<compile_context>
chip_gen: v7x
topology: tpu7x:2x2x1
jax: 0.10.0
libtpu: 0.0.40
codegen_flags: <defaults>
</compile_context>

<pallas_src>
import functools

import jax
import jax.numpy as jnp
from jax.experimental import pallas as pl
from jax.experimental.pallas import tpu as pltpu


# ------------------------------------------------------------------ utils ---
def _round_up(x, m):
    return (x + m - 1) // m * m


# ----------------------------------------------------------- Pallas kernel ---
def _fused_conv_bn_act_kernel(p_ref, w_ref, sc_ref, sh_ref, o_ref,
                              *, use_bn, eps, n_valid_rows, n_rows):
    """One output tile: patches @ W -> BN(batch stats)+ReLU  or  +bias -> Tanh.

    Full contraction dim is resident (single matmul), so there is no
    accumulator scratch and no init/finalize predication.
    """
    # bf16 x bf16 on the MXU, f32 accumulation.
    y = jnp.dot(p_ref[...], w_ref[...], preferred_element_type=jnp.float32)

    if use_bn:
        # BatchNorm2d (training mode): biased batch stats over N*H*W per
        # output channel.  Two-pass (mean, then centered variance) on the
        # resident block — no cancellation issues, no extra HBM traffic.
        inv_n = 1.0 / float(n_valid_rows)
        if n_valid_rows == n_rows:              # no padded rows -> no mask
            mean = jnp.sum(y, axis=0, keepdims=True) * inv_n
            d = y - mean
        else:
            row_ids = jax.lax.broadcasted_iota(jnp.int32, y.shape, 0)
            valid = row_ids < n_valid_rows
            mean = jnp.sum(jnp.where(valid, y, 0.0), axis=0,
                           keepdims=True) * inv_n
            d = jnp.where(valid, y - mean, 0.0)
        var = jnp.sum(d * d, axis=0, keepdims=True) * inv_n
        y = (y - mean) * jax.lax.rsqrt(var + eps) * sc_ref[...] + sh_ref[...]
        y = jnp.maximum(y, 0.0)                 # ReLU
    else:
        y = jnp.tanh(y + sh_ref[...])           # conv bias + Tanh (last layer)
    o_ref[...] = y.astype(o_ref.dtype)


def fused_conv_bn_act(patches, w_pad, scale, shift, *, cout, use_bn,
                      out_dtype, eps=1e-5):
    """patches: (R, K) bf16, w_pad: (Kp, Cp) bf16 -> (R, cout) out_dtype."""
    R, K = patches.shape
    Kp, Cp = w_pad.shape
    Rp = _round_up(R, 8)

    if Rp != R or Kp != K:
        patches = jnp.pad(patches, ((0, Rp - R), (0, Kp - K)))

    # Cout tile: 256 feeds the full v6e/v7x MXU width; keep nj >= 2 whenever
    # Cp >= 256 so the "parallel" axis has work for both v7x TensorCores.
    # (Cp is always a multiple of 128 here.)
    if Cp >= 512:
        tn = 256
    else:
        tn = 128
    nj = Cp // tn

    kernel = functools.partial(_fused_conv_bn_act_kernel,
                               use_bn=use_bn, eps=eps,
                               n_valid_rows=R, n_rows=Rp)
    out = pl.pallas_call(
        kernel,
        out_shape=jax.ShapeDtypeStruct((Rp, Cp), out_dtype),
        grid_spec=pltpu.PrefetchScalarGridSpec(
            num_scalar_prefetch=0,
            grid=(nj,),
            in_specs=[
                # Patches: full (Rp, Kp) block, constant index -> stays
                # resident across the Cout axis (no re-DMA per tile).
                pl.BlockSpec((Rp, Kp), lambda j: (0, 0)),
                pl.BlockSpec((Kp, tn), lambda j: (0, j)),   # weight column slab
                pl.BlockSpec((1, tn), lambda j: (0, j)),    # scale (gamma)
                pl.BlockSpec((1, tn), lambda j: (0, j)),    # shift (beta/bias)
            ],
            out_specs=pl.BlockSpec((Rp, tn), lambda j: (0, j))),
        compiler_params=pltpu.CompilerParams(
            dimension_semantics=("parallel",),
            # Working set (patches + double-buffered weight slab + out) is
            # ~6 MB at this geometry; 32 MiB leaves ample headroom and is
            # portable to v7x's 64 MiB/TC as well as v5e/v6e's 128 MiB.
            vmem_limit_bytes=32 * 1024 * 1024),
    )(patches, w_pad, scale, shift)
    return out[:R, :cout]


# --------------------------------------------------------------- JAX glue ---
def im2col_nhwc(x, k, s, p):
    """x: (N, H, W, C) -> (N*Ho*Wo, k*k*C), feature order (kh, kw, c)."""
    N, H, W, C = x.shape
    if p > 0:
        x = jnp.pad(x, ((0, 0), (p, p), (p, p), (0, 0)))
    Hp, Wp = H + 2 * p, W + 2 * p
    Ho = (Hp - k) // s + 1
    Wo = (Wp - k) // s + 1
    slabs = []
    for i in range(k):
        for j in range(k):
            slabs.append(x[:, i:i + (Ho - 1) * s + 1:s,
                            j:j + (Wo - 1) * s + 1:s, :])
    col = jnp.stack(slabs, axis=3)                 # (N, Ho, Wo, k*k, C)
    return col.reshape(N * Ho * Wo, k * k * C), Ho, Wo


# (kernel, stride, pad, use_batchnorm) for the 4 conv layers of Encoder
_LAYER_CFG = [(4, 4, 1, True), (4, 2, 1, True), (4, 2, 1, True), (3, 2, 0, False)]


def init_encoder_params(key, nc=3, ld=100):
    specs = [(nc, 128, 4), (128, 256, 4), (256, 512, 4), (512, ld, 3)]
    params = []
    for cin, cout, k in specs:
        key, kw, kb, kg, kbe = jax.random.split(key, 5)
        w = jax.random.normal(kw, (cout, cin, k, k), jnp.float32) * 0.05
        b = jax.random.normal(kb, (cout,), jnp.float32) * 0.01
        gamma = 1.0 + 0.1 * jax.random.normal(kg, (cout,), jnp.float32)
        beta = 0.1 * jax.random.normal(kbe, (cout,), jnp.float32)
        params.append((w, b, gamma, beta))
    return params


def prepare_encoder_params(params):
    """One-time layout work: (kh,kw,cin)xCout bf16 weights, padded epilogue rows."""
    meta, arrays = [], []
    for (k, s, p, use_bn), (w, b, gamma, beta) in zip(_LAYER_CFG, params):
        cout, cin = int(w.shape[0]), int(w.shape[1])
        K = cin * k * k
        Kp = _round_up(K, 128)
        Cp = _round_up(cout, 128)
        w2d = jnp.transpose(w, (2, 3, 1, 0)).reshape(K, cout)    # (kh,kw,cin) x cout
        w_pad = jnp.pad(w2d.astype(jnp.bfloat16), ((0, Kp - K), (0, Cp - cout)))
        if use_bn:
            scale, shift = gamma, beta          # conv bias cancels under BN
        else:
            scale, shift = jnp.ones((cout,), jnp.float32), b
        sc = jnp.pad(scale.astype(jnp.float32)[None, :], ((0, 0), (0, Cp - cout)))
        sh = jnp.pad(shift.astype(jnp.float32)[None, :], ((0, 0), (0, Cp - cout)))
        meta.append((k, s, p, use_bn, cout))
        arrays.append((w_pad, sc, sh))
    return tuple(meta), tuple(arrays)


def make_encoder_fn(layer_meta):
    """Returns a jitted x (NCHW) -> (N, ld, H', W') forward using the kernels."""
    n_layers = len(layer_meta)

    def fwd(x, layer_arrays):
        N = x.shape[0]
        h = jnp.transpose(x, (0, 2, 3, 1)).astype(jnp.bfloat16)   # NHWC bf16
        for li, ((k, s, p, use_bn, cout), (w_pad, sc, sh)) in enumerate(
                zip(layer_meta, layer_arrays)):
            # TODO(synk): patch extraction is still XLA glue; folding it into
            #             the kernel needs strided VMEM reads (deferred).
            col, Ho, Wo = im2col_nhwc(h, k, s, p)
            is_last = li == n_layers - 1
            out = fused_conv_bn_act(
                col, w_pad, sc, sh, cout=cout, use_bn=use_bn,
                out_dtype=jnp.float32 if is_last else jnp.bfloat16)
            h = out.reshape(N, Ho, Wo, cout)                      # stays NHWC
        return jnp.transpose(h, (0, 3, 1, 2))                     # final NCHW

    return jax.jit(fwd)


# ------------------------------------------------- pure-JAX reference check ---
def encoder_reference(x, params):
    """Mixed-precision reference: bf16 conv operands, f32 accumulation/epilogue
    (matches the kernel's numerics; the module math is otherwise identical)."""
    h = x
    for (k, s, p, use_bn), (w, b, g, be) in zip(_LAYER_CFG, params):
        h = jax.lax.conv_general_dilated(
            h.astype(jnp.bfloat16), w.astype(jnp.bfloat16), (s, s),
            [(p, p), (p, p)],
            dimension_numbers=('NCHW', 'OIHW', 'NCHW'),
            preferred_element_type=jnp.float32)
        h = h + b[None, :, None, None]
        if use_bn:
            mean = jnp.mean(h, axis=(0, 2, 3), keepdims=True)
            var = jnp.mean((h - mean) ** 2, axis=(0, 2, 3), keepdims=True)
            h = (h - mean) * jax.lax.rsqrt(var + 1e-5) \
                * g[None, :, None, None] + be[None, :, None, None]
            h = jnp.maximum(h, 0.0)
        else:
            h = jnp.tanh(h)
    return h


# ------------------------------------------------------------------- main ---
if __name__ == "__main__":
    key = jax.random.PRNGKey(0)
    kp, kx = jax.random.split(key)

    # Encoder geometry (4/4/1 -> 4/2/1 -> 4/2/1 -> 3/2/0) needs H, W >= ~46.
    N, NC, H, W, LD = 2, 3, 64, 64, 100
    x = jax.random.normal(kx, (N, NC, H, W), jnp.float32)
    params = init_encoder_params(kp, nc=NC, ld=LD)

    meta, arrays = prepare_encoder_params(params)
    encoder = make_encoder_fn(meta)

    out = jax.block_until_ready(encoder(x, arrays))
    assert out.shape == (N, LD, 1, 1), out.shape

    ref = jax.block_until_ready(encoder_reference(x, params))
    max_err = float(jnp.max(jnp.abs(out - ref)))
    assert jnp.allclose(out, ref, atol=2e-2, rtol=2e-2), max_err

    print("KERNEL_OK")
</pallas_src>

<mosaic_0001>
module attributes {stable_mosaic.version = 11 : i64} {
  func.func @_fused_conv_bn_act_kernel(%arg0: i32, %arg1: memref<512x128xbf16, #tpu.memory_space<vmem>>, %arg2: memref<128x128xbf16, #tpu.memory_space<vmem>>, %arg3: memref<1x128xf32, #tpu.memory_space<vmem>>, %arg4: memref<1x128xf32, #tpu.memory_space<vmem>>, %arg5: memref<512x128xbf16, #tpu.memory_space<vmem>>) attributes {dimension_semantics = [#tpu.dimension_semantics<parallel>], iteration_bounds = array<i64: 1>, scalar_prefetch = 0 : i64, scratch_operands = 0 : i64, tpu.core_type = #tpu.core_type<tc>, window_params = [{pipeline_mode = #tpu.pipeline_mode<synchronous>, transform_indices = @transform_0, window_bounds = array<i64: 512, 128>}, {transform_indices = @transform_1, window_bounds = array<i64: 128, 128>}, {transform_indices = @transform_2, window_bounds = array<i64: 1, 128>}, {transform_indices = @transform_3, window_bounds = array<i64: 1, 128>}, {transform_indices = @transform_4, window_bounds = array<i64: 512, 128>}]} {
    %c0 = arith.constant 0 : index
    %c0_0 = arith.constant 0 : index
    %0 = vector.load %arg1[%c0, %c0_0] : memref<512x128xbf16, #tpu.memory_space<vmem>>, vector<512x128xbf16>
    %c0_1 = arith.constant 0 : index
    %c0_2 = arith.constant 0 : index
    %1 = vector.load %arg2[%c0_1, %c0_2] : memref<128x128xbf16, #tpu.memory_space<vmem>>, vector<128x128xbf16>
    %cst = arith.constant dense<0.000000e+00> : vector<512x128xf32>
    %2 = tpu.matmul %0, %1, %cst {dimension_numbers = #tpu.dot_dimension_numbers<[1], [0], [0], [1], [0, 0, 1, 1], [], []>} : vector<512x128xbf16>, vector<128x128xbf16>, vector<512x128xf32> -> vector<512x128xf32>
    %cst_3 = arith.constant dense<0.000000e+00> : vector<128xf32>
    %3 = vector.multi_reduction <add>, %2, %cst_3 [0] : vector<512x128xf32> to vector<128xf32>
    %4 = vector.shape_cast %3 : vector<128xf32> to vector<1x128xf32>
    %cst_4 = arith.constant 0.001953125 : f32
    %5 = vector.broadcast %cst_4 : f32 to vector<1x128xf32>
    %6 = arith.mulf %4, %5 : vector<1x128xf32>
    %7 = vector.broadcast %6 : vector<1x128xf32> to vector<512x128xf32>
    %8 = arith.subf %2, %7 : vector<512x128xf32>
    %9 = arith.mulf %8, %8 : vector<512x128xf32>
    %cst_5 = arith.constant dense<0.000000e+00> : vector<128xf32>
    %10 = vector.multi_reduction <add>, %9, %cst_5 [0] : vector<512x128xf32> to vector<128xf32>
    %11 = vector.shape_cast %10 : vector<128xf32> to vector<1x128xf32>
    %cst_6 = arith.constant 0.001953125 : f32
    %12 = vector.broadcast %cst_6 : f32 to vector<1x128xf32>
    %13 = arith.mulf %11, %12 : vector<1x128xf32>
    %14 = vector.broadcast %6 : vector<1x128xf32> to vector<512x128xf32>
    %15 = arith.subf %2, %14 : vector<512x128xf32>
    %cst_7 = arith.constant 9.99999974E-6 : f32
    %16 = vector.broadcast %cst_7 : f32 to vector<1x128xf32>
    %17 = arith.addf %13, %16 : vector<1x128xf32>
    %18 = math.rsqrt %17 : vector<1x128xf32>
    %19 = vector.broadcast %18 : vector<1x128xf32> to vector<512x128xf32>
    %20 = arith.mulf %15, %19 : vector<512x128xf32>
    %c0_8 = arith.constant 0 : index
    %c0_9 = arith.constant 0 : index
    %21 = vector.load %arg3[%c0_8, %c0_9] : memref<1x128xf32, #tpu.memory_space<vmem>>, vector<1x128xf32>
    %22 = vector.broadcast %21 : vector<1x128xf32> to vector<512x128xf32>
    %23 = arith.mulf %20, %22 : vector<512x128xf32>
    %c0_10 = arith.constant 0 : index
    %c0_11 = arith.constant 0 : index
    %24 = vector.load %arg4[%c0_10, %c0_11] : memref<1x128xf32, #tpu.memory_space<vmem>>, vector<1x128xf32>
    %25 = vector.broadcast %24 : vector<1x128xf32> to vector<512x128xf32>
    %26 = arith.addf %23, %25 : vector<512x128xf32>
    %cst_12 = arith.constant 0.000000e+00 : f32
    %27 = vector.broadcast %cst_12 : f32 to vector<512x128xf32>
    %28 = arith.maximumf %26, %27 : vector<512x128xf32>
    %29 = arith.truncf %28 : vector<512x128xf32> to vector<512x128xbf16>
    %c0_13 = arith.constant 0 : index
    %c0_14 = arith.constant 0 : index
    %30 = vector.load %arg5[%c0_13, %c0_14] : memref<512x128xbf16, #tpu.memory_space<vmem>>, vector<512x128xbf16>
    tpu.vector_store %arg5[%c0_13, %c0_14], %29 {strides = array<i32>} : memref<512x128xbf16, #tpu.memory_space<vmem>>, vector<512x128xbf16>,
    return
  }
  func.func @transform_0(%arg0: i32) -> (i32, i32) {
    %c0_i32 = arith.constant 0 : i32
    %c0_i32_0 = arith.constant 0 : i32
    %c0_i32_1 = arith.constant 0 : i32
    return %c0_i32, %c0_i32_0 : i32, i32
  }
  func.func @transform_1(%arg0: i32) -> (i32, i32) {
    %c0_i32 = arith.constant 0 : i32
    %c0_i32_0 = arith.constant 0 : i32
    return %c0_i32, %arg0 : i32, i32
  }
  func.func @transform_2(%arg0: i32) -> (i32, i32) {
    %c0_i32 = arith.constant 0 : i32
    %c0_i32_0 = arith.constant 0 : i32
    return %c0_i32, %arg0 : i32, i32
  }
  func.func @transform_3(%arg0: i32) -> (i32, i32) {
    %c0_i32 = arith.constant 0 : i32
    %c0_i32_0 = arith.constant 0 : i32
    return %c0_i32, %arg0 : i32, i32
  }
  func.func @transform_4(%arg0: i32) -> (i32, i32) {
    %c0_i32 = arith.constant 0 : i32
    %c0_i32_0 = arith.constant 0 : i32
    return %c0_i32, %arg0 : i32, i32
  }
}

module attributes {stable_mosaic.version = 11 : i64} {
  func.func @_fused_conv_bn_act_kernel(%arg0: i32, %arg1: memref<128x2048xbf16, #tpu.memory_space<vmem>>, %arg2: memref<2048x128xbf16, #tpu.memory_space<vmem>>, %arg3: memref<1x128xf32, #tpu.memory_space<vmem>>, %arg4: memref<1x128xf32, #tpu.memory_space<vmem>>, %arg5: memref<128x128xbf16, #tpu.memory_space<vmem>>) attributes {dimension_semantics = [#tpu.dimension_semantics<parallel>], iteration_bounds = array<i64: 2>, scalar_prefetch = 0 : i64, scratch_operands = 0 : i64, tpu.core_type = #tpu.core_type<tc>, window_params = [{pipeline_mode = #tpu.pipeline_mode<synchronous>, transform_indices = @transform_0, window_bounds = array<i64: 128, 2048>}, {transform_indices = @transform_1, window_bounds = array<i64: 2048, 128>}, {transform_indices = @transform_2, window_bounds = array<i64: 1, 128>}, {transform_indices = @transform_3, window_bounds = array<i64: 1, 128>}, {transform_indices = @transform_4, window_bounds = array<i64: 128, 128>}]} {
    %c0 = arith.constant 0 : index
    %c0_0 = arith.constant 0 : index
    %0 = vector.load %arg1[%c0, %c0_0] : memref<128x2048xbf16, #tpu.memory_space<vmem>>, vector<128x2048xbf16>
    %c0_1 = arith.constant 0 : index
    %c0_2 = arith.constant 0 : index
    %1 = vector.load %arg2[%c0_1, %c0_2] : memref<2048x128xbf16, #tpu.memory_space<vmem>>, vector<2048x128xbf16>
    %cst = arith.constant dense<0.000000e+00> : vector<128x128xf32>
    %2 = tpu.matmul %0, %1, %cst {dimension_numbers = #tpu.dot_dimension_numbers<[1], [0], [0], [1], [0, 0, 1, 1], [], []>} : vector<128x2048xbf16>, vector<2048x128xbf16>, vector<128x128xf32> -> vector<128x128xf32>
    %cst_3 = arith.constant dense<0.000000e+00> : vector<128xf32>
    %3 = vector.multi_reduction <add>, %2, %cst_3 [0] : vector<128x128xf32> to vector<128xf32>
    %4 = vector.shape_cast %3 : vector<128xf32> to vector<1x128xf32>
    %cst_4 = arith.constant 7.812500e-03 : f32
    %5 = vector.broadcast %cst_4 : f32 to vector<1x128xf32>
    %6 = arith.mulf %4, %5 : vector<1x128xf32>
    %7 = vector.broadcast %6 : vector<1x128xf32> to vector<128x128xf32>
    %8 = arith.subf %2, %7 : vector<128x128xf32>
    %9 = arith.mulf %8, %8 : vector<128x128xf32>
    %cst_5 = arith.constant dense<0.000000e+00> : vector<128xf32>
    %10 = vector.multi_reduction <add>, %9, %cst_5 [0] : vector<128x128xf32> to vector<128xf32>
    %11 = vector.shape_cast %10 : vector<128xf32> to vector<1x128xf32>
    %cst_6 = arith.constant 7.812500e-03 : f32
    %12 = vector.broadcast %cst_6 : f32 to vector<1x128xf32>
    %13 = arith.mulf %11, %12 : vector<1x128xf32>
    %14 = vector.broadcast %6 : vector<1x128xf32> to vector<128x128xf32>
    %15 = arith.subf %2, %14 : vector<128x128xf32>
    %cst_7 = arith.constant 9.99999974E-6 : f32
    %16 = vector.broadcast %cst_7 : f32 to vector<1x128xf32>
    %17 = arith.addf %13, %16 : vector<1x128xf32>
    %18 = math.rsqrt %17 : vector<1x128xf32>
    %19 = vector.broadcast %18 : vector<1x128xf32> to vector<128x128xf32>
    %20 = arith.mulf %15, %19 : vector<128x128xf32>
    %c0_8 = arith.constant 0 : index
    %c0_9 = arith.constant 0 : index
    %21 = vector.load %arg3[%c0_8, %c0_9] : memref<1x128xf32, #tpu.memory_space<vmem>>, vector<1x128xf32>
    %22 = vector.broadcast %21 : vector<1x128xf32> to vector<128x128xf32>
    %23 = arith.mulf %20, %22 : vector<128x128xf32>
    %c0_10 = arith.constant 0 : index
    %c0_11 = arith.constant 0 : index
    %24 = vector.load %arg4[%c0_10, %c0_11] : memref<1x128xf32, #tpu.memory_space<vmem>>, vector<1x128xf32>
    %25 = vector.broadcast %24 : vector<1x128xf32> to vector<128x128xf32>
    %26 = arith.addf %23, %25 : vector<128x128xf32>
    %cst_12 = arith.constant 0.000000e+00 : f32
    %27 = vector.broadcast %cst_12 : f32 to vector<128x128xf32>
    %28 = arith.maximumf %26, %27 : vector<128x128xf32>
    %29 = arith.truncf %28 : vector<128x128xf32> to vector<128x128xbf16>
    %c0_13 = arith.constant 0 : index
    %c0_14 = arith.constant 0 : index
    %30 = vector.load %arg5[%c0_13, %c0_14] : memref<128x128xbf16, #tpu.memory_space<vmem>>, vector<128x128xbf16>
    tpu.vector_store %arg5[%c0_13, %c0_14], %29 {strides = array<i32>} : memref<128x128xbf16, #tpu.memory_space<vmem>>, vector<128x128xbf16>,
    return
  }
  func.func @transform_0(%arg0: i32) -> (i32, i32) {
    %c0_i32 = arith.constant 0 : i32
    %c0_i32_0 = arith.constant 0 : i32
    %c0_i32_1 = arith.constant 0 : i32
    return %c0_i32, %c0_i32_0 : i32, i32
  }
  func.func @transform_1(%arg0: i32) -> (i32, i32) {
    %c0_i32 = arith.constant 0 : i32
    %c0_i32_0 = arith.constant 0 : i32
    return %c0_i32, %arg0 : i32, i32
  }
  func.func @transform_2(%arg0: i32) -> (i32, i32) {
    %c0_i32 = arith.constant 0 : i32
    %c0_i32_0 = arith.constant 0 : i32
    return %c0_i32, %arg0 : i32, i32
  }
  func.func @transform_3(%arg0: i32) -> (i32, i32) {
    %c0_i32 = arith.constant 0 : i32
    %c0_i32_0 = arith.constant 0 : i32
    return %c0_i32, %arg0 : i32, i32
  }
  func.func @transform_4(%arg0: i32) -> (i32, i32) {
    %c0_i32 = arith.constant 0 : i32
    %c0_i32_0 = arith.constant 0 : i32
    return %c0_i32, %arg0 : i32, i32
  }
}

module attributes {stable_mosaic.version = 11 : i64} {
  func.func @_fused_conv_bn_act_kernel(%arg0: i32, %arg1: memref<32x4096xbf16, #tpu.memory_space<vmem>>, %arg2: memref<4096x256xbf16, #tpu.memory_space<vmem>>, %arg3: memref<1x256xf32, #tpu.memory_space<vmem>>, %arg4: memref<1x256xf32, #tpu.memory_space<vmem>>, %arg5: memref<32x256xbf16, #tpu.memory_space<vmem>>) attributes {dimension_semantics = [#tpu.dimension_semantics<parallel>], iteration_bounds = array<i64: 2>, scalar_prefetch = 0 : i64, scratch_operands = 0 : i64, tpu.core_type = #tpu.core_type<tc>, window_params = [{pipeline_mode = #tpu.pipeline_mode<synchronous>, transform_indices = @transform_0, window_bounds = array<i64: 32, 4096>}, {transform_indices = @transform_1, window_bounds = array<i64: 4096, 256>}, {transform_indices = @transform_2, window_bounds = array<i64: 1, 256>}, {transform_indices = @transform_3, window_bounds = array<i64: 1, 256>}, {transform_indices = @transform_4, window_bounds = array<i64: 32, 256>}]} {
    %c0 = arith.constant 0 : index
    %c0_0 = arith.constant 0 : index
    %0 = vector.load %arg1[%c0, %c0_0] : memref<32x4096xbf16, #tpu.memory_space<vmem>>, vector<32x4096xbf16>
    %c0_1 = arith.constant 0 : index
    %c0_2 = arith.constant 0 : index
    %1 = vector.load %arg2[%c0_1, %c0_2] : memref<4096x256xbf16, #tpu.memory_space<vmem>>, vector<4096x256xbf16>
    %cst = arith.constant dense<0.000000e+00> : vector<32x256xf32>
    %2 = tpu.matmul %0, %1, %cst {dimension_numbers = #tpu.dot_dimension_numbers<[1], [0], [0], [1], [0, 0, 1, 1], [], []>} : vector<32x4096xbf16>, vector<4096x256xbf16>, vector<32x256xf32> -> vector<32x256xf32>
    %cst_3 = arith.constant dense<0.000000e+00> : vector<256xf32>
    %3 = vector.multi_reduction <add>, %2, %cst_3 [0] : vector<32x256xf32> to vector<256xf32>
    %4 = vector.shape_cast %3 : vector<256xf32> to vector<1x256xf32>
    %cst_4 = arith.constant 3.125000e-02 : f32
    %5 = vector.broadcast %cst_4 : f32 to vector<1x256xf32>
    %6 = arith.mulf %4, %5 : vector<1x256xf32>
    %7 = vector.broadcast %6 : vector<1x256xf32> to vector<32x256xf32>
    %8 = arith.subf %2, %7 : vector<32x256xf32>
    %9 = arith.mulf %8, %8 : vector<32x256xf32>
    %cst_5 = arith.constant dense<0.000000e+00> : vector<256xf32>
    %10 = vector.multi_reduction <add>, %9, %cst_5 [0] : vector<32x256xf32> to vector<256xf32>
    %11 = vector.shape_cast %10 : vector<256xf32> to vector<1x256xf32>
    %cst_6 = arith.constant 3.125000e-02 : f32
    %12 = vector.broadcast %cst_6 : f32 to vector<1x256xf32>
    %13 = arith.mulf %11, %12 : vector<1x256xf32>
    %14 = vector.broadcast %6 : vector<1x256xf32> to vector<32x256xf32>
    %15 = arith.subf %2, %14 : vector<32x256xf32>
    %cst_7 = arith.constant 9.99999974E-6 : f32
    %16 = vector.broadcast %cst_7 : f32 to vector<1x256xf32>
    %17 = arith.addf %13, %16 : vector<1x256xf32>
    %18 = math.rsqrt %17 : vector<1x256xf32>
    %19 = vector.broadcast %18 : vector<1x256xf32> to vector<32x256xf32>
    %20 = arith.mulf %15, %19 : vector<32x256xf32>
    %c0_8 = arith.constant 0 : index
    %c0_9 = arith.constant 0 : index
    %21 = vector.load %arg3[%c0_8, %c0_9] : memref<1x256xf32, #tpu.memory_space<vmem>>, vector<1x256xf32>
    %22 = vector.broadcast %21 : vector<1x256xf32> to vector<32x256xf32>
    %23 = arith.mulf %20, %22 : vector<32x256xf32>
    %c0_10 = arith.constant 0 : index
    %c0_11 = arith.constant 0 : index
    %24 = vector.load %arg4[%c0_10, %c0_11] : memref<1x256xf32, #tpu.memory_space<vmem>>, vector<1x256xf32>
    %25 = vector.broadcast %24 : vector<1x256xf32> to vector<32x256xf32>
    %26 = arith.addf %23, %25 : vector<32x256xf32>
    %cst_12 = arith.constant 0.000000e+00 : f32
    %27 = vector.broadcast %cst_12 : f32 to vector<32x256xf32>
    %28 = arith.maximumf %26, %27 : vector<32x256xf32>
    %29 = arith.truncf %28 : vector<32x256xf32> to vector<32x256xbf16>
    %c0_13 = arith.constant 0 : index
    %c0_14 = arith.constant 0 : index
    %30 = vector.load %arg5[%c0_13, %c0_14] : memref<32x256xbf16, #tpu.memory_space<vmem>>, vector<32x256xbf16>
    tpu.vector_store %arg5[%c0_13, %c0_14], %29 {strides = array<i32>} : memref<32x256xbf16, #tpu.memory_space<vmem>>, vector<32x256xbf16>,
    return
  }
  func.func @transform_0(%arg0: i32) -> (i32, i32) {
    %c0_i32 = arith.constant 0 : i32
    %c0_i32_0 = arith.constant 0 : i32
    %c0_i32_1 = arith.constant 0 : i32
    return %c0_i32, %c0_i32_0 : i32, i32
  }
  func.func @transform_1(%arg0: i32) -> (i32, i32) {
    %c0_i32 = arith.constant 0 : i32
    %c0_i32_0 = arith.constant 0 : i32
    return %c0_i32, %arg0 : i32, i32
  }
  func.func @transform_2(%arg0: i32) -> (i32, i32) {
    %c0_i32 = arith.constant 0 : i32
    %c0_i32_0 = arith.constant 0 : i32
    return %c0_i32, %arg0 : i32, i32
  }
  func.func @transform_3(%arg0: i32) -> (i32, i32) {
    %c0_i32 = arith.constant 0 : i32
    %c0_i32_0 = arith.constant 0 : i32
    return %c0_i32, %arg0 : i32, i32
  }
  func.func @transform_4(%arg0: i32) -> (i32, i32) {
    %c0_i32 = arith.constant 0 : i32
    %c0_i32_0 = arith.constant 0 : i32
    return %c0_i32, %arg0 : i32, i32
  }
}

module attributes {stable_mosaic.version = 11 : i64} {
  func.func @_fused_conv_bn_act_kernel(%arg0: i32, %arg1: memref<8x4608xbf16, #tpu.memory_space<vmem>>, %arg2: memref<4608x128xbf16, #tpu.memory_space<vmem>>, %arg3: memref<1x128xf32, #tpu.memory_space<vmem>>, %arg4: memref<1x128xf32, #tpu.memory_space<vmem>>, %arg5: memref<8x128xf32, #tpu.memory_space<vmem>>) attributes {dimension_semantics = [#tpu.dimension_semantics<parallel>], iteration_bounds = array<i64: 1>, scalar_prefetch = 0 : i64, scratch_operands = 0 : i64, tpu.core_type = #tpu.core_type<tc>, window_params = [{pipeline_mode = #tpu.pipeline_mode<synchronous>, transform_indices = @transform_0, window_bounds = array<i64: 8, 4608>}, {transform_indices = @transform_1, window_bounds = array<i64: 4608, 128>}, {transform_indices = @transform_2, window_bounds = array<i64: 1, 128>}, {transform_indices = @transform_3, window_bounds = array<i64: 1, 128>}, {transform_indices = @transform_4, window_bounds = array<i64: 8, 128>}]} {
    %c0 = arith.constant 0 : index
    %c0_0 = arith.constant 0 : index
    %0 = vector.load %arg1[%c0, %c0_0] : memref<8x4608xbf16, #tpu.memory_space<vmem>>, vector<8x4608xbf16>
    %c0_1 = arith.constant 0 : index
    %c0_2 = arith.constant 0 : index
    %1 = vector.load %arg2[%c0_1, %c0_2] : memref<4608x128xbf16, #tpu.memory_space<vmem>>, vector<4608x128xbf16>
    %cst = arith.constant dense<0.000000e+00> : vector<8x128xf32>
    %2 = tpu.matmul %0, %1, %cst {dimension_numbers = #tpu.dot_dimension_numbers<[1], [0], [0], [1], [0, 0, 1, 1], [], []>} : vector<8x4608xbf16>, vector<4608x128xbf16>, vector<8x128xf32> -> vector<8x128xf32>
    %c0_3 = arith.constant 0 : index
    %c0_4 = arith.constant 0 : index
    %3 = vector.load %arg4[%c0_3, %c0_4] : memref<1x128xf32, #tpu.memory_space<vmem>>, vector<1x128xf32>
    %4 = vector.broadcast %3 : vector<1x128xf32> to vector<8x128xf32>
    %5 = arith.addf %2, %4 : vector<8x128xf32>
    %6 = math.tanh %5 : vector<8x128xf32>
    %c0_5 = arith.constant 0 : index
    %c0_6 = arith.constant 0 : index
    %7 = vector.load %arg5[%c0_5, %c0_6] : memref<8x128xf32, #tpu.memory_space<vmem>>, vector<8x128xf32>
    tpu.vector_store %arg5[%c0_5, %c0_6], %6 {strides = array<i32>} : memref<8x128xf32, #tpu.memory_space<vmem>>, vector<8x128xf32>,
    return
  }
  func.func @transform_0(%arg0: i32) -> (i32, i32) {
    %c0_i32 = arith.constant 0 : i32
    %c0_i32_0 = arith.constant 0 : i32
    %c0_i32_1 = arith.constant 0 : i32
    return %c0_i32, %c0_i32_0 : i32, i32
  }
  func.func @transform_1(%arg0: i32) -> (i32, i32) {
    %c0_i32 = arith.constant 0 : i32
    %c0_i32_0 = arith.constant 0 : i32
    return %c0_i32, %arg0 : i32, i32
  }
  func.func @transform_2(%arg0: i32) -> (i32, i32) {
    %c0_i32 = arith.constant 0 : i32
    %c0_i32_0 = arith.constant 0 : i32
    return %c0_i32, %arg0 : i32, i32
  }
  func.func @transform_3(%arg0: i32) -> (i32, i32) {
    %c0_i32 = arith.constant 0 : i32
    %c0_i32_0 = arith.constant 0 : i32
    return %c0_i32, %arg0 : i32, i32
  }
  func.func @transform_4(%arg0: i32) -> (i32, i32) {
    %c0_i32 = arith.constant 0 : i32
    %c0_i32_0 = arith.constant 0 : i32
    return %c0_i32, %arg0 : i32, i32
  }
}

</mosaic_0001>

<bundles_post_ra>
// kernel: fwd.4
= control target key start
LH: loop header
LB: loop body
LE: loop exit
PB: predicated region body
PF: predicated region fallthrough
CT: control target
= control target key end

     0   :  { %9 = vsyncpa [#allocation3], 0  ;;  %s3831_s0 = inlined_call_operand.vmem [shape: bf16[512,128], index: 0, kind: input, shape index: {}]   ;;  %s3832_s1 = inlined_call_operand.hbm [shape: bf16[128,128], index: 1, kind: input, shape index: {}]   ;;  %s3833_s2 = inlined_call_operand.hbm [shape: f32[1,128], index: 2, kind: input, shape index: {}]   ;;  %s3834_s3 = inlined_call_operand.hbm [shape: f32[1,128], index: 3, kind: input, shape index: {}]   ;;  %s3835_s4 = inlined_call_operand.vmem [shape: bf16[512,128], index: 4, kind: output, shape index: {}]  }
   0x1   :  { %10 = vsyncpa [#allocation5], 0  ;;  %s2144_s15 = smov [#allocation4]   ;;  %s2145_s17 = smov [#allocation2]  }
   0x2   :  { %s31_s16 = sshll.u32 %s2144_s15, 4  ;;  %s18_s18 = sshll.u32 %s2145_s17, 4  ;;  %s32_s16 = int_to_ptr.vmem [resolvable:$true] %s31_s16  ;;  %s2174_s18 = int_to_ptr.vmem [resolvable:$true] %s18_s18 }
   0x3   :  { %s2074_s21 = scalar_lea.hbm %s3833_s2, 16 }
   0x4   :  { %p2075_p0 = scmp.ne.s32.totalorder %s3833_s2, %s2074_s21  ;;  %p2078_p1 = scmp.lt.u32.totalorder %s2074_s21, %s3833_s2 }
   0x6   :  { %p2080_p2 = pnand %p2078_p1, %p2075_p0 }
   0x8   :  { %2083 = shalt.err (!%p2080_p2)
}
   0x9   :  { %s2084_s26 = scalar_lea.vmem %s32_s16, 16  ;;  %s2088_s27 = scalar_lea.vmem %s32_s16, 32 }
   0xa   :  { %p2085_p3 = scmp.ne.s32.totalorder %s32_s16, %s2084_s26  ;;  %p2089_p4 = scmp.lt.s32.totalorder %s32_s16, %s32_s16 }
   0xb   :  { %p2090_p5 = scmp.lt.s32.totalorder %s2088_s27, %s2084_s26 }
   0xd   :  { %p2091_p6 = por %p2090_p5, %p2089_p4 }
   0xf   :  { %p2092_p7 = pnand %p2091_p6, %p2085_p3 }
  0x11   :  { %2095 = shalt.err (!%p2092_p7)
}
  0x12   :  { %34 = dma.hbm_to_vmem [thread:$0]  %s3833_s2, 16, %s32_s16, [#allocation5]  }
  0x13   :  { %s2096_s6 = scalar_lea.hbm %s3832_s1, 1024 }
  0x14   :  { %p2097_p8 = scmp.ne.s32.totalorder %s3832_s1, %s2096_s6  ;;  %p2100_p9 = scmp.lt.u32.totalorder %s2096_s6, %s3832_s1 }
  0x16   :  { %p2102_p10 = pnand %p2100_p9, %p2097_p8 }
  0x18   :  { %2105 = shalt.err (!%p2102_p10)
}
  0x19   :  { %s2106_s11 = scalar_lea.vmem %s2174_s18, 1024  ;;  %p2111_p12 = scmp.lt.s32.totalorder %s2174_s18, %s2174_s18 }
  0x1a   :  { %p2107_p11 = scmp.ne.s32.totalorder %s2174_s18, %s2106_s11  ;;  %p2112_p13 = scmp.lt.s32.totalorder %s2106_s11, %s2106_s11 }
  0x1c   :  { %p2113_p0 = por %p2112_p13, %p2111_p12 }
  0x1e   :  { %p2114_p1 = pnand %p2113_p0, %p2107_p11 }
  0x20   :  { %2117 = shalt.err (!%p2114_p1)
}
  0x21   :  { %s2146_s2 = smov 64   ;;  %s2147_s12 = smov 4  }
  0x22   :  { %24 = dma.hbm_to_vmem [thread:$0]  %s3832_s1, 1024, %s2174_s18, [#allocation3], %s2146_s2, %s2146_s2, %s2147_s12  }
  0x23   :  { %s2148_s15 = smov [#allocation6]   ;;  %s2118_s20 = scalar_lea.hbm %s3834_s3, 16 }
  0x24   :  { %s41_s16 = sshll.u32 %s2148_s15, 4  ;;  %p2119_p2 = scmp.ne.s32.totalorder %s3834_s3, %s2118_s20  ;;  %s42_s16 = int_to_ptr.vmem [resolvable:$true] %s41_s16 }
  0x25   :  { %p2122_p3 = scmp.lt.u32.totalorder %s2118_s20, %s3834_s3 }
  0x27   :  { %p2124_p4 = pnand %p2122_p3, %p2119_p2 }
  0x29   :  { %2127 = shalt.err (!%p2124_p4)
}
  0x2a   :  { %s2128_s25 = scalar_lea.vmem %s42_s16, 16  ;;  %s2132_s1 = scalar_lea.vmem %s42_s16, 32 }
  0x2b   :  { %p2129_p5 = scmp.ne.s32.totalorder %s42_s16, %s2128_s25  ;;  %p2133_p6 = scmp.lt.s32.totalorder %s42_s16, %s42_s16 }
  0x2c   :  { %p2134_p7 = scmp.lt.s32.totalorder %s2132_s1, %s2128_s25 }
  0x2e   :  { %p2135_p8 = por %p2134_p7, %p2133_p6 }
  0x30   :  { %p2136_p9 = pnand %p2135_p8, %p2129_p5 }
  0x32   :  { %2139 = shalt.err (!%p2136_p9)
}
  0x33   :  { %44 = dma.hbm_to_vmem [thread:$0]  %s3834_s3, 16, %s42_s16, [#allocation5]  }
  0x34   :  { %2140 = dma.done.wait [#allocation3], 1024  }
  0x35   :  { %2141 = vsyncadd [#allocation3], 4294966272 }
  0x36   :  { %2142 = dma.done.wait [#allocation5], 32  }
  0x37   :  { %2143 = vsyncadd [#allocation5], 4294967264  ;;  %v2032_v0 = vld [vmem:[#allocation2] sm:$0xff]   ;;  %v2033_v1 = vld [vmem:[#allocation2 + $0x8] sm:$0xff]  }
  0x38   :  { %1931 = vmatprep.subr.bf16.mxu0 %v2032_v0  ;;  %2011 = vmatprep.subr.bf16.mxu1 %v2032_v0  ;;  %v2034_v2 = vld [vmem:[#allocation2 + $0x10] sm:$0xff]   ;;  %v2035_v3 = vld [vmem:[#allocation2 + $0x18] sm:$0xff]   ;;  %v2040_v4 = vld [vmem:[%s3831_s0] sm:$0xff]  }
  0x39   :  { %1932 = vmatpush3.bf16.msra.mxu0 %v2032_v0  ;;  %2019 = vmatpush3.bf16.msra.mxu1 %v2032_v0  ;;  %v2036_v5 = vld [vmem:[#allocation2 + $0x20] sm:$0xff]   ;;  %v2037_v6 = vld [vmem:[#allocation2 + $0x28] sm:$0xff]   ;;  %v2038_v7 = vld [vmem:[#allocation2 + $0x30] sm:$0xff]  }
  0x3a   :  { %1933 = vmatprep.subr.bf16.mxu0 %v2033_v1  ;;  %2012 = vmatprep.subr.bf16.mxu1 %v2033_v1  ;;  %v2039_v8 = vld [vmem:[#allocation2 + $0x38] sm:$0xff]   ;;  %v2056_v9 = vld [vmem:[%s3831_s0 + $0x80] sm:$0xff]   ;;  %v2041_v10 = vld [vmem:[%s3831_s0 + $0x8] sm:$0xff]  }
  0x3b   :  { %1947 = vmatprep.mubr.bf16.mxu0 %v2040_v4  ;;  %1979 = vmatprep.mubr.bf16.mxu1 %v2056_v9  ;;  %v2042_v11 = vld [vmem:[%s3831_s0 + $0x10] sm:$0xff]   ;;  %v2057_v12 = vld [vmem:[%s3831_s0 + $0x88] sm:$0xff]   ;;  %v2043_v14 = vld [vmem:[%s3831_s0 + $0x18] sm:$0xff]  }
  0x3c   :  { %v2058_v13 = vld [vmem:[%s3831_s0 + $0x90] sm:$0xff]   ;;  %v2044_v15 = vld [vmem:[%s3831_s0 + $0x20] sm:$0xff]   ;;  %v2059_v16 = vld [vmem:[%s3831_s0 + $0x98] sm:$0xff]  }
  0x3d   :  { %1934 = vmatpush3.bf16.msra.mxu0 %v2033_v1  ;;  %2020 = vmatpush3.bf16.msra.mxu1 %v2033_v1  ;;  %v2060_v17 = vld [vmem:[%s3831_s0 + $0xa0] sm:$0xff]   ;;  %v2045_v18 = vld [vmem:[%s3831_s0 + $0x28] sm:$0xff]   ;;  %v2046_v20 = vld [vmem:[%s3831_s0 + $0x30] sm:$0xff]  }
  0x3e   :  { %1935 = vmatprep.subr.bf16.mxu0 %v2034_v2  ;;  %2013 = vmatprep.subr.bf16.mxu1 %v2034_v2  ;;  %v2061_v19 = vld [vmem:[%s3831_s0 + $0xa8] sm:$0xff]   ;;  %v2062_v21 = vld [vmem:[%s3831_s0 + $0xb0] sm:$0xff]   ;;  %v2047_v22 = vld [vmem:[%s3831_s0 + $0x38] sm:$0xff]  }
  0x3f   :  { %v2063_v23 = vld [vmem:[%s3831_s0 + $0xb8] sm:$0xff]   ;;  %v2048_v24 = vld [vmem:[%s3831_s0 + $0x40] sm:$0xff]   ;;  %v2049_v26 = vld [vmem:[%s3831_s0 + $0x48] sm:$0xff]  }
  0x40   :  { %v2064_v25 = vld [vmem:[%s3831_s0 + $0xc0] sm:$0xff]   ;;  %v2065_v27 = vld [vmem:[%s3831_s0 + $0xc8] sm:$0xff]   ;;  %v2050_v28 = vld [vmem:[%s3831_s0 + $0x50] sm:$0xff]  }
  0x41   :  { %1936 = vmatpush3.bf16.msra.mxu0 %v2034_v2  ;;  %2021 = vmatpush3.bf16.msra.mxu1 %v2034_v2  ;;  %v2066_v29 = vld [vmem:[%s3831_s0 + $0xd0] sm:$0xff]   ;;  %v2051_v30 = vld [vmem:[%s3831_s0 + $0x58] sm:$0xff]   ;;  %v2052_v32 = vld [vmem:[%s3831_s0 + $0x60] sm:$0xff]  }
  0x42   :  { %1937 = vmatprep.subr.bf16.mxu0 %v2035_v3  ;;  %2014 = vmatprep.subr.bf16.mxu1 %v2035_v3  ;;  %v2067_v31 = vld [vmem:[%s3831_s0 + $0xd8] sm:$0xff]   ;;  %v2068_v33 = vld [vmem:[%s3831_s0 + $0xe0] sm:$0xff]   ;;  %v2053_v34 = vld [vmem:[%s3831_s0 + $0x68] sm:$0xff]  }
  0x43   :  { %v2069_v35 = vld [vmem:[%s3831_s0 + $0xe8] sm:$0xff]   ;;  %v2054_v36 = vld [vmem:[%s3831_s0 + $0x70] sm:$0xff]   ;;  %v2055_v38 = vld [vmem:[%s3831_s0 + $0x78] sm:$0xff]  }
  0x44   :  { %v2070_v37 = vld [vmem:[%s3831_s0 + $0xf0] sm:$0xff]   ;;  %v2071_v39 = vld [vmem:[%s3831_s0 + $0xf8] sm:$0xff]  }
  0x45   :  { %1938 = vmatpush3.bf16.msra.mxu0 %v2035_v3  ;;  %2022 = vmatpush3.bf16.msra.mxu1 %v2035_v3 }
  0x46   :  { %1939 = vmatprep.subr.bf16.mxu0 %v2036_v5  ;;  %2015 = vmatprep.subr.bf16.mxu1 %v2036_v5 }
  0x49   :  { %1940 = vmatpush3.bf16.msra.mxu0 %v2036_v5  ;;  %2023 = vmatpush3.bf16.msra.mxu1 %v2036_v5 }
  0x4a   :  { %1941 = vmatprep.subr.bf16.mxu0 %v2037_v6  ;;  %2016 = vmatprep.subr.bf16.mxu1 %v2037_v6 }
  0x4d   :  { %1942 = vmatpush3.bf16.msra.mxu0 %v2037_v6  ;;  %2024 = vmatpush3.bf16.msra.mxu1 %v2037_v6 }
  0x4e   :  { %1943 = vmatprep.subr.bf16.mxu0 %v2038_v7  ;;  %2017 = vmatprep.subr.bf16.mxu1 %v2038_v7 }
  0x51   :  { %1944 = vmatpush3.bf16.msra.mxu0 %v2038_v7  ;;  %2025 = vmatpush3.bf16.msra.mxu1 %v2038_v7 }
  0x52   :  { %1945 = vmatprep.subr.bf16.mxu0 %v2039_v8  ;;  %2018 = vmatprep.subr.bf16.mxu1 %v2039_v8 }
  0x55   :  { %1946 = vmatpush3.bf16.msra.mxu0 %v2039_v8  ;;  %2026 = vmatpush3.bf16.msra.mxu1 %v2039_v8 }
  0x58   :  { %1948 = vmatmul.mubr.bf16.vlgmr.msra.gmra.mrb[0].mxu0 %v2041_v10  ;;  %1980 = vmatmul.mubr.bf16.vlgmr.msra.gmra.mrb[0].mxu1 %v2057_v12 }
  0x59   :  { %1951 = vmatprep.mubr.bf16.mxu0 %v2042_v11  ;;  %1983 = vmatprep.mubr.bf16.mxu1 %v2058_v13 }
  0x60   :  { %1952 = vmatmul.mubr.bf16.gmra.mrb[4].mxu0 %v2043_v14  ;;  %1984 = vmatmul.mubr.bf16.gmra.mrb[4].mxu1 %v2059_v16 }
  0x61   :  { %1955 = vmatprep.mubr.bf16.mxu0 %v2044_v15  ;;  %1987 = vmatprep.mubr.bf16.mxu1 %v2060_v17 }
  0x68   :  { %1956 = vmatmul.mubr.bf16.gmra.mrb[8].mxu0 %v2045_v18  ;;  %1988 = vmatmul.mubr.bf16.gmra.mrb[8].mxu1 %v2061_v19 }
  0x69   :  { %1959 = vmatprep.mubr.bf16.mxu0 %v2046_v20  ;;  %1991 = vmatprep.mubr.bf16.mxu1 %v2062_v21 }
  0x70   :  { %1960 = vmatmul.mubr.bf16.gmra.mrb[12].mxu0 %v2047_v22  ;;  %1992 = vmatmul.mubr.bf16.gmra.mrb[12].mxu1 %v2063_v23 }
  0x71   :  { %1963 = vmatprep.mubr.bf16.mxu0 %v2048_v24  ;;  %1995 = vmatprep.mubr.bf16.mxu1 %v2064_v25 }
  0x78   :  { %1964 = vmatmul.mubr.bf16.gmra.mrb[16].mxu0 %v2049_v26  ;;  %1996 = vmatmul.mubr.bf16.gmra.mrb[16].mxu1 %v2065_v27 }
  0x79   :  { %1967 = vmatprep.mubr.bf16.mxu0 %v2050_v28  ;;  %1999 = vmatprep.mubr.bf16.mxu1 %v2066_v29 }
  0x80   :  { %1968 = vmatmul.mubr.bf16.gmra.mrb[20].mxu0 %v2051_v30  ;;  %2000 = vmatmul.mubr.bf16.gmra.mrb[20].mxu1 %v2067_v31 }
  0x81   :  { %1971 = vmatprep.mubr.bf16.mxu0 %v2052_v32  ;;  %2003 = vmatprep.mubr.bf16.mxu1 %v2068_v33 }
  0x88   :  { %1972 = vmatmul.mubr.bf16.gmra.mrb[24].mxu0 %v2053_v34  ;;  %2004 = vmatmul.mubr.bf16.gmra.mrb[24].mxu1 %v2069_v35 }
  0x89   :  { %1975 = vmatprep.mubr.bf16.mxu0 %v2054_v36  ;;  %2007 = vmatprep.mubr.bf16.mxu1 %v2070_v37 }
  0x90   :  { %1976 = vmatmul.mubr.bf16.gmra.mrb[28].mxu0 %v2055_v38  ;;  %2008 = vmatmul.mubr.bf16.gmra.mrb[28].mxu1 %v2071_v39 }
 0x12b   :  { %v2313_v40 = vpop.f32.mrb[0].mxu0  ;;  %v2315_v41 = vpop.f32.mrb[0].mxu1 }
 0x12c   :  { %v2317_v42 = vpop.f32.mrb[1].mxu0  ;;  %v2319_v43 = vpop.f32.mrb[1].mxu1 }
 0x12d   :  { %v2321_v44 = vpop.f32.mrb[2].mxu0  ;;  %v2323_v45 = vpop.f32.mrb[2].mxu1 }
 0x12e   :  { %v2325_v46 = vpop.f32.mrb[3].mxu0  ;;  %v2327_v47 = vpop.f32.mrb[3].mxu1 }
 0x12f   :  { %v664_v48 = vadd.f32 %v2325_v46, %v2317_v42 }
 0x131   :  { %v665_v49 = vadd.f32 %v2313_v40, %v664_v48 }
 0x133   :  { %v2332_v50 = vpop.f32.mrb[4].mxu0  ;;  %v666_v51 = vadd.f32 %v2321_v44, %v665_v49  ;;  %v2335_v52 = vpop.f32.mrb[4].mxu1 }
 0x134   :  { %v2337_v53 = vpop.f32.mrb[5].mxu0  ;;  %v2339_v54 = vpop.f32.mrb[5].mxu1 }
 0x135   :  { %v667_v55 = vadd.f32 %v666_v51, %v2337_v53  ;;  %v2342_v56 = vpop.f32.mrb[6].mxu0  ;;  %v2344_v57 = vpop.f32.mrb[6].mxu1 }
 0x136   :  { %v2346_v58 = vpop.f32.mrb[7].mxu0  ;;  %v2348_v59 = vpop.f32.mrb[7].mxu1 }
 0x137   :  { %v668_v60 = vadd.f32 %v667_v55, %v2346_v58 }
 0x139   :  { %v669_v61 = vadd.f32 %v2332_v50, %v668_v60 }
 0x13b   :  { %v2352_v62 = vpop.f32.mrb[8].mxu0  ;;  %v670_v63 = vadd.f32 %v2342_v56, %v669_v61  ;;  %v2355_v0 = vpop.f32.mrb[8].mxu1 }
 0x13c   :  { %v2357_v1 = vpop.f32.mrb[9].mxu0  ;;  %v2359_v2 = vpop.f32.mrb[9].mxu1 }
 0x13d   :  { %v671_v3 = vadd.f32 %v670_v63, %v2357_v1  ;;  %v2362_v4 = vpop.f32.mrb[10].mxu0  ;;  %v2364_v5 = vpop.f32.mrb[10].mxu1 }
 0x13e   :  { %v2366_v6 = vpop.f32.mrb[11].mxu0  ;;  %v2368_v7 = vpop.f32.mrb[11].mxu1 }
 0x13f   :  { %v672_v8 = vadd.f32 %v671_v3, %v2366_v6 }
 0x141   :  { %v673_v9 = vadd.f32 %v2352_v62, %v672_v8 }
 0x143   :  { %v2372_v10 = vpop.f32.mrb[12].mxu0  ;;  %v674_v11 = vadd.f32 %v2362_v4, %v673_v9  ;;  %v2375_v12 = vpop.f32.mrb[12].mxu1 }
 0x144   :  { %v2377_v13 = vpop.f32.mrb[13].mxu0  ;;  %v2379_v14 = vpop.f32.mrb[13].mxu1 }
 0x145   :  { %v675_v15 = vadd.f32 %v674_v11, %v2377_v13  ;;  %v2382_v16 = vpop.f32.mrb[14].mxu0  ;;  %v2384_v17 = vpop.f32.mrb[14].mxu1 }
 0x146   :  { %v2386_v18 = vpop.f32.mrb[15].mxu0  ;;  %v2388_v19 = vpop.f32.mrb[15].mxu1 }
 0x147   :  { %v676_v20 = vadd.f32 %v675_v15, %v2386_v18 }
 0x149   :  { %v677_v21 = vadd.f32 %v2372_v10, %v676_v20 }
 0x14b   :  { %v2392_v22 = vpop.f32.mrb[16].mxu0  ;;  %v678_v23 = vadd.f32 %v2382_v16, %v677_v21  ;;  %v2395_v24 = vpop.f32.mrb[16].mxu1 }
 0x14c   :  { %3879 = vst [vmem:[#allocation9_spill] sm:$0xff] %v2392_v22  ;;  %v2397_v25 = vpop.f32.mrb[17].mxu0  ;;  %v2399_v26 = vpop.f32.mrb[17].mxu1 }
 0x14d   :  { %v679_v27 = vadd.f32 %v678_v23, %v2397_v25  ;;  %v2402_v28 = vpop.f32.mrb[18].mxu0  ;;  %v2404_v29 = vpop.f32.mrb[18].mxu1 }
 0x14e   :  { %3880 = vst [vmem:[#allocation10_spill] sm:$0xff] %v2402_v28  ;;  %v2406_v30 = vpop.f32.mrb[19].mxu0  ;;  %v2408_v31 = vpop.f32.mrb[19].mxu1 }
 0x14f   :  { %v680_v32 = vadd.f32 %v679_v27, %v2406_v30 }
 0x151   :  { %v681_v33 = vadd.f32 %v2392_v22, %v680_v32 }
 0x153   :  { %v2412_v34 = vpop.f32.mrb[20].mxu0  ;;  %v682_v35 = vadd.f32 %v2402_v28, %v681_v33  ;;  %v2415_v36 = vpop.f32.mrb[20].mxu1 }
 0x154   :  { %3881 = vst [vmem:[#allocation11_spill] sm:$0xff] %v2412_v34  ;;  %3882 = vst [vmem:[#allocation12_spill] sm:$0xff] %v2415_v36  ;;  %v2417_v37 = vpop.f32.mrb[21].mxu0  ;;  %v2419_v38 = vpop.f32.mrb[21].mxu1 }
 0x155   :  { %3883 = vst [vmem:[#allocation13_spill] sm:$0xff] %v2417_v37  ;;  %v683_v39 = vadd.f32 %v682_v35, %v2417_v37  ;;  %v2422_v48 = vpop.f32.mrb[22].mxu0  ;;  %v2424_v49 = vpop.f32.mrb[22].mxu1 }
 0x156   :  { %3884 = vst [vmem:[#allocation14_spill] sm:$0xff] %v2422_v48  ;;  %3885 = vst [vmem:[#allocation15_spill] sm:$0xff] %v2424_v49  ;;  %v2426_v51 = vpop.f32.mrb[23].mxu0  ;;  %v2428_v55 = vpop.f32.mrb[23].mxu1 }
 0x157   :  { %3886 = vst [vmem:[#allocation16_spill] sm:$0xff] %v2426_v51  ;;  %3887 = vst [vmem:[#allocation17_spill] sm:$0xff] %v2428_v55  ;;  %v684_v60 = vadd.f32 %v683_v39, %v2426_v51 }
 0x159   :  { %v685_v61 = vadd.f32 %v2412_v34, %v684_v60 }
 0x15b   :  { %v2432_v63 = vpop.f32.mrb[24].mxu0  ;;  %v686_v3 = vadd.f32 %v2422_v48, %v685_v61  ;;  %v2435_v8 = vpop.f32.mrb[24].mxu1 }
 0x15c   :  { %3888 = vst [vmem:[#allocation18_spill] sm:$0xff] %v2432_v63  ;;  %v2437_v9 = vpop.f32.mrb[25].mxu0  ;;  %v2439_v11 = vpop.f32.mrb[25].mxu1 }
 0x15d   :  { %3889 = vst [vmem:[#allocation19_spill] sm:$0xff] %v2437_v9  ;;  %3890 = vst [vmem:[#allocation20_spill] sm:$0xff] %v2439_v11  ;;  %v687_v15 = vadd.f32 %v686_v3, %v2437_v9  ;;  %v2442_v20 = vpop.f32.mrb[26].mxu0  ;;  %v2444_v21 = vpop.f32.mrb[26].mxu1 }
 0x15e   :  { %3891 = vst [vmem:[#allocation21_spill] sm:$0xff] %v2442_v20  ;;  %v2446_v23 = vpop.f32.mrb[27].mxu0  ;;  %v2448_v27 = vpop.f32.mrb[27].mxu1 }
 0x15f   :  { %3892 = vst [vmem:[#allocation22_spill] sm:$0xff] %v2446_v23  ;;  %v688_v32 = vadd.f32 %v687_v15, %v2446_v23 }
 0x161   :  { %v689_v33 = vadd.f32 %v2432_v63, %v688_v32 }
 0x163   :  { %v2452_v35 = vpop.f32.mrb[28].mxu0  ;;  %v690_v39 = vadd.f32 %v2442_v20, %v689_v33  ;;  %v2455_v60 = vpop.f32.mrb[28].mxu1 }
 0x164   :  { %v2457_v61 = vpop.f32.mrb[29].mxu0  ;;  %v2459_v3 = vpop.f32.mrb[29].mxu1 }
 0x165   :  { %3893 = vst [vmem:[#allocation23_spill] sm:$0xff] %v2457_v61  ;;  %v691_v9 = vadd.f32 %v690_v39, %v2457_v61  ;;  %v2462_v48 = vpop.f32.mrb[30].mxu0  ;;  %v2464_v34 = vpop.f32.mrb[30].mxu1 }
 0x166   :  { %v2466_v51 = vpop.f32.mrb[31].mxu0  ;;  %v2468_v15 = vpop.f32.mrb[31].mxu1 }
 0x167   :  { %v692_v32 = vadd.f32 %v691_v9, %v2466_v51 }
 0x169   :  { %v693_v33 = vadd.f32 %v2452_v35, %v692_v32 }
 0x16b   :  { %v694_v20 = vadd.f32 %v2462_v48, %v693_v33 }
 0x16d   :  { %v695_v63 = vadd.f32 %v694_v20, %v2319_v43 }
 0x16f   :  { %v696_v23 = vadd.f32 %v695_v63, %v2327_v47 }
 0x171   :  { %v697_v39 = vadd.f32 %v2315_v41, %v696_v23 }
 0x173   :  { %v698_v61 = vadd.f32 %v2323_v45, %v697_v39 }
 0x175   :  { %v699_v37 = vadd.f32 %v698_v61, %v2339_v54 }
 0x177   :  { %v700_v28 = vadd.f32 %v699_v37, %v2348_v59 }
 0x179   :  { %v701_v22 = vadd.f32 %v2335_v52, %v700_v28 }
 0x17b   :  { %v702_v9 = vadd.f32 %v2344_v57, %v701_v22 }
 0x17d   :  { %v703_v32 = vadd.f32 %v702_v9, %v2359_v2 }
 0x17f   :  { %v704_v33 = vadd.f32 %v703_v32, %v2368_v7 }
 0x181   :  { %v705_v20 = vadd.f32 %v2355_v0, %v704_v33 }
 0x183   :  { %v706_v63 = vadd.f32 %v2364_v5, %v705_v20 }
 0x185   :  { %v707_v23 = vadd.f32 %v706_v63, %v2379_v14 }
 0x187   :  { %v708_v39 = vadd.f32 %v707_v23, %v2388_v19 }
 0x189   :  { %v709_v61 = vadd.f32 %v2375_v12, %v708_v39 }
 0x18b   :  { %v710_v37 = vadd.f32 %v2384_v17, %v709_v61 }
 0x18d   :  { %v711_v28 = vadd.f32 %v710_v37, %v2399_v26 }
 0x18f   :  { %v712_v22 = vadd.f32 %v711_v28, %v2408_v31 }
 0x191   :  { %v713_v9 = vadd.f32 %v2395_v24, %v712_v22 }
 0x193   :  { %v714_v32 = vadd.f32 %v2404_v29, %v713_v9 }
 0x195   :  { %v715_v33 = vadd.f32 %v714_v32, %v2419_v38 }
 0x197   :  { %v716_v20 = vadd.f32 %v715_v33, %v2428_v55 }
 0x199   :  { %v717_v63 = vadd.f32 %v2415_v36, %v716_v20 }
 0x19b   :  { %v718_v23 = vadd.f32 %v2424_v49, %v717_v63 }
 0x19d   :  { %v719_v39 = vadd.f32 %v718_v23, %v2439_v11 }
 0x19f   :  { %v720_v61 = vadd.f32 %v719_v39, %v2448_v27 }
 0x1a1   :  { %v721_v37 = vadd.f32 %v2435_v8, %v720_v61 }
 0x1a3   :  { %v722_v28 = vadd.f32 %v2444_v21, %v721_v37 }
 0x1a5   :  { %v723_v22 = vadd.f32 %v722_v28, %v2459_v3  ;;  %v3900_v28 = vld [vmem:[#allocation10_spill] sm:$0xff] }
 0x1a7   :  { %v724_v9 = vadd.f32 %v723_v22, %v2468_v15  ;;  %v3901_v22 = vld [vmem:[#allocation13_spill] sm:$0xff] }
 0x1a9   :  { %v725_v32 = vadd.f32 %v2455_v60, %v724_v9  ;;  %v3902_v9 = vld [vmem:[#allocation16_spill] sm:$0xff] }
 0x1ab   :  { %v726_v33 = vadd.f32 %v2464_v34, %v725_v32  ;;  %v3904_v32 = vld [vmem:[#allocation11_spill] sm:$0xff] }
 0x1ad   :  { %v727_v55 = vrot.slane %v726_v33, 4 }
 0x1af   :  { %v728_v20 = vadd.f32 %v727_v55, %v726_v33  ;;  %v3906_v33 = vld [vmem:[#allocation14_spill] sm:$0xff] }
 0x1b1   :  { %v729_v36 = vrot.slane %v728_v20, 2 }
 0x1b3   :  { %v730_v63 = vadd.f32 %v729_v36, %v728_v20 }
 0x1b5   :  { %v731_v49 = vrot.slane %v730_v63, 1 }
 0x1b7   :  { %v732_v23 = vadd.f32 %v731_v49, %v730_v63  ;;  %v3899_v49 = vld [vmem:[#allocation9_spill] sm:$0xff]  ;;  %v3907_v63 = vld [vmem:[#allocation19_spill] sm:$0xff] }
 0x1b9   :  { %v2505_v11 = vmul.f32 0.001953125, %v732_v23 }
 0x1bb   :  { %v2509_v39 = vsub.f32 %v2317_v42, %v2505_v11  ;;  %v2513_v61 = vsub.f32 %v2325_v46, %v2505_v11  ;;  %v2517_v37 = vsub.f32 %v2313_v40, %v2505_v11  ;;  %v2521_v55 = vsub.f32 %v2321_v44, %v2505_v11 }
 0x1bc   :  { %v2525_v36 = vsub.f32 %v2337_v53, %v2505_v11  ;;  %v2529_v42 = vsub.f32 %v2346_v58, %v2505_v11  ;;  %v2533_v46 = vsub.f32 %v2332_v50, %v2505_v11  ;;  %v2537_v40 = vsub.f32 %v2342_v56, %v2505_v11 }
 0x1bd   :  { %3894 = vst [vmem:[#allocation24_spill] sm:$0xff] %v2509_v39  ;;  %3895 = vst [vmem:[#allocation25_spill] sm:$0xff] %v2513_v61  ;;  %v2541_v44 = vsub.f32 %v2357_v1, %v2505_v11  ;;  %v2545_v53 = vsub.f32 %v2366_v6, %v2505_v11  ;;  %v2549_v58 = vsub.f32 %v2352_v62, %v2505_v11 }
 0x1be   :  { %3896 = vst [vmem:[#allocation26_spill] sm:$0xff] %v2517_v37  ;;  %v2553_v50 = vsub.f32 %v2362_v4, %v2505_v11  ;;  %v2557_v56 = vsub.f32 %v2377_v13, %v2505_v11  ;;  %v2561_v1 = vsub.f32 %v2386_v18, %v2505_v11  ;;  %v2565_v6 = vsub.f32 %v2372_v10, %v2505_v11 }
 0x1bf   :  { %v2569_v62 = vsub.f32 %v2382_v16, %v2505_v11  ;;  %v2573_v4 = vsub.f32 %v2397_v25, %v2505_v11  ;;  %v2577_v13 = vsub.f32 %v2406_v30, %v2505_v11  ;;  %v2581_v18 = vsub.f32 %v3899_v49, %v2505_v11  ;;  %v3908_v49 = vld [vmem:[#allocation22_spill] sm:$0xff] }
 0x1c0   :  { %v2585_v10 = vsub.f32 %v3900_v28, %v2505_v11  ;;  %v2589_v16 = vsub.f32 %v3901_v22, %v2505_v11  ;;  %v2593_v25 = vsub.f32 %v3902_v9, %v2505_v11  ;;  %v2597_v30 = vsub.f32 %v3904_v32, %v2505_v11  ;;  %v3909_v22 = vld [vmem:[#allocation18_spill] sm:$0xff] }
 0x1c1   :  { %3897 = vst [vmem:[#allocation27_spill] sm:$0xff] %v2573_v4  ;;  %3898 = vst [vmem:[#allocation28_spill] sm:$0xff] %v2577_v13  ;;  %v2601_v20 = vsub.f32 %v3906_v33, %v2505_v11  ;;  %v2605_v23 = vsub.f32 %v3907_v63, %v2505_v11  ;;  %v2609_v28 = vsub.f32 %v3908_v49, %v2505_v11 }
 0x1c2   :  { %3903 = vst [vmem:[#allocation9_spill] sm:$0xff] %v2593_v25  ;;  %3905 = vst [vmem:[#allocation10_spill] sm:$0xff] %v2597_v30  ;;  %v2613_v9 = vsub.f32 %v3909_v22, %v2505_v11  ;;  %v3910_v25 = vld [vmem:[#allocation21_spill] sm:$0xff]  ;;  %v3911_v30 = vld [vmem:[#allocation23_spill] sm:$0xff]  ;;  %v2625_v63 = vsub.f32 %v2466_v51, %v2505_v11  ;;  %v2629_v49 = vsub.f32 %v2452_v35, %v2505_v11 }
 0x1c3   :  { %v2617_v32 = vsub.f32 %v3910_v25, %v2505_v11  ;;  %v2621_v33 = vsub.f32 %v3911_v30, %v2505_v11  ;;  %v2633_v22 = vsub.f32 %v2462_v48, %v2505_v11  ;;  %v2637_v25 = vsub.f32 %v2319_v43, %v2505_v11 }
 0x1c4   :  { %v2641_v30 = vsub.f32 %v2327_v47, %v2505_v11  ;;  %v2645_v51 = vsub.f32 %v2315_v41, %v2505_v11  ;;  %v2649_v35 = vsub.f32 %v2323_v45, %v2505_v11  ;;  %v2653_v48 = vsub.f32 %v2339_v54, %v2505_v11 }
 0x1c5   :  { %v2657_v43 = vsub.f32 %v2348_v59, %v2505_v11  ;;  %v2661_v47 = vsub.f32 %v2335_v52, %v2505_v11  ;;  %v2665_v41 = vsub.f32 %v2344_v57, %v2505_v11  ;;  %v2669_v45 = vsub.f32 %v2359_v2, %v2505_v11 }
 0x1c6   :  { %v2673_v54 = vsub.f32 %v2368_v7, %v2505_v11  ;;  %v2677_v59 = vsub.f32 %v2355_v0, %v2505_v11  ;;  %v2681_v52 = vsub.f32 %v2364_v5, %v2505_v11  ;;  %v2685_v57 = vsub.f32 %v2379_v14, %v2505_v11 }
 0x1c7   :  { %v2689_v2 = vsub.f32 %v2388_v19, %v2505_v11  ;;  %v2693_v7 = vsub.f32 %v2375_v12, %v2505_v11  ;;  %v2697_v0 = vsub.f32 %v2384_v17, %v2505_v11  ;;  %v2701_v5 = vsub.f32 %v2399_v26, %v2505_v11 }
 0x1c8   :  { %3912 = vst [vmem:[#allocation13_spill] sm:$0xff] %v2677_v59  ;;  %3913 = vst [vmem:[#allocation16_spill] sm:$0xff] %v2681_v52  ;;  %v2705_v14 = vsub.f32 %v2408_v31, %v2505_v11  ;;  %v2709_v19 = vsub.f32 %v2395_v24, %v2505_v11  ;;  %v2713_v12 = vsub.f32 %v2404_v29, %v2505_v11 }
 0x1c9   :  { %3914 = vst [vmem:[#allocation11_spill] sm:$0xff] %v2685_v57  ;;  %3915 = vst [vmem:[#allocation14_spill] sm:$0xff] %v2689_v2  ;;  %v2717_v17 = vsub.f32 %v2419_v38, %v2505_v11  ;;  %v2737_v38 = vsub.f32 %v2448_v27, %v2505_v11  ;;  %v2757_v27 = vsub.f32 %v2455_v60, %v2505_v11 }
 0x1ca   :  { %3916 = vst [vmem:[#allocation19_spill] sm:$0xff] %v2697_v0  ;;  %3917 = vst [vmem:[#allocation22_spill] sm:$0xff] %v2701_v5  ;;  %v3920_v0 = vld [vmem:[#allocation17_spill] sm:$0xff]  ;;  %v3922_v5 = vld [vmem:[#allocation12_spill] sm:$0xff]  ;;  %v802_v60 = vmul.f32 %v2525_v36, %v2525_v36 }
 0x1cb   :  { %3918 = vst [vmem:[#allocation18_spill] sm:$0xff] %v2705_v14  ;;  %3919 = vst [vmem:[#allocation21_spill] sm:$0xff] %v2709_v19  ;;  %v2721_v26 = vsub.f32 %v3920_v0, %v2505_v11  ;;  %v2725_v31 = vsub.f32 %v3922_v5, %v2505_v11  ;;  %v3924_v14 = vld [vmem:[#allocation15_spill] sm:$0xff]  ;;  %v3926_v19 = vld [vmem:[#allocation20_spill] sm:$0xff]  ;;  %v2741_v0 = vsub.f32 %v2435_v8, %v2505_v11 }
 0x1cc   :  { %v2729_v24 = vsub.f32 %v3924_v14, %v2505_v11  ;;  %v2733_v29 = vsub.f32 %v3926_v19, %v2505_v11  ;;  %3928 = vst [vmem:[#allocation20_spill] sm:$0xff] %v2737_v38  ;;  %v2745_v5 = vsub.f32 %v2444_v21, %v2505_v11  ;;  %v2749_v14 = vsub.f32 %v2459_v3, %v2505_v11 }
 0x1cd   :  { %3921 = vst [vmem:[#allocation23_spill] sm:$0xff] %v2721_v26  ;;  %3923 = vst [vmem:[#allocation17_spill] sm:$0xff] %v2725_v31  ;;  %v2753_v19 = vsub.f32 %v2468_v15, %v2505_v11  ;;  %v2761_v8 = vsub.f32 %v2464_v34, %v2505_v11  ;;  %v798_v21 = vmul.f32 %v2509_v39, %v2509_v39 }
 0x1ce   :  { %3925 = vst [vmem:[#allocation12_spill] sm:$0xff] %v2729_v24  ;;  %3927 = vst [vmem:[#allocation15_spill] sm:$0xff] %v2733_v29  ;;  %v800_v3 = vmul.f32 %v2517_v37, %v2517_v37  ;;  %v801_v15 = vmul.f32 %v2521_v55, %v2521_v55  ;;  %v803_v34 = vmul.f32 %v2529_v42, %v2529_v42 }
 0x1cf   :  { %3929 = vst [vmem:[#allocation29_spill] sm:$0xff] %v2741_v0  ;;  %3930 = vst [vmem:[#allocation30_spill] sm:$0xff] %v2745_v5  ;;  %v799_v5 = vmul.f32 %v2513_v61, %v2513_v61  ;;  %v804_v39 = vmul.f32 %v2533_v46, %v2533_v46  ;;  %v805_v37 = vmul.f32 %v2537_v40, %v2537_v40 }
 0x1d0   :  { %3931 = vst [vmem:[#allocation31_spill] sm:$0xff] %v2749_v14  ;;  %3932 = vst [vmem:[#allocation32_spill] sm:$0xff] %v2753_v19 }
 0x1d1   :  { %3933 = vst [vmem:[#allocation33_spill] sm:$0xff] %v2757_v27  ;;  %v862_v14 = vadd.f32 %v799_v5, %v798_v21  ;;  %v806_v21 = vmul.f32 %v2541_v44, %v2541_v44 }
 0x1d3   :  { %v863_v19 = vadd.f32 %v862_v14, %v800_v3  ;;  %v807_v3 = vmul.f32 %v2545_v53, %v2545_v53 }
 0x1d5   :  { %v864_v27 = vadd.f32 %v863_v19, %v801_v15  ;;  %v808_v15 = vmul.f32 %v2549_v58, %v2549_v58 }
 0x1d7   :  { %v865_v11 = vadd.f32 %v864_v27, %v802_v60  ;;  %v809_v60 = vmul.f32 %v2553_v50, %v2553_v50 }
 0x1d9   :  { %v866_v61 = vadd.f32 %v865_v11, %v803_v34  ;;  %v810_v11 = vmul.f32 %v2557_v56, %v2557_v56 }
 0x1db   :  { %v867_v5 = vadd.f32 %v866_v61, %v804_v39  ;;  %v811_v61 = vmul.f32 %v2561_v1, %v2561_v1 }
 0x1dd   :  { %v868_v14 = vadd.f32 %v867_v5, %v805_v37  ;;  %v812_v5 = vmul.f32 %v2565_v6, %v2565_v6 }
 0x1df   :  { %v869_v19 = vadd.f32 %v868_v14, %v806_v21  ;;  %v813_v14 = vmul.f32 %v2569_v62, %v2569_v62 }
 0x1e1   :  { %v870_v27 = vadd.f32 %v869_v19, %v807_v3  ;;  %v814_v19 = vmul.f32 %v2573_v4, %v2573_v4 }
 0x1e3   :  { %v871_v34 = vadd.f32 %v870_v27, %v808_v15  ;;  %v815_v27 = vmul.f32 %v2577_v13, %v2577_v13 }
 0x1e5   :  { %v872_v39 = vadd.f32 %v871_v34, %v809_v60  ;;  %v816_v34 = vmul.f32 %v2581_v18, %v2581_v18 }
 0x1e7   :  { %v873_v37 = vadd.f32 %v872_v39, %v810_v11  ;;  %v817_v39 = vmul.f32 %v2585_v10, %v2585_v10 }
 0x1e9   :  { %v874_v21 = vadd.f32 %v873_v37, %v811_v61  ;;  %v818_v37 = vmul.f32 %v2589_v16, %v2589_v16 }
 0x1eb   :  { %v875_v3 = vadd.f32 %v874_v21, %v812_v5  ;;  %v3934_v21 = vld [vmem:[#allocation9_spill] sm:$0xff] }
 0x1ec   :  { %v819_v4 = vmul.f32 %v3934_v21, %v3934_v21 }
 0x1ed   :  { %v876_v15 = vadd.f32 %v875_v3, %v813_v14  ;;  %v3935_v3 = vld [vmem:[#allocation10_spill] sm:$0xff] }
 0x1ee   :  { %v820_v13 = vmul.f32 %v3935_v3, %v3935_v3 }
 0x1ef   :  { %v877_v60 = vadd.f32 %v876_v15, %v814_v19  ;;  %v821_v15 = vmul.f32 %v2601_v20, %v2601_v20 }
 0x1f1   :  { %v878_v11 = vadd.f32 %v877_v60, %v815_v27  ;;  %v822_v60 = vmul.f32 %v2605_v23, %v2605_v23 }
 0x1f3   :  { %v879_v61 = vadd.f32 %v878_v11, %v816_v34  ;;  %v823_v11 = vmul.f32 %v2609_v28, %v2609_v28 }
 0x1f5   :  { %v880_v5 = vadd.f32 %v879_v61, %v817_v39  ;;  %v824_v61 = vmul.f32 %v2613_v9, %v2613_v9 }
 0x1f7   :  { %v881_v14 = vadd.f32 %v880_v5, %v818_v37  ;;  %v825_v5 = vmul.f32 %v2617_v32, %v2617_v32 }
 0x1f9   :  { %v882_v19 = vadd.f32 %v881_v14, %v819_v4  ;;  %v826_v14 = vmul.f32 %v2621_v33, %v2621_v33 }
 0x1fb   :  { %v883_v27 = vadd.f32 %v882_v19, %v820_v13  ;;  %v827_v19 = vmul.f32 %v2625_v63, %v2625_v63 }
 0x1fd   :  { %v884_v34 = vadd.f32 %v883_v27, %v821_v15  ;;  %v828_v27 = vmul.f32 %v2629_v49, %v2629_v49 }
 0x1ff   :  { %v885_v39 = vadd.f32 %v884_v34, %v822_v60  ;;  %v829_v34 = vmul.f32 %v2633_v22, %v2633_v22 }
 0x201   :  { %v886_v37 = vadd.f32 %v885_v39, %v823_v11  ;;  %v830_v39 = vmul.f32 %v2637_v25, %v2637_v25 }
 0x203   :  { %v887_v4 = vadd.f32 %v886_v37, %v824_v61  ;;  %v831_v37 = vmul.f32 %v2641_v30, %v2641_v30 }
 0x205   :  { %v888_v13 = vadd.f32 %v887_v4, %v825_v5  ;;  %v832_v4 = vmul.f32 %v2645_v51, %v2645_v51 }
 0x207   :  { %v889_v15 = vadd.f32 %v888_v13, %v826_v14  ;;  %v833_v13 = vmul.f32 %v2649_v35, %v2649_v35 }
 0x209   :  { %v890_v60 = vadd.f32 %v889_v15, %v827_v19  ;;  %v834_v15 = vmul.f32 %v2653_v48, %v2653_v48 }
 0x20b   :  { %v891_v11 = vadd.f32 %v890_v60, %v828_v27  ;;  %v835_v60 = vmul.f32 %v2657_v43, %v2657_v43 }
 0x20d   :  { %v892_v61 = vadd.f32 %v891_v11, %v829_v34  ;;  %v836_v11 = vmul.f32 %v2661_v47, %v2661_v47 }
 0x20f   :  { %v893_v5 = vadd.f32 %v892_v61, %v830_v39  ;;  %v837_v61 = vmul.f32 %v2665_v41, %v2665_v41 }
 0x211   :  { %v894_v14 = vadd.f32 %v893_v5, %v831_v37  ;;  %v838_v5 = vmul.f32 %v2669_v45, %v2669_v45 }
 0x213   :  { %v895_v19 = vadd.f32 %v894_v14, %v832_v4  ;;  %v839_v14 = vmul.f32 %v2673_v54, %v2673_v54 }
 0x215   :  { %v896_v27 = vadd.f32 %v895_v19, %v833_v13  ;;  %v840_v19 = vmul.f32 %v2677_v59, %v2677_v59 }
 0x217   :  { %v897_v34 = vadd.f32 %v896_v27, %v834_v15  ;;  %v841_v27 = vmul.f32 %v2681_v52, %v2681_v52 }
 0x219   :  { %v898_v39 = vadd.f32 %v897_v34, %v835_v60  ;;  %v842_v34 = vmul.f32 %v2685_v57, %v2685_v57 }
 0x21b   :  { %v899_v37 = vadd.f32 %v898_v39, %v836_v11  ;;  %v843_v39 = vmul.f32 %v2689_v2, %v2689_v2 }
 0x21d   :  { %v900_v4 = vadd.f32 %v899_v37, %v837_v61  ;;  %v844_v37 = vmul.f32 %v2693_v7, %v2693_v7 }
 0x21f   :  { %v901_v13 = vadd.f32 %v900_v4, %v838_v5  ;;  %v3936_v4 = vld [vmem:[#allocation19_spill] sm:$0xff] }
 0x220   :  { %v845_v59 = vmul.f32 %v3936_v4, %v3936_v4 }
 0x221   :  { %v902_v15 = vadd.f32 %v901_v13, %v839_v14  ;;  %v3937_v13 = vld [vmem:[#allocation22_spill] sm:$0xff] }
 0x222   :  { %v846_v52 = vmul.f32 %v3937_v13, %v3937_v13 }
 0x223   :  { %v903_v60 = vadd.f32 %v902_v15, %v840_v19  ;;  %v3938_v15 = vld [vmem:[#allocation18_spill] sm:$0xff] }
 0x224   :  { %v847_v57 = vmul.f32 %v3938_v15, %v3938_v15 }
 0x225   :  { %v904_v11 = vadd.f32 %v903_v60, %v841_v27  ;;  %v3939_v60 = vld [vmem:[#allocation21_spill] sm:$0xff] }
 0x226   :  { %v848_v2 = vmul.f32 %v3939_v60, %v3939_v60 }
 0x227   :  { %v905_v61 = vadd.f32 %v904_v11, %v842_v34  ;;  %v849_v11 = vmul.f32 %v2713_v12, %v2713_v12 }
 0x229   :  { %v906_v5 = vadd.f32 %v905_v61, %v843_v39  ;;  %v850_v61 = vmul.f32 %v2717_v17, %v2717_v17 }
 0x22b   :  { %v907_v14 = vadd.f32 %v906_v5, %v844_v37  ;;  %v851_v5 = vmul.f32 %v2721_v26, %v2721_v26 }
 0x22d   :  { %v908_v19 = vadd.f32 %v907_v14, %v845_v59  ;;  %v852_v14 = vmul.f32 %v2725_v31, %v2725_v31 }
 0x22f   :  { %v909_v27 = vadd.f32 %v908_v19, %v846_v52  ;;  %v853_v19 = vmul.f32 %v2729_v24, %v2729_v24 }
 0x231   :  { %v910_v34 = vadd.f32 %v909_v27, %v847_v57  ;;  %v854_v27 = vmul.f32 %v2733_v29, %v2733_v29 }
 0x233   :  { %v911_v39 = vadd.f32 %v910_v34, %v848_v2  ;;  %v855_v34 = vmul.f32 %v2737_v38, %v2737_v38 }
 0x235   :  { %v912_v37 = vadd.f32 %v911_v39, %v849_v11  ;;  %v856_v39 = vmul.f32 %v2741_v0, %v2741_v0 }
 0x237   :  { %v913_v59 = vadd.f32 %v912_v37, %v850_v61  ;;  %v3940_v37 = vld [vmem:[#allocation30_spill] sm:$0xff] }
 0x238   :  { %v857_v31 = vmul.f32 %v3940_v37, %v3940_v37 }
 0x239   :  { %v914_v52 = vadd.f32 %v913_v59, %v851_v5  ;;  %v3941_v59 = vld [vmem:[#allocation31_spill] sm:$0xff] }
 0x23a   :  { %v858_v24 = vmul.f32 %v3941_v59, %v3941_v59 }
 0x23b   :  { %v915_v57 = vadd.f32 %v914_v52, %v852_v14  ;;  %v3942_v52 = vld [vmem:[#allocation32_spill] sm:$0xff] }
 0x23c   :  { %v859_v29 = vmul.f32 %v3942_v52, %v3942_v52 }
 0x23d   :  { %v916_v2 = vadd.f32 %v915_v57, %v853_v19  ;;  %v3943_v57 = vld [vmem:[#allocation33_spill] sm:$0xff] }
 0x23e   :  { %v860_v38 = vmul.f32 %v3943_v57, %v3943_v57 }
 0x23f   :  { %v917_v11 = vadd.f32 %v916_v2, %v854_v27  ;;  %v861_v2 = vmul.f32 %v2761_v8, %v2761_v8 }
 0x241   :  { %v918_v61 = vadd.f32 %v917_v11, %v855_v34 }
 0x243   :  { %v919_v5 = vadd.f32 %v918_v61, %v856_v39 }
 0x245   :  { %v920_v14 = vadd.f32 %v919_v5, %v857_v31 }
 0x247   :  { %v921_v19 = vadd.f32 %v920_v14, %v858_v24  ;;  %v3944_v24 = vld [vmem:[#allocation24_spill] sm:$0xff] }
 0x249   :  { %v922_v27 = vadd.f32 %v921_v19, %v859_v29  ;;  %v3945_v29 = vld [vmem:[#allocation25_spill] sm:$0xff] }
 0x24b   :  { %v923_v34 = vadd.f32 %v922_v27, %v860_v38  ;;  %v3946_v38 = vld [vmem:[#allocation26_spill] sm:$0xff] }
 0x24d   :  { %v924_v11 = vadd.f32 %v923_v34, %v861_v2  ;;  %v3947_v34 = vld [vmem:[#allocation27_spill] sm:$0xff] }
 0x24f   :  { %v925_v0 = vrot.slane %v924_v11, 4 }
 0x251   :  { %v926_v37 = vadd.f32 %v925_v0, %v924_v11  ;;  %v3948_v11 = vld [vmem:[#allocation28_spill] sm:$0xff] }
 0x253   :  { %v927_v39 = vrot.slane %v926_v37, 2 }
 0x255   :  { %v928_v61 = vadd.f32 %v927_v39, %v926_v37 }
 0x257   :  { %v929_v26 = vrot.slane %v928_v61, 1 }
 0x259   :  { %v930_v59 = vadd.f32 %v929_v26, %v928_v61 }
 0x25b   :  { %v931_v31 = vmul.f32 0.001953125, %v930_v59 }
 0x25d   :  { %v932_v5 = vadd.f32 1e-05, %v931_v31  ;;  %v3949_v31 = vld [vmem:[#allocation13_spill] sm:$0xff] }
 0x25f   :  { %2072 = vrsqrt.f32 %v932_v5  ;;  %v3950_v5 = vld [vmem:[#allocation16_spill] sm:$0xff] }
 0x269   :  { %v2891_v52 = vpop.eup %2072 }
 0x26a   :  { %v2895_v14 = vmul.f32 %v2891_v52, %v3944_v24  ;;  %v2899_v19 = vmul.f32 %v2891_v52, %v3945_v29  ;;  %v2903_v0 = vmul.f32 %v2891_v52, %v3946_v38  ;;  %v2907_v26 = vmul.f32 %v2891_v52, %v2521_v55  ;;  %v3951_v24 = vld [vmem:[#allocation11_spill] sm:$0xff]  ;;  %v3952_v29 = vld [vmem:[#allocation14_spill] sm:$0xff] }
 0x26b   :  { %v2911_v37 = vmul.f32 %v2891_v52, %v2525_v36  ;;  %v2915_v59 = vmul.f32 %v2891_v52, %v2529_v42  ;;  %v2919_v27 = vmul.f32 %v2891_v52, %v2533_v46  ;;  %v2923_v2 = vmul.f32 %v2891_v52, %v2537_v40 }
 0x26c   :  { %v2927_v55 = vmul.f32 %v2891_v52, %v2541_v44  ;;  %v2931_v36 = vmul.f32 %v2891_v52, %v2545_v53  ;;  %v2935_v42 = vmul.f32 %v2891_v52, %v2549_v58  ;;  %v2939_v46 = vmul.f32 %v2891_v52, %v2553_v50 }
 0x26d   :  { %v2943_v40 = vmul.f32 %v2891_v52, %v2557_v56  ;;  %v2947_v44 = vmul.f32 %v2891_v52, %v2561_v1  ;;  %v2951_v53 = vmul.f32 %v2891_v52, %v2565_v6  ;;  %v2955_v58 = vmul.f32 %v2891_v52, %v2569_v62 }
 0x26e   :  { %v2959_v50 = vmul.f32 %v2891_v52, %v3947_v34  ;;  %v2963_v56 = vmul.f32 %v2891_v52, %v3948_v11  ;;  %v2967_v1 = vmul.f32 %v2891_v52, %v2581_v18  ;;  %v2971_v6 = vmul.f32 %v2891_v52, %v2585_v10 }
 0x26f   :  { %v2975_v62 = vmul.f32 %v2891_v52, %v2589_v16  ;;  %v2979_v39 = vmul.f32 %v2891_v52, %v3934_v21  ;;  %v2983_v61 = vmul.f32 %v2891_v52, %v3935_v3  ;;  %v2987_v18 = vmul.f32 %v2891_v52, %v2601_v20 }
 0x270   :  { %v2991_v10 = vmul.f32 %v2891_v52, %v2605_v23  ;;  %v2995_v16 = vmul.f32 %v2891_v52, %v2609_v28  ;;  %v2999_v21 = vmul.f32 %v2891_v52, %v2613_v9  ;;  %v3003_v3 = vmul.f32 %v2891_v52, %v2617_v32 }
 0x271   :  { %v3007_v20 = vmul.f32 %v2891_v52, %v2621_v33  ;;  %v3011_v23 = vmul.f32 %v2891_v52, %v2625_v63  ;;  %v3015_v28 = vmul.f32 %v2891_v52, %v2629_v49  ;;  %v3019_v9 = vmul.f32 %v2891_v52, %v2633_v22 }
 0x272   :  { %v3023_v32 = vmul.f32 %v2891_v52, %v2637_v25  ;;  %v3027_v33 = vmul.f32 %v2891_v52, %v2641_v30  ;;  %v3031_v63 = vmul.f32 %v2891_v52, %v2645_v51  ;;  %v3035_v49 = vmul.f32 %v2891_v52, %v2649_v35 }
 0x273   :  { %v3039_v22 = vmul.f32 %v2891_v52, %v2653_v48  ;;  %v3043_v25 = vmul.f32 %v2891_v52, %v2657_v43  ;;  %v3047_v30 = vmul.f32 %v2891_v52, %v2661_v47  ;;  %v3051_v51 = vmul.f32 %v2891_v52, %v2665_v41 }
 0x274   :  { %v3055_v35 = vmul.f32 %v2891_v52, %v2669_v45  ;;  %v3059_v48 = vmul.f32 %v2891_v52, %v2673_v54  ;;  %v3063_v43 = vmul.f32 %v2891_v52, %v3949_v31  ;;  %v3067_v47 = vmul.f32 %v2891_v52, %v3950_v5  ;;  %v3957_v5 = vld [vmem:[#allocation23_spill] sm:$0xff] }
 0x275   :  { %v3071_v41 = vmul.f32 %v2891_v52, %v3951_v24  ;;  %v3075_v45 = vmul.f32 %v2891_v52, %v3952_v29  ;;  %v3079_v54 = vmul.f32 %v2891_v52, %v2693_v7  ;;  %v3083_v38 = vmul.f32 %v2891_v52, %v3936_v4  ;;  %v3959_v24 = vld [vmem:[#allocation17_spill] sm:$0xff]  ;;  %v3961_v29 = vld [vmem:[#allocation12_spill] sm:$0xff] }
 0x276   :  { %v3087_v34 = vmul.f32 %v2891_v52, %v3937_v13  ;;  %v3091_v11 = vmul.f32 %v2891_v52, %v3938_v15  ;;  %v3095_v31 = vmul.f32 %v2891_v52, %v3939_v60  ;;  %v3099_v7 = vmul.f32 %v2891_v52, %v2713_v12  ;;  %v3963_v12 = vld [vmem:[#allocation15_spill] sm:$0xff] }
 0x277   :  { %v3103_v4 = vmul.f32 %v2891_v52, %v2717_v17  ;;  %v3107_v13 = vmul.f32 %v2891_v52, %v3957_v5  ;;  %v3111_v15 = vmul.f32 %v2891_v52, %v3959_v24  ;;  %v3115_v60 = vmul.f32 %v2891_v52, %v3961_v29  ;;  %v3964_v17 = vld [vmem:[#allocation20_spill] sm:$0xff]  ;;  %v3965_v5 = vld [vmem:[#allocation29_spill] sm:$0xff]  ;;  %v3966_v24 = vld [vmem:[#allocation30_spill] sm:$0xff] }
 0x278   :  { %3953 = vst [vmem:[#allocation9_spill] sm:$0xff] %v3091_v11  ;;  %3954 = vst [vmem:[#allocation10_spill] sm:$0xff] %v3095_v31  ;;  %v3117_v31 = vld [vmem:[#allocation4] ss:$0 sm:$0xff]  ;;  %v3967_v29 = vld [vmem:[#allocation31_spill] sm:$0xff] }
 0x279   :  { %3955 = vst [vmem:[#allocation19_spill] sm:$0xff] %v3099_v7  ;;  %3956 = vst [vmem:[#allocation22_spill] sm:$0xff] %v3103_v4  ;;  %v3121_v7 = vmul.f32 %v2891_v52, %v3963_v12  ;;  %v3125_v4 = vmul.f32 %v2891_v52, %v3964_v17  ;;  %v3968_v11 = vld [vmem:[#allocation32_spill] sm:$0xff]  ;;  %v3145_v17 = vmul.f32 %v2891_v52, %v3943_v57 }
 0x27a   :  { %3958 = vst [vmem:[#allocation18_spill] sm:$0xff] %v3107_v13  ;;  %3960 = vst [vmem:[#allocation21_spill] sm:$0xff] %v3111_v15  ;;  %v3129_v13 = vmul.f32 %v2891_v52, %v3965_v5  ;;  %v3133_v15 = vmul.f32 %v2891_v52, %v3966_v24  ;;  %v3141_v12 = vmul.f32 %v2891_v52, %v3968_v11 }
 0x27b   :  { %3962 = vst [vmem:[#allocation33_spill] sm:$0xff] %v3115_v60  ;;  %v3137_v60 = vmul.f32 %v2891_v52, %v3967_v29  ;;  %v3149_v5 = vmul.f32 %v2891_v52, %v2761_v8  ;;  %v3153_v24 = vmul.f32 %v3117_v31, %v2895_v14  ;;  %v3157_v29 = vmul.f32 %v3117_v31, %v2899_v19 }
 0x27c   :  { %v3161_v11 = vmul.f32 %v3117_v31, %v2903_v0  ;;  %v3165_v57 = vmul.f32 %v3117_v31, %v2907_v26  ;;  %v3169_v8 = vmul.f32 %v3117_v31, %v2911_v37  ;;  %v3173_v52 = vmul.f32 %v3117_v31, %v2915_v59 }
 0x27d   :  { %v3177_v14 = vmul.f32 %v3117_v31, %v2919_v27  ;;  %v3181_v19 = vmul.f32 %v3117_v31, %v2923_v2  ;;  %v3185_v0 = vmul.f32 %v3117_v31, %v2927_v55  ;;  %v3189_v26 = vmul.f32 %v3117_v31, %v2931_v36 }
 0x27e   :  { %v3193_v37 = vmul.f32 %v3117_v31, %v2935_v42  ;;  %v3197_v59 = vmul.f32 %v3117_v31, %v2939_v46  ;;  %v3201_v27 = vmul.f32 %v3117_v31, %v2943_v40  ;;  %v3205_v2 = vmul.f32 %v3117_v31, %v2947_v44 }
 0x27f   :  { %v3209_v55 = vmul.f32 %v3117_v31, %v2951_v53  ;;  %v3213_v36 = vmul.f32 %v3117_v31, %v2955_v58  ;;  %v3217_v42 = vmul.f32 %v3117_v31, %v2959_v50  ;;  %v3221_v46 = vmul.f32 %v3117_v31, %v2963_v56 }
 0x280   :  { %v3225_v40 = vmul.f32 %v3117_v31, %v2967_v1  ;;  %v3229_v44 = vmul.f32 %v3117_v31, %v2971_v6  ;;  %v3233_v53 = vmul.f32 %v3117_v31, %v2975_v62  ;;  %v3237_v58 = vmul.f32 %v3117_v31, %v2979_v39 }
 0x281   :  { %v3241_v50 = vmul.f32 %v3117_v31, %v2983_v61  ;;  %v3245_v56 = vmul.f32 %v3117_v31, %v2987_v18  ;;  %v3249_v1 = vmul.f32 %v3117_v31, %v2991_v10  ;;  %v3253_v6 = vmul.f32 %v3117_v31, %v2995_v16 }
 0x282   :  { %v3257_v62 = vmul.f32 %v3117_v31, %v2999_v21  ;;  %v3261_v39 = vmul.f32 %v3117_v31, %v3003_v3  ;;  %v3265_v61 = vmul.f32 %v3117_v31, %v3007_v20  ;;  %v3269_v18 = vmul.f32 %v3117_v31, %v3011_v23 }
 0x283   :  { %v3273_v10 = vmul.f32 %v3117_v31, %v3015_v28  ;;  %v3277_v16 = vmul.f32 %v3117_v31, %v3019_v9  ;;  %v3281_v21 = vmul.f32 %v3117_v31, %v3023_v32  ;;  %v3285_v3 = vmul.f32 %v3117_v31, %v3027_v33 }
 0x284   :  { %v3289_v20 = vmul.f32 %v3117_v31, %v3031_v63  ;;  %v3293_v23 = vmul.f32 %v3117_v31, %v3035_v49  ;;  %v3297_v28 = vmul.f32 %v3117_v31, %v3039_v22  ;;  %v3301_v9 = vmul.f32 %v3117_v31, %v3043_v25 }
 0x285   :  { %v3305_v32 = vmul.f32 %v3117_v31, %v3047_v30  ;;  %v3309_v33 = vmul.f32 %v3117_v31, %v3051_v51  ;;  %v3313_v63 = vmul.f32 %v3117_v31, %v3055_v35  ;;  %v3317_v49 = vmul.f32 %v3117_v31, %v3059_v48 }
 0x286   :  { %v3321_v22 = vmul.f32 %v3117_v31, %v3063_v43  ;;  %v3325_v25 = vmul.f32 %v3117_v31, %v3067_v47  ;;  %v3329_v30 = vmul.f32 %v3117_v31, %v3071_v41  ;;  %v3333_v51 = vmul.f32 %v3117_v31, %v3075_v45  ;;  %v3974_v47 = vld [vmem:[#allocation9_spill] sm:$0xff] }
 0x287   :  { %v3337_v35 = vmul.f32 %v3117_v31, %v3079_v54  ;;  %v3341_v48 = vmul.f32 %v3117_v31, %v3083_v38  ;;  %v3345_v43 = vmul.f32 %v3117_v31, %v3087_v34  ;;  %v3349_v41 = vmul.f32 %v3117_v31, %v3974_v47 }
 0x288   :  { %3969 = vst [vmem:[#allocation24_spill] sm:$0xff] %v3329_v30  ;;  %3970 = vst [vmem:[#allocation25_spill] sm:$0xff] %v3333_v51  ;;  %v3976_v30 = vld [vmem:[#allocation10_spill] sm:$0xff]  ;;  %v3978_v51 = vld [vmem:[#allocation19_spill] sm:$0xff] }
 0x289   :  { %3971 = vst [vmem:[#allocation26_spill] sm:$0xff] %v3337_v35  ;;  %3972 = vst [vmem:[#allocation27_spill] sm:$0xff] %v3341_v48  ;;  %v3353_v45 = vmul.f32 %v3117_v31, %v3976_v30  ;;  %v3357_v54 = vmul.f32 %v3117_v31, %v3978_v51  ;;  %v3979_v35 = vld [vmem:[#allocation22_spill] sm:$0xff]  ;;  %v3379_v51 = vmul.f32 %v3117_v31, %v3121_v7 }
 0x28a   :  { %3973 = vst [vmem:[#allocation28_spill] sm:$0xff] %v3345_v43  ;;  %3975 = vst [vmem:[#allocation13_spill] sm:$0xff] %v3349_v41  ;;  %v3361_v38 = vmul.f32 %v3117_v31, %v3979_v35  ;;  %v3980_v48 = vld [vmem:[#allocation18_spill] sm:$0xff]  ;;  %v3981_v43 = vld [vmem:[#allocation21_spill] sm:$0xff]  ;;  %v3383_v35 = vmul.f32 %v3117_v31, %v3125_v4  ;;  %v3399_v7 = vmul.f32 %v3117_v31, %v3141_v12 }
 0x28b   :  { %3977 = vst [vmem:[#allocation16_spill] sm:$0xff] %v3353_v45  ;;  %v3365_v34 = vmul.f32 %v3117_v31, %v3980_v48  ;;  %v3369_v47 = vmul.f32 %v3117_v31, %v3981_v43  ;;  %v3982_v41 = vld [vmem:[#allocation33_spill] sm:$0xff]  ;;  %v3375_v45 = vld [vmem:[#allocation6] ss:$0 sm:$0xff]  ;;  %v3387_v48 = vmul.f32 %v3117_v31, %v3129_v13  ;;  %v3391_v43 = vmul.f32 %v3117_v31, %v3133_v15 }
 0x28c   :  { %v3373_v30 = vmul.f32 %v3117_v31, %v3982_v41  ;;  %v3395_v41 = vmul.f32 %v3117_v31, %v3137_v60  ;;  %v3403_v4 = vmul.f32 %v3117_v31, %v3145_v17  ;;  %v3407_v13 = vmul.f32 %v3117_v31, %v3149_v5 }
 0x28d   :  { %v3411_v15 = vadd.f32 %v3375_v45, %v3153_v24  ;;  %v3415_v60 = vadd.f32 %v3375_v45, %v3157_v29  ;;  %v3419_v12 = vadd.f32 %v3375_v45, %v3161_v11  ;;  %v3423_v17 = vadd.f32 %v3375_v45, %v3165_v57 }
 0x28e   :  { %v3427_v31 = vadd.f32 %v3375_v45, %v3169_v8  ;;  %v3431_v5 = vadd.f32 %v3375_v45, %v3173_v52  ;;  %v3435_v24 = vadd.f32 %v3375_v45, %v3177_v14  ;;  %v3439_v29 = vadd.f32 %v3375_v45, %v3181_v19 }
 0x28f   :  { %3983 = vst [vmem:[#allocation11_spill] sm:$0xff] %v3411_v15  ;;  %3984 = vst [vmem:[#allocation14_spill] sm:$0xff] %v3415_v60  ;;  %v3443_v11 = vadd.f32 %v3375_v45, %v3185_v0  ;;  %v3447_v57 = vadd.f32 %v3375_v45, %v3189_v26  ;;  %v3451_v8 = vadd.f32 %v3375_v45, %v3193_v37 }
 0x290   :  { %3985 = vst [vmem:[#allocation23_spill] sm:$0xff] %v3419_v12  ;;  %v3455_v52 = vadd.f32 %v3375_v45, %v3197_v59  ;;  %v3459_v14 = vadd.f32 %v3375_v45, %v3201_v27  ;;  %v3463_v19 = vadd.f32 %v3375_v45, %v3205_v2  ;;  %v3467_v0 = vadd.f32 %v3375_v45, %v3209_v55 }
 0x291   :  { %v3471_v26 = vadd.f32 %v3375_v45, %v3213_v36  ;;  %v3475_v37 = vadd.f32 %v3375_v45, %v3217_v42  ;;  %v3479_v59 = vadd.f32 %v3375_v45, %v3221_v46  ;;  %v3483_v27 = vadd.f32 %v3375_v45, %v3225_v40 }
 0x292   :  { %v3487_v2 = vadd.f32 %v3375_v45, %v3229_v44  ;;  %v3491_v55 = vadd.f32 %v3375_v45, %v3233_v53  ;;  %v3495_v36 = vadd.f32 %v3375_v45, %v3237_v58  ;;  %v3499_v42 = vadd.f32 %v3375_v45, %v3241_v50 }
 0x293   :  { %v3503_v46 = vadd.f32 %v3375_v45, %v3245_v56  ;;  %v3507_v40 = vadd.f32 %v3375_v45, %v3249_v1  ;;  %v3511_v44 = vadd.f32 %v3375_v45, %v3253_v6  ;;  %v3515_v53 = vadd.f32 %v3375_v45, %v3257_v62 }
 0x294   :  { %v3519_v58 = vadd.f32 %v3375_v45, %v3261_v39  ;;  %v3523_v50 = vadd.f32 %v3375_v45, %v3265_v61  ;;  %v3527_v56 = vadd.f32 %v3375_v45, %v3269_v18  ;;  %v3531_v1 = vadd.f32 %v3375_v45, %v3273_v10 }
 0x295   :  { %v3535_v6 = vadd.f32 %v3375_v45, %v3277_v16  ;;  %v3539_v62 = vadd.f32 %v3375_v45, %v3281_v21  ;;  %v3543_v39 = vadd.f32 %v3375_v45, %v3285_v3  ;;  %v3547_v61 = vadd.f32 %v3375_v45, %v3289_v20 }
 0x296   :  { %v3551_v18 = vadd.f32 %v3375_v45, %v3293_v23  ;;  %v3555_v10 = vadd.f32 %v3375_v45, %v3297_v28  ;;  %v3559_v16 = vadd.f32 %v3375_v45, %v3301_v9  ;;  %v3563_v21 = vadd.f32 %v3375_v45, %v3305_v32  ;;  %v3991_v32 = vld [vmem:[#allocation24_spill] sm:$0xff] }
 0x297   :  { %v3567_v3 = vadd.f32 %v3375_v45, %v3309_v33  ;;  %v3571_v20 = vadd.f32 %v3375_v45, %v3313_v63  ;;  %v3575_v23 = vadd.f32 %v3375_v45, %v3317_v49  ;;  %v3579_v28 = vadd.f32 %v3375_v45, %v3321_v22 }
 0x298   :  { %v3583_v9 = vadd.f32 %v3375_v45, %v3325_v25  ;;  %v3587_v33 = vadd.f32 %v3375_v45, %v3991_v32 }
 0x299   :  { %3986 = vst [vmem:[#allocation17_spill] sm:$0xff] %v3567_v3  ;;  %3987 = vst [vmem:[#allocation12_spill] sm:$0xff] %v3571_v20  ;;  %v3993_v3 = vld [vmem:[#allocation25_spill] sm:$0xff]  ;;  %v3994_v20 = vld [vmem:[#allocation26_spill] sm:$0xff] }
 0x29a   :  { %3988 = vst [vmem:[#allocation15_spill] sm:$0xff] %v3575_v23  ;;  %3989 = vst [vmem:[#allocation20_spill] sm:$0xff] %v3579_v28  ;;  %v3591_v63 = vadd.f32 %v3375_v45, %v3993_v3  ;;  %v3595_v49 = vadd.f32 %v3375_v45, %v3994_v20  ;;  %v3995_v23 = vld [vmem:[#allocation27_spill] sm:$0xff]  ;;  %v3996_v28 = vld [vmem:[#allocation28_spill] sm:$0xff]  ;;  %v3615_v20 = vadd.f32 %v3375_v45, %v3357_v54 }
 0x29b   :  { %3990 = vst [vmem:[#allocation29_spill] sm:$0xff] %v3583_v9  ;;  %3992 = vst [vmem:[#allocation30_spill] sm:$0xff] %v3587_v33  ;;  %v3599_v22 = vadd.f32 %v3375_v45, %v3995_v23  ;;  %v3603_v25 = vadd.f32 %v3375_v45, %v3996_v28  ;;  %v3997_v9 = vld [vmem:[#allocation13_spill] sm:$0xff]  ;;  %v3998_v33 = vld [vmem:[#allocation16_spill] sm:$0xff]  ;;  %v3619_v23 = vadd.f32 %v3375_v45, %v3361_v38 }
 0x29c   :  { %v3607_v32 = vadd.f32 %v3375_v45, %v3997_v9  ;;  %v3611_v3 = vadd.f32 %v3375_v45, %v3998_v33  ;;  %v3623_v28 = vadd.f32 %v3375_v45, %v3365_v34  ;;  %v3627_v9 = vadd.f32 %v3375_v45, %v3369_v47 }
 0x29d   :  { %v3631_v33 = vadd.f32 %v3375_v45, %v3373_v30  ;;  %v3635_v54 = vadd.f32 %v3375_v45, %v3379_v51  ;;  %v3639_v38 = vadd.f32 %v3375_v45, %v3383_v35  ;;  %v3643_v34 = vadd.f32 %v3375_v45, %v3387_v48 }
 0x29e   :  { %v3647_v47 = vadd.f32 %v3375_v45, %v3391_v43  ;;  %v3651_v30 = vadd.f32 %v3375_v45, %v3395_v41  ;;  %v3655_v51 = vadd.f32 %v3375_v45, %v3399_v7  ;;  %v3659_v35 = vadd.f32 %v3375_v45, %v3403_v4 }
 0x29f   :  { %3999 = vst [vmem:[#allocation31_spill] sm:$0xff] %v3639_v38  ;;  %4000 = vst [vmem:[#allocation32_spill] sm:$0xff] %v3643_v34  ;;  %v3663_v48 = vadd.f32 %v3375_v45, %v3407_v13  ;;  %v1143_v41 = vmax.f32 %v3423_v17, 0.0  ;;  %v1145_v7 = vmax.f32 %v3431_v5, 0.0  ;;  %v1147_v4 = vmax.f32 %v3439_v29, 0.0 }
 0x2a0   :  { %4001 = vst [vmem:[#allocation9_spill] sm:$0xff] %v3647_v47  ;;  %4002 = vst [vmem:[#allocation10_spill] sm:$0xff] %v3651_v30  ;;  %v1144_v30 = vmax.f32 %v3427_v31, 0.0  ;;  %v1149_v45 = vmax.f32 %v3447_v57, 0.0  ;;  %v1150_v13 = vmax.f32 %v3451_v8, 0.0  ;;  %v1151_v43 = vmax.f32 %v3455_v52, 0.0 }
 0x2a1   :  { %4003 = vst [vmem:[#allocation19_spill] sm:$0xff] %v3655_v51  ;;  %4004 = vst [vmem:[#allocation22_spill] sm:$0xff] %v3659_v35  ;;  %v1146_v51 = vmax.f32 %v3435_v24, 0.0  ;;  %v1148_v35 = vmax.f32 %v3443_v11, 0.0  ;;  %v1152_v47 = vmax.f32 %v3459_v14, 0.0  ;;  %v1153_v17 = vmax.f32 %v3463_v19, 0.0 }
 0x2a2   :  { %4005 = vst [vmem:[#allocation18_spill] sm:$0xff] %v3663_v48  ;;  %v1154_v31 = vmax.f32 %v3467_v0, 0.0  ;;  %v1155_v5 = vmax.f32 %v3471_v26, 0.0  ;;  %v1156_v24 = vmax.f32 %v3475_v37, 0.0  ;;  %v1157_v29 = vmax.f32 %v3479_v59, 0.0  ;;  %v4006_v34 = vld [vmem:[#allocation17_spill] sm:$0xff] }
 0x2a3   :  { %v1158_v11 = vmax.f32 %v3483_v27, 0.0  ;;  %v1159_v57 = vmax.f32 %v3487_v2, 0.0  ;;  %v1160_v8 = vmax.f32 %v3491_v55, 0.0  ;;  %v1161_v52 = vmax.f32 %v3495_v36, 0.0  ;;  %v4007_v12 = vld [vmem:[#allocation12_spill] sm:$0xff]  ;;  %v4008_v60 = vld [vmem:[#allocation15_spill] sm:$0xff] }
 0x2a4   :  { %v1162_v14 = vmax.f32 %v3499_v42, 0.0  ;;  %v1163_v19 = vmax.f32 %v3503_v46, 0.0  ;;  %v1164_v0 = vmax.f32 %v3507_v40, 0.0  ;;  %v1165_v26 = vmax.f32 %v3511_v44, 0.0  ;;  %v4009_v15 = vld [vmem:[#allocation20_spill] sm:$0xff]  ;;  %v4010_v48 = vld [vmem:[#allocation29_spill] sm:$0xff] }
 0x2a5   :  { %v1166_v37 = vmax.f32 %v3515_v53, 0.0  ;;  %v1167_v59 = vmax.f32 %v3519_v58, 0.0  ;;  %v1168_v27 = vmax.f32 %v3523_v50, 0.0  ;;  %v1169_v2 = vmax.f32 %v3527_v56, 0.0  ;;  %v4011_v38 = vld [vmem:[#allocation30_spill] sm:$0xff] }
 0x2a6   :  { %v1170_v55 = vmax.f32 %v3531_v1, 0.0  ;;  %v1171_v36 = vmax.f32 %v3535_v6, 0.0  ;;  %v1172_v42 = vmax.f32 %v3539_v62, 0.0  ;;  %v1173_v46 = vmax.f32 %v3543_v39, 0.0 }
 0x2a7   :  { %v1174_v40 = vmax.f32 %v3547_v61, 0.0  ;;  %v1175_v44 = vmax.f32 %v3551_v18, 0.0  ;;  %v1176_v53 = vmax.f32 %v3555_v10, 0.0  ;;  %v1177_v58 = vmax.f32 %v3559_v16, 0.0 }
 0x2a8   :  { %v1178_v50 = vmax.f32 %v3563_v21, 0.0  ;;  %v1179_v56 = vmax.f32 %v4006_v34, 0.0  ;;  %v1180_v1 = vmax.f32 %v4007_v12, 0.0  ;;  %v1181_v6 = vmax.f32 %v4008_v60, 0.0 }
 0x2a9   :  { %v1182_v62 = vmax.f32 %v4009_v15, 0.0  ;;  %v1183_v39 = vmax.f32 %v4010_v48, 0.0  ;;  %v1184_v61 = vmax.f32 %v4011_v38, 0.0  ;;  %v1185_v18 = vmax.f32 %v3591_v63, 0.0 }
 0x2aa   :  { %v1186_v10 = vmax.f32 %v3595_v49, 0.0  ;;  %v1187_v16 = vmax.f32 %v3599_v22, 0.0  ;;  %v1188_v21 = vmax.f32 %v3603_v25, 0.0  ;;  %v1189_v34 = vmax.f32 %v3607_v32, 0.0  ;;  %v4012_v22 = vld [vmem:[#allocation31_spill] sm:$0xff]  ;;  %v4013_v32 = vld [vmem:[#allocation32_spill] sm:$0xff] }
 0x2ab   :  { %v1190_v12 = vmax.f32 %v3611_v3, 0.0  ;;  %v1191_v60 = vmax.f32 %v3615_v20, 0.0  ;;  %v1192_v15 = vmax.f32 %v3619_v23, 0.0  ;;  %v1193_v48 = vmax.f32 %v3623_v28, 0.0  ;;  %v4014_v20 = vld [vmem:[#allocation9_spill] sm:$0xff]  ;;  %v4015_v28 = vld [vmem:[#allocation10_spill] sm:$0xff] }
 0x2ac   :  { %v1194_v38 = vmax.f32 %v3627_v9, 0.0  ;;  %v1195_v63 = vmax.f32 %v3631_v33, 0.0  ;;  %v1196_v49 = vmax.f32 %v3635_v54, 0.0  ;;  %v1197_v25 = vmax.f32 %v4012_v22, 0.0  ;;  %v4016_v33 = vld [vmem:[#allocation19_spill] sm:$0xff]  ;;  %v4017_v22 = vld [vmem:[#allocation22_spill] sm:$0xff] }
 0x2ad   :  { %v1198_v3 = vmax.f32 %v4013_v32, 0.0  ;;  %v1199_v23 = vmax.f32 %v4014_v20, 0.0  ;;  %v1200_v9 = vmax.f32 %v4015_v28, 0.0  ;;  %v1201_v54 = vmax.f32 %v4016_v33, 0.0  ;;  %v4018_v20 = vld [vmem:[#allocation18_spill] sm:$0xff]  ;;  %v4019_v33 = vld [vmem:[#allocation11_spill] sm:$0xff] }
 0x2ae   :  { %v1202_v32 = vmax.f32 %v4017_v22, 0.0  ;;  %v1203_v28 = vmax.f32 %v4018_v20, 0.0  ;;  %v4020_v22 = vmax.f32 %v4019_v33, 0.0  ;;  %v4021_v20 = vld [vmem:[#allocation14_spill] sm:$0xff] }
 0x2af   :  { %v4022_v33 = vmax.f32 %v4021_v20, 0.0 }
 0x2b1   :  { %v1703_v20 = vpack.c.bf16 %v4022_v33, %v4020_v22  ;;  %v4023_v22 = vld [vmem:[#allocation23_spill] sm:$0xff] }
 0x2b2   :  { %v4024_v33 = vmax.f32 %v4023_v22, 0.0 }
 0x2b3   :  { %1704 = vst [vmem:[%s3835_s4] sm:$0xff] %v1703_v20  }
 0x2b4   :  { %v1708_v22 = vpack.c.bf16 %v1143_v41, %v4024_v33  ;;  %v1713_v33 = vpack.c.bf16 %v1145_v7, %v1144_v30  ;;  %v1718_v41 = vpack.c.bf16 %v1147_v4, %v1146_v51  ;;  %v1723_v7 = vpack.c.bf16 %v1149_v45, %v1148_v35 }
 0x2b5   :  { %v1728_v30 = vpack.c.bf16 %v1151_v43, %v1150_v13  ;;  %v1733_v4 = vpack.c.bf16 %v1153_v17, %v1152_v47  ;;  %v1738_v51 = vpack.c.bf16 %v1155_v5, %v1154_v31  ;;  %v1743_v35 = vpack.c.bf16 %v1157_v29, %v1156_v24 }
 0x2b6   :  { %1860 = vst [vmem:[%s3835_s4 + $0x8] sm:$0xff] %v1708_v22   ;;  %1861 = vst [vmem:[%s3835_s4 + $0x10] sm:$0xff] %v1713_v33   ;;  %v1748_v43 = vpack.c.bf16 %v1159_v57, %v1158_v11  ;;  %v1753_v47 = vpack.c.bf16 %v1161_v52, %v1160_v8  ;;  %v1758_v45 = vpack.c.bf16 %v1163_v19, %v1162_v14 }
 0x2b7   :  { %1862 = vst [vmem:[%s3835_s4 + $0x18] sm:$0xff] %v1718_v41   ;;  %1863 = vst [vmem:[%s3835_s4 + $0x20] sm:$0xff] %v1723_v7   ;;  %v1763_v13 = vpack.c.bf16 %v1165_v26, %v1164_v0  ;;  %v1768_v17 = vpack.c.bf16 %v1167_v59, %v1166_v37  ;;  %v1773_v31 = vpack.c.bf16 %v1169_v2, %v1168_v27 }
 0x2b8   :  { %1864 = vst [vmem:[%s3835_s4 + $0x28] sm:$0xff] %v1728_v30   ;;  %1865 = vst [vmem:[%s3835_s4 + $0x30] sm:$0xff] %v1733_v4   ;;  %v1778_v5 = vpack.c.bf16 %v1171_v36, %v1170_v55  ;;  %v1783_v24 = vpack.c.bf16 %v1173_v46, %v1172_v42  ;;  %v1788_v29 = vpack.c.bf16 %v1175_v44, %v1174_v40 }
 0x2b9   :  { %1866 = vst [vmem:[%s3835_s4 + $0x38] sm:$0xff] %v1738_v51   ;;  %1867 = vst [vmem:[%s3835_s4 + $0x40] sm:$0xff] %v1743_v35   ;;  %v1793_v11 = vpack.c.bf16 %v1177_v58, %v1176_v53  ;;  %v1798_v57 = vpack.c.bf16 %v1179_v56, %v1178_v50  ;;  %v1803_v8 = vpack.c.bf16 %v1181_v6, %v1180_v1 }
 0x2ba   :  { %1868 = vst [vmem:[%s3835_s4 + $0x48] sm:$0xff] %v1748_v43   ;;  %1869 = vst [vmem:[%s3835_s4 + $0x50] sm:$0xff] %v1753_v47   ;;  %v1808_v52 = vpack.c.bf16 %v1183_v39, %v1182_v62  ;;  %v1813_v14 = vpack.c.bf16 %v1185_v18, %v1184_v61  ;;  %v1818_v19 = vpack.c.bf16 %v1187_v16, %v1186_v10 }
 0x2bb   :  { %1870 = vst [vmem:[%s3835_s4 + $0x58] sm:$0xff] %v1758_v45   ;;  %1871 = vst [vmem:[%s3835_s4 + $0x60] sm:$0xff] %v1763_v13   ;;  %v1823_v0 = vpack.c.bf16 %v1189_v34, %v1188_v21  ;;  %v1828_v26 = vpack.c.bf16 %v1191_v60, %v1190_v12  ;;  %v1833_v37 = vpack.c.bf16 %v1193_v48, %v1192_v15 }
 0x2bc   :  { %1872 = vst [vmem:[%s3835_s4 + $0x68] sm:$0xff] %v1768_v17   ;;  %1873 = vst [vmem:[%s3835_s4 + $0x70] sm:$0xff] %v1773_v31   ;;  %v1838_v59 = vpack.c.bf16 %v1195_v63, %v1194_v38  ;;  %v1843_v27 = vpack.c.bf16 %v1197_v25, %v1196_v49  ;;  %v1848_v2 = vpack.c.bf16 %v1199_v23, %v1198_v3 }
 0x2bd   :  { %1874 = vst [vmem:[%s3835_s4 + $0x78] sm:$0xff] %v1778_v5   ;;  %1875 = vst [vmem:[%s3835_s4 + $0x80] sm:$0xff] %v1783_v24   ;;  %v1853_v55 = vpack.c.bf16 %v1201_v54, %v1200_v9  ;;  %v1858_v36 = vpack.c.bf16 %v1203_v28, %v1202_v32 }
 0x2be   :  { %1876 = vst [vmem:[%s3835_s4 + $0x88] sm:$0xff] %v1788_v29   ;;  %1877 = vst [vmem:[%s3835_s4 + $0x90] sm:$0xff] %v1793_v11  }
 0x2bf   :  { %1878 = vst [vmem:[%s3835_s4 + $0x98] sm:$0xff] %v1798_v57   ;;  %1879 = vst [vmem:[%s3835_s4 + $0xa0] sm:$0xff] %v1803_v8  }
 0x2c0   :  { %1880 = vst [vmem:[%s3835_s4 + $0xa8] sm:$0xff] %v1808_v52   ;;  %1881 = vst [vmem:[%s3835_s4 + $0xb0] sm:$0xff] %v1813_v14  }
 0x2c1   :  { %1882 = vst [vmem:[%s3835_s4 + $0xb8] sm:$0xff] %v1818_v19   ;;  %1883 = vst [vmem:[%s3835_s4 + $0xc0] sm:$0xff] %v1823_v0  }
 0x2c2   :  { %1884 = vst [vmem:[%s3835_s4 + $0xc8] sm:$0xff] %v1828_v26   ;;  %1885 = vst [vmem:[%s3835_s4 + $0xd0] sm:$0xff] %v1833_v37  }
 0x2c3   :  { %1886 = vst [vmem:[%s3835_s4 + $0xd8] sm:$0xff] %v1838_v59   ;;  %1887 = vst [vmem:[%s3835_s4 + $0xe0] sm:$0xff] %v1843_v27  }
 0x2c4   :  { %1888 = vst [vmem:[%s3835_s4 + $0xe8] sm:$0xff] %v1848_v2   ;;  %1889 = vst [vmem:[%s3835_s4 + $0xf0] sm:$0xff] %v1853_v55  }
 0x2c5   :  { %1890 = vst [vmem:[%s3835_s4 + $0xf8] sm:$0xff] %v1858_v36  }
 0x2c6   :  { %1528 = vsyncpa [#allocation3], 1 }
 0x2c7   :  { %1529 = vsyncpa [#allocation5], 1 }

// kernel: fwd.5
= control target key start
LH: loop header
LB: loop body
LE: loop exit
PB: predicated region body
PF: predicated region fallthrough
CT: control target
= control target key end

     0   :  { %s5333_s15 = smov 0   ;;  %s5335_s16 = smov 0   ;;  %s6665_s0 = inlined_call_operand.vmem [shape: bf16[128,2048], index: 0, kind: input, shape index: {}]   ;;  %s6666_s1 = inlined_call_operand.vmem [shape: bf16[2048,256], index: 1, kind: input, shape index: {}]   ;;  %s6667_s2 = inlined_call_operand.vmem [shape: f32[1,256], index: 2, kind: input, shape index: {}]   ;;  %s6668_s3 = inlined_call_operand.vmem [shape: f32[1,256], index: 3, kind: input, shape index: {}]   ;;  %s6669_s4 = inlined_call_operand.vmem [shape: bf16[128,256], index: 4, kind: output, shape index: {}]  }
   0x1   :  { %s5337_s17 = smov 0  }
   0x2 LB: > { %s5349_s18 = sadd.s32 4294967295, %s5306_s17   ;;  %s5352_s19 = sadd.s32 1, %s5306_s17   ;;  %s5306_s17 = sphi %s5337_s17, %s6673_s17   ;;  %s5302_s16 = sphi %s5335_s16, %s6672_s16   ;;  %s5298_s15 = sphi %s5333_s15, %s6671_s15  }
   0x3   : > { %s39_s20 = ssub.s32 %s5306_s17, %s5352_s19  ;;  %s42_s21 = sadd.s32 1, %s5302_s16 }
   0x4   : > { %p40_p0 = scmp.eq.s32.totalorder %s39_s20, 0  ;;  %p49_p1 = scmp.ne.s32.totalorder %s5302_s16, %s5298_s15 }
   0x5   : > { %p50_p2 = scmp.eq.s32.totalorder %s5306_s17, 0  ;;  %p131_p3 = scmp.eq.s32.totalorder %s5349_s18, 1 }
   0x6   : > { %s5362_s22 = scalar_select %p40_p0, %s5302_s16, %s42_s21  }
   0x7   : > { %p51_p4 = por %p50_p2, %p49_p1  ;;  %p5364_p5 = por %p131_p3, %p49_p1 }
   0x8   : > { %p4271_p6 = scmp.ge.s32.totalorder %s5306_s17, 2 }
   0xa   : > { %156 = sbr.rel (%p4271_p6) target bundleno = 191 (0xbf), region = 20 }
  0x11   : > { %159 = sbr.rel (!%p51_p4) target bundleno = 191 (0xbf), region = 24  ;;  %s161_s24 = sand.u32 (%p51_p4), 1, %s5302_s16  }
  0x12   : > { %s4273_s25 = sshll.u32 (%p51_p4), %s5306_s17, 2  ;;  %s4272_s26 = sshll.u32 (%p51_p4), %s161_s24, 10 }
  0x13   : > { %s5374_s29 = scalar_lea.vmem (%p51_p4), %s6666_s1, %s4273_s25  ;;  %s5378_s30 = scalar_lea.vmem (%p51_p4), [#allocation2], %s4272_s26 }
  0x14   : > { %v181_v0 = vld [vmem:[%s5374_s29] sm:$0xf] (%p51_p4)  ;;  %v183_v1 = vld [vmem:[%s5374_s29 + $0x8] sm:$0xf] (%p51_p4)  ;;  %v185_v2 = vld [vmem:[%s5374_s29 + $0x10] sm:$0xf] (%p51_p4) }
  0x15   : > { %182 = vst [vmem:[%s5378_s30] sm:$0xf] (%p51_p4), %v181_v0  ;;  %184 = vst [vmem:[%s5378_s30 + $0x4] sm:$0xf] (%p51_p4), %v183_v1  ;;  %v187_v3 = vld [vmem:[%s5374_s29 + $0x18] sm:$0xf] (%p51_p4) }
  0x16   : > { %v189_v4 = vld [vmem:[%s5374_s29 + $0x20] sm:$0xf] (%p51_p4)  ;;  %186 = vst [vmem:[%s5378_s30 + $0x8] sm:$0xf] (%p51_p4), %v185_v2  ;;  %188 = vst [vmem:[%s5378_s30 + $0xc] sm:$0xf] (%p51_p4), %v187_v3 }
  0x17   : > { %190 = vst [vmem:[%s5378_s30 + $0x10] sm:$0xf] (%p51_p4), %v189_v4  ;;  %v191_v5 = vld [vmem:[%s5374_s29 + $0x28] sm:$0xf] (%p51_p4)  ;;  %v193_v6 = vld [vmem:[%s5374_s29 + $0x30] sm:$0xf] (%p51_p4) }
  0x18   : > { %v195_v7 = vld [vmem:[%s5374_s29 + $0x38] sm:$0xf]  ;;  %192 = vst [vmem:[%s5378_s30 + $0x14] sm:$0xf] %v191_v5  ;;  %194 = vst [vmem:[%s5378_s30 + $0x18] sm:$0xf] %v193_v6 }
  0x19   : > { %196 = vst [vmem:[%s5378_s30 + $0x1c] sm:$0xf] %v195_v7  ;;  %v197_v8 = vld [vmem:[%s5374_s29 + $0x40] sm:$0xf]  ;;  %v199_v9 = vld [vmem:[%s5374_s29 + $0x48] sm:$0xf] }
  0x1a   : > { %v201_v10 = vld [vmem:[%s5374_s29 + $0x50] sm:$0xf]  ;;  %198 = vst [vmem:[%s5378_s30 + $0x20] sm:$0xf] %v197_v8  ;;  %200 = vst [vmem:[%s5378_s30 + $0x24] sm:$0xf] %v199_v9 }
  0x1b   : > { %202 = vst [vmem:[%s5378_s30 + $0x28] sm:$0xf] %v201_v10  ;;  %v203_v11 = vld [vmem:[%s5374_s29 + $0x58] sm:$0xf]  ;;  %v205_v12 = vld [vmem:[%s5374_s29 + $0x60] sm:$0xf] }
  0x1c   : > { %v207_v13 = vld [vmem:[%s5374_s29 + $0x68] sm:$0xf]  ;;  %204 = vst [vmem:[%s5378_s30 + $0x2c] sm:$0xf] %v203_v11  ;;  %206 = vst [vmem:[%s5378_s30 + $0x30] sm:$0xf] %v205_v12 }
  0x1d   : > { %208 = vst [vmem:[%s5378_s30 + $0x34] sm:$0xf] %v207_v13  ;;  %v209_v14 = vld [vmem:[%s5374_s29 + $0x70] sm:$0xf]  ;;  %v211_v15 = vld [vmem:[%s5374_s29 + $0x78] sm:$0xf] }
  0x1e   : > { %v213_v16 = vld [vmem:[%s5374_s29 + $0x80] sm:$0xf]  ;;  %210 = vst [vmem:[%s5378_s30 + $0x38] sm:$0xf] %v209_v14  ;;  %212 = vst [vmem:[%s5378_s30 + $0x3c] sm:$0xf] %v211_v15 }
  0x1f   : > { %214 = vst [vmem:[%s5378_s30 + $0x40] sm:$0xf] %v213_v16  ;;  %v215_v17 = vld [vmem:[%s5374_s29 + $0x88] sm:$0xf]  ;;  %v217_v18 = vld [vmem:[%s5374_s29 + $0x90] sm:$0xf] }
  0x20   : > { %v219_v19 = vld [vmem:[%s5374_s29 + $0x98] sm:$0xf]  ;;  %216 = vst [vmem:[%s5378_s30 + $0x44] sm:$0xf] %v215_v17  ;;  %218 = vst [vmem:[%s5378_s30 + $0x48] sm:$0xf] %v217_v18 }
  0x21   : > { %220 = vst [vmem:[%s5378_s30 + $0x4c] sm:$0xf] %v219_v19  ;;  %v221_v20 = vld [vmem:[%s5374_s29 + $0xa0] sm:$0xf]  ;;  %v223_v21 = vld [vmem:[%s5374_s29 + $0xa8] sm:$0xf] }
  0x22   : > { %v225_v22 = vld [vmem:[%s5374_s29 + $0xb0] sm:$0xf]  ;;  %222 = vst [vmem:[%s5378_s30 + $0x50] sm:$0xf] %v221_v20  ;;  %224 = vst [vmem:[%s5378_s30 + $0x54] sm:$0xf] %v223_v21 }
  0x23   : > { %226 = vst [vmem:[%s5378_s30 + $0x58] sm:$0xf] %v225_v22  ;;  %v227_v23 = vld [vmem:[%s5374_s29 + $0xb8] sm:$0xf]  ;;  %v229_v24 = vld [vmem:[%s5374_s29 + $0xc0] sm:$0xf] }
  0x24   : > { %v231_v25 = vld [vmem:[%s5374_s29 + $0xc8] sm:$0xf]  ;;  %228 = vst [vmem:[%s5378_s30 + $0x5c] sm:$0xf] %v227_v23  ;;  %230 = vst [vmem:[%s5378_s30 + $0x60] sm:$0xf] %v229_v24 }
  0x25   : > { %232 = vst [vmem:[%s5378_s30 + $0x64] sm:$0xf] %v231_v25  ;;  %v233_v26 = vld [vmem:[%s5374_s29 + $0xd0] sm:$0xf]  ;;  %v235_v27 = vld [vmem:[%s5374_s29 + $0xd8] sm:$0xf] }
  0x26   : > { %v237_v28 = vld [vmem:[%s5374_s29 + $0xe0] sm:$0xf]  ;;  %234 = vst [vmem:[%s5378_s30 + $0x68] sm:$0xf] %v233_v26  ;;  %236 = vst [vmem:[%s5378_s30 + $0x6c] sm:$0xf] %v235_v27 }
  0x27   : > { %238 = vst [vmem:[%s5378_s30 + $0x70] sm:$0xf] %v237_v28  ;;  %v239_v29 = vld [vmem:[%s5374_s29 + $0xe8] sm:$0xf]  ;;  %v241_v30 = vld [vmem:[%s5374_s29 + $0xf0] sm:$0xf] }
  0x28   : > { %v243_v31 = vld [vmem:[%s5374_s29 + $0xf8] sm:$0xf]  ;;  %240 = vst [vmem:[%s5378_s30 + $0x74] sm:$0xf] %v239_v29  ;;  %242 = vst [vmem:[%s5378_s30 + $0x78] sm:$0xf] %v241_v30 }
  0x29   : > { %244 = vst [vmem:[%s5378_s30 + $0x7c] sm:$0xf] %v243_v31  ;;  %v245_v32 = vld [vmem:[%s5374_s29 + $0x100] sm:$0xf]  ;;  %v247_v33 = vld [vmem:[%s5374_s29 + $0x108] sm:$0xf] }
  0x2a   : > { %v249_v34 = vld [vmem:[%s5374_s29 + $0x110] sm:$0xf]  ;;  %246 = vst [vmem:[%s5378_s30 + $0x80] sm:$0xf] %v245_v32  ;;  %248 = vst [vmem:[%s5378_s30 + $0x84] sm:$0xf] %v247_v33 }
  0x2b   : > { %250 = vst [vmem:[%s5378_s30 + $0x88] sm:$0xf] %v249_v34  ;;  %v251_v35 = vld [vmem:[%s5374_s29 + $0x118] sm:$0xf]  ;;  %v253_v36 = vld [vmem:[%s5374_s29 + $0x120] sm:$0xf] }
  0x2c   : > { %v255_v37 = vld [vmem:[%s5374_s29 + $0x128] sm:$0xf]  ;;  %252 = vst [vmem:[%s5378_s30 + $0x8c] sm:$0xf] %v251_v35  ;;  %254 = vst [vmem:[%s5378_s30 + $0x90] sm:$0xf] %v253_v36 }
  0x2d   : > { %256 = vst [vmem:[%s5378_s30 + $0x94] sm:$0xf] %v255_v37  ;;  %v257_v38 = vld [vmem:[%s5374_s29 + $0x130] sm:$0xf]  ;;  %v259_v39 = vld [vmem:[%s5374_s29 + $0x138] sm:$0xf] }
  0x2e   : > { %v261_v40 = vld [vmem:[%s5374_s29 + $0x140] sm:$0xf]  ;;  %258 = vst [vmem:[%s5378_s30 + $0x98] sm:$0xf] %v257_v38  ;;  %260 = vst [vmem:[%s5378_s30 + $0x9c] sm:$0xf] %v259_v39 }
  0x2f   : > { %262 = vst [vmem:[%s5378_s30 + $0xa0] sm:$0xf] %v261_v40  ;;  %v263_v41 = vld [vmem:[%s5374_s29 + $0x148] sm:$0xf]  ;;  %v265_v42 = vld [vmem:[%s5374_s29 + $0x150] sm:$0xf] }
  0x30   : > { %v267_v43 = vld [vmem:[%s5374_s29 + $0x158] sm:$0xf]  ;;  %264 = vst [vmem:[%s5378_s30 + $0xa4] sm:$0xf] %v263_v41  ;;  %266 = vst [vmem:[%s5378_s30 + $0xa8] sm:$0xf] %v265_v42 }
  0x31   : > { %268 = vst [vmem:[%s5378_s30 + $0xac] sm:$0xf] %v267_v43  ;;  %v269_v44 = vld [vmem:[%s5374_s29 + $0x160] sm:$0xf]  ;;  %v271_v45 = vld [vmem:[%s5374_s29 + $0x168] sm:$0xf] }
  0x32   : > { %v273_v46 = vld [vmem:[%s5374_s29 + $0x170] sm:$0xf]  ;;  %270 = vst [vmem:[%s5378_s30 + $0xb0] sm:$0xf] %v269_v44  ;;  %272 = vst [vmem:[%s5378_s30 + $0xb4] sm:$0xf] %v271_v45 }
  0x33   : > { %274 = vst [vmem:[%s5378_s30 + $0xb8] sm:$0xf] %v273_v46  ;;  %v275_v47 = vld [vmem:[%s5374_s29 + $0x178] sm:$0xf]  ;;  %v277_v48 = vld [vmem:[%s5374_s29 + $0x180] sm:$0xf] }
  0x34   : > { %v279_v49 = vld [vmem:[%s5374_s29 + $0x188] sm:$0xf]  ;;  %276 = vst [vmem:[%s5378_s30 + $0xbc] sm:$0xf] %v275_v47  ;;  %278 = vst [vmem:[%s5378_s30 + $0xc0] sm:$0xf] %v277_v48 }
  0x35   : > { %280 = vst [vmem:[%s5378_s30 + $0xc4] sm:$0xf] %v279_v49  ;;  %v281_v50 = vld [vmem:[%s5374_s29 + $0x190] sm:$0xf]  ;;  %v283_v51 = vld [vmem:[%s5374_s29 + $0x198] sm:$0xf] }
  0x36   : > { %v285_v52 = vld [vmem:[%s5374_s29 + $0x1a0] sm:$0xf]  ;;  %282 = vst [vmem:[%s5378_s30 + $0xc8] sm:$0xf] %v281_v50  ;;  %284 = vst [vmem:[%s5378_s30 + $0xcc] sm:$0xf] %v283_v51 }
  0x37   : > { %286 = vst [vmem:[%s5378_s30 + $0xd0] sm:$0xf] %v285_v52  ;;  %v287_v53 = vld [vmem:[%s5374_s29 + $0x1a8] sm:$0xf]  ;;  %v289_v54 = vld [vmem:[%s5374_s29 + $0x1b0] sm:$0xf] }
  0x38   : > { %v291_v55 = vld [vmem:[%s5374_s29 + $0x1b8] sm:$0xf]  ;;  %288 = vst [vmem:[%s5378_s30 + $0xd4] sm:$0xf] %v287_v53  ;;  %290 = vst [vmem:[%s5378_s30 + $0xd8] sm:$0xf] %v289_v54 }
  0x39   : > { %292 = vst [vmem:[%s5378_s30 + $0xdc] sm:$0xf] %v291_v55  ;;  %v293_v56 = vld [vmem:[%s5374_s29 + $0x1c0] sm:$0xf]  ;;  %v295_v57 = vld [vmem:[%s5374_s29 + $0x1c8] sm:$0xf] }
  0x3a   : > { %v297_v58 = vld [vmem:[%s5374_s29 + $0x1d0] sm:$0xf]  ;;  %294 = vst [vmem:[%s5378_s30 + $0xe0] sm:$0xf] %v293_v56  ;;  %296 = vst [vmem:[%s5378_s30 + $0xe4] sm:$0xf] %v295_v57 }
  0x3b   : > { %298 = vst [vmem:[%s5378_s30 + $0xe8] sm:$0xf] %v297_v58  ;;  %v299_v59 = vld [vmem:[%s5374_s29 + $0x1d8] sm:$0xf]  ;;  %v301_v60 = vld [vmem:[%s5374_s29 + $0x1e0] sm:$0xf] }
  0x3c   : > { %v303_v61 = vld [vmem:[%s5374_s29 + $0x1e8] sm:$0xf]  ;;  %300 = vst [vmem:[%s5378_s30 + $0xec] sm:$0xf] %v299_v59  ;;  %302 = vst [vmem:[%s5378_s30 + $0xf0] sm:$0xf] %v301_v60 }
  0x3d   : > { %304 = vst [vmem:[%s5378_s30 + $0xf4] sm:$0xf] %v303_v61  ;;  %v305_v62 = vld [vmem:[%s5374_s29 + $0x1f0] sm:$0xf]  ;;  %v307_v63 = vld [vmem:[%s5374_s29 + $0x1f8] sm:$0xf] }
  0x3e   : > { %v309_v0 = vld [vmem:[%s5374_s29 + $0x200] sm:$0xf]  ;;  %306 = vst [vmem:[%s5378_s30 + $0xf8] sm:$0xf] %v305_v62  ;;  %308 = vst [vmem:[%s5378_s30 + $0xfc] sm:$0xf] %v307_v63 }
  0x3f   : > { %310 = vst [vmem:[%s5378_s30 + $0x100] sm:$0xf] %v309_v0  ;;  %v311_v1 = vld [vmem:[%s5374_s29 + $0x208] sm:$0xf]  ;;  %v313_v2 = vld [vmem:[%s5374_s29 + $0x210] sm:$0xf] }
  0x40   : > { %v315_v3 = vld [vmem:[%s5374_s29 + $0x218] sm:$0xf]  ;;  %312 = vst [vmem:[%s5378_s30 + $0x104] sm:$0xf] %v311_v1  ;;  %314 = vst [vmem:[%s5378_s30 + $0x108] sm:$0xf] %v313_v2 }
  0x41   : > { %316 = vst [vmem:[%s5378_s30 + $0x10c] sm:$0xf] %v315_v3  ;;  %v317_v4 = vld [vmem:[%s5374_s29 + $0x220] sm:$0xf]  ;;  %v319_v5 = vld [vmem:[%s5374_s29 + $0x228] sm:$0xf] }
  0x42   : > { %v321_v6 = vld [vmem:[%s5374_s29 + $0x230] sm:$0xf]  ;;  %318 = vst [vmem:[%s5378_s30 + $0x110] sm:$0xf] %v317_v4  ;;  %320 = vst [vmem:[%s5378_s30 + $0x114] sm:$0xf] %v319_v5 }
  0x43   : > { %322 = vst [vmem:[%s5378_s30 + $0x118] sm:$0xf] %v321_v6  ;;  %v323_v7 = vld [vmem:[%s5374_s29 + $0x238] sm:$0xf]  ;;  %v325_v8 = vld [vmem:[%s5374_s29 + $0x240] sm:$0xf] }
  0x44   : > { %v327_v9 = vld [vmem:[%s5374_s29 + $0x248] sm:$0xf]  ;;  %324 = vst [vmem:[%s5378_s30 + $0x11c] sm:$0xf] %v323_v7  ;;  %326 = vst [vmem:[%s5378_s30 + $0x120] sm:$0xf] %v325_v8 }
  0x45   : > { %328 = vst [vmem:[%s5378_s30 + $0x124] sm:$0xf] %v327_v9  ;;  %v329_v10 = vld [vmem:[%s5374_s29 + $0x250] sm:$0xf]  ;;  %v331_v11 = vld [vmem:[%s5374_s29 + $0x258] sm:$0xf] }
  0x46   : > { %v333_v12 = vld [vmem:[%s5374_s29 + $0x260] sm:$0xf]  ;;  %330 = vst [vmem:[%s5378_s30 + $0x128] sm:$0xf] %v329_v10  ;;  %332 = vst [vmem:[%s5378_s30 + $0x12c] sm:$0xf] %v331_v11 }
  0x47   : > { %334 = vst [vmem:[%s5378_s30 + $0x130] sm:$0xf] %v333_v12  ;;  %v335_v13 = vld [vmem:[%s5374_s29 + $0x268] sm:$0xf]  ;;  %v337_v14 = vld [vmem:[%s5374_s29 + $0x270] sm:$0xf] }
  0x48   : > { %v339_v15 = vld [vmem:[%s5374_s29 + $0x278] sm:$0xf]  ;;  %336 = vst [vmem:[%s5378_s30 + $0x134] sm:$0xf] %v335_v13  ;;  %338 = vst [vmem:[%s5378_s30 + $0x138] sm:$0xf] %v337_v14 }
  0x49   : > { %340 = vst [vmem:[%s5378_s30 + $0x13c] sm:$0xf] %v339_v15  ;;  %v341_v16 = vld [vmem:[%s5374_s29 + $0x280] sm:$0xf]  ;;  %v343_v17 = vld [vmem:[%s5374_s29 + $0x288] sm:$0xf] }
  0x4a   : > { %v345_v18 = vld [vmem:[%s5374_s29 + $0x290] sm:$0xf]  ;;  %342 = vst [vmem:[%s5378_s30 + $0x140] sm:$0xf] %v341_v16  ;;  %344 = vst [vmem:[%s5378_s30 + $0x144] sm:$0xf] %v343_v17 }
  0x4b   : > { %346 = vst [vmem:[%s5378_s30 + $0x148] sm:$0xf] %v345_v18  ;;  %v347_v19 = vld [vmem:[%s5374_s29 + $0x298] sm:$0xf]  ;;  %v349_v20 = vld [vmem:[%s5374_s29 + $0x2a0] sm:$0xf] }
  0x4c   : > { %v351_v21 = vld [vmem:[%s5374_s29 + $0x2a8] sm:$0xf]  ;;  %348 = vst [vmem:[%s5378_s30 + $0x14c] sm:$0xf] %v347_v19  ;;  %350 = vst [vmem:[%s5378_s30 + $0x150] sm:$0xf] %v349_v20 }
  0x4d   : > { %352 = vst [vmem:[%s5378_s30 + $0x154] sm:$0xf] %v351_v21  ;;  %v353_v22 = vld [vmem:[%s5374_s29 + $0x2b0] sm:$0xf]  ;;  %v355_v23 = vld [vmem:[%s5374_s29 + $0x2b8] sm:$0xf] }
  0x4e   : > { %v357_v24 = vld [vmem:[%s5374_s29 + $0x2c0] sm:$0xf]  ;;  %354 = vst [vmem:[%s5378_s30 + $0x158] sm:$0xf] %v353_v22  ;;  %356 = vst [vmem:[%s5378_s30 + $0x15c] sm:$0xf] %v355_v23 }
  0x4f   : > { %358 = vst [vmem:[%s5378_s30 + $0x160] sm:$0xf] %v357_v24  ;;  %v359_v25 = vld [vmem:[%s5374_s29 + $0x2c8] sm:$0xf]  ;;  %v361_v26 = vld [vmem:[%s5374_s29 + $0x2d0] sm:$0xf] }
  0x50   : > { %v363_v27 = vld [vmem:[%s5374_s29 + $0x2d8] sm:$0xf]  ;;  %360 = vst [vmem:[%s5378_s30 + $0x164] sm:$0xf] %v359_v25  ;;  %362 = vst [vmem:[%s5378_s30 + $0x168] sm:$0xf] %v361_v26 }
  0x51   : > { %364 = vst [vmem:[%s5378_s30 + $0x16c] sm:$0xf] %v363_v27  ;;  %v365_v28 = vld [vmem:[%s5374_s29 + $0x2e0] sm:$0xf]  ;;  %v367_v29 = vld [vmem:[%s5374_s29 + $0x2e8] sm:$0xf] }
  0x52   : > { %v369_v30 = vld [vmem:[%s5374_s29 + $0x2f0] sm:$0xf]  ;;  %366 = vst [vmem:[%s5378_s30 + $0x170] sm:$0xf] %v365_v28  ;;  %368 = vst [vmem:[%s5378_s30 + $0x174] sm:$0xf] %v367_v29 }
  0x53   : > { %370 = vst [vmem:[%s5378_s30 + $0x178] sm:$0xf] %v369_v30  ;;  %v371_v31 = vld [vmem:[%s5374_s29 + $0x2f8] sm:$0xf]  ;;  %v373_v32 = vld [vmem:[%s5374_s29 + $0x300] sm:$0xf] }
  0x54   : > { %v375_v33 = vld [vmem:[%s5374_s29 + $0x308] sm:$0xf]  ;;  %372 = vst [vmem:[%s5378_s30 + $0x17c] sm:$0xf] %v371_v31  ;;  %374 = vst [vmem:[%s5378_s30 + $0x180] sm:$0xf] %v373_v32 }
  0x55   : > { %376 = vst [vmem:[%s5378_s30 + $0x184] sm:$0xf] %v375_v33  ;;  %v377_v34 = vld [vmem:[%s5374_s29 + $0x310] sm:$0xf]  ;;  %v379_v35 = vld [vmem:[%s5374_s29 + $0x318] sm:$0xf] }
  0x56   : > { %v381_v36 = vld [vmem:[%s5374_s29 + $0x320] sm:$0xf]  ;;  %378 = vst [vmem:[%s5378_s30 + $0x188] sm:$0xf] %v377_v34  ;;  %380 = vst [vmem:[%s5378_s30 + $0x18c] sm:$0xf] %v379_v35 }
  0x57   : > { %382 = vst [vmem:[%s5378_s30 + $0x190] sm:$0xf] %v381_v36  ;;  %v383_v37 = vld [vmem:[%s5374_s29 + $0x328] sm:$0xf]  ;;  %v385_v38 = vld [vmem:[%s5374_s29 + $0x330] sm:$0xf] }
  0x58   : > { %v387_v39 = vld [vmem:[%s5374_s29 + $0x338] sm:$0xf]  ;;  %384 = vst [vmem:[%s5378_s30 + $0x194] sm:$0xf] %v383_v37  ;;  %386 = vst [vmem:[%s5378_s30 + $0x198] sm:$0xf] %v385_v38 }
  0x59   : > { %388 = vst [vmem:[%s5378_s30 + $0x19c] sm:$0xf] %v387_v39  ;;  %v389_v40 = vld [vmem:[%s5374_s29 + $0x340] sm:$0xf]  ;;  %v391_v41 = vld [vmem:[%s5374_s29 + $0x348] sm:$0xf] }
  0x5a   : > { %v393_v42 = vld [vmem:[%s5374_s29 + $0x350] sm:$0xf]  ;;  %390 = vst [vmem:[%s5378_s30 + $0x1a0] sm:$0xf] %v389_v40  ;;  %392 = vst [vmem:[%s5378_s30 + $0x1a4] sm:$0xf] %v391_v41 }
  0x5b   : > { %394 = vst [vmem:[%s5378_s30 + $0x1a8] sm:$0xf] %v393_v42  ;;  %v395_v43 = vld [vmem:[%s5374_s29 + $0x358] sm:$0xf]  ;;  %v397_v44 = vld [vmem:[%s5374_s29 + $0x360] sm:$0xf] }
  0x5c   : > { %v399_v45 = vld [vmem:[%s5374_s29 + $0x368] sm:$0xf]  ;;  %396 = vst [vmem:[%s5378_s30 + $0x1ac] sm:$0xf] %v395_v43  ;;  %398 = vst [vmem:[%s5378_s30 + $0x1b0] sm:$0xf] %v397_v44 }
  0x5d   : > { %400 = vst [vmem:[%s5378_s30 + $0x1b4] sm:$0xf] %v399_v45  ;;  %v401_v46 = vld [vmem:[%s5374_s29 + $0x370] sm:$0xf]  ;;  %v403_v47 = vld [vmem:[%s5374_s29 + $0x378] sm:$0xf] }
  0x5e   : > { %v405_v48 = vld [vmem:[%s5374_s29 + $0x380] sm:$0xf]  ;;  %402 = vst [vmem:[%s5378_s30 + $0x1b8] sm:$0xf] %v401_v46  ;;  %404 = vst [vmem:[%s5378_s30 + $0x1bc] sm:$0xf] %v403_v47 }
  0x5f   : > { %406 = vst [vmem:[%s5378_s30 + $0x1c0] sm:$0xf] %v405_v48  ;;  %v407_v49 = vld [vmem:[%s5374_s29 + $0x388] sm:$0xf]  ;;  %v409_v50 = vld [vmem:[%s5374_s29 + $0x390] sm:$0xf] }
  0x60   : > { %v411_v51 = vld [vmem:[%s5374_s29 + $0x398] sm:$0xf]  ;;  %408 = vst [vmem:[%s5378_s30 + $0x1c4] sm:$0xf] %v407_v49  ;;  %410 = vst [vmem:[%s5378_s30 + $0x1c8] sm:$0xf] %v409_v50 }
  0x61   : > { %412 = vst [vmem:[%s5378_s30 + $0x1cc] sm:$0xf] %v411_v51  ;;  %v413_v52 = vld [vmem:[%s5374_s29 + $0x3a0] sm:$0xf]  ;;  %v415_v53 = vld [vmem:[%s5374_s29 + $0x3a8] sm:$0xf] }
  0x62   : > { %v417_v54 = vld [vmem:[%s5374_s29 + $0x3b0] sm:$0xf]  ;;  %414 = vst [vmem:[%s5378_s30 + $0x1d0] sm:$0xf] %v413_v52  ;;  %416 = vst [vmem:[%s5378_s30 + $0x1d4] sm:$0xf] %v415_v53 }
  0x63   : > { %418 = vst [vmem:[%s5378_s30 + $0x1d8] sm:$0xf] %v417_v54  ;;  %v419_v55 = vld [vmem:[%s5374_s29 + $0x3b8] sm:$0xf]  ;;  %v421_v56 = vld [vmem:[%s5374_s29 + $0x3c0] sm:$0xf] }
  0x64   : > { %v423_v57 = vld [vmem:[%s5374_s29 + $0x3c8] sm:$0xf]  ;;  %420 = vst [vmem:[%s5378_s30 + $0x1dc] sm:$0xf] %v419_v55  ;;  %422 = vst [vmem:[%s5378_s30 + $0x1e0] sm:$0xf] %v421_v56 }
  0x65   : > { %424 = vst [vmem:[%s5378_s30 + $0x1e4] sm:$0xf] %v423_v57  ;;  %v425_v58 = vld [vmem:[%s5374_s29 + $0x3d0] sm:$0xf]  ;;  %v427_v59 = vld [vmem:[%s5374_s29 + $0x3d8] sm:$0xf] }
  0x66   : > { %v429_v60 = vld [vmem:[%s5374_s29 + $0x3e0] sm:$0xf]  ;;  %426 = vst [vmem:[%s5378_s30 + $0x1e8] sm:$0xf] %v425_v58  ;;  %428 = vst [vmem:[%s5378_s30 + $0x1ec] sm:$0xf] %v427_v59 }
  0x67   : > { %430 = vst [vmem:[%s5378_s30 + $0x1f0] sm:$0xf] %v429_v60  ;;  %v431_v61 = vld [vmem:[%s5374_s29 + $0x3e8] sm:$0xf]  ;;  %v433_v62 = vld [vmem:[%s5374_s29 + $0x3f0] sm:$0xf] }
  0x68   : > { %v435_v63 = vld [vmem:[%s5374_s29 + $0x3f8] sm:$0xf]  ;;  %432 = vst [vmem:[%s5378_s30 + $0x1f4] sm:$0xf] %v431_v61  ;;  %434 = vst [vmem:[%s5378_s30 + $0x1f8] sm:$0xf] %v433_v62 }
  0x69   : > { %436 = vst [vmem:[%s5378_s30 + $0x1fc] sm:$0xf] %v435_v63  ;;  %v437_v0 = vld [vmem:[%s5374_s29 + $0x400] sm:$0xf]  ;;  %v439_v1 = vld [vmem:[%s5374_s29 + $0x408] sm:$0xf] }
  0x6a   : > { %v441_v2 = vld [vmem:[%s5374_s29 + $0x410] sm:$0xf]  ;;  %438 = vst [vmem:[%s5378_s30 + $0x200] sm:$0xf] %v437_v0  ;;  %440 = vst [vmem:[%s5378_s30 + $0x204] sm:$0xf] %v439_v1 }
  0x6b   : > { %442 = vst [vmem:[%s5378_s30 + $0x208] sm:$0xf] %v441_v2  ;;  %v443_v3 = vld [vmem:[%s5374_s29 + $0x418] sm:$0xf]  ;;  %v445_v4 = vld [vmem:[%s5374_s29 + $0x420] sm:$0xf] }
  0x6c   : > { %v447_v5 = vld [vmem:[%s5374_s29 + $0x428] sm:$0xf]  ;;  %444 = vst [vmem:[%s5378_s30 + $0x20c] sm:$0xf] %v443_v3  ;;  %446 = vst [vmem:[%s5378_s30 + $0x210] sm:$0xf] %v445_v4 }
  0x6d   : > { %448 = vst [vmem:[%s5378_s30 + $0x214] sm:$0xf] %v447_v5  ;;  %v449_v6 = vld [vmem:[%s5374_s29 + $0x430] sm:$0xf]  ;;  %v451_v7 = vld [vmem:[%s5374_s29 + $0x438] sm:$0xf] }
  0x6e   : > { %v453_v8 = vld [vmem:[%s5374_s29 + $0x440] sm:$0xf]  ;;  %450 = vst [vmem:[%s5378_s30 + $0x218] sm:$0xf] %v449_v6  ;;  %452 = vst [vmem:[%s5378_s30 + $0x21c] sm:$0xf] %v451_v7 }
  0x6f   : > { %454 = vst [vmem:[%s5378_s30 + $0x220] sm:$0xf] %v453_v8  ;;  %v455_v9 = vld [vmem:[%s5374_s29 + $0x448] sm:$0xf]  ;;  %v457_v10 = vld [vmem:[%s5374_s29 + $0x450] sm:$0xf] }
  0x70   : > { %v459_v11 = vld [vmem:[%s5374_s29 + $0x458] sm:$0xf]  ;;  %456 = vst [vmem:[%s5378_s30 + $0x224] sm:$0xf] %v455_v9  ;;  %458 = vst [vmem:[%s5378_s30 + $0x228] sm:$0xf] %v457_v10 }
  0x71   : > { %460 = vst [vmem:[%s5378_s30 + $0x22c] sm:$0xf] %v459_v11  ;;  %v461_v12 = vld [vmem:[%s5374_s29 + $0x460] sm:$0xf]  ;;  %v463_v13 = vld [vmem:[%s5374_s29 + $0x468] sm:$0xf] }
  0x72   : > { %v465_v14 = vld [vmem:[%s5374_s29 + $0x470] sm:$0xf]  ;;  %462 = vst [vmem:[%s5378_s30 + $0x230] sm:$0xf] %v461_v12  ;;  %464 = vst [vmem:[%s5378_s30 + $0x234] sm:$0xf] %v463_v13 }
  0x73   : > { %466 = vst [vmem:[%s5378_s30 + $0x238] sm:$0xf] %v465_v14  ;;  %v467_v15 = vld [vmem:[%s5374_s29 + $0x478] sm:$0xf]  ;;  %v469_v16 = vld [vmem:[%s5374_s29 + $0x480] sm:$0xf] }
  0x74   : > { %v471_v17 = vld [vmem:[%s5374_s29 + $0x488] sm:$0xf]  ;;  %468 = vst [vmem:[%s5378_s30 + $0x23c] sm:$0xf] %v467_v15  ;;  %470 = vst [vmem:[%s5378_s30 + $0x240] sm:$0xf] %v469_v16 }
  0x75   : > { %472 = vst [vmem:[%s5378_s30 + $0x244] sm:$0xf] %v471_v17  ;;  %v473_v18 = vld [vmem:[%s5374_s29 + $0x490] sm:$0xf]  ;;  %v475_v19 = vld [vmem:[%s5374_s29 + $0x498] sm:$0xf] }
  0x76   : > { %v477_v20 = vld [vmem:[%s5374_s29 + $0x4a0] sm:$0xf]  ;;  %474 = vst [vmem:[%s5378_s30 + $0x248] sm:$0xf] %v473_v18  ;;  %476 = vst [vmem:[%s5378_s30 + $0x24c] sm:$0xf] %v475_v19 }
  0x77   : > { %478 = vst [vmem:[%s5378_s30 + $0x250] sm:$0xf] %v477_v20  ;;  %v479_v21 = vld [vmem:[%s5374_s29 + $0x4a8] sm:$0xf]  ;;  %v481_v22 = vld [vmem:[%s5374_s29 + $0x4b0] sm:$0xf] }
  0x78   : > { %v483_v23 = vld [vmem:[%s5374_s29 + $0x4b8] sm:$0xf]  ;;  %480 = vst [vmem:[%s5378_s30 + $0x254] sm:$0xf] %v479_v21  ;;  %482 = vst [vmem:[%s5378_s30 + $0x258] sm:$0xf] %v481_v22 }
  0x79   : > { %484 = vst [vmem:[%s5378_s30 + $0x25c] sm:$0xf] %v483_v23  ;;  %v485_v24 = vld [vmem:[%s5374_s29 + $0x4c0] sm:$0xf]  ;;  %v487_v25 = vld [vmem:[%s5374_s29 + $0x4c8] sm:$0xf] }
  0x7a   : > { %v489_v26 = vld [vmem:[%s5374_s29 + $0x4d0] sm:$0xf]  ;;  %486 = vst [vmem:[%s5378_s30 + $0x260] sm:$0xf] %v485_v24  ;;  %488 = vst [vmem:[%s5378_s30 + $0x264] sm:$0xf] %v487_v25 }
  0x7b   : > { %490 = vst [vmem:[%s5378_s30 + $0x268] sm:$0xf] %v489_v26  ;;  %v491_v27 = vld [vmem:[%s5374_s29 + $0x4d8] sm:$0xf]  ;;  %v493_v28 = vld [vmem:[%s5374_s29 + $0x4e0] sm:$0xf] }
  0x7c   : > { %v495_v29 = vld [vmem:[%s5374_s29 + $0x4e8] sm:$0xf]  ;;  %492 = vst [vmem:[%s5378_s30 + $0x26c] sm:$0xf] %v491_v27  ;;  %494 = vst [vmem:[%s5378_s30 + $0x270] sm:$0xf] %v493_v28 }
  0x7d   : > { %496 = vst [vmem:[%s5378_s30 + $0x274] sm:$0xf] %v495_v29  ;;  %v497_v30 = vld [vmem:[%s5374_s29 + $0x4f0] sm:$0xf]  ;;  %v499_v31 = vld [vmem:[%s5374_s29 + $0x4f8] sm:$0xf] }
  0x7e   : > { %v501_v32 = vld [vmem:[%s5374_s29 + $0x500] sm:$0xf]  ;;  %498 = vst [vmem:[%s5378_s30 + $0x278] sm:$0xf] %v497_v30  ;;  %500 = vst [vmem:[%s5378_s30 + $0x27c] sm:$0xf] %v499_v31 }
  0x7f   : > { %502 = vst [vmem:[%s5378_s30 + $0x280] sm:$0xf] %v501_v32  ;;  %v503_v33 = vld [vmem:[%s5374_s29 + $0x508] sm:$0xf]  ;;  %v505_v34 = vld [vmem:[%s5374_s29 + $0x510] sm:$0xf] }
  0x80   : > { %v507_v35 = vld [vmem:[%s5374_s29 + $0x518] sm:$0xf]  ;;  %504 = vst [vmem:[%s5378_s30 + $0x284] sm:$0xf] %v503_v33  ;;  %506 = vst [vmem:[%s5378_s30 + $0x288] sm:$0xf] %v505_v34 }
  0x81   : > { %508 = vst [vmem:[%s5378_s30 + $0x28c] sm:$0xf] %v507_v35  ;;  %v509_v36 = vld [vmem:[%s5374_s29 + $0x520] sm:$0xf]  ;;  %v511_v37 = vld [vmem:[%s5374_s29 + $0x528] sm:$0xf] }
  0x82   : > { %v513_v38 = vld [vmem:[%s5374_s29 + $0x530] sm:$0xf]  ;;  %510 = vst [vmem:[%s5378_s30 + $0x290] sm:$0xf] %v509_v36  ;;  %512 = vst [vmem:[%s5378_s30 + $0x294] sm:$0xf] %v511_v37 }
  0x83   : > { %514 = vst [vmem:[%s5378_s30 + $0x298] sm:$0xf] %v513_v38  ;;  %v515_v39 = vld [vmem:[%s5374_s29 + $0x538] sm:$0xf]  ;;  %v517_v40 = vld [vmem:[%s5374_s29 + $0x540] sm:$0xf] }
  0x84   : > { %v519_v41 = vld [vmem:[%s5374_s29 + $0x548] sm:$0xf]  ;;  %516 = vst [vmem:[%s5378_s30 + $0x29c] sm:$0xf] %v515_v39  ;;  %518 = vst [vmem:[%s5378_s30 + $0x2a0] sm:$0xf] %v517_v40 }
  0x85   : > { %520 = vst [vmem:[%s5378_s30 + $0x2a4] sm:$0xf] %v519_v41  ;;  %v521_v42 = vld [vmem:[%s5374_s29 + $0x550] sm:$0xf]  ;;  %v523_v43 = vld [vmem:[%s5374_s29 + $0x558] sm:$0xf] }
  0x86   : > { %v525_v44 = vld [vmem:[%s5374_s29 + $0x560] sm:$0xf]  ;;  %522 = vst [vmem:[%s5378_s30 + $0x2a8] sm:$0xf] %v521_v42  ;;  %524 = vst [vmem:[%s5378_s30 + $0x2ac] sm:$0xf] %v523_v43 }
  0x87   : > { %526 = vst [vmem:[%s5378_s30 + $0x2b0] sm:$0xf] %v525_v44  ;;  %v527_v45 = vld [vmem:[%s5374_s29 + $0x568] sm:$0xf]  ;;  %v529_v46 = vld [vmem:[%s5374_s29 + $0x570] sm:$0xf] }
  0x88   : > { %v531_v47 = vld [vmem:[%s5374_s29 + $0x578] sm:$0xf]  ;;  %528 = vst [vmem:[%s5378_s30 + $0x2b4] sm:$0xf] %v527_v45  ;;  %530 = vst [vmem:[%s5378_s30 + $0x2b8] sm:$0xf] %v529_v46 }
  0x89   : > { %532 = vst [vmem:[%s5378_s30 + $0x2bc] sm:$0xf] %v531_v47  ;;  %v533_v48 = vld [vmem:[%s5374_s29 + $0x580] sm:$0xf]  ;;  %v535_v49 = vld [vmem:[%s5374_s29 + $0x588] sm:$0xf] }
  0x8a   : > { %v537_v50 = vld [vmem:[%s5374_s29 + $0x590] sm:$0xf]  ;;  %534 = vst [vmem:[%s5378_s30 + $0x2c0] sm:$0xf] %v533_v48  ;;  %536 = vst [vmem:[%s5378_s30 + $0x2c4] sm:$0xf] %v535_v49 }
  0x8b   : > { %538 = vst [vmem:[%s5378_s30 + $0x2c8] sm:$0xf] %v537_v50  ;;  %v539_v51 = vld [vmem:[%s5374_s29 + $0x598] sm:$0xf]  ;;  %v541_v52 = vld [vmem:[%s5374_s29 + $0x5a0] sm:$0xf] }
  0x8c   : > { %v543_v53 = vld [vmem:[%s5374_s29 + $0x5a8] sm:$0xf]  ;;  %540 = vst [vmem:[%s5378_s30 + $0x2cc] sm:$0xf] %v539_v51  ;;  %542 = vst [vmem:[%s5378_s30 + $0x2d0] sm:$0xf] %v541_v52 }
  0x8d   : > { %544 = vst [vmem:[%s5378_s30 + $0x2d4] sm:$0xf] %v543_v53  ;;  %v545_v54 = vld [vmem:[%s5374_s29 + $0x5b0] sm:$0xf]  ;;  %v547_v55 = vld [vmem:[%s5374_s29 + $0x5b8] sm:$0xf] }
  0x8e   : > { %v549_v56 = vld [vmem:[%s5374_s29 + $0x5c0] sm:$0xf]  ;;  %546 = vst [vmem:[%s5378_s30 + $0x2d8] sm:$0xf] %v545_v54  ;;  %548 = vst [vmem:[%s5378_s30 + $0x2dc] sm:$0xf] %v547_v55 }
  0x8f   : > { %550 = vst [vmem:[%s5378_s30 + $0x2e0] sm:$0xf] %v549_v56  ;;  %v551_v57 = vld [vmem:[%s5374_s29 + $0x5c8] sm:$0xf]  ;;  %v553_v58 = vld [vmem:[%s5374_s29 + $0x5d0] sm:$0xf] }
  0x90   : > { %v555_v59 = vld [vmem:[%s5374_s29 + $0x5d8] sm:$0xf]  ;;  %552 = vst [vmem:[%s5378_s30 + $0x2e4] sm:$0xf] %v551_v57  ;;  %554 = vst [vmem:[%s5378_s30 + $0x2e8] sm:$0xf] %v553_v58 }
  0x91   : > { %556 = vst [vmem:[%s5378_s30 + $0x2ec] sm:$0xf] %v555_v59  ;;  %v557_v60 = vld [vmem:[%s5374_s29 + $0x5e0] sm:$0xf]  ;;  %v559_v61 = vld [vmem:[%s5374_s29 + $0x5e8] sm:$0xf] }
  0x92   : > { %v561_v62 = vld [vmem:[%s5374_s29 + $0x5f0] sm:$0xf]  ;;  %558 = vst [vmem:[%s5378_s30 + $0x2f0] sm:$0xf] %v557_v60  ;;  %560 = vst [vmem:[%s5378_s30 + $0x2f4] sm:$0xf] %v559_v61 }
  0x93   : > { %562 = vst [vmem:[%s5378_s30 + $0x2f8] sm:$0xf] %v561_v62  ;;  %v563_v63 = vld [vmem:[%s5374_s29 + $0x5f8] sm:$0xf]  ;;  %v565_v0 = vld [vmem:[%s5374_s29 + $0x600] sm:$0xf] }
  0x94   : > { %v567_v1 = vld [vmem:[%s5374_s29 + $0x608] sm:$0xf]  ;;  %564 = vst [vmem:[%s5378_s30 + $0x2fc] sm:$0xf] %v563_v63  ;;  %566 = vst [vmem:[%s5378_s30 + $0x300] sm:$0xf] %v565_v0 }
  0x95   : > { %568 = vst [vmem:[%s5378_s30 + $0x304] sm:$0xf] %v567_v1  ;;  %v569_v2 = vld [vmem:[%s5374_s29 + $0x610] sm:$0xf]  ;;  %v571_v3 = vld [vmem:[%s5374_s29 + $0x618] sm:$0xf] }
  0x96   : > { %v573_v4 = vld [vmem:[%s5374_s29 + $0x620] sm:$0xf]  ;;  %570 = vst [vmem:[%s5378_s30 + $0x308] sm:$0xf] %v569_v2  ;;  %572 = vst [vmem:[%s5378_s30 + $0x30c] sm:$0xf] %v571_v3 }
  0x97   : > { %574 = vst [vmem:[%s5378_s30 + $0x310] sm:$0xf] %v573_v4  ;;  %v575_v5 = vld [vmem:[%s5374_s29 + $0x628] sm:$0xf]  ;;  %v577_v6 = vld [vmem:[%s5374_s29 + $0x630] sm:$0xf] }
  0x98   : > { %v579_v7 = vld [vmem:[%s5374_s29 + $0x638] sm:$0xf]  ;;  %576 = vst [vmem:[%s5378_s30 + $0x314] sm:$0xf] %v575_v5  ;;  %578 = vst [vmem:[%s5378_s30 + $0x318] sm:$0xf] %v577_v6 }
  0x99   : > { %580 = vst [vmem:[%s5378_s30 + $0x31c] sm:$0xf] %v579_v7  ;;  %v581_v8 = vld [vmem:[%s5374_s29 + $0x640] sm:$0xf]  ;;  %v583_v9 = vld [vmem:[%s5374_s29 + $0x648] sm:$0xf] }
  0x9a   : > { %v585_v10 = vld [vmem:[%s5374_s29 + $0x650] sm:$0xf]  ;;  %582 = vst [vmem:[%s5378_s30 + $0x320] sm:$0xf] %v581_v8  ;;  %584 = vst [vmem:[%s5378_s30 + $0x324] sm:$0xf] %v583_v9 }
  0x9b   : > { %586 = vst [vmem:[%s5378_s30 + $0x328] sm:$0xf] %v585_v10  ;;  %v587_v11 = vld [vmem:[%s5374_s29 + $0x658] sm:$0xf]  ;;  %v589_v12 = vld [vmem:[%s5374_s29 + $0x660] sm:$0xf] }
  0x9c   : > { %v591_v13 = vld [vmem:[%s5374_s29 + $0x668] sm:$0xf]  ;;  %588 = vst [vmem:[%s5378_s30 + $0x32c] sm:$0xf] %v587_v11  ;;  %590 = vst [vmem:[%s5378_s30 + $0x330] sm:$0xf] %v589_v12 }
  0x9d   : > { %592 = vst [vmem:[%s5378_s30 + $0x334] sm:$0xf] %v591_v13  ;;  %v593_v14 = vld [vmem:[%s5374_s29 + $0x670] sm:$0xf]  ;;  %v595_v15 = vld [vmem:[%s5374_s29 + $0x678] sm:$0xf] }
  0x9e   : > { %v597_v16 = vld [vmem:[%s5374_s29 + $0x680] sm:$0xf]  ;;  %594 = vst [vmem:[%s5378_s30 + $0x338] sm:$0xf] %v593_v14  ;;  %596 = vst [vmem:[%s5378_s30 + $0x33c] sm:$0xf] %v595_v15 }
  0x9f   : > { %598 = vst [vmem:[%s5378_s30 + $0x340] sm:$0xf] %v597_v16  ;;  %v599_v17 = vld [vmem:[%s5374_s29 + $0x688] sm:$0xf]  ;;  %v601_v18 = vld [vmem:[%s5374_s29 + $0x690] sm:$0xf] }
  0xa0   : > { %v603_v19 = vld [vmem:[%s5374_s29 + $0x698] sm:$0xf]  ;;  %600 = vst [vmem:[%s5378_s30 + $0x344] sm:$0xf] %v599_v17  ;;  %602 = vst [vmem:[%s5378_s30 + $0x348] sm:$0xf] %v601_v18 }
  0xa1   : > { %604 = vst [vmem:[%s5378_s30 + $0x34c] sm:$0xf] %v603_v19  ;;  %v605_v20 = vld [vmem:[%s5374_s29 + $0x6a0] sm:$0xf]  ;;  %v607_v21 = vld [vmem:[%s5374_s29 + $0x6a8] sm:$0xf] }
  0xa2   : > { %v609_v22 = vld [vmem:[%s5374_s29 + $0x6b0] sm:$0xf]  ;;  %606 = vst [vmem:[%s5378_s30 + $0x350] sm:$0xf] %v605_v20  ;;  %608 = vst [vmem:[%s5378_s30 + $0x354] sm:$0xf] %v607_v21 }
  0xa3   : > { %610 = vst [vmem:[%s5378_s30 + $0x358] sm:$0xf] %v609_v22  ;;  %v611_v23 = vld [vmem:[%s5374_s29 + $0x6b8] sm:$0xf]  ;;  %v613_v24 = vld [vmem:[%s5374_s29 + $0x6c0] sm:$0xf] }
  0xa4   : > { %v615_v25 = vld [vmem:[%s5374_s29 + $0x6c8] sm:$0xf]  ;;  %612 = vst [vmem:[%s5378_s30 + $0x35c] sm:$0xf] %v611_v23  ;;  %614 = vst [vmem:[%s5378_s30 + $0x360] sm:$0xf] %v613_v24 }
  0xa5   : > { %616 = vst [vmem:[%s5378_s30 + $0x364] sm:$0xf] %v615_v25  ;;  %v617_v26 = vld [vmem:[%s5374_s29 + $0x6d0] sm:$0xf]  ;;  %v619_v27 = vld [vmem:[%s5374_s29 + $0x6d8] sm:$0xf] }
  0xa6   : > { %v621_v28 = vld [vmem:[%s5374_s29 + $0x6e0] sm:$0xf]  ;;  %618 = vst [vmem:[%s5378_s30 + $0x368] sm:$0xf] %v617_v26  ;;  %620 = vst [vmem:[%s5378_s30 + $0x36c] sm:$0xf] %v619_v27 }
  0xa7   : > { %622 = vst [vmem:[%s5378_s30 + $0x370] sm:$0xf] %v621_v28  ;;  %v623_v29 = vld [vmem:[%s5374_s29 + $0x6e8] sm:$0xf]  ;;  %v625_v30 = vld [vmem:[%s5374_s29 + $0x6f0] sm:$0xf] }
  0xa8   : > { %v627_v31 = vld [vmem:[%s5374_s29 + $0x6f8] sm:$0xf]  ;;  %624 = vst [vmem:[%s5378_s30 + $0x374] sm:$0xf] %v623_v29  ;;  %626 = vst [vmem:[%s5378_s30 + $0x378] sm:$0xf] %v625_v30 }
  0xa9   : > { %628 = vst [vmem:[%s5378_s30 + $0x37c] sm:$0xf] %v627_v31  ;;  %v629_v32 = vld [vmem:[%s5374_s29 + $0x700] sm:$0xf]  ;;  %v631_v33 = vld [vmem:[%s5374_s29 + $0x708] sm:$0xf] }
  0xaa   : > { %v633_v34 = vld [vmem:[%s5374_s29 + $0x710] sm:$0xf]  ;;  %630 = vst [vmem:[%s5378_s30 + $0x380] sm:$0xf] %v629_v32  ;;  %632 = vst [vmem:[%s5378_s30 + $0x384] sm:$0xf] %v631_v33 }
  0xab   : > { %634 = vst [vmem:[%s5378_s30 + $0x388] sm:$0xf] %v633_v34  ;;  %v635_v35 = vld [vmem:[%s5374_s29 + $0x718] sm:$0xf]  ;;  %v637_v36 = vld [vmem:[%s5374_s29 + $0x720] sm:$0xf] }
  0xac   : > { %v639_v37 = vld [vmem:[%s5374_s29 + $0x728] sm:$0xf]  ;;  %636 = vst [vmem:[%s5378_s30 + $0x38c] sm:$0xf] %v635_v35  ;;  %638 = vst [vmem:[%s5378_s30 + $0x390] sm:$0xf] %v637_v36 }
  0xad   : > { %640 = vst [vmem:[%s5378_s30 + $0x394] sm:$0xf] %v639_v37  ;;  %v641_v38 = vld [vmem:[%s5374_s29 + $0x730] sm:$0xf]  ;;  %v643_v39 = vld [vmem:[%s5374_s29 + $0x738] sm:$0xf] }
  0xae   : > { %v645_v40 = vld [vmem:[%s5374_s29 + $0x740] sm:$0xf]  ;;  %642 = vst [vmem:[%s5378_s30 + $0x398] sm:$0xf] %v641_v38  ;;  %644 = vst [vmem:[%s5378_s30 + $0x39c] sm:$0xf] %v643_v39 }
  0xaf   : > { %646 = vst [vmem:[%s5378_s30 + $0x3a0] sm:$0xf] %v645_v40  ;;  %v647_v41 = vld [vmem:[%s5374_s29 + $0x748] sm:$0xf]  ;;  %v649_v42 = vld [vmem:[%s5374_s29 + $0x750] sm:$0xf] }
  0xb0   : > { %v651_v43 = vld [vmem:[%s5374_s29 + $0x758] sm:$0xf]  ;;  %648 = vst [vmem:[%s5378_s30 + $0x3a4] sm:$0xf] %v647_v41  ;;  %650 = vst [vmem:[%s5378_s30 + $0x3a8] sm:$0xf] %v649_v42 }
  0xb1   : > { %652 = vst [vmem:[%s5378_s30 + $0x3ac] sm:$0xf] %v651_v43  ;;  %v653_v44 = vld [vmem:[%s5374_s29 + $0x760] sm:$0xf]  ;;  %v655_v45 = vld [vmem:[%s5374_s29 + $0x768] sm:$0xf] }
  0xb2   : > { %v657_v46 = vld [vmem:[%s5374_s29 + $0x770] sm:$0xf]  ;;  %654 = vst [vmem:[%s5378_s30 + $0x3b0] sm:$0xf] %v653_v44  ;;  %656 = vst [vmem:[%s5378_s30 + $0x3b4] sm:$0xf] %v655_v45 }
  0xb3   : > { %658 = vst [vmem:[%s5378_s30 + $0x3b8] sm:$0xf] %v657_v46  ;;  %v659_v47 = vld [vmem:[%s5374_s29 + $0x778] sm:$0xf]  ;;  %v661_v48 = vld [vmem:[%s5374_s29 + $0x780] sm:$0xf] }
  0xb4   : > { %v663_v49 = vld [vmem:[%s5374_s29 + $0x788] sm:$0xf]  ;;  %660 = vst [vmem:[%s5378_s30 + $0x3bc] sm:$0xf] %v659_v47  ;;  %662 = vst [vmem:[%s5378_s30 + $0x3c0] sm:$0xf] %v661_v48 }
  0xb5   : > { %664 = vst [vmem:[%s5378_s30 + $0x3c4] sm:$0xf] %v663_v49  ;;  %v665_v50 = vld [vmem:[%s5374_s29 + $0x790] sm:$0xf]  ;;  %v667_v51 = vld [vmem:[%s5374_s29 + $0x798] sm:$0xf] }
  0xb6   : > { %v669_v52 = vld [vmem:[%s5374_s29 + $0x7a0] sm:$0xf]  ;;  %666 = vst [vmem:[%s5378_s30 + $0x3c8] sm:$0xf] %v665_v50  ;;  %668 = vst [vmem:[%s5378_s30 + $0x3cc] sm:$0xf] %v667_v51 }
  0xb7   : > { %670 = vst [vmem:[%s5378_s30 + $0x3d0] sm:$0xf] %v669_v52  ;;  %v671_v53 = vld [vmem:[%s5374_s29 + $0x7a8] sm:$0xf]  ;;  %v673_v54 = vld [vmem:[%s5374_s29 + $0x7b0] sm:$0xf] }
  0xb8   : > { %v675_v55 = vld [vmem:[%s5374_s29 + $0x7b8] sm:$0xf]  ;;  %672 = vst [vmem:[%s5378_s30 + $0x3d4] sm:$0xf] %v671_v53  ;;  %674 = vst [vmem:[%s5378_s30 + $0x3d8] sm:$0xf] %v673_v54 }
  0xb9   : > { %676 = vst [vmem:[%s5378_s30 + $0x3dc] sm:$0xf] %v675_v55  ;;  %v677_v56 = vld [vmem:[%s5374_s29 + $0x7c0] sm:$0xf]  ;;  %v679_v57 = vld [vmem:[%s5374_s29 + $0x7c8] sm:$0xf] }
  0xba   : > { %v681_v58 = vld [vmem:[%s5374_s29 + $0x7d0] sm:$0xf]  ;;  %678 = vst [vmem:[%s5378_s30 + $0x3e0] sm:$0xf] %v677_v56  ;;  %680 = vst [vmem:[%s5378_s30 + $0x3e4] sm:$0xf] %v679_v57 }
  0xbb   : > { %682 = vst [vmem:[%s5378_s30 + $0x3e8] sm:$0xf] %v681_v58  ;;  %v683_v59 = vld [vmem:[%s5374_s29 + $0x7d8] sm:$0xf]  ;;  %v685_v60 = vld [vmem:[%s5374_s29 + $0x7e0] sm:$0xf] }
  0xbc   : > { %v687_v61 = vld [vmem:[%s5374_s29 + $0x7e8] sm:$0xf]  ;;  %684 = vst [vmem:[%s5378_s30 + $0x3ec] sm:$0xf] %v683_v59  ;;  %686 = vst [vmem:[%s5378_s30 + $0x3f0] sm:$0xf] %v685_v60 }
  0xbd   : > { %688 = vst [vmem:[%s5378_s30 + $0x3f4] sm:$0xf] %v687_v61  ;;  %v689_v62 = vld [vmem:[%s5374_s29 + $0x7f0] sm:$0xf]  ;;  %v691_v63 = vld [vmem:[%s5374_s29 + $0x7f8] sm:$0xf] }
  0xbe   : > { %690 = vst [vmem:[%s5378_s30 + $0x3f8] sm:$0xf] %v689_v62  ;;  %692 = vst [vmem:[%s5378_s30 + $0x3fc] sm:$0xf] %v691_v63 }
  0xbf PF: > { %p4274_p7 = scmp.ge.s32.totalorder %s5306_s17, 1  ;;  %p1238_p8 = scmp.lt.s32.totalorder %s5306_s17, 3 }
  0xc1   : > { %p1239_p9 = pnand %p4274_p7, %p1238_p8 }
  0xc2   : > { %s1245_s5 = sand.u32 (!%p1239_p9), 1, %s5298_s15   ;;  %v5896_v0 = vld [vmem:[%s6665_s0] sm:$0xff] (!%p1239_p9)  ;;  %v5906_v2 = vld [vmem:[%s6665_s0 + $0x8] sm:$0xff] (!%p1239_p9)  ;;  %p1275_p10 = scmp.lt.s32.totalorder (!%p1239_p9), %s5349_s18, 1 }
  0xc3   : > { %1242 = sbr.rel (%p1239_p9) target bundleno = 815 (0x32f), region = 73  ;;  %v5901_v1 = vld [vmem:[%s6665_s0 + $0x40] sm:$0xff] (!%p1239_p9)  ;;  %s4275_s12 = sshll.u32 (!%p1239_p9), %s1245_s5, 10  ;;  %v5915_v4 = vld [vmem:[%s6665_s0 + $0x48] sm:$0xff] (!%p1239_p9) }
  0xc4   : > { %v4278_v3 = vcombine.high (!%p1239_p9), %v5896_v0, %v5901_v1  ;;  %v4280_v5 = vcombine.high (!%p1239_p9), %v5906_v2, %v5915_v4  ;;  %s5919_s17 = scalar_lea.vmem (!%p1239_p9), [#allocation2], %s4275_s12  ;;  %v1298_v35 = vld [vmem:[%s6665_s0 + $0x80] sm:$0xff] (!%p1239_p9)  ;;  %v1299_v38 = vld [vmem:[%s6665_s0 + $0x88] sm:$0xff] (!%p1239_p9)  ;;  %v4277_v42 = vcombine.low (!%p1239_p9), %v5896_v0, %v5901_v1  ;;  %v4279_v43 = vcombine.low (!%p1239_p9), %v5906_v2, %v5915_v4  ;;  %s4276_s13 = sshll.u32 (!%p1239_p9), %s1245_s5, 6 }
  0xc5   : > { %v5154_v6 = vld [vmem:[%s5919_s17 + $0x40] sm:$0xff] (!%p1239_p9)   ;;  %v5158_v10 = vld [vmem:[%s5919_s17 + $0x48] sm:$0xff] (!%p1239_p9)   ;;  %v5162_v14 = vld [vmem:[%s5919_s17 + $0x50] sm:$0xff] (!%p1239_p9)   ;;  %s6623_s15 = scalar_lea.vmem (!%p1239_p9), [#allocation3], %s4276_s13 }
  0xc6   : > { %3106 = vmatprep.mubr.bf16.mxu0 (!%p1239_p9), %v4278_v3  ;;  %v5155_v7 = vld [vmem:[%s5919_s17 + $0xc0] sm:$0xff] (!%p1239_p9)   ;;  %3203 = vmatprep.mubr.bf16.mxu1 (!%p1239_p9), %v4280_v5  ;;  %v5159_v11 = vld [vmem:[%s5919_s17 + $0xc8] sm:$0xff] (!%p1239_p9)   ;;  %v5163_v15 = vld [vmem:[%s5919_s17 + $0xd0] sm:$0xff] (!%p1239_p9)  }
  0xc7   : > { %4618 = vmatprep.subr.bf16.mxu0 (!%p1239_p9), %v5154_v6  ;;  %v5156_v8 = vld [vmem:[%s5919_s17] sm:$0xff] (!%p1239_p9)   ;;  %4682 = vmatprep.subr.bf16.mxu1 (!%p1239_p9), %v5155_v7  ;;  %v5160_v12 = vld [vmem:[%s5919_s17 + $0x8] sm:$0xff] (!%p1239_p9)   ;;  %v5164_v16 = vld [vmem:[%s5919_s17 + $0x10] sm:$0xff] (!%p1239_p9)  }
  0xc8   : > { %v5157_v9 = vld [vmem:[%s5919_s17 + $0x80] sm:$0xff] (!%p1239_p9)   ;;  %4619 = vmatpush3.bf16.msra.mxu0 (!%p1239_p9), %v5156_v8  ;;  %v5161_v13 = vld [vmem:[%s5919_s17 + $0x88] sm:$0xff] (!%p1239_p9)   ;;  %v5165_v17 = vld [vmem:[%s5919_s17 + $0x90] sm:$0xff] (!%p1239_p9)  }
  0xc9   : > { %4683 = vmatpush3.bf16.msra.mxu1 (!%p1239_p9), %v5157_v9  ;;  %4620 = vmatprep.subr.bf16.mxu0 (!%p1239_p9), %v5158_v10  ;;  %v5166_v18 = vld [vmem:[%s5919_s17 + $0x58] sm:$0xff] (!%p1239_p9)   ;;  %v5170_v22 = vld [vmem:[%s5919_s17 + $0x60] sm:$0xff] (!%p1239_p9)   ;;  %v5174_v26 = vld [vmem:[%s5919_s17 + $0x68] sm:$0xff] (!%p1239_p9)  }
  0xca   : > { %4684 = vmatprep.subr.bf16.mxu1 %v5159_v11  ;;  %v5167_v19 = vld [vmem:[%s5919_s17 + $0xd8] sm:$0xff]   ;;  %v5171_v23 = vld [vmem:[%s5919_s17 + $0xe0] sm:$0xff]   ;;  %v5175_v27 = vld [vmem:[%s5919_s17 + $0xe8] sm:$0xff]   ;;  %s4552_s5 = sshll.u32 (%p5364_p5), %s5349_s18, 2 }
  0xcb   : > { %v5168_v20 = vld [vmem:[%s5919_s17 + $0x18] sm:$0xff]   ;;  %v5172_v24 = vld [vmem:[%s5919_s17 + $0x20] sm:$0xff]   ;;  %v5176_v28 = vld [vmem:[%s5919_s17 + $0x28] sm:$0xff]   ;;  %s4094_s21 = scalar_lea.vmem (%p5364_p5), %s6669_s4, %s4552_s5 }
  0xcc   : > { %4621 = vmatpush3.bf16.msra.mxu0 %v5160_v12  ;;  %v5169_v21 = vld [vmem:[%s5919_s17 + $0x98] sm:$0xff]   ;;  %v5173_v25 = vld [vmem:[%s5919_s17 + $0xa0] sm:$0xff]   ;;  %v5177_v29 = vld [vmem:[%s5919_s17 + $0xa8] sm:$0xff]  }
  0xcd   : > { %4685 = vmatpush3.bf16.msra.mxu1 %v5161_v13  ;;  %4622 = vmatprep.subr.bf16.mxu0 %v5162_v14  ;;  %v5178_v30 = vld [vmem:[%s5919_s17 + $0x70] sm:$0xff]   ;;  %v5182_v34 = vld [vmem:[%s5919_s17 + $0x78] sm:$0xff]   ;;  %v1306_v36 = vld [vmem:[%s6665_s0 + $0xc0] sm:$0xff] }
  0xce   : > { %4686 = vmatprep.subr.bf16.mxu1 %v5163_v15  ;;  %v5179_v31 = vld [vmem:[%s5919_s17 + $0xf0] sm:$0xff]   ;;  %v5183_v37 = vld [vmem:[%s5919_s17 + $0xf8] sm:$0xff]   ;;  %v1307_v39 = vld [vmem:[%s6665_s0 + $0xc8] sm:$0xff]  ;;  %v4294_v46 = vcombine.high %v1298_v35, %v1306_v36  ;;  %v4293_v54 = vcombine.low %v1298_v35, %v1306_v36 }
  0xcf   : > { %v5180_v32 = vld [vmem:[%s5919_s17 + $0x30] sm:$0xff]   ;;  %v5184_v40 = vld [vmem:[%s5919_s17 + $0x38] sm:$0xff]   ;;  %v5186_v44 = vld [vmem:[%s5919_s17 + $0x140] sm:$0xff]   ;;  %v4296_v48 = vcombine.high %v1299_v38, %v1307_v39  ;;  %v4295_v56 = vcombine.low %v1299_v38, %v1307_v39 }
  0xd0   : > { %4623 = vmatpush3.bf16.msra.mxu0 %v5164_v16  ;;  %v5181_v33 = vld [vmem:[%s5919_s17 + $0xb0] sm:$0xff]   ;;  %v5185_v41 = vld [vmem:[%s5919_s17 + $0xb8] sm:$0xff]   ;;  %v5187_v45 = vld [vmem:[%s5919_s17 + $0x100] sm:$0xff]  }
  0xd1   : > { %4687 = vmatpush3.bf16.msra.mxu1 %v5165_v17  ;;  %4624 = vmatprep.subr.bf16.mxu0 %v5166_v18  ;;  %v5188_v47 = vld [vmem:[%s5919_s17 + $0x1c0] sm:$0xff]   ;;  %v5190_v50 = vld [vmem:[%s5919_s17 + $0x148] sm:$0xff]   ;;  %v5194_v62 = vld [vmem:[%s5919_s17 + $0x150] sm:$0xff]  }
  0xd2   : > { %4688 = vmatprep.subr.bf16.mxu1 %v5167_v19  ;;  %v5189_v49 = vld [vmem:[%s5919_s17 + $0x180] sm:$0xff]   ;;  %v5191_v52 = vld [vmem:[%s5919_s17 + $0x108] sm:$0xff]   ;;  %v5195_v63 = vld [vmem:[%s5919_s17 + $0x110] sm:$0xff]  }
  0xd3   : > { %v1314_v51 = vld [vmem:[%s6665_s0 + $0x100] sm:$0xff]  ;;  %v5192_v53 = vld [vmem:[%s5919_s17 + $0x1c8] sm:$0xff]   ;;  %v5196_v0 = vld [vmem:[%s5919_s17 + $0x1d0] sm:$0xff]  }
  0xd4   : > { %4625 = vmatpush3.bf16.msra.mxu0 %v5168_v20  ;;  %v5193_v55 = vld [vmem:[%s5919_s17 + $0x188] sm:$0xff]   ;;  %v1322_v57 = vld [vmem:[%s6665_s0 + $0x140] sm:$0xff]  ;;  %v5197_v1 = vld [vmem:[%s5919_s17 + $0x190] sm:$0xff]  }
  0xd5   : > { %4689 = vmatpush3.bf16.msra.mxu1 %v5169_v21  ;;  %4626 = vmatprep.subr.bf16.mxu0 %v5170_v22  ;;  %v1315_v58 = vld [vmem:[%s6665_s0 + $0x108] sm:$0xff]  ;;  %v4310_v60 = vcombine.high %v1314_v51, %v1322_v57  ;;  %v1330_v2 = vld [vmem:[%s6665_s0 + $0x180] sm:$0xff]  ;;  %v4309_v6 = vcombine.low %v1314_v51, %v1322_v57  ;;  %v5198_v7 = vld [vmem:[%s5919_s17 + $0x158] sm:$0xff]  }
  0xd6   : > { %4690 = vmatprep.subr.bf16.mxu1 %v5171_v23  ;;  %v1323_v59 = vld [vmem:[%s6665_s0 + $0x148] sm:$0xff]  ;;  %v1338_v3 = vld [vmem:[%s6665_s0 + $0x1c0] sm:$0xff]  ;;  %v5199_v10 = vld [vmem:[%s5919_s17 + $0x118] sm:$0xff]  }
  0xd7   : > { %v4312_v61 = vcombine.high %v1315_v58, %v1323_v59  ;;  %v1331_v4 = vld [vmem:[%s6665_s0 + $0x188] sm:$0xff]  ;;  %v4311_v8 = vcombine.low %v1315_v58, %v1323_v59  ;;  %v4326_v9 = vcombine.high %v1330_v2, %v1338_v3  ;;  %v5200_v12 = vld [vmem:[%s5919_s17 + $0x1d8] sm:$0xff]   ;;  %v1346_v14 = vld [vmem:[%s6665_s0 + $0x200] sm:$0xff]  ;;  %v4325_v21 = vcombine.low %v1330_v2, %v1338_v3 }
  0xd8   : > { %4627 = vmatpush3.bf16.msra.mxu0 %v5172_v24  ;;  %v1339_v5 = vld [vmem:[%s6665_s0 + $0x1c8] sm:$0xff]  ;;  %v5201_v13 = vld [vmem:[%s5919_s17 + $0x198] sm:$0xff]   ;;  %v1354_v15 = vld [vmem:[%s6665_s0 + $0x240] sm:$0xff] }
  0xd9   : > { %4691 = vmatpush3.bf16.msra.mxu1 %v5173_v25  ;;  %4628 = vmatprep.subr.bf16.mxu0 %v5174_v26  ;;  %v4328_v11 = vcombine.high %v1331_v4, %v1339_v5  ;;  %v1347_v16 = vld [vmem:[%s6665_s0 + $0x208] sm:$0xff]  ;;  %v5202_v18 = vld [vmem:[%s5919_s17 + $0x160] sm:$0xff]   ;;  %v4327_v23 = vcombine.low %v1331_v4, %v1339_v5  ;;  %v4342_v24 = vcombine.high %v1346_v14, %v1354_v15  ;;  %v5210_v35 = vld [vmem:[%s5919_s17 + $0x170] sm:$0xff]  }
  0xda   : > { %4692 = vmatprep.subr.bf16.mxu1 %v5175_v27  ;;  %v1355_v17 = vld [vmem:[%s6665_s0 + $0x248] sm:$0xff]  ;;  %v5203_v19 = vld [vmem:[%s5919_s17 + $0x120] sm:$0xff]   ;;  %v5211_v38 = vld [vmem:[%s5919_s17 + $0x130] sm:$0xff]  }
  0xdb   : > { %v5204_v20 = vld [vmem:[%s5919_s17 + $0x1e0] sm:$0xff]   ;;  %v4344_v25 = vcombine.high %v1347_v16, %v1355_v17  ;;  %v5206_v26 = vld [vmem:[%s5919_s17 + $0x168] sm:$0xff]   ;;  %v4343_v36 = vcombine.low %v1347_v16, %v1355_v17  ;;  %v1285_v2 = vld [vmem:[%s6665_s0 + $0x18] sm:$0xff] }
  0xdc   : > { %4629 = vmatpush3.bf16.msra.mxu0 %v5176_v28  ;;  %v5205_v22 = vld [vmem:[%s5919_s17 + $0x1a0] sm:$0xff]   ;;  %v5207_v27 = vld [vmem:[%s5919_s17 + $0x128] sm:$0xff]   ;;  %v1293_v3 = vld [vmem:[%s6665_s0 + $0x58] sm:$0xff] }
  0xdd   : > { %4693 = vmatpush3.bf16.msra.mxu1 %v5177_v29  ;;  %4630 = vmatprep.subr.bf16.mxu0 %v5178_v30  ;;  %v5208_v28 = vld [vmem:[%s5919_s17 + $0x1e8] sm:$0xff]   ;;  %v1362_v30 = vld [vmem:[%s6665_s0 + $0x280] sm:$0xff] }
  0xde   : > { %4694 = vmatprep.subr.bf16.mxu1 %v5179_v31  ;;  %v5209_v29 = vld [vmem:[%s5919_s17 + $0x1a8] sm:$0xff]   ;;  %v1370_v31 = vld [vmem:[%s6665_s0 + $0x2c0] sm:$0xff] }
  0xdf   : > { %v1402_v57 = vld [vmem:[%s6665_s0 + $0x3c0] sm:$0xff]  ;;  %v1395_v58 = vld [vmem:[%s6665_s0 + $0x388] sm:$0xff] }
  0xe0   : > { %4631 = vmatpush3.bf16.msra.mxu0 %v5180_v32  ;;  %v1363_v32 = vld [vmem:[%s6665_s0 + $0x288] sm:$0xff] }
  0xe1   : > { %4695 = vmatpush3.bf16.msra.mxu1 %v5181_v33  ;;  %4632 = vmatprep.subr.bf16.mxu0 %v5182_v34  ;;  %v1371_v33 = vld [vmem:[%s6665_s0 + $0x2c8] sm:$0xff]  ;;  %v4341_v34 = vcombine.low %v1346_v14, %v1354_v15  ;;  %v5219_v14 = vld [vmem:[%s5919_s17 + $0x200] sm:$0xff]  }
  0xe2   : > { %4696 = vmatprep.subr.bf16.mxu1 %v5183_v37  ;;  %v4358_v37 = vcombine.high %v1362_v30, %v1370_v31  ;;  %v4360_v39 = vcombine.high %v1363_v32, %v1371_v33  ;;  %v4359_v51 = vcombine.low %v1363_v32, %v1371_v33  ;;  %v1403_v59 = vld [vmem:[%s6665_s0 + $0x3c8] sm:$0xff]  ;;  %v5221_v15 = vld [vmem:[%s5919_s17 + $0x280] sm:$0xff]   ;;  %v5229_v33 = vld [vmem:[%s5919_s17 + $0x290] sm:$0xff]  }
  0xe3   : > { %v4391_v5 = vcombine.low %v1395_v58, %v1403_v59 }
  0xe4   : > { %4633 = vmatpush3.bf16.msra.mxu0 %v5184_v40  ;;  %v5212_v40 = vld [vmem:[%s5919_s17 + $0x1f0] sm:$0xff]  }
  0xe5   : > { %4697 = vmatpush3.bf16.msra.mxu1 %v5185_v41  ;;  %4746 = vmatprep.subr.bf16.mxu0 %v5186_v44  ;;  %v5213_v41 = vld [vmem:[%s5919_s17 + $0x1b0] sm:$0xff]   ;;  %v1379_v44 = vld [vmem:[%s6665_s0 + $0x308] sm:$0xff] }
  0xe6   : > { %4810 = vmatprep.subr.bf16.mxu1 %v5188_v47  ;;  %v5215_v47 = vld [vmem:[%s5919_s17 + $0x138] sm:$0xff]  }
  0xe7   : > { %3107 = vmatmul.mubr.bf16.vlgmr.msra.gmra.mrb[0].mxu0 %v4277_v42  ;;  %v1378_v42 = vld [vmem:[%s6665_s0 + $0x300] sm:$0xff] }
  0xe8   : > { %3204 = vmatmul.mubr.bf16.vlgmr.msra.gmra.mrb[0].mxu1 %v4279_v43  ;;  %4747 = vmatpush3.bf16.msra.mxu0 %v5187_v45  ;;  %v1386_v43 = vld [vmem:[%s6665_s0 + $0x340] sm:$0xff]  ;;  %v1387_v45 = vld [vmem:[%s6665_s0 + $0x348] sm:$0xff] }
  0xe9   : > { %3114 = vmatprep.mubr.bf16.mxu0 %v4294_v46  ;;  %4811 = vmatpush3.bf16.msra.mxu1 %v5189_v49  ;;  %v5214_v46 = vld [vmem:[%s5919_s17 + $0x178] sm:$0xff]   ;;  %v4357_v49 = vcombine.low %v1362_v30, %v1370_v31  ;;  %v5227_v31 = vld [vmem:[%s5919_s17 + $0x210] sm:$0xff]  }
  0xea   : > { %3211 = vmatprep.mubr.bf16.mxu1 %v4296_v48  ;;  %4748 = vmatprep.subr.bf16.mxu0 %v5190_v50  ;;  %v5216_v48 = vld [vmem:[%s5919_s17 + $0x1f8] sm:$0xff]  }
  0xeb   : > { %4812 = vmatprep.subr.bf16.mxu1 %v5192_v53  ;;  %v5217_v50 = vld [vmem:[%s5919_s17 + $0x1b8] sm:$0xff]   ;;  %v4376_v53 = vcombine.high %v1379_v44, %v1387_v45 }
  0xec   : > { %4749 = vmatpush3.bf16.msra.mxu0 %v5191_v52  ;;  %v4374_v52 = vcombine.high %v1378_v42, %v1386_v43 }
  0xed   : > { %4813 = vmatpush3.bf16.msra.mxu1 %v5193_v55  ;;  %4750 = vmatprep.subr.bf16.mxu0 %v5194_v62  ;;  %v5220_v55 = vld [vmem:[%s5919_s17 + $0x2c0] sm:$0xff]  }
  0xee   : > { %4814 = vmatprep.subr.bf16.mxu1 %v5196_v0  ;;  %v1284_v0 = vld [vmem:[%s6665_s0 + $0x10] sm:$0xff] }
  0xef   : > { %3115 = vmatmul.mubr.bf16.gmra.mrb[4].mxu0 %v4293_v54  ;;  %v5218_v54 = vld [vmem:[%s5919_s17 + $0x240] sm:$0xff]  }
  0xf0   : > { %3212 = vmatmul.mubr.bf16.gmra.mrb[4].mxu1 %v4295_v56  ;;  %3122 = vmatprep.mubr.bf16.mxu0 %v4310_v60  ;;  %v1394_v56 = vld [vmem:[%s6665_s0 + $0x380] sm:$0xff]  ;;  %v4373_v60 = vcombine.low %v1378_v42, %v1386_v43 }
  0xf1   : > { %3219 = vmatprep.mubr.bf16.mxu1 %v4312_v61  ;;  %4751 = vmatpush3.bf16.msra.mxu0 %v5195_v63  ;;  %v4375_v61 = vcombine.low %v1379_v44, %v1387_v45  ;;  %v4390_v62 = vcombine.high %v1394_v56, %v1402_v57  ;;  %v4392_v63 = vcombine.high %v1395_v58, %v1403_v59  ;;  %v5234_v42 = vld [vmem:[%s5919_s17 + $0x260] sm:$0xff]   ;;  %v5242_v58 = vld [vmem:[%s5919_s17 + $0x270] sm:$0xff]  }
  0xf2   : > { %4815 = vmatpush3.bf16.msra.mxu1 %v5197_v1  ;;  %4752 = vmatprep.subr.bf16.mxu0 %v5198_v7  ;;  %v1292_v1 = vld [vmem:[%s6665_s0 + $0x50] sm:$0xff]  ;;  %v4389_v4 = vcombine.low %v1394_v56, %v1402_v57  ;;  %v4284_v7 = vcombine.high %v1285_v2, %v1293_v3  ;;  %v5236_v44 = vld [vmem:[%s5919_s17 + $0x2e0] sm:$0xff]   ;;  %v5239_v56 = vld [vmem:[%s5919_s17 + $0x228] sm:$0xff]  }
  0xf3   : > { %4816 = vmatprep.subr.bf16.mxu1 %v5200_v12  ;;  %v1309_v12 = vld [vmem:[%s6665_s0 + $0xd8] sm:$0xff]  ;;  %v5241_v57 = vld [vmem:[%s5919_s17 + $0x2a8] sm:$0xff]  }
  0xf5   : > { %4753 = vmatpush3.bf16.msra.mxu0 %v5199_v10  ;;  %v1301_v10 = vld [vmem:[%s6665_s0 + $0x98] sm:$0xff] }
  0xf6   : > { %4817 = vmatpush3.bf16.msra.mxu1 %v5201_v13  ;;  %4754 = vmatprep.subr.bf16.mxu0 %v5202_v18  ;;  %v4283_v13 = vcombine.low %v1285_v2, %v1293_v3  ;;  %v4300_v17 = vcombine.high %v1301_v10, %v1309_v12  ;;  %v5222_v18 = vld [vmem:[%s5919_s17 + $0x248] sm:$0xff]   ;;  %v5246_v2 = vld [vmem:[%s5919_s17 + $0x278] sm:$0xff]   ;;  %v1364_v3 = vld [vmem:[%s6665_s0 + $0x290] sm:$0xff] }
  0xf7   : > { %3123 = vmatmul.mubr.bf16.gmra.mrb[8].mxu0 %v4309_v6  ;;  %4818 = vmatprep.subr.bf16.mxu1 %v5204_v20  ;;  %v4282_v6 = vcombine.high %v1284_v0, %v1292_v1  ;;  %v5224_v20 = vld [vmem:[%s5919_s17 + $0x2c8] sm:$0xff]  }
  0xf8   : > { %3220 = vmatmul.mubr.bf16.gmra.mrb[8].mxu1 %v4311_v8  ;;  %3130 = vmatprep.mubr.bf16.mxu0 %v4326_v9  ;;  %v1300_v8 = vld [vmem:[%s6665_s0 + $0x90] sm:$0xff] }
  0xf9   : > { %3227 = vmatprep.mubr.bf16.mxu1 %v4328_v11  ;;  %4755 = vmatpush3.bf16.msra.mxu0 %v5203_v19  ;;  %v1308_v9 = vld [vmem:[%s6665_s0 + $0xd0] sm:$0xff]  ;;  %v4281_v11 = vcombine.low %v1284_v0, %v1292_v1  ;;  %v5223_v19 = vld [vmem:[%s5919_s17 + $0x208] sm:$0xff]  }
  0xfa   : > { %4819 = vmatpush3.bf16.msra.mxu1 %v5205_v22  ;;  %4756 = vmatprep.subr.bf16.mxu0 %v5206_v26  ;;  %v4298_v16 = vcombine.high %v1300_v8, %v1308_v9  ;;  %v1316_v22 = vld [vmem:[%s6665_s0 + $0x110] sm:$0xff] }
  0xfb   : > { %4820 = vmatprep.subr.bf16.mxu1 %v5208_v28  ;;  %v5226_v26 = vld [vmem:[%s5919_s17 + $0x250] sm:$0xff]   ;;  %v4297_v28 = vcombine.low %v1300_v8, %v1308_v9  ;;  %v5247_v8 = vld [vmem:[%s5919_s17 + $0x238] sm:$0xff]  }
  0xfc   : > { %v5245_v1 = vld [vmem:[%s5919_s17 + $0x2b0] sm:$0xff]   ;;  %v5249_v9 = vld [vmem:[%s5919_s17 + $0x2b8] sm:$0xff]  }
  0xfd   : > { %4757 = vmatpush3.bf16.msra.mxu0 %v5207_v27  ;;  %v5228_v27 = vld [vmem:[%s5919_s17 + $0x2d0] sm:$0xff]  }
  0xfe   : > { %4821 = vmatpush3.bf16.msra.mxu1 %v5209_v29  ;;  %4758 = vmatprep.subr.bf16.mxu0 %v5210_v35  ;;  %v4299_v29 = vcombine.low %v1301_v10, %v1309_v12  ;;  %v1332_v35 = vld [vmem:[%s6665_s0 + $0x190] sm:$0xff]  ;;  %v5250_v10 = vld [vmem:[%s5919_s17 + $0x340] sm:$0xff]  }
  0xff   : > { %3131 = vmatmul.mubr.bf16.gmra.mrb[12].mxu0 %v4325_v21  ;;  %4822 = vmatprep.subr.bf16.mxu1 %v5212_v40  ;;  %v5225_v21 = vld [vmem:[%s5919_s17 + $0x288] sm:$0xff]   ;;  %v5231_v40 = vld [vmem:[%s5919_s17 + $0x218] sm:$0xff]   ;;  %v5252_v12 = vld [vmem:[%s5919_s17 + $0x3c0] sm:$0xff]  }
 0x100   : > { %3228 = vmatmul.mubr.bf16.gmra.mrb[12].mxu1 %v4327_v23  ;;  %3138 = vmatprep.mubr.bf16.mxu0 %v4342_v24  ;;  %v1324_v23 = vld [vmem:[%s6665_s0 + $0x150] sm:$0xff]  ;;  %v1317_v24 = vld [vmem:[%s6665_s0 + $0x118] sm:$0xff] }
 0x101   : > { %3235 = vmatprep.mubr.bf16.mxu1 %v4344_v25  ;;  %4759 = vmatpush3.bf16.msra.mxu0 %v5211_v38  ;;  %v1325_v25 = vld [vmem:[%s6665_s0 + $0x158] sm:$0xff]  ;;  %v4314_v30 = vcombine.high %v1316_v22, %v1324_v23  ;;  %v4313_v43 = vcombine.low %v1316_v22, %v1324_v23 }
 0x102   : > { %4823 = vmatpush3.bf16.msra.mxu1 %v5213_v41  ;;  %4760 = vmatprep.subr.bf16.mxu0 %v5214_v46  ;;  %v4316_v32 = vcombine.high %v1317_v24, %v1325_v25  ;;  %v1333_v38 = vld [vmem:[%s6665_s0 + $0x198] sm:$0xff]  ;;  %v4315_v45 = vcombine.low %v1317_v24, %v1325_v25  ;;  %v1396_v24 = vld [vmem:[%s6665_s0 + $0x390] sm:$0xff] }
 0x103   : > { %4824 = vmatprep.subr.bf16.mxu1 %v5216_v48  ;;  %v5233_v41 = vld [vmem:[%s5919_s17 + $0x298] sm:$0xff]   ;;  %v5235_v48 = vld [vmem:[%s5919_s17 + $0x220] sm:$0xff]   ;;  %v1404_v25 = vld [vmem:[%s6665_s0 + $0x3d0] sm:$0xff] }
 0x105   : > { %4761 = vmatpush3.bf16.msra.mxu0 %v5215_v47 }
 0x106   : > { %4825 = vmatpush3.bf16.msra.mxu1 %v5217_v50  ;;  %4874 = vmatprep.subr.bf16.mxu0 %v5218_v54  ;;  %v5238_v50 = vld [vmem:[%s5919_s17 + $0x268] sm:$0xff]   ;;  %v1349_v54 = vld [vmem:[%s6665_s0 + $0x218] sm:$0xff] }
 0x107   : > { %3139 = vmatmul.mubr.bf16.gmra.mrb[16].mxu0 %v4341_v34  ;;  %4938 = vmatprep.subr.bf16.mxu1 %v5220_v55  ;;  %v5230_v34 = vld [vmem:[%s5919_s17 + $0x258] sm:$0xff]  }
 0x108   : > { %3236 = vmatmul.mubr.bf16.gmra.mrb[16].mxu1 %v4343_v36  ;;  %3146 = vmatprep.mubr.bf16.mxu0 %v4358_v37  ;;  %v1340_v36 = vld [vmem:[%s6665_s0 + $0x1d0] sm:$0xff]  ;;  %v5232_v37 = vld [vmem:[%s5919_s17 + $0x2d8] sm:$0xff]  }
 0x109   : > { %3243 = vmatprep.mubr.bf16.mxu1 %v4360_v39  ;;  %v1341_v39 = vld [vmem:[%s6665_s0 + $0x1d8] sm:$0xff]  ;;  %v4330_v46 = vcombine.high %v1332_v35, %v1340_v36  ;;  %v4329_v59 = vcombine.low %v1332_v35, %v1340_v36  ;;  %v1295_v35 = vld [vmem:[%s6665_s0 + $0x68] sm:$0xff]  ;;  %v4393_v36 = vcombine.low %v1396_v24, %v1404_v25 }
 0x10a   : > { %v4332_v47 = vcombine.high %v1333_v38, %v1341_v39  ;;  %v1357_v55 = vld [vmem:[%s6665_s0 + $0x258] sm:$0xff] }
 0x10b   : > { %v4348_v0 = vcombine.high %v1349_v54, %v1357_v55 }
 0x10f   : > { %3147 = vmatmul.mubr.bf16.gmra.mrb[20].mxu0 %v4357_v49  ;;  %v5237_v49 = vld [vmem:[%s5919_s17 + $0x2a0] sm:$0xff]  }
 0x110   : > { %3244 = vmatmul.mubr.bf16.gmra.mrb[20].mxu1 %v4359_v51  ;;  %3154 = vmatprep.mubr.bf16.mxu0 %v4374_v52  ;;  %v1348_v51 = vld [vmem:[%s6665_s0 + $0x210] sm:$0xff] }
 0x111   : > { %3251 = vmatprep.mubr.bf16.mxu1 %v4376_v53  ;;  %v1356_v52 = vld [vmem:[%s6665_s0 + $0x250] sm:$0xff]  ;;  %v5240_v53 = vld [vmem:[%s5919_s17 + $0x2e8] sm:$0xff]  }
 0x117   : > { %3155 = vmatmul.mubr.bf16.gmra.mrb[24].mxu0 %v4373_v60  ;;  %v5244_v60 = vld [vmem:[%s5919_s17 + $0x2f0] sm:$0xff]  }
 0x118   : > { %3252 = vmatmul.mubr.bf16.gmra.mrb[24].mxu1 %v4375_v61  ;;  %3162 = vmatprep.mubr.bf16.mxu0 %v4390_v62  ;;  %v4331_v61 = vcombine.low %v1333_v38, %v1341_v39  ;;  %v4346_v62 = vcombine.high %v1348_v51, %v1356_v52 }
 0x119   : > { %3259 = vmatprep.mubr.bf16.mxu1 %v4392_v63  ;;  %v5243_v63 = vld [vmem:[%s5919_s17 + $0x230] sm:$0xff]  }
 0x11f   : > { %3163 = vmatmul.mubr.bf16.gmra.mrb[28].mxu0 %v4389_v4  ;;  %v1372_v4 = vld [vmem:[%s6665_s0 + $0x2d0] sm:$0xff] }
 0x120   : > { %3260 = vmatmul.mubr.bf16.gmra.mrb[28].mxu1 %v4391_v5  ;;  %3300 = vmatprep.mubr.bf16.mxu0 %v4282_v6  ;;  %v5248_v5 = vld [vmem:[%s5919_s17 + $0x2f8] sm:$0xff]  }
 0x121   : > { %3397 = vmatprep.mubr.bf16.mxu1 %v4284_v7  ;;  %v1365_v6 = vld [vmem:[%s6665_s0 + $0x298] sm:$0xff] }
 0x122   : > { %v1373_v7 = vld [vmem:[%s6665_s0 + $0x2d8] sm:$0xff] }
 0x127   : > { %3301 = vmatmul.mubr.bf16.vlgmr.msra.gmra.mrb[32].mxu0 %v4281_v11  ;;  %v4345_v11 = vcombine.low %v1348_v51, %v1356_v52  ;;  %v5256_v51 = vld [vmem:[%s5919_s17 + $0x3c8] sm:$0xff]  }
 0x128   : > { %3398 = vmatmul.mubr.bf16.vlgmr.msra.gmra.mrb[32].mxu1 %v4283_v13  ;;  %4875 = vmatpush3.bf16.msra.mxu0 %v5219_v14  ;;  %v4347_v13 = vcombine.low %v1349_v54, %v1357_v55  ;;  %v4362_v14 = vcombine.high %v1364_v3, %v1372_v4  ;;  %v5255_v52 = vld [vmem:[%s5919_s17 + $0x308] sm:$0xff]   ;;  %v1318_v54 = vld [vmem:[%s6665_s0 + $0x120] sm:$0xff] }
 0x129   : > { %4939 = vmatpush3.bf16.msra.mxu1 %v5221_v15  ;;  %3308 = vmatprep.mubr.bf16.mxu0 %v4298_v16  ;;  %v4364_v15 = vcombine.high %v1365_v6, %v1373_v7  ;;  %v1380_v16 = vld [vmem:[%s6665_s0 + $0x310] sm:$0xff]  ;;  %v1326_v55 = vld [vmem:[%s6665_s0 + $0x160] sm:$0xff] }
 0x12a   : > { %3405 = vmatprep.mubr.bf16.mxu1 %v4300_v17  ;;  %4876 = vmatprep.subr.bf16.mxu0 %v5222_v18  ;;  %v1388_v17 = vld [vmem:[%s6665_s0 + $0x350] sm:$0xff]  ;;  %v1381_v18 = vld [vmem:[%s6665_s0 + $0x318] sm:$0xff] }
 0x12b   : > { %4940 = vmatprep.subr.bf16.mxu1 %v5224_v20  ;;  %v4361_v20 = vcombine.low %v1364_v3, %v1372_v4  ;;  %v4378_v22 = vcombine.high %v1380_v16, %v1388_v17  ;;  %v5264_v3 = vld [vmem:[%s5919_s17 + $0x3d8] sm:$0xff]   ;;  %v1334_v4 = vld [vmem:[%s6665_s0 + $0x1a0] sm:$0xff] }
 0x12c   : > { %4877 = vmatpush3.bf16.msra.mxu0 %v5223_v19  ;;  %v1389_v19 = vld [vmem:[%s6665_s0 + $0x358] sm:$0xff] }
 0x12d   : > { %4941 = vmatpush3.bf16.msra.mxu1 %v5225_v21  ;;  %4878 = vmatprep.subr.bf16.mxu0 %v5226_v26  ;;  %v4363_v21 = vcombine.low %v1365_v6, %v1373_v7  ;;  %v4380_v23 = vcombine.high %v1381_v18, %v1389_v19  ;;  %v1397_v26 = vld [vmem:[%s6665_s0 + $0x398] sm:$0xff]  ;;  %v1335_v6 = vld [vmem:[%s6665_s0 + $0x1a8] sm:$0xff] }
 0x12e   : > { %4942 = vmatprep.subr.bf16.mxu1 %v5228_v27  ;;  %v1405_v27 = vld [vmem:[%s6665_s0 + $0x3d8] sm:$0xff] }
 0x12f   : > { %3309 = vmatmul.mubr.bf16.gmra.mrb[36].mxu0 %v4297_v28  ;;  %v4377_v28 = vcombine.low %v1380_v16, %v1388_v17  ;;  %v5263_v7 = vld [vmem:[%s5919_s17 + $0x318] sm:$0xff]   ;;  %v5267_v16 = vld [vmem:[%s5919_s17 + $0x320] sm:$0xff]  }
 0x130   : > { %3406 = vmatmul.mubr.bf16.gmra.mrb[36].mxu1 %v4299_v29  ;;  %3316 = vmatprep.mubr.bf16.mxu0 %v4314_v30  ;;  %v4379_v29 = vcombine.low %v1381_v18, %v1389_v19  ;;  %v4394_v30 = vcombine.high %v1396_v24, %v1404_v25  ;;  %v5269_v17 = vld [vmem:[%s5919_s17 + $0x3a0] sm:$0xff]   ;;  %v5270_v18 = vld [vmem:[%s5919_s17 + $0x368] sm:$0xff]  }
 0x131   : > { %3413 = vmatprep.mubr.bf16.mxu1 %v4316_v32  ;;  %4879 = vmatpush3.bf16.msra.mxu0 %v5227_v31  ;;  %v4396_v31 = vcombine.high %v1397_v26, %v1405_v27  ;;  %v1286_v32 = vld [vmem:[%s6665_s0 + $0x20] sm:$0xff]  ;;  %v5272_v19 = vld [vmem:[%s5919_s17 + $0x3e8] sm:$0xff]  }
 0x132   : > { %4943 = vmatpush3.bf16.msra.mxu1 %v5229_v33  ;;  %4880 = vmatprep.subr.bf16.mxu0 %v5230_v34  ;;  %v1294_v33 = vld [vmem:[%s6665_s0 + $0x60] sm:$0xff]  ;;  %v1287_v34 = vld [vmem:[%s6665_s0 + $0x28] sm:$0xff] }
 0x133   : > { %4944 = vmatprep.subr.bf16.mxu1 %v5232_v37  ;;  %v4395_v37 = vcombine.low %v1397_v26, %v1405_v27  ;;  %v4286_v38 = vcombine.high %v1286_v32, %v1294_v33  ;;  %v4288_v39 = vcombine.high %v1287_v34, %v1295_v35  ;;  %v1359_v24 = vld [vmem:[%s6665_s0 + $0x268] sm:$0xff]  ;;  %v5274_v26 = vld [vmem:[%s5919_s17 + $0x370] sm:$0xff]  }
 0x134   : > { %v5273_v25 = vld [vmem:[%s5919_s17 + $0x3a8] sm:$0xff]  }
 0x135   : > { %4881 = vmatpush3.bf16.msra.mxu0 %v5231_v40  ;;  %v1302_v40 = vld [vmem:[%s6665_s0 + $0xa0] sm:$0xff] }
 0x136   : > { %4945 = vmatpush3.bf16.msra.mxu1 %v5233_v41  ;;  %4882 = vmatprep.subr.bf16.mxu0 %v5234_v42  ;;  %v1310_v41 = vld [vmem:[%s6665_s0 + $0xe0] sm:$0xff]  ;;  %v4285_v42 = vcombine.low %v1286_v32, %v1294_v33  ;;  %v5275_v32 = vld [vmem:[%s5919_s17 + $0x330] sm:$0xff]  }
 0x137   : > { %3317 = vmatmul.mubr.bf16.gmra.mrb[40].mxu0 %v4313_v43  ;;  %4946 = vmatprep.subr.bf16.mxu1 %v5236_v44  ;;  %v1303_v43 = vld [vmem:[%s6665_s0 + $0xa8] sm:$0xff]  ;;  %v5277_v33 = vld [vmem:[%s5919_s17 + $0x3b0] sm:$0xff]  }
 0x138   : > { %3414 = vmatmul.mubr.bf16.gmra.mrb[40].mxu1 %v4315_v45  ;;  %3324 = vmatprep.mubr.bf16.mxu0 %v4330_v46  ;;  %v1311_v44 = vld [vmem:[%s6665_s0 + $0xe8] sm:$0xff]  ;;  %v4287_v45 = vcombine.low %v1287_v34, %v1295_v35  ;;  %v5251_v46 = vld [vmem:[%s5919_s17 + $0x300] sm:$0xff]   ;;  %v5278_v34 = vld [vmem:[%s5919_s17 + $0x378] sm:$0xff]  }
 0x139   : > { %3421 = vmatprep.mubr.bf16.mxu1 %v4332_v47  ;;  %4883 = vmatpush3.bf16.msra.mxu0 %v5235_v48  ;;  %v5253_v47 = vld [vmem:[%s5919_s17 + $0x380] sm:$0xff]   ;;  %v4302_v48 = vcombine.high %v1302_v40, %v1310_v41  ;;  %v5280_v35 = vld [vmem:[%s5919_s17 + $0x3f8] sm:$0xff]  }
 0x13a   : > { %4947 = vmatpush3.bf16.msra.mxu1 %v5237_v49  ;;  %4884 = vmatprep.subr.bf16.mxu0 %v5238_v50  ;;  %v4304_v49 = vcombine.high %v1303_v43, %v1311_v44  ;;  %v5254_v50 = vld [vmem:[%s5919_s17 + $0x348] sm:$0xff]  }
 0x13b   : > { %4948 = vmatprep.subr.bf16.mxu1 %v5240_v53  ;;  %v5257_v53 = vld [vmem:[%s5919_s17 + $0x388] sm:$0xff]  }
 0x13d   : > { %4885 = vmatpush3.bf16.msra.mxu0 %v5239_v56  ;;  %v5258_v56 = vld [vmem:[%s5919_s17 + $0x350] sm:$0xff]  }
 0x13e   : > { %4949 = vmatpush3.bf16.msra.mxu1 %v5241_v57  ;;  %4886 = vmatprep.subr.bf16.mxu0 %v5242_v58  ;;  %v1319_v57 = vld [vmem:[%s6665_s0 + $0x128] sm:$0xff] }
 0x13f   : > { %3325 = vmatmul.mubr.bf16.gmra.mrb[44].mxu0 %v4329_v59  ;;  %4950 = vmatprep.subr.bf16.mxu1 %v5244_v60  ;;  %v1327_v58 = vld [vmem:[%s6665_s0 + $0x168] sm:$0xff]  ;;  %v5260_v59 = vld [vmem:[%s5919_s17 + $0x3d0] sm:$0xff]   ;;  %v4301_v60 = vcombine.low %v1302_v40, %v1310_v41  ;;  %v5281_v41 = vld [vmem:[%s5919_s17 + $0x3b8] sm:$0xff]  }
 0x140   : > { %3422 = vmatmul.mubr.bf16.gmra.mrb[44].mxu1 %v4331_v61  ;;  %3332 = vmatprep.mubr.bf16.mxu0 %v4346_v62  ;;  %v4303_v61 = vcombine.low %v1303_v43, %v1311_v44  ;;  %v4318_v62 = vcombine.high %v1318_v54, %v1326_v55  ;;  %v1375_v40 = vld [vmem:[%s6665_s0 + $0x2e8] sm:$0xff] }
 0x141   : > { %3429 = vmatprep.mubr.bf16.mxu1 %v4348_v0  ;;  %4887 = vmatpush3.bf16.msra.mxu0 %v5243_v63  ;;  %v4320_v63 = vcombine.high %v1319_v57, %v1327_v58  ;;  %v5259_v0 = vld [vmem:[%s5919_s17 + $0x310] sm:$0xff]  }
 0x142   : > { %4951 = vmatpush3.bf16.msra.mxu1 %v5245_v1  ;;  %4888 = vmatprep.subr.bf16.mxu0 %v5246_v2  ;;  %v5261_v1 = vld [vmem:[%s5919_s17 + $0x390] sm:$0xff]   ;;  %v5262_v2 = vld [vmem:[%s5919_s17 + $0x358] sm:$0xff]  }
 0x143   : > { %4952 = vmatprep.subr.bf16.mxu1 %v5248_v5  ;;  %v1342_v5 = vld [vmem:[%s6665_s0 + $0x1e0] sm:$0xff] }
 0x144   : > { %v4333_v27 = vcombine.low %v1334_v4, %v1342_v5 }
 0x145   : > { %4889 = vmatpush3.bf16.msra.mxu0 %v5247_v8  ;;  %v1343_v8 = vld [vmem:[%s6665_s0 + $0x1e8] sm:$0xff] }
 0x146   : > { %4953 = vmatpush3.bf16.msra.mxu1 %v5249_v9  ;;  %5002 = vmatprep.subr.bf16.mxu0 %v5250_v10  ;;  %v5265_v9 = vld [vmem:[%s5919_s17 + $0x398] sm:$0xff]   ;;  %v5266_v10 = vld [vmem:[%s5919_s17 + $0x360] sm:$0xff]  }
 0x147   : > { %3333 = vmatmul.mubr.bf16.gmra.mrb[48].mxu0 %v4345_v11  ;;  %5066 = vmatprep.subr.bf16.mxu1 %v5252_v12  ;;  %v4317_v11 = vcombine.low %v1318_v54, %v1326_v55  ;;  %v5268_v12 = vld [vmem:[%s5919_s17 + $0x3e0] sm:$0xff]  }
 0x148   : > { %3430 = vmatmul.mubr.bf16.gmra.mrb[48].mxu1 %v4347_v13  ;;  %3340 = vmatprep.mubr.bf16.mxu0 %v4362_v14  ;;  %v4319_v13 = vcombine.low %v1319_v57, %v1327_v58  ;;  %v4334_v14 = vcombine.high %v1334_v4, %v1342_v5  ;;  %v1398_v54 = vld [vmem:[%s6665_s0 + $0x3a0] sm:$0xff]  ;;  %v1407_v57 = vld [vmem:[%s6665_s0 + $0x3e8] sm:$0xff] }
 0x149   : > { %3437 = vmatprep.mubr.bf16.mxu1 %v4364_v15  ;;  %v4336_v15 = vcombine.high %v1335_v6, %v1343_v8  ;;  %v1406_v55 = vld [vmem:[%s6665_s0 + $0x3e0] sm:$0xff] }
 0x14f   : > { %3341 = vmatmul.mubr.bf16.gmra.mrb[52].mxu0 %v4361_v20  ;;  %v1350_v20 = vld [vmem:[%s6665_s0 + $0x220] sm:$0xff] }
 0x150   : > { %3438 = vmatmul.mubr.bf16.gmra.mrb[52].mxu1 %v4363_v21  ;;  %3348 = vmatprep.mubr.bf16.mxu0 %v4378_v22  ;;  %v1358_v21 = vld [vmem:[%s6665_s0 + $0x260] sm:$0xff]  ;;  %v1351_v22 = vld [vmem:[%s6665_s0 + $0x228] sm:$0xff] }
 0x151   : > { %3445 = vmatprep.mubr.bf16.mxu1 %v4380_v23  ;;  %v5271_v23 = vld [vmem:[%s5919_s17 + $0x328] sm:$0xff]   ;;  %v4351_v43 = vcombine.low %v1351_v22, %v1359_v24 }
 0x157   : > { %3349 = vmatmul.mubr.bf16.gmra.mrb[56].mxu0 %v4377_v28  ;;  %v5276_v28 = vld [vmem:[%s5919_s17 + $0x3f0] sm:$0xff]  }
 0x158   : > { %3446 = vmatmul.mubr.bf16.gmra.mrb[56].mxu1 %v4379_v29  ;;  %3356 = vmatprep.mubr.bf16.mxu0 %v4394_v30  ;;  %v4335_v29 = vcombine.low %v1335_v6, %v1343_v8  ;;  %v4350_v30 = vcombine.high %v1350_v20, %v1358_v21  ;;  %v1304_v6 = vld [vmem:[%s6665_s0 + $0xb0] sm:$0xff]  ;;  %v1305_v8 = vld [vmem:[%s6665_s0 + $0xb8] sm:$0xff] }
 0x159   : > { %3453 = vmatprep.mubr.bf16.mxu1 %v4396_v31  ;;  %v4352_v31 = vcombine.high %v1351_v22, %v1359_v24  ;;  %v1336_v22 = vld [vmem:[%s6665_s0 + $0x1b0] sm:$0xff]  ;;  %v1337_v24 = vld [vmem:[%s6665_s0 + $0x1b8] sm:$0xff] }
 0x15f   : > { %3357 = vmatmul.mubr.bf16.gmra.mrb[60].mxu0 %v4393_v36  ;;  %v1366_v36 = vld [vmem:[%s6665_s0 + $0x2a0] sm:$0xff] }
 0x160   : > { %3454 = vmatmul.mubr.bf16.gmra.mrb[60].mxu1 %v4395_v37  ;;  %3494 = vmatprep.mubr.bf16.mxu0 %v4286_v38  ;;  %v1374_v37 = vld [vmem:[%s6665_s0 + $0x2e0] sm:$0xff]  ;;  %v5279_v38 = vld [vmem:[%s5919_s17 + $0x338] sm:$0xff]   ;;  %s6611_s17 = scalar_select %p1275_p10, %s5349_s18, 1 }
 0x161   : > { %3591 = vmatprep.mubr.bf16.mxu1 %v4288_v39  ;;  %v1367_v39 = vld [vmem:[%s6665_s0 + $0x2a8] sm:$0xff]  ;;  %v4366_v44 = vcombine.high %v1366_v36, %v1374_v37 }
 0x162   : > { %s1277_s9 = scalar_lea.vmem %s6667_s2, %s6611_s17  ;;  %s1280_s12 = scalar_lea.vmem %s6668_s3, %s6611_s17 }
 0x167   : > { %3495 = vmatmul.mubr.bf16.vlgmr.msra.gmra.mrb[64].mxu0 %v4285_v42  ;;  %v4349_v42 = vcombine.low %v1350_v20, %v1358_v21 }
 0x168   : > { %3592 = vmatmul.mubr.bf16.vlgmr.msra.gmra.mrb[64].mxu1 %v4287_v45  ;;  %5003 = vmatpush3.bf16.msra.mxu0 %v5251_v46  ;;  %v4368_v45 = vcombine.high %v1367_v39, %v1375_v40  ;;  %v1382_v46 = vld [vmem:[%s6665_s0 + $0x320] sm:$0xff] }
 0x169   : > { %5067 = vmatpush3.bf16.msra.mxu1 %v5253_v47  ;;  %3502 = vmatprep.mubr.bf16.mxu0 %v4302_v48  ;;  %v1390_v47 = vld [vmem:[%s6665_s0 + $0x360] sm:$0xff]  ;;  %v1383_v48 = vld [vmem:[%s6665_s0 + $0x328] sm:$0xff] }
 0x16a   : > { %3599 = vmatprep.mubr.bf16.mxu1 %v4304_v49  ;;  %5004 = vmatprep.subr.bf16.mxu0 %v5254_v50  ;;  %v1391_v49 = vld [vmem:[%s6665_s0 + $0x368] sm:$0xff]  ;;  %v4365_v50 = vcombine.low %v1366_v36, %v1374_v37  ;;  %v4381_v58 = vcombine.low %v1382_v46, %v1390_v47 }
 0x16b   : > { %5068 = vmatprep.subr.bf16.mxu1 %v5256_v51  ;;  %v4367_v51 = vcombine.low %v1367_v39, %v1375_v40 }
 0x16c   : > { %5005 = vmatpush3.bf16.msra.mxu0 %v5255_v52  ;;  %v4382_v52 = vcombine.high %v1382_v46, %v1390_v47 }
 0x16d   : > { %5069 = vmatpush3.bf16.msra.mxu1 %v5257_v53  ;;  %5006 = vmatprep.subr.bf16.mxu0 %v5258_v56  ;;  %v4384_v53 = vcombine.high %v1383_v48, %v1391_v49  ;;  %v1399_v56 = vld [vmem:[%s6665_s0 + $0x3a8] sm:$0xff] }
 0x16e   : > { %5070 = vmatprep.subr.bf16.mxu1 %v5260_v59  ;;  %v4383_v59 = vcombine.low %v1383_v48, %v1391_v49 }
 0x16f   : > { %3503 = vmatmul.mubr.bf16.gmra.mrb[68].mxu0 %v4301_v60  ;;  %v4398_v60 = vcombine.high %v1398_v54, %v1406_v55 }
 0x170   : > { %3600 = vmatmul.mubr.bf16.gmra.mrb[68].mxu1 %v4303_v61  ;;  %3510 = vmatprep.mubr.bf16.mxu0 %v4318_v62  ;;  %v4400_v61 = vcombine.high %v1399_v56, %v1407_v57  ;;  %v1288_v62 = vld [vmem:[%s6665_s0 + $0x30] sm:$0xff] }
 0x171   : > { %3607 = vmatprep.mubr.bf16.mxu1 %v4320_v63  ;;  %5007 = vmatpush3.bf16.msra.mxu0 %v5259_v0  ;;  %v1296_v63 = vld [vmem:[%s6665_s0 + $0x70] sm:$0xff]  ;;  %v1289_v0 = vld [vmem:[%s6665_s0 + $0x38] sm:$0xff] }
 0x172   : > { %5071 = vmatpush3.bf16.msra.mxu1 %v5261_v1  ;;  %5008 = vmatprep.subr.bf16.mxu0 %v5262_v2  ;;  %v1297_v1 = vld [vmem:[%s6665_s0 + $0x78] sm:$0xff]  ;;  %v4397_v2 = vcombine.low %v1398_v54, %v1406_v55  ;;  %v4290_v4 = vcombine.high %v1288_v62, %v1296_v63 }
 0x173   : > { %5072 = vmatprep.subr.bf16.mxu1 %v5264_v3  ;;  %v4399_v3 = vcombine.low %v1399_v56, %v1407_v57  ;;  %v4292_v5 = vcombine.high %v1289_v0, %v1297_v1  ;;  %v1369_v55 = vld [vmem:[%s6665_s0 + $0x2b8] sm:$0xff] }
 0x174   : > { %v1377_v56 = vld [vmem:[%s6665_s0 + $0x2f8] sm:$0xff] }
 0x175   : > { %5009 = vmatpush3.bf16.msra.mxu0 %v5263_v7  ;;  %v1312_v7 = vld [vmem:[%s6665_s0 + $0xf0] sm:$0xff] }
 0x176   : > { %5073 = vmatpush3.bf16.msra.mxu1 %v5265_v9  ;;  %5010 = vmatprep.subr.bf16.mxu0 %v5266_v10  ;;  %v1313_v9 = vld [vmem:[%s6665_s0 + $0xf8] sm:$0xff]  ;;  %v4289_v10 = vcombine.low %v1288_v62, %v1296_v63 }
 0x177   : > { %3511 = vmatmul.mubr.bf16.gmra.mrb[72].mxu0 %v4317_v11  ;;  %5074 = vmatprep.subr.bf16.mxu1 %v5268_v12  ;;  %v4291_v11 = vcombine.low %v1289_v0, %v1297_v1  ;;  %v4306_v12 = vcombine.high %v1304_v6, %v1312_v7 }
 0x178   : > { %3608 = vmatmul.mubr.bf16.gmra.mrb[72].mxu1 %v4319_v13  ;;  %3518 = vmatprep.mubr.bf16.mxu0 %v4334_v14  ;;  %v4308_v13 = vcombine.high %v1305_v8, %v1313_v9  ;;  %v1320_v14 = vld [vmem:[%s6665_s0 + $0x130] sm:$0xff] }
 0x179   : > { %3615 = vmatprep.mubr.bf16.mxu1 %v4336_v15  ;;  %5011 = vmatpush3.bf16.msra.mxu0 %v5267_v16  ;;  %v1328_v15 = vld [vmem:[%s6665_s0 + $0x170] sm:$0xff]  ;;  %v1321_v16 = vld [vmem:[%s6665_s0 + $0x138] sm:$0xff] }
 0x17a   : > { %5075 = vmatpush3.bf16.msra.mxu1 %v5269_v17  ;;  %5012 = vmatprep.subr.bf16.mxu0 %v5270_v18  ;;  %v1329_v17 = vld [vmem:[%s6665_s0 + $0x178] sm:$0xff]  ;;  %v4305_v18 = vcombine.low %v1304_v6, %v1312_v7  ;;  %v4322_v20 = vcombine.high %v1320_v14, %v1328_v15 }
 0x17b   : > { %5076 = vmatprep.subr.bf16.mxu1 %v5272_v19  ;;  %v4307_v19 = vcombine.low %v1305_v8, %v1313_v9  ;;  %v4324_v21 = vcombine.high %v1321_v16, %v1329_v17 }
 0x17d   : > { %5013 = vmatpush3.bf16.msra.mxu0 %v5271_v23  ;;  %v1344_v23 = vld [vmem:[%s6665_s0 + $0x1f0] sm:$0xff] }
 0x17e   : > { %5077 = vmatpush3.bf16.msra.mxu1 %v5273_v25  ;;  %5014 = vmatprep.subr.bf16.mxu0 %v5274_v26  ;;  %v1345_v25 = vld [vmem:[%s6665_s0 + $0x1f8] sm:$0xff]  ;;  %v4321_v26 = vcombine.low %v1320_v14, %v1328_v15  ;;  %v4337_v37 = vcombine.low %v1336_v22, %v1344_v23 }
 0x17f   : > { %3519 = vmatmul.mubr.bf16.gmra.mrb[76].mxu0 %v4333_v27  ;;  %5078 = vmatprep.subr.bf16.mxu1 %v5276_v28  ;;  %v4323_v27 = vcombine.low %v1321_v16, %v1329_v17  ;;  %v4338_v28 = vcombine.high %v1336_v22, %v1344_v23  ;;  %v1393_v14 = vld [vmem:[%s6665_s0 + $0x378] sm:$0xff] }
 0x180   : > { %3616 = vmatmul.mubr.bf16.gmra.mrb[76].mxu1 %v4335_v29  ;;  %3526 = vmatprep.mubr.bf16.mxu0 %v4350_v30  ;;  %v4340_v29 = vcombine.high %v1337_v24, %v1345_v25  ;;  %v1352_v30 = vld [vmem:[%s6665_s0 + $0x230] sm:$0xff] }
 0x181   : > { %3623 = vmatprep.mubr.bf16.mxu1 %v4352_v31  ;;  %5015 = vmatpush3.bf16.msra.mxu0 %v5275_v32  ;;  %v1360_v31 = vld [vmem:[%s6665_s0 + $0x270] sm:$0xff] }
 0x182   : > { %5079 = vmatpush3.bf16.msra.mxu1 %v5277_v33  ;;  %5016 = vmatprep.subr.bf16.mxu0 %v5278_v34  ;;  %v1353_v33 = vld [vmem:[%s6665_s0 + $0x238] sm:$0xff] }
 0x183   : > { %5080 = vmatprep.subr.bf16.mxu1 %v5280_v35  ;;  %v1361_v34 = vld [vmem:[%s6665_s0 + $0x278] sm:$0xff] }
 0x184   : > { %v4356_v46 = vcombine.high %v1353_v33, %v1361_v34  ;;  %v4355_v63 = vcombine.low %v1353_v33, %v1361_v34  ;;  %v1408_v33 = vld [vmem:[%s6665_s0 + $0x3f0] sm:$0xff] }
 0x185   : > { %5017 = vmatpush3.bf16.msra.mxu0 %v5279_v38 }
 0x186   : > { %5081 = vmatpush3.bf16.msra.mxu1 %v5281_v41  ;;  %v4339_v41 = vcombine.low %v1337_v24, %v1345_v25 }
 0x187   : > { %3527 = vmatmul.mubr.bf16.gmra.mrb[80].mxu0 %v4349_v42  ;;  %v4354_v42 = vcombine.high %v1352_v30, %v1360_v31 }
 0x188   : > { %3624 = vmatmul.mubr.bf16.gmra.mrb[80].mxu1 %v4351_v43  ;;  %3534 = vmatprep.mubr.bf16.mxu0 %v4366_v44 }
 0x189   : > { %3631 = vmatprep.mubr.bf16.mxu1 %v4368_v45 }
 0x18f   : > { %3535 = vmatmul.mubr.bf16.gmra.mrb[84].mxu0 %v4365_v50 }
 0x190   : > { %3632 = vmatmul.mubr.bf16.gmra.mrb[84].mxu1 %v4367_v51  ;;  %3542 = vmatprep.mubr.bf16.mxu0 %v4382_v52  ;;  %v1368_v52 = vld [vmem:[%s6665_s0 + $0x2b0] sm:$0xff] }
 0x191   : > { %3639 = vmatprep.mubr.bf16.mxu1 %v4384_v53  ;;  %v1376_v53 = vld [vmem:[%s6665_s0 + $0x2f0] sm:$0xff] }
 0x192   : > { %v4370_v0 = vcombine.high %v1368_v52, %v1376_v53  ;;  %v4369_v17 = vcombine.low %v1368_v52, %v1376_v53 }
 0x197   : > { %3543 = vmatmul.mubr.bf16.gmra.mrb[88].mxu0 %v4381_v58 }
 0x198   : > { %3640 = vmatmul.mubr.bf16.gmra.mrb[88].mxu1 %v4383_v59  ;;  %3550 = vmatprep.mubr.bf16.mxu0 %v4398_v60  ;;  %v4353_v59 = vcombine.low %v1352_v30, %v1360_v31 }
 0x199   : > { %3647 = vmatprep.mubr.bf16.mxu1 %v4400_v61 }
 0x19f   : > { %3551 = vmatmul.mubr.bf16.gmra.mrb[92].mxu0 %v4397_v2 }
 0x1a0   : > { %3648 = vmatmul.mubr.bf16.gmra.mrb[92].mxu1 %v4399_v3  ;;  %3688 = vmatprep.mubr.bf16.mxu0 %v4290_v4  ;;  %v4372_v4 = vcombine.high %v1369_v55, %v1377_v56 }
 0x1a1   : > { %3785 = vmatprep.mubr.bf16.mxu1 %v4292_v5 }
 0x1a7   : > { %3689 = vmatmul.mubr.bf16.vlgmr.msra.gmra.mrb[96].mxu0 %v4289_v10  ;;  %v1384_v10 = vld [vmem:[%s6665_s0 + $0x330] sm:$0xff] }
 0x1a8   : > { %3786 = vmatmul.mubr.bf16.vlgmr.msra.gmra.mrb[96].mxu1 %v4291_v11  ;;  %3696 = vmatprep.mubr.bf16.mxu0 %v4306_v12  ;;  %v1392_v11 = vld [vmem:[%s6665_s0 + $0x370] sm:$0xff] }
 0x1a9   : > { %3793 = vmatprep.mubr.bf16.mxu1 %v4308_v13  ;;  %v1385_v13 = vld [vmem:[%s6665_s0 + $0x338] sm:$0xff]  ;;  %v4386_v22 = vcombine.high %v1384_v10, %v1392_v11 }
 0x1af   : > { %3697 = vmatmul.mubr.bf16.gmra.mrb[100].mxu0 %v4305_v18 }
 0x1b0   : > { %3794 = vmatmul.mubr.bf16.gmra.mrb[100].mxu1 %v4307_v19  ;;  %3704 = vmatprep.mubr.bf16.mxu0 %v4322_v20 }
 0x1b1   : > { %3801 = vmatprep.mubr.bf16.mxu1 %v4324_v21  ;;  %v4371_v21 = vcombine.low %v1369_v55, %v1377_v56 }
 0x1b7   : > { %3705 = vmatmul.mubr.bf16.gmra.mrb[104].mxu0 %v4321_v26  ;;  %v4388_v26 = vcombine.high %v1385_v13, %v1393_v14 }
 0x1b8   : > { %3802 = vmatmul.mubr.bf16.gmra.mrb[104].mxu1 %v4323_v27  ;;  %3712 = vmatprep.mubr.bf16.mxu0 %v4338_v28 }
 0x1b9   : > { %3809 = vmatprep.mubr.bf16.mxu1 %v4340_v29 }
 0x1ba   : > { %v4634_v32 = vpop.f32.mrb[0].mxu0 }
 0x1bb   : > { %v4698_v35 = vpop.f32.mrb[0].mxu1  ;;  %v4635_v36 = vpop.f32.mrb[1].mxu0 }
 0x1bc   : > { %v4636_v38 = vadd.f32 %v4635_v36, %v4634_v32  ;;  %v4699_v39 = vpop.f32.mrb[1].mxu1  ;;  %v4637_v40 = vpop.f32.mrb[2].mxu0  ;;  %v1400_v32 = vld [vmem:[%s6665_s0 + $0x3b0] sm:$0xff]  ;;  %v1409_v36 = vld [vmem:[%s6665_s0 + $0x3f8] sm:$0xff] }
 0x1bd   : > { %v4700_v43 = vadd.f32 %v4699_v39, %v4698_v35  ;;  %v4701_v44 = vpop.f32.mrb[2].mxu1  ;;  %v4638_v45 = vpop.f32.mrb[3].mxu0  ;;  %v1401_v35 = vld [vmem:[%s6665_s0 + $0x3b8] sm:$0xff]  ;;  %v4385_v39 = vcombine.low %v1384_v10, %v1392_v11 }
 0x1be   : > { %v4639_v47 = vadd.f32 %v4638_v45, %v4637_v40  ;;  %v4702_v48 = vpop.f32.mrb[3].mxu1 }
 0x1bf   : > { %v6389_v49 = vadd.f32 %v4700_v43, %v4636_v38  ;;  %v4703_v50 = vadd.f32 %v4702_v48, %v4701_v44  ;;  %3713 = vmatmul.mubr.bf16.gmra.mrb[108].mxu0 %v4337_v37  ;;  %v4387_v43 = vcombine.low %v1385_v13, %v1393_v14  ;;  %v4402_v44 = vcombine.high %v1400_v32, %v1408_v33 }
 0x1c0   : > { %3810 = vmatmul.mubr.bf16.gmra.mrb[108].mxu1 %v4339_v41  ;;  %3720 = vmatprep.mubr.bf16.mxu0 %v4354_v42  ;;  %v4404_v48 = vcombine.high %v1401_v35, %v1409_v36 }
 0x1c1   : > { %v6391_v51 = vadd.f32 %v4703_v50, %v4639_v47  ;;  %3817 = vmatprep.mubr.bf16.mxu1 %v4356_v46 }
 0x1c2   : > { %v4640_v54 = vpop.f32.mrb[4].mxu0 }
 0x1c3   : > { %v4704_v57 = vpop.f32.mrb[4].mxu1  ;;  %v4641_v58 = vpop.f32.mrb[5].mxu0 }
 0x1c4   : > { %v4642_v60 = vadd.f32 %v4641_v58, %v4640_v54  ;;  %v4705_v61 = vpop.f32.mrb[5].mxu1  ;;  %v4643_v62 = vpop.f32.mrb[6].mxu0 }
 0x1c5   : > { %v4706_v1 = vadd.f32 %v4705_v61, %v4704_v57  ;;  %v4707_v2 = vpop.f32.mrb[6].mxu1  ;;  %v4644_v3 = vpop.f32.mrb[7].mxu0 }
 0x1c6   : > { %v4645_v5 = vadd.f32 %v4644_v3, %v4643_v62  ;;  %v4708_v6 = vpop.f32.mrb[7].mxu1 }
 0x1c7   : > { %v6405_v7 = vadd.f32 %v4706_v1, %v4642_v60  ;;  %v4709_v8 = vadd.f32 %v4708_v6, %v4707_v2  ;;  %3721 = vmatmul.mubr.bf16.gmra.mrb[112].mxu0 %v4353_v59  ;;  %v4401_v59 = vcombine.low %v1400_v32, %v1408_v33 }
 0x1c8   : > { %3818 = vmatmul.mubr.bf16.gmra.mrb[112].mxu1 %v4355_v63  ;;  %3728 = vmatprep.mubr.bf16.mxu0 %v4370_v0  ;;  %v4403_v63 = vcombine.low %v1401_v35, %v1409_v36 }
 0x1c9   : > { %v6407_v9 = vadd.f32 %v4709_v8, %v4645_v5  ;;  %3825 = vmatprep.mubr.bf16.mxu1 %v4372_v4 }
 0x1ca   : > { %v4646_v12 = vpop.f32.mrb[8].mxu0 }
 0x1cb   : > { %v4710_v15 = vpop.f32.mrb[8].mxu1  ;;  %v4647_v16 = vpop.f32.mrb[9].mxu0 }
 0x1cc   : > { %v4648_v18 = vadd.f32 %v4647_v16, %v4646_v12  ;;  %v4711_v19 = vpop.f32.mrb[9].mxu1  ;;  %v4649_v20 = vpop.f32.mrb[10].mxu0 }
 0x1cd   : > { %v4712_v23 = vadd.f32 %v4711_v19, %v4710_v15  ;;  %v4713_v24 = vpop.f32.mrb[10].mxu1  ;;  %v4650_v25 = vpop.f32.mrb[11].mxu0 }
 0x1ce   : > { %v4651_v27 = vadd.f32 %v4650_v25, %v4649_v20  ;;  %v4714_v28 = vpop.f32.mrb[11].mxu1 }
 0x1cf   : > { %v6421_v29 = vadd.f32 %v4712_v23, %v4648_v18  ;;  %v4715_v30 = vadd.f32 %v4714_v28, %v4713_v24  ;;  %3729 = vmatmul.mubr.bf16.gmra.mrb[116].mxu0 %v4369_v17 }
 0x1d0   : > { %3826 = vmatmul.mubr.bf16.gmra.mrb[116].mxu1 %v4371_v21  ;;  %3736 = vmatprep.mubr.bf16.mxu0 %v4386_v22 }
 0x1d1   : > { %v6423_v31 = vadd.f32 %v4715_v30, %v4651_v27  ;;  %3833 = vmatprep.mubr.bf16.mxu1 %v4388_v26 }
 0x1d2   : > { %v4652_v34 = vpop.f32.mrb[12].mxu0 }
 0x1d3   : > { %v4716_v37 = vpop.f32.mrb[12].mxu1  ;;  %v4653_v38 = vpop.f32.mrb[13].mxu0 }
 0x1d4   : > { %v4654_v40 = vadd.f32 %v4653_v38, %v4652_v34  ;;  %v4717_v41 = vpop.f32.mrb[13].mxu1  ;;  %v4655_v42 = vpop.f32.mrb[14].mxu0 }
 0x1d5   : > { %v4718_v45 = vadd.f32 %v4717_v41, %v4716_v37  ;;  %v4719_v46 = vpop.f32.mrb[14].mxu1  ;;  %v4656_v47 = vpop.f32.mrb[15].mxu0 }
 0x1d6   : > { %v4657_v50 = vadd.f32 %v4656_v47, %v4655_v42  ;;  %v4720_v52 = vpop.f32.mrb[15].mxu1 }
 0x1d7   : > { %v6437_v53 = vadd.f32 %v4718_v45, %v4654_v40  ;;  %v4721_v54 = vadd.f32 %v4720_v52, %v4719_v46  ;;  %3737 = vmatmul.mubr.bf16.gmra.mrb[120].mxu0 %v4385_v39 }
 0x1d8   : > { %3834 = vmatmul.mubr.bf16.gmra.mrb[120].mxu1 %v4387_v43  ;;  %3744 = vmatprep.mubr.bf16.mxu0 %v4402_v44 }
 0x1d9   : > { %v6439_v55 = vadd.f32 %v4721_v54, %v4657_v50  ;;  %3841 = vmatprep.mubr.bf16.mxu1 %v4404_v48 }
 0x1da   : > { %v4658_v56 = vpop.f32.mrb[16].mxu0 }
 0x1db   : > { %v4722_v57 = vpop.f32.mrb[16].mxu1  ;;  %v4659_v58 = vpop.f32.mrb[17].mxu0 }
 0x1dc   : > { %v4660_v60 = vadd.f32 %v4659_v58, %v4658_v56  ;;  %v4723_v61 = vpop.f32.mrb[17].mxu1  ;;  %v4661_v62 = vpop.f32.mrb[18].mxu0 }
 0x1dd   : > { %v4724_v0 = vadd.f32 %v4723_v61, %v4722_v57  ;;  %v4725_v1 = vpop.f32.mrb[18].mxu1  ;;  %v4662_v2 = vpop.f32.mrb[19].mxu0 }
 0x1de   : > { %v4663_v3 = vadd.f32 %v4662_v2, %v4661_v62  ;;  %v4726_v4 = vpop.f32.mrb[19].mxu1 }
 0x1df   : > { %v6441_v5 = vadd.f32 %v4724_v0, %v4660_v60  ;;  %v4727_v6 = vadd.f32 %v4726_v4, %v4725_v1  ;;  %3745 = vmatmul.mubr.bf16.gmra.mrb[124].mxu0 %v4401_v59 }
 0x1e0   : > { %3842 = vmatmul.mubr.bf16.gmra.mrb[124].mxu1 %v4403_v63 }
 0x1e1   : > { %v6443_v8 = vadd.f32 %v4727_v6, %v4663_v3 }
 0x1e2   : > { %v4664_v10 = vpop.f32.mrb[20].mxu0 }
 0x1e3   : > { %v4728_v11 = vpop.f32.mrb[20].mxu1  ;;  %v4665_v12 = vpop.f32.mrb[21].mxu0 }
 0x1e4   : > { %v4666_v13 = vadd.f32 %v4665_v12, %v4664_v10  ;;  %v4729_v14 = vpop.f32.mrb[21].mxu1  ;;  %v4667_v15 = vpop.f32.mrb[22].mxu0 }
 0x1e5   : > { %v4730_v16 = vadd.f32 %v4729_v14, %v4728_v11  ;;  %v4731_v17 = vpop.f32.mrb[22].mxu1  ;;  %v4668_v18 = vpop.f32.mrb[23].mxu0 }
 0x1e6   : > { %v4669_v19 = vadd.f32 %v4668_v18, %v4667_v15  ;;  %v4732_v20 = vpop.f32.mrb[23].mxu1 }
 0x1e7   : > { %v6445_v21 = vadd.f32 %v4730_v16, %v4666_v13  ;;  %v4733_v22 = vadd.f32 %v4732_v20, %v4731_v17 }
 0x1e9   : > { %v6447_v23 = vadd.f32 %v4733_v22, %v4669_v19 }
 0x1ea   : > { %v4670_v24 = vpop.f32.mrb[24].mxu0 }
 0x1eb   : > { %v4734_v25 = vpop.f32.mrb[24].mxu1  ;;  %v4671_v26 = vpop.f32.mrb[25].mxu0 }
 0x1ec   : > { %v4672_v27 = vadd.f32 %v4671_v26, %v4670_v24  ;;  %v4735_v28 = vpop.f32.mrb[25].mxu1  ;;  %v4673_v30 = vpop.f32.mrb[26].mxu0 }
 0x1ed   : > { %v4736_v32 = vadd.f32 %v4735_v28, %v4734_v25  ;;  %v4737_v33 = vpop.f32.mrb[26].mxu1  ;;  %v4674_v34 = vpop.f32.mrb[27].mxu0 }
 0x1ee   : > { %v4675_v35 = vadd.f32 %v4674_v34, %v4673_v30  ;;  %v4738_v36 = vpop.f32.mrb[27].mxu1 }
 0x1ef   : > { %v6449_v37 = vadd.f32 %v4736_v32, %v4672_v27  ;;  %v4739_v38 = vadd.f32 %v4738_v36, %v4737_v33 }
 0x1f1   : > { %v6451_v39 = vadd.f32 %v4739_v38, %v4675_v35 }
 0x1f2   : > { %v4676_v40 = vpop.f32.mrb[28].mxu0 }
 0x1f3   : > { %v4740_v41 = vpop.f32.mrb[28].mxu1  ;;  %v4677_v42 = vpop.f32.mrb[29].mxu0 }
 0x1f4   : > { %v4678_v43 = vadd.f32 %v4677_v42, %v4676_v40  ;;  %v4741_v44 = vpop.f32.mrb[29].mxu1  ;;  %v4679_v45 = vpop.f32.mrb[30].mxu0 }
 0x1f5   : > { %v4742_v46 = vadd.f32 %v4741_v44, %v4740_v41  ;;  %v4743_v47 = vpop.f32.mrb[30].mxu1  ;;  %v4680_v48 = vpop.f32.mrb[31].mxu0 }
 0x1f6   : > { %v4681_v50 = vadd.f32 %v4680_v48, %v4679_v45  ;;  %v4744_v52 = vpop.f32.mrb[31].mxu1 }
 0x1f7   : > { %v6453_v54 = vadd.f32 %v4742_v46, %v4678_v43  ;;  %v4745_v56 = vadd.f32 %v4744_v52, %v4743_v47 }
 0x1f9   : > { %v6455_v57 = vadd.f32 %v4745_v56, %v4681_v50 }
 0x1fa   : > { %v4762_v58 = vpop.f32.mrb[32].mxu0 }
 0x1fb   : > { %v4826_v59 = vpop.f32.mrb[32].mxu1  ;;  %v4763_v60 = vpop.f32.mrb[33].mxu0 }
 0x1fc   : > { %v4764_v61 = vadd.f32 %v4763_v60, %v4762_v58  ;;  %v4827_v62 = vpop.f32.mrb[33].mxu1  ;;  %v4765_v63 = vpop.f32.mrb[34].mxu0 }
 0x1fd   : > { %v4828_v0 = vadd.f32 %v4827_v62, %v4826_v59  ;;  %v4829_v1 = vpop.f32.mrb[34].mxu1  ;;  %v4766_v2 = vpop.f32.mrb[35].mxu0 }
 0x1fe   : > { %v3303_v3 = vadd.f32 %v4764_v61, %v6389_v49  ;;  %v4767_v4 = vadd.f32 %v4766_v2, %v4765_v63  ;;  %v4830_v6 = vpop.f32.mrb[35].mxu1 }
 0x1ff   : > { %v4831_v10 = vadd.f32 %v4830_v6, %v4829_v1 }
 0x200   : > { %v6458_v11 = vadd.f32 %v4828_v0, %v3303_v3  ;;  %v3306_v12 = vadd.f32 %v4767_v4, %v6391_v51 }
 0x202   : > { %v6461_v13 = vadd.f32 %v4831_v10, %v3306_v12  ;;  %v4768_v14 = vpop.f32.mrb[36].mxu0 }
 0x203   : > { %v4832_v15 = vpop.f32.mrb[36].mxu1  ;;  %v4769_v16 = vpop.f32.mrb[37].mxu0 }
 0x204   : > { %v4770_v17 = vadd.f32 %v4769_v16, %v4768_v14  ;;  %v4833_v18 = vpop.f32.mrb[37].mxu1  ;;  %v4771_v19 = vpop.f32.mrb[38].mxu0 }
 0x205   : > { %v4834_v20 = vadd.f32 %v4833_v18, %v4832_v15  ;;  %v4835_v22 = vpop.f32.mrb[38].mxu1  ;;  %v4772_v24 = vpop.f32.mrb[39].mxu0 }
 0x206   : > { %v3311_v49 = vadd.f32 %v4770_v17, %v6405_v7  ;;  %v4773_v25 = vadd.f32 %v4772_v24, %v4771_v19  ;;  %v4836_v26 = vpop.f32.mrb[39].mxu1 }
 0x207   : > { %v4837_v27 = vadd.f32 %v4836_v26, %v4835_v22 }
 0x208   : > { %v6464_v28 = vadd.f32 %v4834_v20, %v3311_v49  ;;  %v3314_v51 = vadd.f32 %v4773_v25, %v6407_v9 }
 0x20a   : > { %v6467_v30 = vadd.f32 %v4837_v27, %v3314_v51  ;;  %v4774_v32 = vpop.f32.mrb[40].mxu0 }
 0x20b   : > { %v4838_v33 = vpop.f32.mrb[40].mxu1  ;;  %v4775_v34 = vpop.f32.mrb[41].mxu0 }
 0x20c   : > { %v4776_v35 = vadd.f32 %v4775_v34, %v4774_v32  ;;  %v4839_v36 = vpop.f32.mrb[41].mxu1  ;;  %v4777_v38 = vpop.f32.mrb[42].mxu0 }
 0x20d   : > { %v4840_v40 = vadd.f32 %v4839_v36, %v4838_v33  ;;  %v4841_v41 = vpop.f32.mrb[42].mxu1  ;;  %v4778_v42 = vpop.f32.mrb[43].mxu0 }
 0x20e   : > { %v3319_v7 = vadd.f32 %v4776_v35, %v6421_v29  ;;  %v4779_v43 = vadd.f32 %v4778_v42, %v4777_v38  ;;  %v4842_v44 = vpop.f32.mrb[43].mxu1 }
 0x20f   : > { %v4843_v45 = vadd.f32 %v4842_v44, %v4841_v41 }
 0x210   : > { %v6470_v46 = vadd.f32 %v4840_v40, %v3319_v7  ;;  %v3322_v9 = vadd.f32 %v4779_v43, %v6423_v31 }
 0x212   : > { %v6473_v47 = vadd.f32 %v4843_v45, %v3322_v9  ;;  %v4780_v48 = vpop.f32.mrb[44].mxu0 }
 0x213   : > { %v4844_v50 = vpop.f32.mrb[44].mxu1  ;;  %v4781_v52 = vpop.f32.mrb[45].mxu0 }
 0x214   : > { %v4782_v56 = vadd.f32 %v4781_v52, %v4780_v48  ;;  %v4845_v58 = vpop.f32.mrb[45].mxu1  ;;  %v4783_v59 = vpop.f32.mrb[46].mxu0 }
 0x215   : > { %v4846_v60 = vadd.f32 %v4845_v58, %v4844_v50  ;;  %v4847_v61 = vpop.f32.mrb[46].mxu1  ;;  %v4784_v62 = vpop.f32.mrb[47].mxu0 }
 0x216   : > { %v3327_v29 = vadd.f32 %v4782_v56, %v6437_v53  ;;  %v4785_v63 = vadd.f32 %v4784_v62, %v4783_v59  ;;  %v4848_v0 = vpop.f32.mrb[47].mxu1 }
 0x217   : > { %v4849_v1 = vadd.f32 %v4848_v0, %v4847_v61 }
 0x218   : > { %v6476_v2 = vadd.f32 %v4846_v60, %v3327_v29  ;;  %v3330_v31 = vadd.f32 %v4785_v63, %v6439_v55 }
 0x21a   : > { %v6479_v3 = vadd.f32 %v4849_v1, %v3330_v31  ;;  %v4786_v4 = vpop.f32.mrb[48].mxu0 }
 0x21b   : > { %v4850_v6 = vpop.f32.mrb[48].mxu1  ;;  %v4787_v10 = vpop.f32.mrb[49].mxu0 }
 0x21c   : > { %v4788_v12 = vadd.f32 %v4787_v10, %v4786_v4  ;;  %v4851_v14 = vpop.f32.mrb[49].mxu1  ;;  %v4789_v15 = vpop.f32.mrb[50].mxu0 }
 0x21d   : > { %v4852_v16 = vadd.f32 %v4851_v14, %v4850_v6  ;;  %v4853_v17 = vpop.f32.mrb[50].mxu1  ;;  %v4790_v18 = vpop.f32.mrb[51].mxu0 }
 0x21e   : > { %v3335_v53 = vadd.f32 %v4788_v12, %v6441_v5  ;;  %v4791_v19 = vadd.f32 %v4790_v18, %v4789_v15  ;;  %v4854_v20 = vpop.f32.mrb[51].mxu1 }
 0x21f   : > { %v4855_v22 = vadd.f32 %v4854_v20, %v4853_v17 }
 0x220   : > { %v6482_v24 = vadd.f32 %v4852_v16, %v3335_v53  ;;  %v3338_v55 = vadd.f32 %v4791_v19, %v6443_v8 }
 0x222   : > { %v6485_v49 = vadd.f32 %v4855_v22, %v3338_v55  ;;  %v4792_v25 = vpop.f32.mrb[52].mxu0 }
 0x223   : > { %v4856_v26 = vpop.f32.mrb[52].mxu1  ;;  %v4793_v27 = vpop.f32.mrb[53].mxu0 }
 0x224   : > { %v4794_v51 = vadd.f32 %v4793_v27, %v4792_v25  ;;  %v4857_v32 = vpop.f32.mrb[53].mxu1  ;;  %v4795_v33 = vpop.f32.mrb[54].mxu0 }
 0x225   : > { %v4858_v34 = vadd.f32 %v4857_v32, %v4856_v26  ;;  %v4859_v35 = vpop.f32.mrb[54].mxu1  ;;  %v4796_v36 = vpop.f32.mrb[55].mxu0 }
 0x226   : > { %v3343_v5 = vadd.f32 %v4794_v51, %v6445_v21  ;;  %v4797_v38 = vadd.f32 %v4796_v36, %v4795_v33  ;;  %v4860_v40 = vpop.f32.mrb[55].mxu1 }
 0x227   : > { %v4861_v41 = vadd.f32 %v4860_v40, %v4859_v35 }
 0x228   : > { %v6488_v42 = vadd.f32 %v4858_v34, %v3343_v5  ;;  %v3346_v8 = vadd.f32 %v4797_v38, %v6447_v23 }
 0x22a   : > { %v6491_v7 = vadd.f32 %v4861_v41, %v3346_v8  ;;  %v4798_v43 = vpop.f32.mrb[56].mxu0 }
 0x22b   : > { %v4862_v44 = vpop.f32.mrb[56].mxu1  ;;  %v4799_v45 = vpop.f32.mrb[57].mxu0 }
 0x22c   : > { %v4800_v9 = vadd.f32 %v4799_v45, %v4798_v43  ;;  %v4863_v48 = vpop.f32.mrb[57].mxu1  ;;  %v4801_v50 = vpop.f32.mrb[58].mxu0 }
 0x22d   : > { %v4864_v52 = vadd.f32 %v4863_v48, %v4862_v44  ;;  %v4865_v56 = vpop.f32.mrb[58].mxu1  ;;  %v4802_v58 = vpop.f32.mrb[59].mxu0 }
 0x22e   : > { %v3351_v21 = vadd.f32 %v4800_v9, %v6449_v37  ;;  %v4803_v59 = vadd.f32 %v4802_v58, %v4801_v50  ;;  %v4866_v60 = vpop.f32.mrb[59].mxu1 }
 0x22f   : > { %v4867_v61 = vadd.f32 %v4866_v60, %v4865_v56 }
 0x230   : > { %v6494_v62 = vadd.f32 %v4864_v52, %v3351_v21  ;;  %v3354_v23 = vadd.f32 %v4803_v59, %v6451_v39 }
 0x232   : > { %v6497_v29 = vadd.f32 %v4867_v61, %v3354_v23  ;;  %v4804_v63 = vpop.f32.mrb[60].mxu0 }
 0x233   : > { %v4868_v0 = vpop.f32.mrb[60].mxu1  ;;  %v4805_v1 = vpop.f32.mrb[61].mxu0 }
 0x234   : > { %v4806_v31 = vadd.f32 %v4805_v1, %v4804_v63  ;;  %v4869_v4 = vpop.f32.mrb[61].mxu1  ;;  %v4807_v6 = vpop.f32.mrb[62].mxu0 }
 0x235   : > { %v4870_v10 = vadd.f32 %v4869_v4, %v4868_v0  ;;  %v4871_v12 = vpop.f32.mrb[62].mxu1  ;;  %v4808_v14 = vpop.f32.mrb[63].mxu0 }
 0x236   : > { %v3359_v37 = vadd.f32 %v4806_v31, %v6453_v54  ;;  %v4809_v15 = vadd.f32 %v4808_v14, %v4807_v6  ;;  %v4872_v16 = vpop.f32.mrb[63].mxu1 }
 0x237   : > { %v4873_v17 = vadd.f32 %v4872_v16, %v4871_v12 }
 0x238   : > { %v6500_v18 = vadd.f32 %v4870_v10, %v3359_v37  ;;  %v3362_v39 = vadd.f32 %v4809_v15, %v6455_v57 }
 0x23a   : > { %v6503_v53 = vadd.f32 %v4873_v17, %v3362_v39  ;;  %v4890_v19 = vpop.f32.mrb[64].mxu0 }
 0x23b   : > { %v4954_v20 = vpop.f32.mrb[64].mxu1  ;;  %v4891_v22 = vpop.f32.mrb[65].mxu0 }
 0x23c   : > { %v4892_v55 = vadd.f32 %v4891_v22, %v4890_v19  ;;  %v4955_v25 = vpop.f32.mrb[65].mxu1  ;;  %v4893_v26 = vpop.f32.mrb[66].mxu0 }
 0x23d   : > { %v4956_v27 = vadd.f32 %v4955_v25, %v4954_v20  ;;  %v4957_v51 = vpop.f32.mrb[66].mxu1  ;;  %v4894_v32 = vpop.f32.mrb[67].mxu0 }
 0x23e   : > { %v3497_v54 = vadd.f32 %v4892_v55, %v6458_v11  ;;  %v4895_v33 = vadd.f32 %v4894_v32, %v4893_v26  ;;  %v4958_v34 = vpop.f32.mrb[67].mxu1 }
 0x23f   : > { %v4959_v35 = vadd.f32 %v4958_v34, %v4957_v51 }
 0x240   : > { %v6506_v36 = vadd.f32 %v4956_v27, %v3497_v54  ;;  %v3500_v57 = vadd.f32 %v4895_v33, %v6461_v13 }
 0x242   : > { %v6509_v5 = vadd.f32 %v4959_v35, %v3500_v57  ;;  %v4896_v38 = vpop.f32.mrb[68].mxu0 }
 0x243   : > { %v4960_v40 = vpop.f32.mrb[68].mxu1  ;;  %v4897_v41 = vpop.f32.mrb[69].mxu0 }
 0x244   : > { %v4898_v8 = vadd.f32 %v4897_v41, %v4896_v38  ;;  %v4961_v43 = vpop.f32.mrb[69].mxu1  ;;  %v4899_v44 = vpop.f32.mrb[70].mxu0 }
 0x245   : > { %v4962_v45 = vadd.f32 %v4961_v43, %v4960_v40  ;;  %v4963_v9 = vpop.f32.mrb[70].mxu1  ;;  %v4900_v48 = vpop.f32.mrb[71].mxu0 }
 0x246   : > { %v3505_v11 = vadd.f32 %v4898_v8, %v6464_v28  ;;  %v4901_v50 = vadd.f32 %v4900_v48, %v4899_v44  ;;  %v4964_v52 = vpop.f32.mrb[71].mxu1 }
 0x247   : > { %v4965_v56 = vadd.f32 %v4964_v52, %v4963_v9 }
 0x248   : > { %v6512_v58 = vadd.f32 %v4962_v45, %v3505_v11  ;;  %v3508_v13 = vadd.f32 %v4901_v50, %v6467_v30 }
 0x24a   : > { %v6515_v21 = vadd.f32 %v4965_v56, %v3508_v13  ;;  %v4902_v59 = vpop.f32.mrb[72].mxu0 }
 0x24b   : > { %v4966_v60 = vpop.f32.mrb[72].mxu1  ;;  %v4903_v61 = vpop.f32.mrb[73].mxu0 }
 0x24c   : > { %v4904_v23 = vadd.f32 %v4903_v61, %v4902_v59  ;;  %v4967_v63 = vpop.f32.mrb[73].mxu1  ;;  %v4905_v0 = vpop.f32.mrb[74].mxu0 }
 0x24d   : > { %v4968_v1 = vadd.f32 %v4967_v63, %v4966_v60  ;;  %v4969_v31 = vpop.f32.mrb[74].mxu1  ;;  %v4906_v4 = vpop.f32.mrb[75].mxu0 }
 0x24e   : > { %v3513_v28 = vadd.f32 %v4904_v23, %v6470_v46  ;;  %v4907_v6 = vadd.f32 %v4906_v4, %v4905_v0  ;;  %v4970_v10 = vpop.f32.mrb[75].mxu1 }
 0x24f   : > { %v4971_v12 = vadd.f32 %v4970_v10, %v4969_v31 }
 0x250   : > { %v6518_v14 = vadd.f32 %v4968_v1, %v3513_v28  ;;  %v3516_v30 = vadd.f32 %v4907_v6, %v6473_v47 }
 0x252   : > { %v6521_v37 = vadd.f32 %v4971_v12, %v3516_v30  ;;  %v4908_v15 = vpop.f32.mrb[76].mxu0 }
 0x253   : > { %v4972_v16 = vpop.f32.mrb[76].mxu1  ;;  %v4909_v17 = vpop.f32.mrb[77].mxu0 }
 0x254   : > { %v4910_v39 = vadd.f32 %v4909_v17, %v4908_v15  ;;  %v4973_v19 = vpop.f32.mrb[77].mxu1  ;;  %v4911_v20 = vpop.f32.mrb[78].mxu0 }
 0x255   : > { %v4974_v22 = vadd.f32 %v4973_v19, %v4972_v16  ;;  %v4975_v55 = vpop.f32.mrb[78].mxu1  ;;  %v4912_v25 = vpop.f32.mrb[79].mxu0 }
 0x256   : > { %v3521_v46 = vadd.f32 %v4910_v39, %v6476_v2  ;;  %v4913_v26 = vadd.f32 %v4912_v25, %v4911_v20  ;;  %v4976_v27 = vpop.f32.mrb[79].mxu1 }
 0x257   : > { %v4977_v51 = vadd.f32 %v4976_v27, %v4975_v55 }
 0x258   : > { %v6524_v32 = vadd.f32 %v4974_v22, %v3521_v46  ;;  %v3524_v47 = vadd.f32 %v4913_v26, %v6479_v3 }
 0x25a   : > { %v6527_v54 = vadd.f32 %v4977_v51, %v3524_v47  ;;  %v4914_v33 = vpop.f32.mrb[80].mxu0 }
 0x25b   : > { %v4978_v34 = vpop.f32.mrb[80].mxu1  ;;  %v4915_v35 = vpop.f32.mrb[81].mxu0 }
 0x25c   : > { %v4916_v57 = vadd.f32 %v4915_v35, %v4914_v33  ;;  %v4979_v38 = vpop.f32.mrb[81].mxu1  ;;  %v4917_v40 = vpop.f32.mrb[82].mxu0 }
 0x25d   : > { %v4980_v41 = vadd.f32 %v4979_v38, %v4978_v34  ;;  %v4981_v8 = vpop.f32.mrb[82].mxu1  ;;  %v4918_v43 = vpop.f32.mrb[83].mxu0 }
 0x25e   : > { %v3529_v2 = vadd.f32 %v4916_v57, %v6482_v24  ;;  %v4919_v44 = vadd.f32 %v4918_v43, %v4917_v40  ;;  %v4982_v45 = vpop.f32.mrb[83].mxu1 }
 0x25f   : > { %v4983_v9 = vadd.f32 %v4982_v45, %v4981_v8 }
 0x260   : > { %v6530_v48 = vadd.f32 %v4980_v41, %v3529_v2  ;;  %v3532_v3 = vadd.f32 %v4919_v44, %v6485_v49 }
 0x262   : > { %v6533_v11 = vadd.f32 %v4983_v9, %v3532_v3  ;;  %v4920_v50 = vpop.f32.mrb[84].mxu0 }
 0x263   : > { %v4984_v52 = vpop.f32.mrb[84].mxu1  ;;  %v4921_v56 = vpop.f32.mrb[85].mxu0 }
 0x264   : > { %v4922_v13 = vadd.f32 %v4921_v56, %v4920_v50  ;;  %v4985_v59 = vpop.f32.mrb[85].mxu1  ;;  %v4923_v60 = vpop.f32.mrb[86].mxu0 }
 0x265   : > { %v4986_v61 = vadd.f32 %v4985_v59, %v4984_v52  ;;  %v4987_v23 = vpop.f32.mrb[86].mxu1  ;;  %v4924_v63 = vpop.f32.mrb[87].mxu0 }
 0x266   : > { %v3537_v24 = vadd.f32 %v4922_v13, %v6488_v42  ;;  %v4925_v0 = vadd.f32 %v4924_v63, %v4923_v60  ;;  %v4988_v1 = vpop.f32.mrb[87].mxu1 }
 0x267   : > { %v4989_v31 = vadd.f32 %v4988_v1, %v4987_v23 }
 0x268   : > { %v6536_v4 = vadd.f32 %v4986_v61, %v3537_v24  ;;  %v3540_v49 = vadd.f32 %v4925_v0, %v6491_v7 }
 0x26a   : > { %v6539_v28 = vadd.f32 %v4989_v31, %v3540_v49  ;;  %v4926_v6 = vpop.f32.mrb[88].mxu0 }
 0x26b   : > { %v4990_v10 = vpop.f32.mrb[88].mxu1  ;;  %v4927_v12 = vpop.f32.mrb[89].mxu0 }
 0x26c   : > { %v4928_v30 = vadd.f32 %v4927_v12, %v4926_v6  ;;  %v4991_v15 = vpop.f32.mrb[89].mxu1  ;;  %v4929_v16 = vpop.f32.mrb[90].mxu0 }
 0x26d   : > { %v4992_v17 = vadd.f32 %v4991_v15, %v4990_v10  ;;  %v4993_v39 = vpop.f32.mrb[90].mxu1  ;;  %v4930_v19 = vpop.f32.mrb[91].mxu0 }
 0x26e   : > { %v3545_v42 = vadd.f32 %v4928_v30, %v6494_v62  ;;  %v4931_v20 = vadd.f32 %v4930_v19, %v4929_v16  ;;  %v4994_v22 = vpop.f32.mrb[91].mxu1 }
 0x26f   : > { %v4995_v55 = vadd.f32 %v4994_v22, %v4993_v39 }
 0x270   : > { %v6542_v25 = vadd.f32 %v4992_v17, %v3545_v42  ;;  %v3548_v7 = vadd.f32 %v4931_v20, %v6497_v29 }
 0x272   : > { %v6545_v46 = vadd.f32 %v4995_v55, %v3548_v7  ;;  %v4932_v26 = vpop.f32.mrb[92].mxu0 }
 0x273   : > { %v4996_v27 = vpop.f32.mrb[92].mxu1  ;;  %v4933_v51 = vpop.f32.mrb[93].mxu0 }
 0x274   : > { %v4934_v47 = vadd.f32 %v4933_v51, %v4932_v26  ;;  %v4997_v33 = vpop.f32.mrb[93].mxu1  ;;  %v4935_v34 = vpop.f32.mrb[94].mxu0 }
 0x275   : > { %v4998_v35 = vadd.f32 %v4997_v33, %v4996_v27  ;;  %v4999_v57 = vpop.f32.mrb[94].mxu1  ;;  %v4936_v38 = vpop.f32.mrb[95].mxu0 }
 0x276   : > { %v3553_v62 = vadd.f32 %v4934_v47, %v6500_v18  ;;  %v4937_v40 = vadd.f32 %v4936_v38, %v4935_v34  ;;  %v5000_v41 = vpop.f32.mrb[95].mxu1 }
 0x277   : > { %v5001_v8 = vadd.f32 %v5000_v41, %v4999_v57 }
 0x278   : > { %v6548_v43 = vadd.f32 %v4998_v35, %v3553_v62  ;;  %v3556_v29 = vadd.f32 %v4937_v40, %v6503_v53 }
 0x27a   : > { %v6551_v2 = vadd.f32 %v5001_v8, %v3556_v29  ;;  %v5018_v44 = vpop.f32.mrb[96].mxu0 }
 0x27b   : > { %v5082_v45 = vpop.f32.mrb[96].mxu1  ;;  %v5019_v9 = vpop.f32.mrb[97].mxu0 }
 0x27c   : > { %v5020_v3 = vadd.f32 %v5019_v9, %v5018_v44  ;;  %v5083_v50 = vpop.f32.mrb[97].mxu1  ;;  %v5021_v52 = vpop.f32.mrb[98].mxu0 }
 0x27d   : > { %v5084_v56 = vadd.f32 %v5083_v50, %v5082_v45  ;;  %v5085_v13 = vpop.f32.mrb[98].mxu1  ;;  %v5022_v59 = vpop.f32.mrb[99].mxu0 }
 0x27e   : > { %v3691_v18 = vadd.f32 %v5020_v3, %v6506_v36  ;;  %v5023_v60 = vadd.f32 %v5022_v59, %v5021_v52  ;;  %v5086_v61 = vpop.f32.mrb[99].mxu1 }
 0x27f   : > { %v5087_v23 = vadd.f32 %v5086_v61, %v5085_v13 }
 0x280   : > { %v6554_v63 = vadd.f32 %v5084_v56, %v3691_v18  ;;  %v3694_v53 = vadd.f32 %v5023_v60, %v6509_v5 }
 0x282   : > { %v6557_v24 = vadd.f32 %v5087_v23, %v3694_v53  ;;  %v5024_v0 = vpop.f32.mrb[100].mxu0 }
 0x283   : > { %v5088_v1 = vpop.f32.mrb[100].mxu1  ;;  %v5025_v31 = vpop.f32.mrb[101].mxu0 }
 0x284   : > { %v3850_v49 = vadd.f32 %v6557_v24, %v6554_v63  ;;  %v5026_v6 = vadd.f32 %v5025_v31, %v5024_v0  ;;  %v5089_v10 = vpop.f32.mrb[101].mxu1  ;;  %v5027_v12 = vpop.f32.mrb[102].mxu0 }
 0x285   : > { %v5090_v30 = vadd.f32 %v5089_v10, %v5088_v1  ;;  %v5091_v36 = vpop.f32.mrb[102].mxu1  ;;  %v5028_v15 = vpop.f32.mrb[103].mxu0 }
 0x286   : > { %v3699_v16 = vadd.f32 %v5026_v6, %v6512_v58  ;;  %v5029_v17 = vadd.f32 %v5028_v15, %v5027_v12  ;;  %v5092_v39 = vpop.f32.mrb[103].mxu1 }
 0x287   : > { %v5093_v19 = vadd.f32 %v5092_v39, %v5091_v36 }
 0x288   : > { %v6562_v5 = vadd.f32 %v5090_v30, %v3699_v16  ;;  %v3702_v42 = vadd.f32 %v5029_v17, %v6515_v21 }
 0x28a   : > { %v3851_v20 = vadd.f32 %v3850_v49, %v6562_v5  ;;  %v6566_v22 = vadd.f32 %v5093_v19, %v3702_v42  ;;  %v5030_v55 = vpop.f32.mrb[104].mxu0 }
 0x28b   : > { %v5094_v7 = vpop.f32.mrb[104].mxu1  ;;  %v5031_v26 = vpop.f32.mrb[105].mxu0 }
 0x28c   : > { %v3852_v27 = vadd.f32 %v3851_v20, %v6566_v22  ;;  %v5032_v51 = vadd.f32 %v5031_v26, %v5030_v55  ;;  %v5095_v47 = vpop.f32.mrb[105].mxu1  ;;  %v5033_v33 = vpop.f32.mrb[106].mxu0 }
 0x28d   : > { %v5096_v58 = vadd.f32 %v5095_v47, %v5094_v7  ;;  %v5097_v34 = vpop.f32.mrb[106].mxu1  ;;  %v5034_v35 = vpop.f32.mrb[107].mxu0 }
 0x28e   : > { %v3707_v57 = vadd.f32 %v5032_v51, %v6518_v14  ;;  %v5035_v38 = vadd.f32 %v5034_v35, %v5033_v33  ;;  %v5098_v62 = vpop.f32.mrb[107].mxu1 }
 0x28f   : > { %v5099_v21 = vadd.f32 %v5098_v62, %v5097_v34 }
 0x290   : > { %v6570_v40 = vadd.f32 %v5096_v58, %v3707_v57  ;;  %v3710_v41 = vadd.f32 %v5035_v38, %v6521_v37 }
 0x292   : > { %v3853_v8 = vadd.f32 %v3852_v27, %v6570_v40  ;;  %v6574_v29 = vadd.f32 %v5099_v21, %v3710_v41  ;;  %v5036_v44 = vpop.f32.mrb[108].mxu0 }
 0x293   : > { %v5100_v45 = vpop.f32.mrb[108].mxu1  ;;  %v5037_v9 = vpop.f32.mrb[109].mxu0 }
 0x294   : > { %v3854_v3 = vadd.f32 %v3853_v8, %v6574_v29  ;;  %v5038_v50 = vadd.f32 %v5037_v9, %v5036_v44  ;;  %v5101_v52 = vpop.f32.mrb[109].mxu1  ;;  %v5039_v56 = vpop.f32.mrb[110].mxu0 }
 0x295   : > { %v5102_v14 = vadd.f32 %v5101_v52, %v5100_v45  ;;  %v5103_v13 = vpop.f32.mrb[110].mxu1  ;;  %v5040_v59 = vpop.f32.mrb[111].mxu0 }
 0x296   : > { %v3715_v18 = vadd.f32 %v5038_v50, %v6524_v32  ;;  %v5041_v60 = vadd.f32 %v5040_v59, %v5039_v56  ;;  %v5104_v61 = vpop.f32.mrb[111].mxu1 }
 0x297   : > { %v5105_v37 = vadd.f32 %v5104_v61, %v5103_v13 }
 0x298   : > { %v6578_v23 = vadd.f32 %v5102_v14, %v3715_v18  ;;  %v3718_v53 = vadd.f32 %v5041_v60, %v6527_v54 }
 0x29a   : > { %v3855_v0 = vadd.f32 %v3854_v3, %v6578_v23  ;;  %v6582_v1 = vadd.f32 %v5105_v37, %v3718_v53  ;;  %v5042_v31 = vpop.f32.mrb[112].mxu0 }
 0x29b   : > { %v5106_v49 = vpop.f32.mrb[112].mxu1  ;;  %v5043_v6 = vpop.f32.mrb[113].mxu0 }
 0x29c   : > { %v3856_v10 = vadd.f32 %v3855_v0, %v6582_v1  ;;  %v5044_v12 = vadd.f32 %v5043_v6, %v5042_v31  ;;  %v5107_v30 = vpop.f32.mrb[113].mxu1  ;;  %v5045_v36 = vpop.f32.mrb[114].mxu0 }
 0x29d   : > { %v5108_v32 = vadd.f32 %v5107_v30, %v5106_v49  ;;  %v5109_v15 = vpop.f32.mrb[114].mxu1  ;;  %v5046_v16 = vpop.f32.mrb[115].mxu0 }
 0x29e   : > { %v3723_v17 = vadd.f32 %v5044_v12, %v6530_v48  ;;  %v5047_v39 = vadd.f32 %v5046_v16, %v5045_v36  ;;  %v5110_v19 = vpop.f32.mrb[115].mxu1 }
 0x29f   : > { %v5111_v54 = vadd.f32 %v5110_v19, %v5109_v15 }
 0x2a0   : > { %v6586_v42 = vadd.f32 %v5108_v32, %v3723_v17  ;;  %v3726_v20 = vadd.f32 %v5047_v39, %v6533_v11 }
 0x2a2   : > { %v3857_v55 = vadd.f32 %v3856_v10, %v6586_v42  ;;  %v6590_v7 = vadd.f32 %v5111_v54, %v3726_v20  ;;  %v5048_v26 = vpop.f32.mrb[116].mxu0 }
 0x2a3   : > { %v5112_v27 = vpop.f32.mrb[116].mxu1  ;;  %v5049_v51 = vpop.f32.mrb[117].mxu0 }
 0x2a4   : > { %v3858_v47 = vadd.f32 %v3857_v55, %v6590_v7  ;;  %v5050_v33 = vadd.f32 %v5049_v51, %v5048_v26  ;;  %v5113_v58 = vpop.f32.mrb[117].mxu1  ;;  %v5051_v34 = vpop.f32.mrb[118].mxu0 }
 0x2a5   : > { %v5114_v48 = vadd.f32 %v5113_v58, %v5112_v27  ;;  %v5115_v35 = vpop.f32.mrb[118].mxu1  ;;  %v5052_v57 = vpop.f32.mrb[119].mxu0 }
 0x2a6   : > { %v3731_v38 = vadd.f32 %v5050_v33, %v6536_v4  ;;  %v5053_v62 = vadd.f32 %v5052_v57, %v5051_v34  ;;  %v5116_v21 = vpop.f32.mrb[119].mxu1 }
 0x2a7   : > { %v5117_v11 = vadd.f32 %v5116_v21, %v5115_v35 }
 0x2a8   : > { %v3828_v41 = vadd.f32 %v5114_v48, %v3731_v38  ;;  %v3734_v8 = vadd.f32 %v5053_v62, %v6539_v28 }
 0x2aa   : > { %v3859_v44 = vadd.f32 %v3858_v47, %v3828_v41  ;;  %v3831_v45 = vadd.f32 %v5117_v11, %v3734_v8  ;;  %v5054_v9 = vpop.f32.mrb[120].mxu0 }
 0x2ab   : > { %v5118_v3 = vpop.f32.mrb[120].mxu1  ;;  %v5055_v50 = vpop.f32.mrb[121].mxu0 }
 0x2ac   : > { %v3860_v52 = vadd.f32 %v3859_v44, %v3831_v45  ;;  %v5056_v56 = vadd.f32 %v5055_v50, %v5054_v9  ;;  %v5119_v14 = vpop.f32.mrb[121].mxu1  ;;  %v5057_v13 = vpop.f32.mrb[122].mxu0 }
 0x2ad   : > { %v5120_v59 = vadd.f32 %v5119_v14, %v5118_v3  ;;  %v5121_v18 = vpop.f32.mrb[122].mxu1  ;;  %v5058_v60 = vpop.f32.mrb[123].mxu0 }
 0x2ae   : > { %v3739_v4 = vadd.f32 %v5056_v56, %v6542_v25  ;;  %v5059_v61 = vadd.f32 %v5058_v60, %v5057_v13  ;;  %v5122_v37 = vpop.f32.mrb[123].mxu1 }
 0x2af   : > { %v5123_v53 = vadd.f32 %v5122_v37, %v5121_v18 }
 0x2b0   : > { %v3836_v0 = vadd.f32 %v5120_v59, %v3739_v4  ;;  %v3742_v28 = vadd.f32 %v5059_v61, %v6545_v46 }
 0x2b2   : > { %v3861_v31 = vadd.f32 %v3860_v52, %v3836_v0  ;;  %v3839_v49 = vadd.f32 %v5123_v53, %v3742_v28  ;;  %v5060_v6 = vpop.f32.mrb[124].mxu0 }
 0x2b3   : > { %v5124_v10 = vpop.f32.mrb[124].mxu1  ;;  %v5061_v12 = vpop.f32.mrb[125].mxu0 }
 0x2b4   : > { %v3862_v30 = vadd.f32 %v3861_v31, %v3839_v49  ;;  %v5062_v36 = vadd.f32 %v5061_v12, %v5060_v6  ;;  %v5125_v32 = vpop.f32.mrb[125].mxu1  ;;  %v5063_v15 = vpop.f32.mrb[126].mxu0 }
 0x2b5   : > { %v5126_v16 = vadd.f32 %v5125_v32, %v5124_v10  ;;  %v5127_v17 = vpop.f32.mrb[126].mxu1  ;;  %v5064_v39 = vpop.f32.mrb[127].mxu0 }
 0x2b6   : > { %v3747_v25 = vadd.f32 %v5062_v36, %v6548_v43  ;;  %v5065_v19 = vadd.f32 %v5064_v39, %v5063_v15  ;;  %v5128_v54 = vpop.f32.mrb[127].mxu1 }
 0x2b7   : > { %v5129_v20 = vadd.f32 %v5128_v54, %v5127_v17 }
 0x2b8   : > { %v3844_v55 = vadd.f32 %v5126_v16, %v3747_v25  ;;  %v3750_v46 = vadd.f32 %v5065_v19, %v6551_v2 }
 0x2ba   : > { %v3863_v26 = vadd.f32 %v3862_v30, %v3844_v55  ;;  %v3847_v27 = vadd.f32 %v5129_v20, %v3750_v46 }
 0x2bc   : > { %v3864_v51 = vadd.f32 %v3863_v26, %v3847_v27 }
 0x2be   : > { %v3865_v47 = vrot.slane %v3864_v51, 4 }
 0x2c0   : > { %v3866_v33 = vadd.f32 %v3865_v47, %v3864_v51 }
 0x2c2   : > { %v3867_v58 = vrot.slane %v3866_v33, 2 }
 0x2c4   : > { %v3868_v34 = vadd.f32 %v3867_v58, %v3866_v33 }
 0x2c6   : > { %v3869_v48 = vrot.slane %v3868_v34, 1 }
 0x2c8   : > { %v3870_v35 = vadd.f32 %v3869_v48, %v3868_v34 }
 0x2ca   : > { %v3871_v57 = vmul.f32 0.0078125, %v3870_v35 }
 0x2cc   : > { %v3872_v38 = vsub.f32 %v6554_v63, %v3871_v57  ;;  %v3873_v43 = vsub.f32 %v6557_v24, %v3871_v57  ;;  %v3874_v62 = vsub.f32 %v6562_v5, %v3871_v57  ;;  %v3875_v21 = vsub.f32 %v6566_v22, %v3871_v57 }
 0x2cd   : > { %v3876_v2 = vsub.f32 %v6570_v40, %v3871_v57  ;;  %v3877_v11 = vsub.f32 %v6574_v29, %v3871_v57  ;;  %v3878_v8 = vsub.f32 %v6578_v23, %v3871_v57  ;;  %v3879_v44 = vsub.f32 %v6582_v1, %v3871_v57 }
 0x2ce   : > { %v3880_v9 = vsub.f32 %v6586_v42, %v3871_v57  ;;  %v3881_v3 = vsub.f32 %v6590_v7, %v3871_v57  ;;  %v3882_v50 = vsub.f32 %v3828_v41, %v3871_v57  ;;  %v3883_v63 = vsub.f32 %v3831_v45, %v3871_v57 }
 0x2cf   : > { %v3884_v52 = vsub.f32 %v3836_v0, %v3871_v57  ;;  %v3885_v24 = vsub.f32 %v3839_v49, %v3871_v57  ;;  %v3886_v56 = vsub.f32 %v3844_v55, %v3871_v57  ;;  %v3887_v5 = vsub.f32 %v3847_v27, %v3871_v57 }
 0x2d0   : > { %v3888_v14 = vmul.f32 %v3872_v38, %v3872_v38  ;;  %v3889_v22 = vmul.f32 %v3873_v43, %v3873_v43  ;;  %v3890_v13 = vmul.f32 %v3874_v62, %v3874_v62  ;;  %v3891_v59 = vmul.f32 %v3875_v21, %v3875_v21 }
 0x2d1   : > { %v3892_v18 = vmul.f32 %v3876_v2, %v3876_v2  ;;  %v3893_v60 = vmul.f32 %v3877_v11, %v3877_v11  ;;  %v3894_v4 = vmul.f32 %v3878_v8, %v3878_v8  ;;  %v3895_v61 = vmul.f32 %v3879_v44, %v3879_v44 }
 0x2d2   : > { %v3904_v40 = vadd.f32 %v3889_v22, %v3888_v14  ;;  %v3896_v41 = vmul.f32 %v3880_v9, %v3880_v9  ;;  %v3897_v37 = vmul.f32 %v3881_v3, %v3881_v3  ;;  %v3898_v0 = vmul.f32 %v3882_v50, %v3882_v50  ;;  %v4533_v14 = vld [vmem:[%s1277_s9] ss:$0 sm:$0xff] }
 0x2d3   : > { %v3899_v31 = vmul.f32 %v3883_v63, %v3883_v63  ;;  %v3900_v6 = vmul.f32 %v3884_v52, %v3884_v52  ;;  %v3901_v12 = vmul.f32 %v3885_v24, %v3885_v24  ;;  %v3902_v36 = vmul.f32 %v3886_v56, %v3886_v56 }
 0x2d4   : > { %v3905_v29 = vadd.f32 %v3904_v40, %v3890_v13  ;;  %v3903_v15 = vmul.f32 %v3887_v5, %v3887_v5 }
 0x2d6   : > { %v3906_v23 = vadd.f32 %v3905_v29, %v3891_v59 }
 0x2d8   : > { %v3907_v1 = vadd.f32 %v3906_v23, %v3892_v18 }
 0x2da   : > { %v3908_v42 = vadd.f32 %v3907_v1, %v3893_v60  ;;  %v4534_v1 = vld [vmem:[%s1280_s12] ss:$0 sm:$0xff] }
 0x2dc   : > { %v3909_v7 = vadd.f32 %v3908_v42, %v3894_v4 }
 0x2de   : > { %v3910_v45 = vadd.f32 %v3909_v7, %v3895_v61 }
 0x2e0   : > { %v3911_v53 = vadd.f32 %v3910_v45, %v3896_v41 }
 0x2e2   : > { %v3912_v28 = vadd.f32 %v3911_v53, %v3897_v37 }
 0x2e4   : > { %v3913_v49 = vadd.f32 %v3912_v28, %v3898_v0 }
 0x2e6   : > { %v3914_v10 = vadd.f32 %v3913_v49, %v3899_v31 }
 0x2e8   : > { %v3915_v30 = vadd.f32 %v3914_v10, %v3900_v6 }
 0x2ea   : > { %v3916_v32 = vadd.f32 %v3915_v30, %v3901_v12 }
 0x2ec   : > { %v3917_v16 = vadd.f32 %v3916_v32, %v3902_v36 }
 0x2ee   : > { %v3918_v17 = vadd.f32 %v3917_v16, %v3903_v15 }
 0x2f0   : > { %v3919_v39 = vrot.slane %v3918_v17, 4 }
 0x2f2   : > { %v3920_v25 = vadd.f32 %v3919_v39, %v3918_v17 }
 0x2f4   : > { %v3921_v19 = vrot.slane %v3920_v25, 2 }
 0x2f6   : > { %v3922_v54 = vadd.f32 %v3921_v19, %v3920_v25 }
 0x2f8   : > { %v3923_v20 = vrot.slane %v3922_v54, 1 }
 0x2fa   : > { %v3924_v55 = vadd.f32 %v3923_v20, %v3922_v54 }
 0x2fc   : > { %v3925_v46 = vmul.f32 0.0078125, %v3924_v55 }
 0x2fe   : > { %v3926_v26 = vadd.f32 1e-05, %v3925_v46 }
 0x300   : > { %5282 = vrsqrt.f32 %v3926_v26 }
 0x30a   : > { %v5283_v27 = vpop.eup %5282 }
 0x30b   : > { %v3928_v51 = vmul.f32 %v5283_v27, %v3872_v38  ;;  %v3929_v47 = vmul.f32 %v5283_v27, %v3873_v43  ;;  %v3930_v33 = vmul.f32 %v5283_v27, %v3874_v62  ;;  %v3931_v58 = vmul.f32 %v5283_v27, %v3875_v21 }
 0x30c   : > { %v3932_v34 = vmul.f32 %v5283_v27, %v3876_v2  ;;  %v3933_v48 = vmul.f32 %v5283_v27, %v3877_v11  ;;  %v3934_v35 = vmul.f32 %v5283_v27, %v3878_v8  ;;  %v3935_v57 = vmul.f32 %v5283_v27, %v3879_v44 }
 0x30d   : > { %v3936_v22 = vmul.f32 %v5283_v27, %v3880_v9  ;;  %v3937_v13 = vmul.f32 %v5283_v27, %v3881_v3  ;;  %v3938_v40 = vmul.f32 %v5283_v27, %v3882_v50  ;;  %v3939_v59 = vmul.f32 %v5283_v27, %v3883_v63 }
 0x30e   : > { %v3940_v29 = vmul.f32 %v5283_v27, %v3884_v52  ;;  %v3941_v18 = vmul.f32 %v5283_v27, %v3885_v24  ;;  %v3942_v23 = vmul.f32 %v5283_v27, %v3886_v56  ;;  %v3943_v38 = vmul.f32 %v5283_v27, %v3887_v5 }
 0x30f   : > { %v3951_v43 = vmul.f32 %v4533_v14, %v3928_v51  ;;  %v3952_v62 = vmul.f32 %v4533_v14, %v3929_v47  ;;  %v3953_v21 = vmul.f32 %v4533_v14, %v3930_v33  ;;  %v3954_v2 = vmul.f32 %v4533_v14, %v3931_v58 }
 0x310   : > { %v3955_v11 = vmul.f32 %v4533_v14, %v3932_v34  ;;  %v3956_v8 = vmul.f32 %v4533_v14, %v3933_v48  ;;  %v3957_v44 = vmul.f32 %v4533_v14, %v3934_v35  ;;  %v3958_v60 = vmul.f32 %v4533_v14, %v3935_v57 }
 0x311   : > { %v3959_v4 = vmul.f32 %v4533_v14, %v3936_v22  ;;  %v3960_v42 = vmul.f32 %v4533_v14, %v3937_v13  ;;  %v3961_v61 = vmul.f32 %v4533_v14, %v3938_v40  ;;  %v3962_v9 = vmul.f32 %v4533_v14, %v3939_v59 }
 0x312   : > { %v3963_v3 = vmul.f32 %v4533_v14, %v3940_v29  ;;  %v3964_v50 = vmul.f32 %v4533_v14, %v3941_v18  ;;  %v3965_v63 = vmul.f32 %v4533_v14, %v3942_v23  ;;  %v3966_v52 = vmul.f32 %v4533_v14, %v3943_v38 }
 0x313   : > { %v3974_v24 = vadd.f32 %v4534_v1, %v3951_v43  ;;  %v3975_v56 = vadd.f32 %v4534_v1, %v3952_v62  ;;  %v3976_v5 = vadd.f32 %v4534_v1, %v3953_v21  ;;  %v3977_v7 = vadd.f32 %v4534_v1, %v3954_v2 }
 0x314   : > { %v3978_v41 = vadd.f32 %v4534_v1, %v3955_v11  ;;  %v3979_v45 = vadd.f32 %v4534_v1, %v3956_v8  ;;  %v3980_v37 = vadd.f32 %v4534_v1, %v3957_v44  ;;  %v3981_v53 = vadd.f32 %v4534_v1, %v3958_v60 }
 0x315   : > { %v3982_v0 = vadd.f32 %v4534_v1, %v3959_v4  ;;  %v3983_v28 = vadd.f32 %v4534_v1, %v3960_v42  ;;  %v3984_v31 = vadd.f32 %v4534_v1, %v3961_v61  ;;  %v3985_v49 = vadd.f32 %v4534_v1, %v3962_v9 }
 0x316   : > { %v3986_v6 = vadd.f32 %v4534_v1, %v3963_v3  ;;  %v3987_v10 = vadd.f32 %v4534_v1, %v3964_v50  ;;  %v3988_v12 = vadd.f32 %v4534_v1, %v3965_v63  ;;  %v3989_v30 = vadd.f32 %v4534_v1, %v3966_v52 }
 0x317   : > { %v3990_v36 = vmax.f32 %v3974_v24, 0.0  ;;  %v3991_v32 = vmax.f32 %v3975_v56, 0.0  ;;  %v3992_v15 = vmax.f32 %v3976_v5, 0.0  ;;  %v3993_v16 = vmax.f32 %v3977_v7, 0.0 }
 0x318   : > { %v3994_v17 = vmax.f32 %v3978_v41, 0.0  ;;  %v3995_v39 = vmax.f32 %v3979_v45, 0.0  ;;  %v3996_v25 = vmax.f32 %v3980_v37, 0.0  ;;  %v3997_v19 = vmax.f32 %v3981_v53, 0.0 }
 0x319   : > { %v3998_v54 = vmax.f32 %v3982_v0, 0.0  ;;  %v3999_v20 = vmax.f32 %v3983_v28, 0.0  ;;  %v4000_v55 = vmax.f32 %v3984_v31, 0.0  ;;  %v4001_v46 = vmax.f32 %v3985_v49, 0.0 }
 0x31a   : > { %v4002_v26 = vmax.f32 %v3986_v6, 0.0  ;;  %v4003_v27 = vmax.f32 %v3987_v10, 0.0  ;;  %v4004_v51 = vmax.f32 %v3988_v12, 0.0  ;;  %v4005_v47 = vmax.f32 %v3989_v30, 0.0  ;;  %4092 = sbr.rel (!%p5364_p5) target bundleno = 815 (0x32f), region = 81 }
 0x31b   : > { %v4574_v33 = vpack.c.bf16 %v3991_v32, %v3990_v36  ;;  %v4579_v58 = vpack.c.bf16 %v3993_v16, %v3992_v15  ;;  %v4584_v34 = vpack.c.bf16 %v3995_v39, %v3994_v17  ;;  %v4589_v48 = vpack.c.bf16 %v3997_v19, %v3996_v25 }
 0x31c   : > { %v4594_v35 = vpack.c.bf16 %v3999_v20, %v3998_v54  ;;  %v4599_v57 = vpack.c.bf16 %v4001_v46, %v4000_v55  ;;  %v4604_v14 = vpack.c.bf16 %v4003_v27, %v4002_v26  ;;  %v4609_v22 = vpack.c.bf16 %v4005_v47, %v4004_v51 }
 0x31d   : > { %4575 = vst [vmem:[%s6623_s15] sm:$0xff] %v4574_v33   ;;  %4611 = vst [vmem:[%s6623_s15 + $0x8] sm:$0xff] %v4579_v58  }
 0x31e   : > { %4612 = vst [vmem:[%s6623_s15 + $0x10] sm:$0xff] %v4584_v34   ;;  %4613 = vst [vmem:[%s6623_s15 + $0x18] sm:$0xff] %v4589_v48  }
 0x31f   : > { %4614 = vst [vmem:[%s6623_s15 + $0x20] sm:$0xff] %v4594_v35   ;;  %4615 = vst [vmem:[%s6623_s15 + $0x28] sm:$0xff] %v4599_v57  }
 0x320   : > { %4616 = vst [vmem:[%s6623_s15 + $0x30] sm:$0xff] %v4604_v14   ;;  %4617 = vst [vmem:[%s6623_s15 + $0x38] sm:$0xff] %v4609_v22  }
 0x324   : > { %v4110_v13 = vld [vmem:[%s6623_s15] sm:$0xf]  ;;  %v4112_v40 = vld [vmem:[%s6623_s15 + $0x4] sm:$0xf]  ;;  %v4114_v59 = vld [vmem:[%s6623_s15 + $0x8] sm:$0xf] }
 0x325   : > { %v4116_v29 = vld [vmem:[%s6623_s15 + $0xc] sm:$0xf]  ;;  %v4118_v18 = vld [vmem:[%s6623_s15 + $0x10] sm:$0xf]  ;;  %4111 = vst [vmem:[%s4094_s21] sm:$0xf] %v4110_v13 }
 0x326   : > { %4113 = vst [vmem:[%s4094_s21 + $0x8] sm:$0xf] %v4112_v40  ;;  %4115 = vst [vmem:[%s4094_s21 + $0x10] sm:$0xf] %v4114_v59  ;;  %v4120_v23 = vld [vmem:[%s6623_s15 + $0x14] sm:$0xf] }
 0x327   : > { %4117 = vst [vmem:[%s4094_s21 + $0x18] sm:$0xf] %v4116_v29  ;;  %4119 = vst [vmem:[%s4094_s21 + $0x20] sm:$0xf] %v4118_v18  ;;  %v4122_v38 = vld [vmem:[%s6623_s15 + $0x18] sm:$0xf] }
 0x328   : > { %v4124_v43 = vld [vmem:[%s6623_s15 + $0x1c] sm:$0xf]  ;;  %4121 = vst [vmem:[%s4094_s21 + $0x28] sm:$0xf] %v4120_v23  ;;  %4123 = vst [vmem:[%s4094_s21 + $0x30] sm:$0xf] %v4122_v38 }
 0x329   : > { %4125 = vst [vmem:[%s4094_s21 + $0x38] sm:$0xf] %v4124_v43  ;;  %v4126_v62 = vld [vmem:[%s6623_s15 + $0x20] sm:$0xf]  ;;  %v4128_v21 = vld [vmem:[%s6623_s15 + $0x24] sm:$0xf] }
 0x32a   : > { %v4130_v2 = vld [vmem:[%s6623_s15 + $0x28] sm:$0xf]  ;;  %4127 = vst [vmem:[%s4094_s21 + $0x40] sm:$0xf] %v4126_v62  ;;  %4129 = vst [vmem:[%s4094_s21 + $0x48] sm:$0xf] %v4128_v21 }
 0x32b   : > { %4131 = vst [vmem:[%s4094_s21 + $0x50] sm:$0xf] %v4130_v2  ;;  %v4132_v11 = vld [vmem:[%s6623_s15 + $0x2c] sm:$0xf]  ;;  %v4134_v8 = vld [vmem:[%s6623_s15 + $0x30] sm:$0xf] }
 0x32c   : > { %v4136_v44 = vld [vmem:[%s6623_s15 + $0x34] sm:$0xf]  ;;  %4133 = vst [vmem:[%s4094_s21 + $0x58] sm:$0xf] %v4132_v11  ;;  %4135 = vst [vmem:[%s4094_s21 + $0x60] sm:$0xf] %v4134_v8 }
 0x32d   : > { %4137 = vst [vmem:[%s4094_s21 + $0x68] sm:$0xf] %v4136_v44  ;;  %v4138_v60 = vld [vmem:[%s6623_s15 + $0x38] sm:$0xf]  ;;  %v4140_v1 = vld [vmem:[%s6623_s15 + $0x3c] sm:$0xf] }
 0x32e   : > { %4139 = vst [vmem:[%s4094_s21 + $0x70] sm:$0xf] %v4138_v60  ;;  %4141 = vst [vmem:[%s4094_s21 + $0x78] sm:$0xf] %v4140_v1 }
 0x32f PF: > { %p11_p11 = scmp.ge.s32.totalorder %s5352_s19, 4   ;;  %s6671_s15 = smov %s5302_s16 }
 0x330   : > { %s6672_s16 = smov %s5362_s22  ;;  %s6673_s17 = smov %s5352_s19 }
 0x331   :  { %13 = sbr.rel (!%p11_p11) target bundleno = 2 (0x2), region = 159 }

// kernel: fwd.6
= control target key start
LH: loop header
LB: loop body
LE: loop exit
PB: predicated region body
PF: predicated region fallthrough
CT: control target
= control target key end

     0   :  { %s10551_s15 = smov 0   ;;  %s10553_s16 = smov 0   ;;  %s12490_s0 = inlined_call_operand.vmem [shape: bf16[32,4096], index: 0, kind: input, shape index: {}]   ;;  %s12491_s1 = inlined_call_operand.vmem [shape: bf16[4096,512], index: 1, kind: input, shape index: {}]   ;;  %s12492_s2 = inlined_call_operand.vmem [shape: f32[1,512], index: 2, kind: input, shape index: {}]   ;;  %s12493_s3 = inlined_call_operand.vmem [shape: f32[1,512], index: 3, kind: input, shape index: {}]   ;;  %s12494_s4 = inlined_call_operand.vmem [shape: bf16[32,512], index: 4, kind: output, shape index: {}]  }
   0x1   :  { %s10555_s17 = smov 0  }
   0x2 LB: > { %s10567_s18 = sadd.s32 4294967295, %s10524_s17   ;;  %s10570_s19 = sadd.s32 1, %s10524_s17   ;;  %s10524_s17 = sphi %s10555_s17, %s12498_s17   ;;  %s10520_s16 = sphi %s10553_s16, %s12497_s16   ;;  %s10516_s15 = sphi %s10551_s15, %s12496_s15  }
   0x3   : > { %s39_s20 = ssub.s32 %s10524_s17, %s10570_s19  ;;  %s42_s21 = sadd.s32 1, %s10520_s16 }
   0x4   : > { %p40_p0 = scmp.eq.s32.totalorder %s39_s20, 0  ;;  %p49_p1 = scmp.ne.s32.totalorder %s10520_s16, %s10516_s15 }
   0x5   : > { %p50_p2 = scmp.eq.s32.totalorder %s10524_s17, 0  ;;  %p131_p3 = scmp.eq.s32.totalorder %s10567_s18, 1 }
   0x6   : > { %s10580_s22 = scalar_select %p40_p0, %s10520_s16, %s42_s21  }
   0x7   : > { %p51_p4 = por %p50_p2, %p49_p1  ;;  %p10582_p5 = por %p131_p3, %p49_p1 }
   0x8   : > { %p8986_p6 = scmp.ge.s32.totalorder %s10524_s17, 2 }
   0xa   : > { %156 = sbr.rel (%p8986_p6) target bundleno = 277 (0x115), region = 20 }
  0x11   : > { %159 = sbr.rel (!%p51_p4) target bundleno = 277 (0x115), region = 24  ;;  %s161_s24 = sand.u32 (%p51_p4), 1, %s10520_s16  }
  0x12   : > { %s9580_s25 = sshll.u32 (%p51_p4), %s10524_s17, 3  ;;  %s8987_s26 = sshll.u32 (%p51_p4), %s161_s24, 12 }
  0x13   : > { %s10592_s29 = scalar_lea.vmem (%p51_p4), %s12491_s1, %s9580_s25  ;;  %s10597_s30 = scalar_lea.vmem (%p51_p4), [#allocation2], %s8987_s26 }
  0x14   : > { %v1219_v0 = vld [vmem:[%s10592_s29] sm:$0xff] (%p51_p4)  ;;  %v1221_v1 = vld [vmem:[%s10592_s29 + $0x10] sm:$0xff] (%p51_p4) }
  0x15   : > { %v1223_v2 = vld [vmem:[%s10592_s29 + $0x20] sm:$0xff] (%p51_p4)  ;;  %1220 = vst [vmem:[%s10597_s30] sm:$0xff] (%p51_p4), %v1219_v0  ;;  %1222 = vst [vmem:[%s10597_s30 + $0x8] sm:$0xff] (%p51_p4), %v1221_v1  ;;  %v1225_v3 = vld [vmem:[%s10592_s29 + $0x30] sm:$0xff] (%p51_p4) }
  0x16   : > { %1224 = vst [vmem:[%s10597_s30 + $0x10] sm:$0xff] (%p51_p4), %v1223_v2  ;;  %v1227_v4 = vld [vmem:[%s10592_s29 + $0x40] sm:$0xff] (%p51_p4)  ;;  %v1229_v5 = vld [vmem:[%s10592_s29 + $0x50] sm:$0xff] (%p51_p4)  ;;  %1226 = vst [vmem:[%s10597_s30 + $0x18] sm:$0xff] (%p51_p4), %v1225_v3 }
  0x17   : > { %1228 = vst [vmem:[%s10597_s30 + $0x20] sm:$0xff] (%p51_p4), %v1227_v4  ;;  %1230 = vst [vmem:[%s10597_s30 + $0x28] sm:$0xff] (%p51_p4), %v1229_v5  ;;  %v1231_v6 = vld [vmem:[%s10592_s29 + $0x60] sm:$0xff] (%p51_p4)  ;;  %v1233_v7 = vld [vmem:[%s10592_s29 + $0x70] sm:$0xff] (%p51_p4) }
  0x18   : > { %v1235_v8 = vld [vmem:[%s10592_s29 + $0x80] sm:$0xff]  ;;  %1232 = vst [vmem:[%s10597_s30 + $0x30] sm:$0xff] %v1231_v6  ;;  %1234 = vst [vmem:[%s10597_s30 + $0x38] sm:$0xff] %v1233_v7  ;;  %v1237_v9 = vld [vmem:[%s10592_s29 + $0x90] sm:$0xff] }
  0x19   : > { %1236 = vst [vmem:[%s10597_s30 + $0x40] sm:$0xff] %v1235_v8  ;;  %v1239_v10 = vld [vmem:[%s10592_s29 + $0xa0] sm:$0xff]  ;;  %v1241_v11 = vld [vmem:[%s10592_s29 + $0xb0] sm:$0xff]  ;;  %1238 = vst [vmem:[%s10597_s30 + $0x48] sm:$0xff] %v1237_v9 }
  0x1a   : > { %1240 = vst [vmem:[%s10597_s30 + $0x50] sm:$0xff] %v1239_v10  ;;  %1242 = vst [vmem:[%s10597_s30 + $0x58] sm:$0xff] %v1241_v11  ;;  %v1243_v12 = vld [vmem:[%s10592_s29 + $0xc0] sm:$0xff]  ;;  %v1245_v13 = vld [vmem:[%s10592_s29 + $0xd0] sm:$0xff] }
  0x1b   : > { %v1247_v14 = vld [vmem:[%s10592_s29 + $0xe0] sm:$0xff]  ;;  %1244 = vst [vmem:[%s10597_s30 + $0x60] sm:$0xff] %v1243_v12  ;;  %1246 = vst [vmem:[%s10597_s30 + $0x68] sm:$0xff] %v1245_v13  ;;  %v1249_v15 = vld [vmem:[%s10592_s29 + $0xf0] sm:$0xff] }
  0x1c   : > { %1248 = vst [vmem:[%s10597_s30 + $0x70] sm:$0xff] %v1247_v14  ;;  %v1251_v16 = vld [vmem:[%s10592_s29 + $0x100] sm:$0xff]  ;;  %v1253_v17 = vld [vmem:[%s10592_s29 + $0x110] sm:$0xff]  ;;  %1250 = vst [vmem:[%s10597_s30 + $0x78] sm:$0xff] %v1249_v15 }
  0x1d   : > { %1252 = vst [vmem:[%s10597_s30 + $0x80] sm:$0xff] %v1251_v16  ;;  %1254 = vst [vmem:[%s10597_s30 + $0x88] sm:$0xff] %v1253_v17  ;;  %v1255_v18 = vld [vmem:[%s10592_s29 + $0x120] sm:$0xff]  ;;  %v1257_v19 = vld [vmem:[%s10592_s29 + $0x130] sm:$0xff] }
  0x1e   : > { %v1259_v20 = vld [vmem:[%s10592_s29 + $0x140] sm:$0xff]  ;;  %1256 = vst [vmem:[%s10597_s30 + $0x90] sm:$0xff] %v1255_v18  ;;  %1258 = vst [vmem:[%s10597_s30 + $0x98] sm:$0xff] %v1257_v19  ;;  %v1261_v21 = vld [vmem:[%s10592_s29 + $0x150] sm:$0xff] }
  0x1f   : > { %1260 = vst [vmem:[%s10597_s30 + $0xa0] sm:$0xff] %v1259_v20  ;;  %v1263_v22 = vld [vmem:[%s10592_s29 + $0x160] sm:$0xff]  ;;  %v1265_v23 = vld [vmem:[%s10592_s29 + $0x170] sm:$0xff]  ;;  %1262 = vst [vmem:[%s10597_s30 + $0xa8] sm:$0xff] %v1261_v21 }
  0x20   : > { %1264 = vst [vmem:[%s10597_s30 + $0xb0] sm:$0xff] %v1263_v22  ;;  %1266 = vst [vmem:[%s10597_s30 + $0xb8] sm:$0xff] %v1265_v23  ;;  %v1267_v24 = vld [vmem:[%s10592_s29 + $0x180] sm:$0xff]  ;;  %v1269_v25 = vld [vmem:[%s10592_s29 + $0x190] sm:$0xff] }
  0x21   : > { %v1271_v26 = vld [vmem:[%s10592_s29 + $0x1a0] sm:$0xff]  ;;  %1268 = vst [vmem:[%s10597_s30 + $0xc0] sm:$0xff] %v1267_v24  ;;  %1270 = vst [vmem:[%s10597_s30 + $0xc8] sm:$0xff] %v1269_v25  ;;  %v1273_v27 = vld [vmem:[%s10592_s29 + $0x1b0] sm:$0xff] }
  0x22   : > { %1272 = vst [vmem:[%s10597_s30 + $0xd0] sm:$0xff] %v1271_v26  ;;  %v1275_v28 = vld [vmem:[%s10592_s29 + $0x1c0] sm:$0xff]  ;;  %v1277_v29 = vld [vmem:[%s10592_s29 + $0x1d0] sm:$0xff]  ;;  %1274 = vst [vmem:[%s10597_s30 + $0xd8] sm:$0xff] %v1273_v27 }
  0x23   : > { %1276 = vst [vmem:[%s10597_s30 + $0xe0] sm:$0xff] %v1275_v28  ;;  %1278 = vst [vmem:[%s10597_s30 + $0xe8] sm:$0xff] %v1277_v29  ;;  %v1279_v30 = vld [vmem:[%s10592_s29 + $0x1e0] sm:$0xff]  ;;  %v1281_v31 = vld [vmem:[%s10592_s29 + $0x1f0] sm:$0xff] }
  0x24   : > { %v1283_v32 = vld [vmem:[%s10592_s29 + $0x200] sm:$0xff]  ;;  %1280 = vst [vmem:[%s10597_s30 + $0xf0] sm:$0xff] %v1279_v30  ;;  %1282 = vst [vmem:[%s10597_s30 + $0xf8] sm:$0xff] %v1281_v31  ;;  %v1285_v33 = vld [vmem:[%s10592_s29 + $0x210] sm:$0xff] }
  0x25   : > { %1284 = vst [vmem:[%s10597_s30 + $0x100] sm:$0xff] %v1283_v32  ;;  %v1287_v34 = vld [vmem:[%s10592_s29 + $0x220] sm:$0xff]  ;;  %v1289_v35 = vld [vmem:[%s10592_s29 + $0x230] sm:$0xff]  ;;  %1286 = vst [vmem:[%s10597_s30 + $0x108] sm:$0xff] %v1285_v33 }
  0x26   : > { %1288 = vst [vmem:[%s10597_s30 + $0x110] sm:$0xff] %v1287_v34  ;;  %1290 = vst [vmem:[%s10597_s30 + $0x118] sm:$0xff] %v1289_v35  ;;  %v1291_v36 = vld [vmem:[%s10592_s29 + $0x240] sm:$0xff]  ;;  %v1293_v37 = vld [vmem:[%s10592_s29 + $0x250] sm:$0xff] }
  0x27   : > { %v1295_v38 = vld [vmem:[%s10592_s29 + $0x260] sm:$0xff]  ;;  %1292 = vst [vmem:[%s10597_s30 + $0x120] sm:$0xff] %v1291_v36  ;;  %1294 = vst [vmem:[%s10597_s30 + $0x128] sm:$0xff] %v1293_v37  ;;  %v1297_v39 = vld [vmem:[%s10592_s29 + $0x270] sm:$0xff] }
  0x28   : > { %1296 = vst [vmem:[%s10597_s30 + $0x130] sm:$0xff] %v1295_v38  ;;  %v1299_v40 = vld [vmem:[%s10592_s29 + $0x280] sm:$0xff]  ;;  %v1301_v41 = vld [vmem:[%s10592_s29 + $0x290] sm:$0xff]  ;;  %1298 = vst [vmem:[%s10597_s30 + $0x138] sm:$0xff] %v1297_v39 }
  0x29   : > { %1300 = vst [vmem:[%s10597_s30 + $0x140] sm:$0xff] %v1299_v40  ;;  %1302 = vst [vmem:[%s10597_s30 + $0x148] sm:$0xff] %v1301_v41  ;;  %v1303_v42 = vld [vmem:[%s10592_s29 + $0x2a0] sm:$0xff]  ;;  %v1305_v43 = vld [vmem:[%s10592_s29 + $0x2b0] sm:$0xff] }
  0x2a   : > { %v1307_v44 = vld [vmem:[%s10592_s29 + $0x2c0] sm:$0xff]  ;;  %1304 = vst [vmem:[%s10597_s30 + $0x150] sm:$0xff] %v1303_v42  ;;  %1306 = vst [vmem:[%s10597_s30 + $0x158] sm:$0xff] %v1305_v43  ;;  %v1309_v45 = vld [vmem:[%s10592_s29 + $0x2d0] sm:$0xff] }
  0x2b   : > { %1308 = vst [vmem:[%s10597_s30 + $0x160] sm:$0xff] %v1307_v44  ;;  %v1311_v46 = vld [vmem:[%s10592_s29 + $0x2e0] sm:$0xff]  ;;  %v1313_v47 = vld [vmem:[%s10592_s29 + $0x2f0] sm:$0xff]  ;;  %1310 = vst [vmem:[%s10597_s30 + $0x168] sm:$0xff] %v1309_v45 }
  0x2c   : > { %1312 = vst [vmem:[%s10597_s30 + $0x170] sm:$0xff] %v1311_v46  ;;  %1314 = vst [vmem:[%s10597_s30 + $0x178] sm:$0xff] %v1313_v47  ;;  %v1315_v48 = vld [vmem:[%s10592_s29 + $0x300] sm:$0xff]  ;;  %v1317_v49 = vld [vmem:[%s10592_s29 + $0x310] sm:$0xff] }
  0x2d   : > { %v1319_v50 = vld [vmem:[%s10592_s29 + $0x320] sm:$0xff]  ;;  %1316 = vst [vmem:[%s10597_s30 + $0x180] sm:$0xff] %v1315_v48  ;;  %1318 = vst [vmem:[%s10597_s30 + $0x188] sm:$0xff] %v1317_v49  ;;  %v1321_v51 = vld [vmem:[%s10592_s29 + $0x330] sm:$0xff] }
  0x2e   : > { %1320 = vst [vmem:[%s10597_s30 + $0x190] sm:$0xff] %v1319_v50  ;;  %v1323_v52 = vld [vmem:[%s10592_s29 + $0x340] sm:$0xff]  ;;  %v1325_v53 = vld [vmem:[%s10592_s29 + $0x350] sm:$0xff]  ;;  %1322 = vst [vmem:[%s10597_s30 + $0x198] sm:$0xff] %v1321_v51 }
  0x2f   : > { %1324 = vst [vmem:[%s10597_s30 + $0x1a0] sm:$0xff] %v1323_v52  ;;  %1326 = vst [vmem:[%s10597_s30 + $0x1a8] sm:$0xff] %v1325_v53  ;;  %v1327_v54 = vld [vmem:[%s10592_s29 + $0x360] sm:$0xff]  ;;  %v1329_v55 = vld [vmem:[%s10592_s29 + $0x370] sm:$0xff] }
  0x30   : > { %v1331_v56 = vld [vmem:[%s10592_s29 + $0x380] sm:$0xff]  ;;  %1328 = vst [vmem:[%s10597_s30 + $0x1b0] sm:$0xff] %v1327_v54  ;;  %1330 = vst [vmem:[%s10597_s30 + $0x1b8] sm:$0xff] %v1329_v55  ;;  %v1333_v57 = vld [vmem:[%s10592_s29 + $0x390] sm:$0xff] }
  0x31   : > { %1332 = vst [vmem:[%s10597_s30 + $0x1c0] sm:$0xff] %v1331_v56  ;;  %v1335_v58 = vld [vmem:[%s10592_s29 + $0x3a0] sm:$0xff]  ;;  %v1337_v59 = vld [vmem:[%s10592_s29 + $0x3b0] sm:$0xff]  ;;  %1334 = vst [vmem:[%s10597_s30 + $0x1c8] sm:$0xff] %v1333_v57 }
  0x32   : > { %1336 = vst [vmem:[%s10597_s30 + $0x1d0] sm:$0xff] %v1335_v58  ;;  %1338 = vst [vmem:[%s10597_s30 + $0x1d8] sm:$0xff] %v1337_v59  ;;  %v1339_v60 = vld [vmem:[%s10592_s29 + $0x3c0] sm:$0xff]  ;;  %v1341_v61 = vld [vmem:[%s10592_s29 + $0x3d0] sm:$0xff] }
  0x33   : > { %v1343_v62 = vld [vmem:[%s10592_s29 + $0x3e0] sm:$0xff]  ;;  %1340 = vst [vmem:[%s10597_s30 + $0x1e0] sm:$0xff] %v1339_v60  ;;  %1342 = vst [vmem:[%s10597_s30 + $0x1e8] sm:$0xff] %v1341_v61  ;;  %v1345_v63 = vld [vmem:[%s10592_s29 + $0x3f0] sm:$0xff] }
  0x34   : > { %1344 = vst [vmem:[%s10597_s30 + $0x1f0] sm:$0xff] %v1343_v62  ;;  %v1347_v0 = vld [vmem:[%s10592_s29 + $0x400] sm:$0xff]  ;;  %v1349_v1 = vld [vmem:[%s10592_s29 + $0x410] sm:$0xff]  ;;  %1346 = vst [vmem:[%s10597_s30 + $0x1f8] sm:$0xff] %v1345_v63 }
  0x35   : > { %1348 = vst [vmem:[%s10597_s30 + $0x200] sm:$0xff] %v1347_v0  ;;  %1350 = vst [vmem:[%s10597_s30 + $0x208] sm:$0xff] %v1349_v1  ;;  %v1351_v2 = vld [vmem:[%s10592_s29 + $0x420] sm:$0xff]  ;;  %v1353_v3 = vld [vmem:[%s10592_s29 + $0x430] sm:$0xff] }
  0x36   : > { %v1355_v4 = vld [vmem:[%s10592_s29 + $0x440] sm:$0xff]  ;;  %1352 = vst [vmem:[%s10597_s30 + $0x210] sm:$0xff] %v1351_v2  ;;  %1354 = vst [vmem:[%s10597_s30 + $0x218] sm:$0xff] %v1353_v3  ;;  %v1357_v5 = vld [vmem:[%s10592_s29 + $0x450] sm:$0xff] }
  0x37   : > { %1356 = vst [vmem:[%s10597_s30 + $0x220] sm:$0xff] %v1355_v4  ;;  %v1359_v6 = vld [vmem:[%s10592_s29 + $0x460] sm:$0xff]  ;;  %v1361_v7 = vld [vmem:[%s10592_s29 + $0x470] sm:$0xff]  ;;  %1358 = vst [vmem:[%s10597_s30 + $0x228] sm:$0xff] %v1357_v5 }
  0x38   : > { %1360 = vst [vmem:[%s10597_s30 + $0x230] sm:$0xff] %v1359_v6  ;;  %1362 = vst [vmem:[%s10597_s30 + $0x238] sm:$0xff] %v1361_v7  ;;  %v1363_v8 = vld [vmem:[%s10592_s29 + $0x480] sm:$0xff]  ;;  %v1365_v9 = vld [vmem:[%s10592_s29 + $0x490] sm:$0xff] }
  0x39   : > { %v1367_v10 = vld [vmem:[%s10592_s29 + $0x4a0] sm:$0xff]  ;;  %1364 = vst [vmem:[%s10597_s30 + $0x240] sm:$0xff] %v1363_v8  ;;  %1366 = vst [vmem:[%s10597_s30 + $0x248] sm:$0xff] %v1365_v9  ;;  %v1369_v11 = vld [vmem:[%s10592_s29 + $0x4b0] sm:$0xff] }
  0x3a   : > { %1368 = vst [vmem:[%s10597_s30 + $0x250] sm:$0xff] %v1367_v10  ;;  %v1371_v12 = vld [vmem:[%s10592_s29 + $0x4c0] sm:$0xff]  ;;  %v1373_v13 = vld [vmem:[%s10592_s29 + $0x4d0] sm:$0xff]  ;;  %1370 = vst [vmem:[%s10597_s30 + $0x258] sm:$0xff] %v1369_v11 }
  0x3b   : > { %1372 = vst [vmem:[%s10597_s30 + $0x260] sm:$0xff] %v1371_v12  ;;  %1374 = vst [vmem:[%s10597_s30 + $0x268] sm:$0xff] %v1373_v13  ;;  %v1375_v14 = vld [vmem:[%s10592_s29 + $0x4e0] sm:$0xff]  ;;  %v1377_v15 = vld [vmem:[%s10592_s29 + $0x4f0] sm:$0xff] }
  0x3c   : > { %v1379_v16 = vld [vmem:[%s10592_s29 + $0x500] sm:$0xff]  ;;  %1376 = vst [vmem:[%s10597_s30 + $0x270] sm:$0xff] %v1375_v14  ;;  %1378 = vst [vmem:[%s10597_s30 + $0x278] sm:$0xff] %v1377_v15  ;;  %v1381_v17 = vld [vmem:[%s10592_s29 + $0x510] sm:$0xff] }
  0x3d   : > { %1380 = vst [vmem:[%s10597_s30 + $0x280] sm:$0xff] %v1379_v16  ;;  %v1383_v18 = vld [vmem:[%s10592_s29 + $0x520] sm:$0xff]  ;;  %v1385_v19 = vld [vmem:[%s10592_s29 + $0x530] sm:$0xff]  ;;  %1382 = vst [vmem:[%s10597_s30 + $0x288] sm:$0xff] %v1381_v17 }
  0x3e   : > { %1384 = vst [vmem:[%s10597_s30 + $0x290] sm:$0xff] %v1383_v18  ;;  %1386 = vst [vmem:[%s10597_s30 + $0x298] sm:$0xff] %v1385_v19  ;;  %v1387_v20 = vld [vmem:[%s10592_s29 + $0x540] sm:$0xff]  ;;  %v1389_v21 = vld [vmem:[%s10592_s29 + $0x550] sm:$0xff] }
  0x3f   : > { %v1391_v22 = vld [vmem:[%s10592_s29 + $0x560] sm:$0xff]  ;;  %1388 = vst [vmem:[%s10597_s30 + $0x2a0] sm:$0xff] %v1387_v20  ;;  %1390 = vst [vmem:[%s10597_s30 + $0x2a8] sm:$0xff] %v1389_v21  ;;  %v1393_v23 = vld [vmem:[%s10592_s29 + $0x570] sm:$0xff] }
  0x40   : > { %1392 = vst [vmem:[%s10597_s30 + $0x2b0] sm:$0xff] %v1391_v22  ;;  %v1395_v24 = vld [vmem:[%s10592_s29 + $0x580] sm:$0xff]  ;;  %v1397_v25 = vld [vmem:[%s10592_s29 + $0x590] sm:$0xff]  ;;  %1394 = vst [vmem:[%s10597_s30 + $0x2b8] sm:$0xff] %v1393_v23 }
  0x41   : > { %1396 = vst [vmem:[%s10597_s30 + $0x2c0] sm:$0xff] %v1395_v24  ;;  %1398 = vst [vmem:[%s10597_s30 + $0x2c8] sm:$0xff] %v1397_v25  ;;  %v1399_v26 = vld [vmem:[%s10592_s29 + $0x5a0] sm:$0xff]  ;;  %v1401_v27 = vld [vmem:[%s10592_s29 + $0x5b0] sm:$0xff] }
  0x42   : > { %v1403_v28 = vld [vmem:[%s10592_s29 + $0x5c0] sm:$0xff]  ;;  %1400 = vst [vmem:[%s10597_s30 + $0x2d0] sm:$0xff] %v1399_v26  ;;  %1402 = vst [vmem:[%s10597_s30 + $0x2d8] sm:$0xff] %v1401_v27  ;;  %v1405_v29 = vld [vmem:[%s10592_s29 + $0x5d0] sm:$0xff] }
  0x43   : > { %1404 = vst [vmem:[%s10597_s30 + $0x2e0] sm:$0xff] %v1403_v28  ;;  %v1407_v30 = vld [vmem:[%s10592_s29 + $0x5e0] sm:$0xff]  ;;  %v1409_v31 = vld [vmem:[%s10592_s29 + $0x5f0] sm:$0xff]  ;;  %1406 = vst [vmem:[%s10597_s30 + $0x2e8] sm:$0xff] %v1405_v29 }
  0x44   : > { %1408 = vst [vmem:[%s10597_s30 + $0x2f0] sm:$0xff] %v1407_v30  ;;  %1410 = vst [vmem:[%s10597_s30 + $0x2f8] sm:$0xff] %v1409_v31  ;;  %v1411_v32 = vld [vmem:[%s10592_s29 + $0x600] sm:$0xff]  ;;  %v1413_v33 = vld [vmem:[%s10592_s29 + $0x610] sm:$0xff] }
  0x45   : > { %v1415_v34 = vld [vmem:[%s10592_s29 + $0x620] sm:$0xff]  ;;  %1412 = vst [vmem:[%s10597_s30 + $0x300] sm:$0xff] %v1411_v32  ;;  %1414 = vst [vmem:[%s10597_s30 + $0x308] sm:$0xff] %v1413_v33  ;;  %v1417_v35 = vld [vmem:[%s10592_s29 + $0x630] sm:$0xff] }
  0x46   : > { %1416 = vst [vmem:[%s10597_s30 + $0x310] sm:$0xff] %v1415_v34  ;;  %v1419_v36 = vld [vmem:[%s10592_s29 + $0x640] sm:$0xff]  ;;  %v1421_v37 = vld [vmem:[%s10592_s29 + $0x650] sm:$0xff]  ;;  %1418 = vst [vmem:[%s10597_s30 + $0x318] sm:$0xff] %v1417_v35 }
  0x47   : > { %1420 = vst [vmem:[%s10597_s30 + $0x320] sm:$0xff] %v1419_v36  ;;  %1422 = vst [vmem:[%s10597_s30 + $0x328] sm:$0xff] %v1421_v37  ;;  %v1423_v38 = vld [vmem:[%s10592_s29 + $0x660] sm:$0xff]  ;;  %v1425_v39 = vld [vmem:[%s10592_s29 + $0x670] sm:$0xff] }
  0x48   : > { %v1427_v40 = vld [vmem:[%s10592_s29 + $0x680] sm:$0xff]  ;;  %1424 = vst [vmem:[%s10597_s30 + $0x330] sm:$0xff] %v1423_v38  ;;  %1426 = vst [vmem:[%s10597_s30 + $0x338] sm:$0xff] %v1425_v39  ;;  %v1429_v41 = vld [vmem:[%s10592_s29 + $0x690] sm:$0xff] }
  0x49   : > { %1428 = vst [vmem:[%s10597_s30 + $0x340] sm:$0xff] %v1427_v40  ;;  %v1431_v42 = vld [vmem:[%s10592_s29 + $0x6a0] sm:$0xff]  ;;  %v1433_v43 = vld [vmem:[%s10592_s29 + $0x6b0] sm:$0xff]  ;;  %1430 = vst [vmem:[%s10597_s30 + $0x348] sm:$0xff] %v1429_v41 }
  0x4a   : > { %1432 = vst [vmem:[%s10597_s30 + $0x350] sm:$0xff] %v1431_v42  ;;  %1434 = vst [vmem:[%s10597_s30 + $0x358] sm:$0xff] %v1433_v43  ;;  %v1435_v44 = vld [vmem:[%s10592_s29 + $0x6c0] sm:$0xff]  ;;  %v1437_v45 = vld [vmem:[%s10592_s29 + $0x6d0] sm:$0xff] }
  0x4b   : > { %v1439_v46 = vld [vmem:[%s10592_s29 + $0x6e0] sm:$0xff]  ;;  %1436 = vst [vmem:[%s10597_s30 + $0x360] sm:$0xff] %v1435_v44  ;;  %1438 = vst [vmem:[%s10597_s30 + $0x368] sm:$0xff] %v1437_v45  ;;  %v1441_v47 = vld [vmem:[%s10592_s29 + $0x6f0] sm:$0xff] }
  0x4c   : > { %1440 = vst [vmem:[%s10597_s30 + $0x370] sm:$0xff] %v1439_v46  ;;  %v1443_v48 = vld [vmem:[%s10592_s29 + $0x700] sm:$0xff]  ;;  %v1445_v49 = vld [vmem:[%s10592_s29 + $0x710] sm:$0xff]  ;;  %1442 = vst [vmem:[%s10597_s30 + $0x378] sm:$0xff] %v1441_v47 }
  0x4d   : > { %1444 = vst [vmem:[%s10597_s30 + $0x380] sm:$0xff] %v1443_v48  ;;  %1446 = vst [vmem:[%s10597_s30 + $0x388] sm:$0xff] %v1445_v49  ;;  %v1447_v50 = vld [vmem:[%s10592_s29 + $0x720] sm:$0xff]  ;;  %v1449_v51 = vld [vmem:[%s10592_s29 + $0x730] sm:$0xff] }
  0x4e   : > { %v1451_v52 = vld [vmem:[%s10592_s29 + $0x740] sm:$0xff]  ;;  %1448 = vst [vmem:[%s10597_s30 + $0x390] sm:$0xff] %v1447_v50  ;;  %1450 = vst [vmem:[%s10597_s30 + $0x398] sm:$0xff] %v1449_v51  ;;  %v1453_v53 = vld [vmem:[%s10592_s29 + $0x750] sm:$0xff] }
  0x4f   : > { %1452 = vst [vmem:[%s10597_s30 + $0x3a0] sm:$0xff] %v1451_v52  ;;  %v1455_v54 = vld [vmem:[%s10592_s29 + $0x760] sm:$0xff]  ;;  %v1457_v55 = vld [vmem:[%s10592_s29 + $0x770] sm:$0xff]  ;;  %1454 = vst [vmem:[%s10597_s30 + $0x3a8] sm:$0xff] %v1453_v53 }
  0x50   : > { %1456 = vst [vmem:[%s10597_s30 + $0x3b0] sm:$0xff] %v1455_v54  ;;  %1458 = vst [vmem:[%s10597_s30 + $0x3b8] sm:$0xff] %v1457_v55  ;;  %v1459_v56 = vld [vmem:[%s10592_s29 + $0x780] sm:$0xff]  ;;  %v1461_v57 = vld [vmem:[%s10592_s29 + $0x790] sm:$0xff] }
  0x51   : > { %v1463_v58 = vld [vmem:[%s10592_s29 + $0x7a0] sm:$0xff]  ;;  %1460 = vst [vmem:[%s10597_s30 + $0x3c0] sm:$0xff] %v1459_v56  ;;  %1462 = vst [vmem:[%s10597_s30 + $0x3c8] sm:$0xff] %v1461_v57  ;;  %v1465_v59 = vld [vmem:[%s10592_s29 + $0x7b0] sm:$0xff] }
  0x52   : > { %1464 = vst [vmem:[%s10597_s30 + $0x3d0] sm:$0xff] %v1463_v58  ;;  %v1467_v60 = vld [vmem:[%s10592_s29 + $0x7c0] sm:$0xff]  ;;  %v1469_v61 = vld [vmem:[%s10592_s29 + $0x7d0] sm:$0xff]  ;;  %1466 = vst [vmem:[%s10597_s30 + $0x3d8] sm:$0xff] %v1465_v59 }
  0x53   : > { %1468 = vst [vmem:[%s10597_s30 + $0x3e0] sm:$0xff] %v1467_v60  ;;  %1470 = vst [vmem:[%s10597_s30 + $0x3e8] sm:$0xff] %v1469_v61  ;;  %v1471_v62 = vld [vmem:[%s10592_s29 + $0x7e0] sm:$0xff]  ;;  %v1473_v63 = vld [vmem:[%s10592_s29 + $0x7f0] sm:$0xff] }
  0x54   : > { %v1475_v0 = vld [vmem:[%s10592_s29 + $0x800] sm:$0xff]  ;;  %1472 = vst [vmem:[%s10597_s30 + $0x3f0] sm:$0xff] %v1471_v62  ;;  %1474 = vst [vmem:[%s10597_s30 + $0x3f8] sm:$0xff] %v1473_v63  ;;  %v1477_v1 = vld [vmem:[%s10592_s29 + $0x810] sm:$0xff] }
  0x55   : > { %1476 = vst [vmem:[%s10597_s30 + $0x400] sm:$0xff] %v1475_v0  ;;  %v1479_v2 = vld [vmem:[%s10592_s29 + $0x820] sm:$0xff]  ;;  %v1481_v3 = vld [vmem:[%s10592_s29 + $0x830] sm:$0xff]  ;;  %1478 = vst [vmem:[%s10597_s30 + $0x408] sm:$0xff] %v1477_v1 }
  0x56   : > { %1480 = vst [vmem:[%s10597_s30 + $0x410] sm:$0xff] %v1479_v2  ;;  %1482 = vst [vmem:[%s10597_s30 + $0x418] sm:$0xff] %v1481_v3  ;;  %v1483_v4 = vld [vmem:[%s10592_s29 + $0x840] sm:$0xff]  ;;  %v1485_v5 = vld [vmem:[%s10592_s29 + $0x850] sm:$0xff] }
  0x57   : > { %v1487_v6 = vld [vmem:[%s10592_s29 + $0x860] sm:$0xff]  ;;  %1484 = vst [vmem:[%s10597_s30 + $0x420] sm:$0xff] %v1483_v4  ;;  %1486 = vst [vmem:[%s10597_s30 + $0x428] sm:$0xff] %v1485_v5  ;;  %v1489_v7 = vld [vmem:[%s10592_s29 + $0x870] sm:$0xff] }
  0x58   : > { %1488 = vst [vmem:[%s10597_s30 + $0x430] sm:$0xff] %v1487_v6  ;;  %v1491_v8 = vld [vmem:[%s10592_s29 + $0x880] sm:$0xff]  ;;  %v1493_v9 = vld [vmem:[%s10592_s29 + $0x890] sm:$0xff]  ;;  %1490 = vst [vmem:[%s10597_s30 + $0x438] sm:$0xff] %v1489_v7 }
  0x59   : > { %1492 = vst [vmem:[%s10597_s30 + $0x440] sm:$0xff] %v1491_v8  ;;  %1494 = vst [vmem:[%s10597_s30 + $0x448] sm:$0xff] %v1493_v9  ;;  %v1495_v10 = vld [vmem:[%s10592_s29 + $0x8a0] sm:$0xff]  ;;  %v1497_v11 = vld [vmem:[%s10592_s29 + $0x8b0] sm:$0xff] }
  0x5a   : > { %v1499_v12 = vld [vmem:[%s10592_s29 + $0x8c0] sm:$0xff]  ;;  %1496 = vst [vmem:[%s10597_s30 + $0x450] sm:$0xff] %v1495_v10  ;;  %1498 = vst [vmem:[%s10597_s30 + $0x458] sm:$0xff] %v1497_v11  ;;  %v1501_v13 = vld [vmem:[%s10592_s29 + $0x8d0] sm:$0xff] }
  0x5b   : > { %1500 = vst [vmem:[%s10597_s30 + $0x460] sm:$0xff] %v1499_v12  ;;  %v1503_v14 = vld [vmem:[%s10592_s29 + $0x8e0] sm:$0xff]  ;;  %v1505_v15 = vld [vmem:[%s10592_s29 + $0x8f0] sm:$0xff]  ;;  %1502 = vst [vmem:[%s10597_s30 + $0x468] sm:$0xff] %v1501_v13 }
  0x5c   : > { %1504 = vst [vmem:[%s10597_s30 + $0x470] sm:$0xff] %v1503_v14  ;;  %1506 = vst [vmem:[%s10597_s30 + $0x478] sm:$0xff] %v1505_v15  ;;  %v1507_v16 = vld [vmem:[%s10592_s29 + $0x900] sm:$0xff]  ;;  %v1509_v17 = vld [vmem:[%s10592_s29 + $0x910] sm:$0xff] }
  0x5d   : > { %v1511_v18 = vld [vmem:[%s10592_s29 + $0x920] sm:$0xff]  ;;  %1508 = vst [vmem:[%s10597_s30 + $0x480] sm:$0xff] %v1507_v16  ;;  %1510 = vst [vmem:[%s10597_s30 + $0x488] sm:$0xff] %v1509_v17  ;;  %v1513_v19 = vld [vmem:[%s10592_s29 + $0x930] sm:$0xff] }
  0x5e   : > { %1512 = vst [vmem:[%s10597_s30 + $0x490] sm:$0xff] %v1511_v18  ;;  %v1515_v20 = vld [vmem:[%s10592_s29 + $0x940] sm:$0xff]  ;;  %v1517_v21 = vld [vmem:[%s10592_s29 + $0x950] sm:$0xff]  ;;  %1514 = vst [vmem:[%s10597_s30 + $0x498] sm:$0xff] %v1513_v19 }
  0x5f   : > { %1516 = vst [vmem:[%s10597_s30 + $0x4a0] sm:$0xff] %v1515_v20  ;;  %1518 = vst [vmem:[%s10597_s30 + $0x4a8] sm:$0xff] %v1517_v21  ;;  %v1519_v22 = vld [vmem:[%s10592_s29 + $0x960] sm:$0xff]  ;;  %v1521_v23 = vld [vmem:[%s10592_s29 + $0x970] sm:$0xff] }
  0x60   : > { %v1523_v24 = vld [vmem:[%s10592_s29 + $0x980] sm:$0xff]  ;;  %1520 = vst [vmem:[%s10597_s30 + $0x4b0] sm:$0xff] %v1519_v22  ;;  %1522 = vst [vmem:[%s10597_s30 + $0x4b8] sm:$0xff] %v1521_v23  ;;  %v1525_v25 = vld [vmem:[%s10592_s29 + $0x990] sm:$0xff] }
  0x61   : > { %1524 = vst [vmem:[%s10597_s30 + $0x4c0] sm:$0xff] %v1523_v24  ;;  %v1527_v26 = vld [vmem:[%s10592_s29 + $0x9a0] sm:$0xff]  ;;  %v1529_v27 = vld [vmem:[%s10592_s29 + $0x9b0] sm:$0xff]  ;;  %1526 = vst [vmem:[%s10597_s30 + $0x4c8] sm:$0xff] %v1525_v25 }
  0x62   : > { %1528 = vst [vmem:[%s10597_s30 + $0x4d0] sm:$0xff] %v1527_v26  ;;  %1530 = vst [vmem:[%s10597_s30 + $0x4d8] sm:$0xff] %v1529_v27  ;;  %v1531_v28 = vld [vmem:[%s10592_s29 + $0x9c0] sm:$0xff]  ;;  %v1533_v29 = vld [vmem:[%s10592_s29 + $0x9d0] sm:$0xff] }
  0x63   : > { %v1535_v30 = vld [vmem:[%s10592_s29 + $0x9e0] sm:$0xff]  ;;  %1532 = vst [vmem:[%s10597_s30 + $0x4e0] sm:$0xff] %v1531_v28  ;;  %1534 = vst [vmem:[%s10597_s30 + $0x4e8] sm:$0xff] %v1533_v29  ;;  %v1537_v31 = vld [vmem:[%s10592_s29 + $0x9f0] sm:$0xff] }
  0x64   : > { %1536 = vst [vmem:[%s10597_s30 + $0x4f0] sm:$0xff] %v1535_v30  ;;  %v1539_v32 = vld [vmem:[%s10592_s29 + $0xa00] sm:$0xff]  ;;  %v1541_v33 = vld [vmem:[%s10592_s29 + $0xa10] sm:$0xff]  ;;  %1538 = vst [vmem:[%s10597_s30 + $0x4f8] sm:$0xff] %v1537_v31 }
  0x65   : > { %1540 = vst [vmem:[%s10597_s30 + $0x500] sm:$0xff] %v1539_v32  ;;  %1542 = vst [vmem:[%s10597_s30 + $0x508] sm:$0xff] %v1541_v33  ;;  %v1543_v34 = vld [vmem:[%s10592_s29 + $0xa20] sm:$0xff]  ;;  %v1545_v35 = vld [vmem:[%s10592_s29 + $0xa30] sm:$0xff] }
  0x66   : > { %v1547_v36 = vld [vmem:[%s10592_s29 + $0xa40] sm:$0xff]  ;;  %1544 = vst [vmem:[%s10597_s30 + $0x510] sm:$0xff] %v1543_v34  ;;  %1546 = vst [vmem:[%s10597_s30 + $0x518] sm:$0xff] %v1545_v35  ;;  %v1549_v37 = vld [vmem:[%s10592_s29 + $0xa50] sm:$0xff] }
  0x67   : > { %1548 = vst [vmem:[%s10597_s30 + $0x520] sm:$0xff] %v1547_v36  ;;  %v1551_v38 = vld [vmem:[%s10592_s29 + $0xa60] sm:$0xff]  ;;  %v1553_v39 = vld [vmem:[%s10592_s29 + $0xa70] sm:$0xff]  ;;  %1550 = vst [vmem:[%s10597_s30 + $0x528] sm:$0xff] %v1549_v37 }
  0x68   : > { %1552 = vst [vmem:[%s10597_s30 + $0x530] sm:$0xff] %v1551_v38  ;;  %1554 = vst [vmem:[%s10597_s30 + $0x538] sm:$0xff] %v1553_v39  ;;  %v1555_v40 = vld [vmem:[%s10592_s29 + $0xa80] sm:$0xff]  ;;  %v1557_v41 = vld [vmem:[%s10592_s29 + $0xa90] sm:$0xff] }
  0x69   : > { %v1559_v42 = vld [vmem:[%s10592_s29 + $0xaa0] sm:$0xff]  ;;  %1556 = vst [vmem:[%s10597_s30 + $0x540] sm:$0xff] %v1555_v40  ;;  %1558 = vst [vmem:[%s10597_s30 + $0x548] sm:$0xff] %v1557_v41  ;;  %v1561_v43 = vld [vmem:[%s10592_s29 + $0xab0] sm:$0xff] }
  0x6a   : > { %1560 = vst [vmem:[%s10597_s30 + $0x550] sm:$0xff] %v1559_v42  ;;  %v1563_v44 = vld [vmem:[%s10592_s29 + $0xac0] sm:$0xff]  ;;  %v1565_v45 = vld [vmem:[%s10592_s29 + $0xad0] sm:$0xff]  ;;  %1562 = vst [vmem:[%s10597_s30 + $0x558] sm:$0xff] %v1561_v43 }
  0x6b   : > { %1564 = vst [vmem:[%s10597_s30 + $0x560] sm:$0xff] %v1563_v44  ;;  %1566 = vst [vmem:[%s10597_s30 + $0x568] sm:$0xff] %v1565_v45  ;;  %v1567_v46 = vld [vmem:[%s10592_s29 + $0xae0] sm:$0xff]  ;;  %v1569_v47 = vld [vmem:[%s10592_s29 + $0xaf0] sm:$0xff] }
  0x6c   : > { %v1571_v48 = vld [vmem:[%s10592_s29 + $0xb00] sm:$0xff]  ;;  %1568 = vst [vmem:[%s10597_s30 + $0x570] sm:$0xff] %v1567_v46  ;;  %1570 = vst [vmem:[%s10597_s30 + $0x578] sm:$0xff] %v1569_v47  ;;  %v1573_v49 = vld [vmem:[%s10592_s29 + $0xb10] sm:$0xff] }
  0x6d   : > { %1572 = vst [vmem:[%s10597_s30 + $0x580] sm:$0xff] %v1571_v48  ;;  %v1575_v50 = vld [vmem:[%s10592_s29 + $0xb20] sm:$0xff]  ;;  %v1577_v51 = vld [vmem:[%s10592_s29 + $0xb30] sm:$0xff]  ;;  %1574 = vst [vmem:[%s10597_s30 + $0x588] sm:$0xff] %v1573_v49 }
  0x6e   : > { %1576 = vst [vmem:[%s10597_s30 + $0x590] sm:$0xff] %v1575_v50  ;;  %1578 = vst [vmem:[%s10597_s30 + $0x598] sm:$0xff] %v1577_v51  ;;  %v1579_v52 = vld [vmem:[%s10592_s29 + $0xb40] sm:$0xff]  ;;  %v1581_v53 = vld [vmem:[%s10592_s29 + $0xb50] sm:$0xff] }
  0x6f   : > { %v1583_v54 = vld [vmem:[%s10592_s29 + $0xb60] sm:$0xff]  ;;  %1580 = vst [vmem:[%s10597_s30 + $0x5a0] sm:$0xff] %v1579_v52  ;;  %1582 = vst [vmem:[%s10597_s30 + $0x5a8] sm:$0xff] %v1581_v53  ;;  %v1585_v55 = vld [vmem:[%s10592_s29 + $0xb70] sm:$0xff] }
  0x70   : > { %1584 = vst [vmem:[%s10597_s30 + $0x5b0] sm:$0xff] %v1583_v54  ;;  %v1587_v56 = vld [vmem:[%s10592_s29 + $0xb80] sm:$0xff]  ;;  %v1589_v57 = vld [vmem:[%s10592_s29 + $0xb90] sm:$0xff]  ;;  %1586 = vst [vmem:[%s10597_s30 + $0x5b8] sm:$0xff] %v1585_v55 }
  0x71   : > { %1588 = vst [vmem:[%s10597_s30 + $0x5c0] sm:$0xff] %v1587_v56  ;;  %1590 = vst [vmem:[%s10597_s30 + $0x5c8] sm:$0xff] %v1589_v57  ;;  %v1591_v58 = vld [vmem:[%s10592_s29 + $0xba0] sm:$0xff]  ;;  %v1593_v59 = vld [vmem:[%s10592_s29 + $0xbb0] sm:$0xff] }
  0x72   : > { %v1595_v60 = vld [vmem:[%s10592_s29 + $0xbc0] sm:$0xff]  ;;  %1592 = vst [vmem:[%s10597_s30 + $0x5d0] sm:$0xff] %v1591_v58  ;;  %1594 = vst [vmem:[%s10597_s30 + $0x5d8] sm:$0xff] %v1593_v59  ;;  %v1597_v61 = vld [vmem:[%s10592_s29 + $0xbd0] sm:$0xff] }
  0x73   : > { %1596 = vst [vmem:[%s10597_s30 + $0x5e0] sm:$0xff] %v1595_v60  ;;  %v1599_v62 = vld [vmem:[%s10592_s29 + $0xbe0] sm:$0xff]  ;;  %v1601_v63 = vld [vmem:[%s10592_s29 + $0xbf0] sm:$0xff]  ;;  %1598 = vst [vmem:[%s10597_s30 + $0x5e8] sm:$0xff] %v1597_v61 }
  0x74   : > { %1600 = vst [vmem:[%s10597_s30 + $0x5f0] sm:$0xff] %v1599_v62  ;;  %1602 = vst [vmem:[%s10597_s30 + $0x5f8] sm:$0xff] %v1601_v63  ;;  %v1603_v0 = vld [vmem:[%s10592_s29 + $0xc00] sm:$0xff]  ;;  %v1605_v1 = vld [vmem:[%s10592_s29 + $0xc10] sm:$0xff] }
  0x75   : > { %v1607_v2 = vld [vmem:[%s10592_s29 + $0xc20] sm:$0xff]  ;;  %1604 = vst [vmem:[%s10597_s30 + $0x600] sm:$0xff] %v1603_v0  ;;  %1606 = vst [vmem:[%s10597_s30 + $0x608] sm:$0xff] %v1605_v1  ;;  %v1609_v3 = vld [vmem:[%s10592_s29 + $0xc30] sm:$0xff] }
  0x76   : > { %1608 = vst [vmem:[%s10597_s30 + $0x610] sm:$0xff] %v1607_v2  ;;  %v1611_v4 = vld [vmem:[%s10592_s29 + $0xc40] sm:$0xff]  ;;  %v1613_v5 = vld [vmem:[%s10592_s29 + $0xc50] sm:$0xff]  ;;  %1610 = vst [vmem:[%s10597_s30 + $0x618] sm:$0xff] %v1609_v3 }
  0x77   : > { %1612 = vst [vmem:[%s10597_s30 + $0x620] sm:$0xff] %v1611_v4  ;;  %1614 = vst [vmem:[%s10597_s30 + $0x628] sm:$0xff] %v1613_v5  ;;  %v1615_v6 = vld [vmem:[%s10592_s29 + $0xc60] sm:$0xff]  ;;  %v1617_v7 = vld [vmem:[%s10592_s29 + $0xc70] sm:$0xff] }
  0x78   : > { %v1619_v8 = vld [vmem:[%s10592_s29 + $0xc80] sm:$0xff]  ;;  %1616 = vst [vmem:[%s10597_s30 + $0x630] sm:$0xff] %v1615_v6  ;;  %1618 = vst [vmem:[%s10597_s30 + $0x638] sm:$0xff] %v1617_v7  ;;  %v1621_v9 = vld [vmem:[%s10592_s29 + $0xc90] sm:$0xff] }
  0x79   : > { %1620 = vst [vmem:[%s10597_s30 + $0x640] sm:$0xff] %v1619_v8  ;;  %v1623_v10 = vld [vmem:[%s10592_s29 + $0xca0] sm:$0xff]  ;;  %v1625_v11 = vld [vmem:[%s10592_s29 + $0xcb0] sm:$0xff]  ;;  %1622 = vst [vmem:[%s10597_s30 + $0x648] sm:$0xff] %v1621_v9 }
  0x7a   : > { %1624 = vst [vmem:[%s10597_s30 + $0x650] sm:$0xff] %v1623_v10  ;;  %1626 = vst [vmem:[%s10597_s30 + $0x658] sm:$0xff] %v1625_v11  ;;  %v1627_v12 = vld [vmem:[%s10592_s29 + $0xcc0] sm:$0xff]  ;;  %v1629_v13 = vld [vmem:[%s10592_s29 + $0xcd0] sm:$0xff] }
  0x7b   : > { %v1631_v14 = vld [vmem:[%s10592_s29 + $0xce0] sm:$0xff]  ;;  %1628 = vst [vmem:[%s10597_s30 + $0x660] sm:$0xff] %v1627_v12  ;;  %1630 = vst [vmem:[%s10597_s30 + $0x668] sm:$0xff] %v1629_v13  ;;  %v1633_v15 = vld [vmem:[%s10592_s29 + $0xcf0] sm:$0xff] }
  0x7c   : > { %1632 = vst [vmem:[%s10597_s30 + $0x670] sm:$0xff] %v1631_v14  ;;  %v1635_v16 = vld [vmem:[%s10592_s29 + $0xd00] sm:$0xff]  ;;  %v1637_v17 = vld [vmem:[%s10592_s29 + $0xd10] sm:$0xff]  ;;  %1634 = vst [vmem:[%s10597_s30 + $0x678] sm:$0xff] %v1633_v15 }
  0x7d   : > { %1636 = vst [vmem:[%s10597_s30 + $0x680] sm:$0xff] %v1635_v16  ;;  %1638 = vst [vmem:[%s10597_s30 + $0x688] sm:$0xff] %v1637_v17  ;;  %v1639_v18 = vld [vmem:[%s10592_s29 + $0xd20] sm:$0xff]  ;;  %v1641_v19 = vld [vmem:[%s10592_s29 + $0xd30] sm:$0xff] }
  0x7e   : > { %v1643_v20 = vld [vmem:[%s10592_s29 + $0xd40] sm:$0xff]  ;;  %1640 = vst [vmem:[%s10597_s30 + $0x690] sm:$0xff] %v1639_v18  ;;  %1642 = vst [vmem:[%s10597_s30 + $0x698] sm:$0xff] %v1641_v19  ;;  %v1645_v21 = vld [vmem:[%s10592_s29 + $0xd50] sm:$0xff] }
  0x7f   : > { %1644 = vst [vmem:[%s10597_s30 + $0x6a0] sm:$0xff] %v1643_v20  ;;  %v1647_v22 = vld [vmem:[%s10592_s29 + $0xd60] sm:$0xff]  ;;  %v1649_v23 = vld [vmem:[%s10592_s29 + $0xd70] sm:$0xff]  ;;  %1646 = vst [vmem:[%s10597_s30 + $0x6a8] sm:$0xff] %v1645_v21 }
  0x80   : > { %1648 = vst [vmem:[%s10597_s30 + $0x6b0] sm:$0xff] %v1647_v22  ;;  %1650 = vst [vmem:[%s10597_s30 + $0x6b8] sm:$0xff] %v1649_v23  ;;  %v1651_v24 = vld [vmem:[%s10592_s29 + $0xd80] sm:$0xff]  ;;  %v1653_v25 = vld [vmem:[%s10592_s29 + $0xd90] sm:$0xff] }
  0x81   : > { %v1655_v26 = vld [vmem:[%s10592_s29 + $0xda0] sm:$0xff]  ;;  %1652 = vst [vmem:[%s10597_s30 + $0x6c0] sm:$0xff] %v1651_v24  ;;  %1654 = vst [vmem:[%s10597_s30 + $0x6c8] sm:$0xff] %v1653_v25  ;;  %v1657_v27 = vld [vmem:[%s10592_s29 + $0xdb0] sm:$0xff] }
  0x82   : > { %1656 = vst [vmem:[%s10597_s30 + $0x6d0] sm:$0xff] %v1655_v26  ;;  %v1659_v28 = vld [vmem:[%s10592_s29 + $0xdc0] sm:$0xff]  ;;  %v1661_v29 = vld [vmem:[%s10592_s29 + $0xdd0] sm:$0xff]  ;;  %1658 = vst [vmem:[%s10597_s30 + $0x6d8] sm:$0xff] %v1657_v27 }
  0x83   : > { %1660 = vst [vmem:[%s10597_s30 + $0x6e0] sm:$0xff] %v1659_v28  ;;  %1662 = vst [vmem:[%s10597_s30 + $0x6e8] sm:$0xff] %v1661_v29  ;;  %v1663_v30 = vld [vmem:[%s10592_s29 + $0xde0] sm:$0xff]  ;;  %v1665_v31 = vld [vmem:[%s10592_s29 + $0xdf0] sm:$0xff] }
  0x84   : > { %v1667_v32 = vld [vmem:[%s10592_s29 + $0xe00] sm:$0xff]  ;;  %1664 = vst [vmem:[%s10597_s30 + $0x6f0] sm:$0xff] %v1663_v30  ;;  %1666 = vst [vmem:[%s10597_s30 + $0x6f8] sm:$0xff] %v1665_v31  ;;  %v1669_v33 = vld [vmem:[%s10592_s29 + $0xe10] sm:$0xff] }
  0x85   : > { %1668 = vst [vmem:[%s10597_s30 + $0x700] sm:$0xff] %v1667_v32  ;;  %v1671_v34 = vld [vmem:[%s10592_s29 + $0xe20] sm:$0xff]  ;;  %v1673_v35 = vld [vmem:[%s10592_s29 + $0xe30] sm:$0xff]  ;;  %1670 = vst [vmem:[%s10597_s30 + $0x708] sm:$0xff] %v1669_v33 }
  0x86   : > { %1672 = vst [vmem:[%s10597_s30 + $0x710] sm:$0xff] %v1671_v34  ;;  %1674 = vst [vmem:[%s10597_s30 + $0x718] sm:$0xff] %v1673_v35  ;;  %v1675_v36 = vld [vmem:[%s10592_s29 + $0xe40] sm:$0xff]  ;;  %v1677_v37 = vld [vmem:[%s10592_s29 + $0xe50] sm:$0xff] }
  0x87   : > { %v1679_v38 = vld [vmem:[%s10592_s29 + $0xe60] sm:$0xff]  ;;  %1676 = vst [vmem:[%s10597_s30 + $0x720] sm:$0xff] %v1675_v36  ;;  %1678 = vst [vmem:[%s10597_s30 + $0x728] sm:$0xff] %v1677_v37  ;;  %v1681_v39 = vld [vmem:[%s10592_s29 + $0xe70] sm:$0xff] }
  0x88   : > { %1680 = vst [vmem:[%s10597_s30 + $0x730] sm:$0xff] %v1679_v38  ;;  %v1683_v40 = vld [vmem:[%s10592_s29 + $0xe80] sm:$0xff]  ;;  %v1685_v41 = vld [vmem:[%s10592_s29 + $0xe90] sm:$0xff]  ;;  %1682 = vst [vmem:[%s10597_s30 + $0x738] sm:$0xff] %v1681_v39 }
  0x89   : > { %1684 = vst [vmem:[%s10597_s30 + $0x740] sm:$0xff] %v1683_v40  ;;  %1686 = vst [vmem:[%s10597_s30 + $0x748] sm:$0xff] %v1685_v41  ;;  %v1687_v42 = vld [vmem:[%s10592_s29 + $0xea0] sm:$0xff]  ;;  %v1689_v43 = vld [vmem:[%s10592_s29 + $0xeb0] sm:$0xff] }
  0x8a   : > { %v1691_v44 = vld [vmem:[%s10592_s29 + $0xec0] sm:$0xff]  ;;  %1688 = vst [vmem:[%s10597_s30 + $0x750] sm:$0xff] %v1687_v42  ;;  %1690 = vst [vmem:[%s10597_s30 + $0x758] sm:$0xff] %v1689_v43  ;;  %v1693_v45 = vld [vmem:[%s10592_s29 + $0xed0] sm:$0xff] }
  0x8b   : > { %1692 = vst [vmem:[%s10597_s30 + $0x760] sm:$0xff] %v1691_v44  ;;  %v1695_v46 = vld [vmem:[%s10592_s29 + $0xee0] sm:$0xff]  ;;  %v1697_v47 = vld [vmem:[%s10592_s29 + $0xef0] sm:$0xff]  ;;  %1694 = vst [vmem:[%s10597_s30 + $0x768] sm:$0xff] %v1693_v45 }
  0x8c   : > { %1696 = vst [vmem:[%s10597_s30 + $0x770] sm:$0xff] %v1695_v46  ;;  %1698 = vst [vmem:[%s10597_s30 + $0x778] sm:$0xff] %v1697_v47  ;;  %v1699_v48 = vld [vmem:[%s10592_s29 + $0xf00] sm:$0xff]  ;;  %v1701_v49 = vld [vmem:[%s10592_s29 + $0xf10] sm:$0xff] }
  0x8d   : > { %v1703_v50 = vld [vmem:[%s10592_s29 + $0xf20] sm:$0xff]  ;;  %1700 = vst [vmem:[%s10597_s30 + $0x780] sm:$0xff] %v1699_v48  ;;  %1702 = vst [vmem:[%s10597_s30 + $0x788] sm:$0xff] %v1701_v49  ;;  %v1705_v51 = vld [vmem:[%s10592_s29 + $0xf30] sm:$0xff] }
  0x8e   : > { %1704 = vst [vmem:[%s10597_s30 + $0x790] sm:$0xff] %v1703_v50  ;;  %v1707_v52 = vld [vmem:[%s10592_s29 + $0xf40] sm:$0xff]  ;;  %v1709_v53 = vld [vmem:[%s10592_s29 + $0xf50] sm:$0xff]  ;;  %1706 = vst [vmem:[%s10597_s30 + $0x798] sm:$0xff] %v1705_v51 }
  0x8f   : > { %1708 = vst [vmem:[%s10597_s30 + $0x7a0] sm:$0xff] %v1707_v52  ;;  %1710 = vst [vmem:[%s10597_s30 + $0x7a8] sm:$0xff] %v1709_v53  ;;  %v1711_v54 = vld [vmem:[%s10592_s29 + $0xf60] sm:$0xff]  ;;  %v1713_v55 = vld [vmem:[%s10592_s29 + $0xf70] sm:$0xff] }
  0x90   : > { %v1715_v56 = vld [vmem:[%s10592_s29 + $0xf80] sm:$0xff]  ;;  %1712 = vst [vmem:[%s10597_s30 + $0x7b0] sm:$0xff] %v1711_v54  ;;  %1714 = vst [vmem:[%s10597_s30 + $0x7b8] sm:$0xff] %v1713_v55  ;;  %v1717_v57 = vld [vmem:[%s10592_s29 + $0xf90] sm:$0xff] }
  0x91   : > { %1716 = vst [vmem:[%s10597_s30 + $0x7c0] sm:$0xff] %v1715_v56  ;;  %v1719_v58 = vld [vmem:[%s10592_s29 + $0xfa0] sm:$0xff]  ;;  %v1721_v59 = vld [vmem:[%s10592_s29 + $0xfb0] sm:$0xff]  ;;  %1718 = vst [vmem:[%s10597_s30 + $0x7c8] sm:$0xff] %v1717_v57 }
  0x92   : > { %1720 = vst [vmem:[%s10597_s30 + $0x7d0] sm:$0xff] %v1719_v58  ;;  %1722 = vst [vmem:[%s10597_s30 + $0x7d8] sm:$0xff] %v1721_v59  ;;  %v1723_v60 = vld [vmem:[%s10592_s29 + $0xfc0] sm:$0xff]  ;;  %v1725_v61 = vld [vmem:[%s10592_s29 + $0xfd0] sm:$0xff] }
  0x93   : > { %v1727_v62 = vld [vmem:[%s10592_s29 + $0xfe0] sm:$0xff]  ;;  %1724 = vst [vmem:[%s10597_s30 + $0x7e0] sm:$0xff] %v1723_v60  ;;  %1726 = vst [vmem:[%s10597_s30 + $0x7e8] sm:$0xff] %v1725_v61  ;;  %v1729_v63 = vld [vmem:[%s10592_s29 + $0xff0] sm:$0xff] }
  0x94   : > { %1728 = vst [vmem:[%s10597_s30 + $0x7f0] sm:$0xff] %v1727_v62  ;;  %v1731_v0 = vld [vmem:[%s10592_s29 + $0x1000] sm:$0xff]  ;;  %v1733_v1 = vld [vmem:[%s10592_s29 + $0x1010] sm:$0xff]  ;;  %1730 = vst [vmem:[%s10597_s30 + $0x7f8] sm:$0xff] %v1729_v63 }
  0x95   : > { %1732 = vst [vmem:[%s10597_s30 + $0x800] sm:$0xff] %v1731_v0  ;;  %1734 = vst [vmem:[%s10597_s30 + $0x808] sm:$0xff] %v1733_v1  ;;  %v1735_v2 = vld [vmem:[%s10592_s29 + $0x1020] sm:$0xff]  ;;  %v1737_v3 = vld [vmem:[%s10592_s29 + $0x1030] sm:$0xff] }
  0x96   : > { %v1739_v4 = vld [vmem:[%s10592_s29 + $0x1040] sm:$0xff]  ;;  %1736 = vst [vmem:[%s10597_s30 + $0x810] sm:$0xff] %v1735_v2  ;;  %1738 = vst [vmem:[%s10597_s30 + $0x818] sm:$0xff] %v1737_v3  ;;  %v1741_v5 = vld [vmem:[%s10592_s29 + $0x1050] sm:$0xff] }
  0x97   : > { %1740 = vst [vmem:[%s10597_s30 + $0x820] sm:$0xff] %v1739_v4  ;;  %v1743_v6 = vld [vmem:[%s10592_s29 + $0x1060] sm:$0xff]  ;;  %v1745_v7 = vld [vmem:[%s10592_s29 + $0x1070] sm:$0xff]  ;;  %1742 = vst [vmem:[%s10597_s30 + $0x828] sm:$0xff] %v1741_v5 }
  0x98   : > { %1744 = vst [vmem:[%s10597_s30 + $0x830] sm:$0xff] %v1743_v6  ;;  %1746 = vst [vmem:[%s10597_s30 + $0x838] sm:$0xff] %v1745_v7  ;;  %v1747_v8 = vld [vmem:[%s10592_s29 + $0x1080] sm:$0xff]  ;;  %v1749_v9 = vld [vmem:[%s10592_s29 + $0x1090] sm:$0xff] }
  0x99   : > { %v1751_v10 = vld [vmem:[%s10592_s29 + $0x10a0] sm:$0xff]  ;;  %1748 = vst [vmem:[%s10597_s30 + $0x840] sm:$0xff] %v1747_v8  ;;  %1750 = vst [vmem:[%s10597_s30 + $0x848] sm:$0xff] %v1749_v9  ;;  %v1753_v11 = vld [vmem:[%s10592_s29 + $0x10b0] sm:$0xff] }
  0x9a   : > { %1752 = vst [vmem:[%s10597_s30 + $0x850] sm:$0xff] %v1751_v10  ;;  %v1755_v12 = vld [vmem:[%s10592_s29 + $0x10c0] sm:$0xff]  ;;  %v1757_v13 = vld [vmem:[%s10592_s29 + $0x10d0] sm:$0xff]  ;;  %1754 = vst [vmem:[%s10597_s30 + $0x858] sm:$0xff] %v1753_v11 }
  0x9b   : > { %1756 = vst [vmem:[%s10597_s30 + $0x860] sm:$0xff] %v1755_v12  ;;  %1758 = vst [vmem:[%s10597_s30 + $0x868] sm:$0xff] %v1757_v13  ;;  %v1759_v14 = vld [vmem:[%s10592_s29 + $0x10e0] sm:$0xff]  ;;  %v1761_v15 = vld [vmem:[%s10592_s29 + $0x10f0] sm:$0xff] }
  0x9c   : > { %v1763_v16 = vld [vmem:[%s10592_s29 + $0x1100] sm:$0xff]  ;;  %1760 = vst [vmem:[%s10597_s30 + $0x870] sm:$0xff] %v1759_v14  ;;  %1762 = vst [vmem:[%s10597_s30 + $0x878] sm:$0xff] %v1761_v15  ;;  %v1765_v17 = vld [vmem:[%s10592_s29 + $0x1110] sm:$0xff] }
  0x9d   : > { %1764 = vst [vmem:[%s10597_s30 + $0x880] sm:$0xff] %v1763_v16  ;;  %v1767_v18 = vld [vmem:[%s10592_s29 + $0x1120] sm:$0xff]  ;;  %v1769_v19 = vld [vmem:[%s10592_s29 + $0x1130] sm:$0xff]  ;;  %1766 = vst [vmem:[%s10597_s30 + $0x888] sm:$0xff] %v1765_v17 }
  0x9e   : > { %1768 = vst [vmem:[%s10597_s30 + $0x890] sm:$0xff] %v1767_v18  ;;  %1770 = vst [vmem:[%s10597_s30 + $0x898] sm:$0xff] %v1769_v19  ;;  %v1771_v20 = vld [vmem:[%s10592_s29 + $0x1140] sm:$0xff]  ;;  %v1773_v21 = vld [vmem:[%s10592_s29 + $0x1150] sm:$0xff] }
  0x9f   : > { %v1775_v22 = vld [vmem:[%s10592_s29 + $0x1160] sm:$0xff]  ;;  %1772 = vst [vmem:[%s10597_s30 + $0x8a0] sm:$0xff] %v1771_v20  ;;  %1774 = vst [vmem:[%s10597_s30 + $0x8a8] sm:$0xff] %v1773_v21  ;;  %v1777_v23 = vld [vmem:[%s10592_s29 + $0x1170] sm:$0xff] }
  0xa0   : > { %1776 = vst [vmem:[%s10597_s30 + $0x8b0] sm:$0xff] %v1775_v22  ;;  %v1779_v24 = vld [vmem:[%s10592_s29 + $0x1180] sm:$0xff]  ;;  %v1781_v25 = vld [vmem:[%s10592_s29 + $0x1190] sm:$0xff]  ;;  %1778 = vst [vmem:[%s10597_s30 + $0x8b8] sm:$0xff] %v1777_v23 }
  0xa1   : > { %1780 = vst [vmem:[%s10597_s30 + $0x8c0] sm:$0xff] %v1779_v24  ;;  %1782 = vst [vmem:[%s10597_s30 + $0x8c8] sm:$0xff] %v1781_v25  ;;  %v1783_v26 = vld [vmem:[%s10592_s29 + $0x11a0] sm:$0xff]  ;;  %v1785_v27 = vld [vmem:[%s10592_s29 + $0x11b0] sm:$0xff] }
  0xa2   : > { %v1787_v28 = vld [vmem:[%s10592_s29 + $0x11c0] sm:$0xff]  ;;  %1784 = vst [vmem:[%s10597_s30 + $0x8d0] sm:$0xff] %v1783_v26  ;;  %1786 = vst [vmem:[%s10597_s30 + $0x8d8] sm:$0xff] %v1785_v27  ;;  %v1789_v29 = vld [vmem:[%s10592_s29 + $0x11d0] sm:$0xff] }
  0xa3   : > { %1788 = vst [vmem:[%s10597_s30 + $0x8e0] sm:$0xff] %v1787_v28  ;;  %v1791_v30 = vld [vmem:[%s10592_s29 + $0x11e0] sm:$0xff]  ;;  %v1793_v31 = vld [vmem:[%s10592_s29 + $0x11f0] sm:$0xff]  ;;  %1790 = vst [vmem:[%s10597_s30 + $0x8e8] sm:$0xff] %v1789_v29 }
  0xa4   : > { %1792 = vst [vmem:[%s10597_s30 + $0x8f0] sm:$0xff] %v1791_v30  ;;  %1794 = vst [vmem:[%s10597_s30 + $0x8f8] sm:$0xff] %v1793_v31  ;;  %v1795_v32 = vld [vmem:[%s10592_s29 + $0x1200] sm:$0xff]  ;;  %v1797_v33 = vld [vmem:[%s10592_s29 + $0x1210] sm:$0xff] }
  0xa5   : > { %v1799_v34 = vld [vmem:[%s10592_s29 + $0x1220] sm:$0xff]  ;;  %1796 = vst [vmem:[%s10597_s30 + $0x900] sm:$0xff] %v1795_v32  ;;  %1798 = vst [vmem:[%s10597_s30 + $0x908] sm:$0xff] %v1797_v33  ;;  %v1801_v35 = vld [vmem:[%s10592_s29 + $0x1230] sm:$0xff] }
  0xa6   : > { %1800 = vst [vmem:[%s10597_s30 + $0x910] sm:$0xff] %v1799_v34  ;;  %v1803_v36 = vld [vmem:[%s10592_s29 + $0x1240] sm:$0xff]  ;;  %v1805_v37 = vld [vmem:[%s10592_s29 + $0x1250] sm:$0xff]  ;;  %1802 = vst [vmem:[%s10597_s30 + $0x918] sm:$0xff] %v1801_v35 }
  0xa7   : > { %1804 = vst [vmem:[%s10597_s30 + $0x920] sm:$0xff] %v1803_v36  ;;  %1806 = vst [vmem:[%s10597_s30 + $0x928] sm:$0xff] %v1805_v37  ;;  %v1807_v38 = vld [vmem:[%s10592_s29 + $0x1260] sm:$0xff]  ;;  %v1809_v39 = vld [vmem:[%s10592_s29 + $0x1270] sm:$0xff] }
  0xa8   : > { %v1811_v40 = vld [vmem:[%s10592_s29 + $0x1280] sm:$0xff]  ;;  %1808 = vst [vmem:[%s10597_s30 + $0x930] sm:$0xff] %v1807_v38  ;;  %1810 = vst [vmem:[%s10597_s30 + $0x938] sm:$0xff] %v1809_v39  ;;  %v1813_v41 = vld [vmem:[%s10592_s29 + $0x1290] sm:$0xff] }
  0xa9   : > { %1812 = vst [vmem:[%s10597_s30 + $0x940] sm:$0xff] %v1811_v40  ;;  %v1815_v42 = vld [vmem:[%s10592_s29 + $0x12a0] sm:$0xff]  ;;  %v1817_v43 = vld [vmem:[%s10592_s29 + $0x12b0] sm:$0xff]  ;;  %1814 = vst [vmem:[%s10597_s30 + $0x948] sm:$0xff] %v1813_v41 }
  0xaa   : > { %1816 = vst [vmem:[%s10597_s30 + $0x950] sm:$0xff] %v1815_v42  ;;  %1818 = vst [vmem:[%s10597_s30 + $0x958] sm:$0xff] %v1817_v43  ;;  %v1819_v44 = vld [vmem:[%s10592_s29 + $0x12c0] sm:$0xff]  ;;  %v1821_v45 = vld [vmem:[%s10592_s29 + $0x12d0] sm:$0xff] }
  0xab   : > { %v1823_v46 = vld [vmem:[%s10592_s29 + $0x12e0] sm:$0xff]  ;;  %1820 = vst [vmem:[%s10597_s30 + $0x960] sm:$0xff] %v1819_v44  ;;  %1822 = vst [vmem:[%s10597_s30 + $0x968] sm:$0xff] %v1821_v45  ;;  %v1825_v47 = vld [vmem:[%s10592_s29 + $0x12f0] sm:$0xff] }
  0xac   : > { %1824 = vst [vmem:[%s10597_s30 + $0x970] sm:$0xff] %v1823_v46  ;;  %v1827_v48 = vld [vmem:[%s10592_s29 + $0x1300] sm:$0xff]  ;;  %v1829_v49 = vld [vmem:[%s10592_s29 + $0x1310] sm:$0xff]  ;;  %1826 = vst [vmem:[%s10597_s30 + $0x978] sm:$0xff] %v1825_v47 }
  0xad   : > { %1828 = vst [vmem:[%s10597_s30 + $0x980] sm:$0xff] %v1827_v48  ;;  %1830 = vst [vmem:[%s10597_s30 + $0x988] sm:$0xff] %v1829_v49  ;;  %v1831_v50 = vld [vmem:[%s10592_s29 + $0x1320] sm:$0xff]  ;;  %v1833_v51 = vld [vmem:[%s10592_s29 + $0x1330] sm:$0xff] }
  0xae   : > { %v1835_v52 = vld [vmem:[%s10592_s29 + $0x1340] sm:$0xff]  ;;  %1832 = vst [vmem:[%s10597_s30 + $0x990] sm:$0xff] %v1831_v50  ;;  %1834 = vst [vmem:[%s10597_s30 + $0x998] sm:$0xff] %v1833_v51  ;;  %v1837_v53 = vld [vmem:[%s10592_s29 + $0x1350] sm:$0xff] }
  0xaf   : > { %1836 = vst [vmem:[%s10597_s30 + $0x9a0] sm:$0xff] %v1835_v52  ;;  %v1839_v54 = vld [vmem:[%s10592_s29 + $0x1360] sm:$0xff]  ;;  %v1841_v55 = vld [vmem:[%s10592_s29 + $0x1370] sm:$0xff]  ;;  %1838 = vst [vmem:[%s10597_s30 + $0x9a8] sm:$0xff] %v1837_v53 }
  0xb0   : > { %1840 = vst [vmem:[%s10597_s30 + $0x9b0] sm:$0xff] %v1839_v54  ;;  %1842 = vst [vmem:[%s10597_s30 + $0x9b8] sm:$0xff] %v1841_v55  ;;  %v1843_v56 = vld [vmem:[%s10592_s29 + $0x1380] sm:$0xff]  ;;  %v1845_v57 = vld [vmem:[%s10592_s29 + $0x1390] sm:$0xff] }
  0xb1   : > { %v1847_v58 = vld [vmem:[%s10592_s29 + $0x13a0] sm:$0xff]  ;;  %1844 = vst [vmem:[%s10597_s30 + $0x9c0] sm:$0xff] %v1843_v56  ;;  %1846 = vst [vmem:[%s10597_s30 + $0x9c8] sm:$0xff] %v1845_v57  ;;  %v1849_v59 = vld [vmem:[%s10592_s29 + $0x13b0] sm:$0xff] }
  0xb2   : > { %1848 = vst [vmem:[%s10597_s30 + $0x9d0] sm:$0xff] %v1847_v58  ;;  %v1851_v60 = vld [vmem:[%s10592_s29 + $0x13c0] sm:$0xff]  ;;  %v1853_v61 = vld [vmem:[%s10592_s29 + $0x13d0] sm:$0xff]  ;;  %1850 = vst [vmem:[%s10597_s30 + $0x9d8] sm:$0xff] %v1849_v59 }
  0xb3   : > { %1852 = vst [vmem:[%s10597_s30 + $0x9e0] sm:$0xff] %v1851_v60  ;;  %1854 = vst [vmem:[%s10597_s30 + $0x9e8] sm:$0xff] %v1853_v61  ;;  %v1855_v62 = vld [vmem:[%s10592_s29 + $0x13e0] sm:$0xff]  ;;  %v1857_v63 = vld [vmem:[%s10592_s29 + $0x13f0] sm:$0xff] }
  0xb4   : > { %v1859_v0 = vld [vmem:[%s10592_s29 + $0x1400] sm:$0xff]  ;;  %1856 = vst [vmem:[%s10597_s30 + $0x9f0] sm:$0xff] %v1855_v62  ;;  %1858 = vst [vmem:[%s10597_s30 + $0x9f8] sm:$0xff] %v1857_v63  ;;  %v1861_v1 = vld [vmem:[%s10592_s29 + $0x1410] sm:$0xff] }
  0xb5   : > { %1860 = vst [vmem:[%s10597_s30 + $0xa00] sm:$0xff] %v1859_v0  ;;  %v1863_v2 = vld [vmem:[%s10592_s29 + $0x1420] sm:$0xff]  ;;  %v1865_v3 = vld [vmem:[%s10592_s29 + $0x1430] sm:$0xff]  ;;  %1862 = vst [vmem:[%s10597_s30 + $0xa08] sm:$0xff] %v1861_v1 }
  0xb6   : > { %1864 = vst [vmem:[%s10597_s30 + $0xa10] sm:$0xff] %v1863_v2  ;;  %1866 = vst [vmem:[%s10597_s30 + $0xa18] sm:$0xff] %v1865_v3  ;;  %v1867_v4 = vld [vmem:[%s10592_s29 + $0x1440] sm:$0xff]  ;;  %v1869_v5 = vld [vmem:[%s10592_s29 + $0x1450] sm:$0xff] }
  0xb7   : > { %v1871_v6 = vld [vmem:[%s10592_s29 + $0x1460] sm:$0xff]  ;;  %1868 = vst [vmem:[%s10597_s30 + $0xa20] sm:$0xff] %v1867_v4  ;;  %1870 = vst [vmem:[%s10597_s30 + $0xa28] sm:$0xff] %v1869_v5  ;;  %v1873_v7 = vld [vmem:[%s10592_s29 + $0x1470] sm:$0xff] }
  0xb8   : > { %1872 = vst [vmem:[%s10597_s30 + $0xa30] sm:$0xff] %v1871_v6  ;;  %v1875_v8 = vld [vmem:[%s10592_s29 + $0x1480] sm:$0xff]  ;;  %v1877_v9 = vld [vmem:[%s10592_s29 + $0x1490] sm:$0xff]  ;;  %1874 = vst [vmem:[%s10597_s30 + $0xa38] sm:$0xff] %v1873_v7 }
  0xb9   : > { %1876 = vst [vmem:[%s10597_s30 + $0xa40] sm:$0xff] %v1875_v8  ;;  %1878 = vst [vmem:[%s10597_s30 + $0xa48] sm:$0xff] %v1877_v9  ;;  %v1879_v10 = vld [vmem:[%s10592_s29 + $0x14a0] sm:$0xff]  ;;  %v1881_v11 = vld [vmem:[%s10592_s29 + $0x14b0] sm:$0xff] }
  0xba   : > { %v1883_v12 = vld [vmem:[%s10592_s29 + $0x14c0] sm:$0xff]  ;;  %1880 = vst [vmem:[%s10597_s30 + $0xa50] sm:$0xff] %v1879_v10  ;;  %1882 = vst [vmem:[%s10597_s30 + $0xa58] sm:$0xff] %v1881_v11  ;;  %v1885_v13 = vld [vmem:[%s10592_s29 + $0x14d0] sm:$0xff] }
  0xbb   : > { %1884 = vst [vmem:[%s10597_s30 + $0xa60] sm:$0xff] %v1883_v12  ;;  %v1887_v14 = vld [vmem:[%s10592_s29 + $0x14e0] sm:$0xff]  ;;  %v1889_v15 = vld [vmem:[%s10592_s29 + $0x14f0] sm:$0xff]  ;;  %1886 = vst [vmem:[%s10597_s30 + $0xa68] sm:$0xff] %v1885_v13 }
  0xbc   : > { %1888 = vst [vmem:[%s10597_s30 + $0xa70] sm:$0xff] %v1887_v14  ;;  %1890 = vst [vmem:[%s10597_s30 + $0xa78] sm:$0xff] %v1889_v15  ;;  %v1891_v16 = vld [vmem:[%s10592_s29 + $0x1500] sm:$0xff]  ;;  %v1893_v17 = vld [vmem:[%s10592_s29 + $0x1510] sm:$0xff] }
  0xbd   : > { %v1895_v18 = vld [vmem:[%s10592_s29 + $0x1520] sm:$0xff]  ;;  %1892 = vst [vmem:[%s10597_s30 + $0xa80] sm:$0xff] %v1891_v16  ;;  %1894 = vst [vmem:[%s10597_s30 + $0xa88] sm:$0xff] %v1893_v17  ;;  %v1897_v19 = vld [vmem:[%s10592_s29 + $0x1530] sm:$0xff] }
  0xbe   : > { %1896 = vst [vmem:[%s10597_s30 + $0xa90] sm:$0xff] %v1895_v18  ;;  %v1899_v20 = vld [vmem:[%s10592_s29 + $0x1540] sm:$0xff]  ;;  %v1901_v21 = vld [vmem:[%s10592_s29 + $0x1550] sm:$0xff]  ;;  %1898 = vst [vmem:[%s10597_s30 + $0xa98] sm:$0xff] %v1897_v19 }
  0xbf   : > { %1900 = vst [vmem:[%s10597_s30 + $0xaa0] sm:$0xff] %v1899_v20  ;;  %1902 = vst [vmem:[%s10597_s30 + $0xaa8] sm:$0xff] %v1901_v21  ;;  %v1903_v22 = vld [vmem:[%s10592_s29 + $0x1560] sm:$0xff]  ;;  %v1905_v23 = vld [vmem:[%s10592_s29 + $0x1570] sm:$0xff] }
  0xc0   : > { %v1907_v24 = vld [vmem:[%s10592_s29 + $0x1580] sm:$0xff]  ;;  %1904 = vst [vmem:[%s10597_s30 + $0xab0] sm:$0xff] %v1903_v22  ;;  %1906 = vst [vmem:[%s10597_s30 + $0xab8] sm:$0xff] %v1905_v23  ;;  %v1909_v25 = vld [vmem:[%s10592_s29 + $0x1590] sm:$0xff] }
  0xc1   : > { %1908 = vst [vmem:[%s10597_s30 + $0xac0] sm:$0xff] %v1907_v24  ;;  %v1911_v26 = vld [vmem:[%s10592_s29 + $0x15a0] sm:$0xff]  ;;  %v1913_v27 = vld [vmem:[%s10592_s29 + $0x15b0] sm:$0xff]  ;;  %1910 = vst [vmem:[%s10597_s30 + $0xac8] sm:$0xff] %v1909_v25 }
  0xc2   : > { %1912 = vst [vmem:[%s10597_s30 + $0xad0] sm:$0xff] %v1911_v26  ;;  %1914 = vst [vmem:[%s10597_s30 + $0xad8] sm:$0xff] %v1913_v27  ;;  %v1915_v28 = vld [vmem:[%s10592_s29 + $0x15c0] sm:$0xff]  ;;  %v1917_v29 = vld [vmem:[%s10592_s29 + $0x15d0] sm:$0xff] }
  0xc3   : > { %v1919_v30 = vld [vmem:[%s10592_s29 + $0x15e0] sm:$0xff]  ;;  %1916 = vst [vmem:[%s10597_s30 + $0xae0] sm:$0xff] %v1915_v28  ;;  %1918 = vst [vmem:[%s10597_s30 + $0xae8] sm:$0xff] %v1917_v29  ;;  %v1921_v31 = vld [vmem:[%s10592_s29 + $0x15f0] sm:$0xff] }
  0xc4   : > { %1920 = vst [vmem:[%s10597_s30 + $0xaf0] sm:$0xff] %v1919_v30  ;;  %v1923_v32 = vld [vmem:[%s10592_s29 + $0x1600] sm:$0xff]  ;;  %v1925_v33 = vld [vmem:[%s10592_s29 + $0x1610] sm:$0xff]  ;;  %1922 = vst [vmem:[%s10597_s30 + $0xaf8] sm:$0xff] %v1921_v31 }
  0xc5   : > { %1924 = vst [vmem:[%s10597_s30 + $0xb00] sm:$0xff] %v1923_v32  ;;  %1926 = vst [vmem:[%s10597_s30 + $0xb08] sm:$0xff] %v1925_v33  ;;  %v1927_v34 = vld [vmem:[%s10592_s29 + $0x1620] sm:$0xff]  ;;  %v1929_v35 = vld [vmem:[%s10592_s29 + $0x1630] sm:$0xff] }
  0xc6   : > { %v1931_v36 = vld [vmem:[%s10592_s29 + $0x1640] sm:$0xff]  ;;  %1928 = vst [vmem:[%s10597_s30 + $0xb10] sm:$0xff] %v1927_v34  ;;  %1930 = vst [vmem:[%s10597_s30 + $0xb18] sm:$0xff] %v1929_v35  ;;  %v1933_v37 = vld [vmem:[%s10592_s29 + $0x1650] sm:$0xff] }
  0xc7   : > { %1932 = vst [vmem:[%s10597_s30 + $0xb20] sm:$0xff] %v1931_v36  ;;  %v1935_v38 = vld [vmem:[%s10592_s29 + $0x1660] sm:$0xff]  ;;  %v1937_v39 = vld [vmem:[%s10592_s29 + $0x1670] sm:$0xff]  ;;  %1934 = vst [vmem:[%s10597_s30 + $0xb28] sm:$0xff] %v1933_v37 }
  0xc8   : > { %1936 = vst [vmem:[%s10597_s30 + $0xb30] sm:$0xff] %v1935_v38  ;;  %1938 = vst [vmem:[%s10597_s30 + $0xb38] sm:$0xff] %v1937_v39  ;;  %v1939_v40 = vld [vmem:[%s10592_s29 + $0x1680] sm:$0xff]  ;;  %v1941_v41 = vld [vmem:[%s10592_s29 + $0x1690] sm:$0xff] }
  0xc9   : > { %v1943_v42 = vld [vmem:[%s10592_s29 + $0x16a0] sm:$0xff]  ;;  %1940 = vst [vmem:[%s10597_s30 + $0xb40] sm:$0xff] %v1939_v40  ;;  %1942 = vst [vmem:[%s10597_s30 + $0xb48] sm:$0xff] %v1941_v41  ;;  %v1945_v43 = vld [vmem:[%s10592_s29 + $0x16b0] sm:$0xff] }
  0xca   : > { %1944 = vst [vmem:[%s10597_s30 + $0xb50] sm:$0xff] %v1943_v42  ;;  %v1947_v44 = vld [vmem:[%s10592_s29 + $0x16c0] sm:$0xff]  ;;  %v1949_v45 = vld [vmem:[%s10592_s29 + $0x16d0] sm:$0xff]  ;;  %1946 = vst [vmem:[%s10597_s30 + $0xb58] sm:$0xff] %v1945_v43 }
  0xcb   : > { %1948 = vst [vmem:[%s10597_s30 + $0xb60] sm:$0xff] %v1947_v44  ;;  %1950 = vst [vmem:[%s10597_s30 + $0xb68] sm:$0xff] %v1949_v45  ;;  %v1951_v46 = vld [vmem:[%s10592_s29 + $0x16e0] sm:$0xff]  ;;  %v1953_v47 = vld [vmem:[%s10592_s29 + $0x16f0] sm:$0xff] }
  0xcc   : > { %v1955_v48 = vld [vmem:[%s10592_s29 + $0x1700] sm:$0xff]  ;;  %1952 = vst [vmem:[%s10597_s30 + $0xb70] sm:$0xff] %v1951_v46  ;;  %1954 = vst [vmem:[%s10597_s30 + $0xb78] sm:$0xff] %v1953_v47  ;;  %v1957_v49 = vld [vmem:[%s10592_s29 + $0x1710] sm:$0xff] }
  0xcd   : > { %1956 = vst [vmem:[%s10597_s30 + $0xb80] sm:$0xff] %v1955_v48  ;;  %v1959_v50 = vld [vmem:[%s10592_s29 + $0x1720] sm:$0xff]  ;;  %v1961_v51 = vld [vmem:[%s10592_s29 + $0x1730] sm:$0xff]  ;;  %1958 = vst [vmem:[%s10597_s30 + $0xb88] sm:$0xff] %v1957_v49 }
  0xce   : > { %1960 = vst [vmem:[%s10597_s30 + $0xb90] sm:$0xff] %v1959_v50  ;;  %1962 = vst [vmem:[%s10597_s30 + $0xb98] sm:$0xff] %v1961_v51  ;;  %v1963_v52 = vld [vmem:[%s10592_s29 + $0x1740] sm:$0xff]  ;;  %v1965_v53 = vld [vmem:[%s10592_s29 + $0x1750] sm:$0xff] }
  0xcf   : > { %v1967_v54 = vld [vmem:[%s10592_s29 + $0x1760] sm:$0xff]  ;;  %1964 = vst [vmem:[%s10597_s30 + $0xba0] sm:$0xff] %v1963_v52  ;;  %1966 = vst [vmem:[%s10597_s30 + $0xba8] sm:$0xff] %v1965_v53  ;;  %v1969_v55 = vld [vmem:[%s10592_s29 + $0x1770] sm:$0xff] }
  0xd0   : > { %1968 = vst [vmem:[%s10597_s30 + $0xbb0] sm:$0xff] %v1967_v54  ;;  %v1971_v56 = vld [vmem:[%s10592_s29 + $0x1780] sm:$0xff]  ;;  %v1973_v57 = vld [vmem:[%s10592_s29 + $0x1790] sm:$0xff]  ;;  %1970 = vst [vmem:[%s10597_s30 + $0xbb8] sm:$0xff] %v1969_v55 }
  0xd1   : > { %1972 = vst [vmem:[%s10597_s30 + $0xbc0] sm:$0xff] %v1971_v56  ;;  %1974 = vst [vmem:[%s10597_s30 + $0xbc8] sm:$0xff] %v1973_v57  ;;  %v1975_v58 = vld [vmem:[%s10592_s29 + $0x17a0] sm:$0xff]  ;;  %v1977_v59 = vld [vmem:[%s10592_s29 + $0x17b0] sm:$0xff] }
  0xd2   : > { %v1979_v60 = vld [vmem:[%s10592_s29 + $0x17c0] sm:$0xff]  ;;  %1976 = vst [vmem:[%s10597_s30 + $0xbd0] sm:$0xff] %v1975_v58  ;;  %1978 = vst [vmem:[%s10597_s30 + $0xbd8] sm:$0xff] %v1977_v59  ;;  %v1981_v61 = vld [vmem:[%s10592_s29 + $0x17d0] sm:$0xff] }
  0xd3   : > { %1980 = vst [vmem:[%s10597_s30 + $0xbe0] sm:$0xff] %v1979_v60  ;;  %v1983_v62 = vld [vmem:[%s10592_s29 + $0x17e0] sm:$0xff]  ;;  %v1985_v63 = vld [vmem:[%s10592_s29 + $0x17f0] sm:$0xff]  ;;  %1982 = vst [vmem:[%s10597_s30 + $0xbe8] sm:$0xff] %v1981_v61 }
  0xd4   : > { %1984 = vst [vmem:[%s10597_s30 + $0xbf0] sm:$0xff] %v1983_v62  ;;  %1986 = vst [vmem:[%s10597_s30 + $0xbf8] sm:$0xff] %v1985_v63  ;;  %v1987_v0 = vld [vmem:[%s10592_s29 + $0x1800] sm:$0xff]  ;;  %v1989_v1 = vld [vmem:[%s10592_s29 + $0x1810] sm:$0xff] }
  0xd5   : > { %v1991_v2 = vld [vmem:[%s10592_s29 + $0x1820] sm:$0xff]  ;;  %1988 = vst [vmem:[%s10597_s30 + $0xc00] sm:$0xff] %v1987_v0  ;;  %1990 = vst [vmem:[%s10597_s30 + $0xc08] sm:$0xff] %v1989_v1  ;;  %v1993_v3 = vld [vmem:[%s10592_s29 + $0x1830] sm:$0xff] }
  0xd6   : > { %1992 = vst [vmem:[%s10597_s30 + $0xc10] sm:$0xff] %v1991_v2  ;;  %v1995_v4 = vld [vmem:[%s10592_s29 + $0x1840] sm:$0xff]  ;;  %v1997_v5 = vld [vmem:[%s10592_s29 + $0x1850] sm:$0xff]  ;;  %1994 = vst [vmem:[%s10597_s30 + $0xc18] sm:$0xff] %v1993_v3 }
  0xd7   : > { %1996 = vst [vmem:[%s10597_s30 + $0xc20] sm:$0xff] %v1995_v4  ;;  %1998 = vst [vmem:[%s10597_s30 + $0xc28] sm:$0xff] %v1997_v5  ;;  %v1999_v6 = vld [vmem:[%s10592_s29 + $0x1860] sm:$0xff]  ;;  %v2001_v7 = vld [vmem:[%s10592_s29 + $0x1870] sm:$0xff] }
  0xd8   : > { %v2003_v8 = vld [vmem:[%s10592_s29 + $0x1880] sm:$0xff]  ;;  %2000 = vst [vmem:[%s10597_s30 + $0xc30] sm:$0xff] %v1999_v6  ;;  %2002 = vst [vmem:[%s10597_s30 + $0xc38] sm:$0xff] %v2001_v7  ;;  %v2005_v9 = vld [vmem:[%s10592_s29 + $0x1890] sm:$0xff] }
  0xd9   : > { %2004 = vst [vmem:[%s10597_s30 + $0xc40] sm:$0xff] %v2003_v8  ;;  %v2007_v10 = vld [vmem:[%s10592_s29 + $0x18a0] sm:$0xff]  ;;  %v2009_v11 = vld [vmem:[%s10592_s29 + $0x18b0] sm:$0xff]  ;;  %2006 = vst [vmem:[%s10597_s30 + $0xc48] sm:$0xff] %v2005_v9 }
  0xda   : > { %2008 = vst [vmem:[%s10597_s30 + $0xc50] sm:$0xff] %v2007_v10  ;;  %2010 = vst [vmem:[%s10597_s30 + $0xc58] sm:$0xff] %v2009_v11  ;;  %v2011_v12 = vld [vmem:[%s10592_s29 + $0x18c0] sm:$0xff]  ;;  %v2013_v13 = vld [vmem:[%s10592_s29 + $0x18d0] sm:$0xff] }
  0xdb   : > { %v2015_v14 = vld [vmem:[%s10592_s29 + $0x18e0] sm:$0xff]  ;;  %2012 = vst [vmem:[%s10597_s30 + $0xc60] sm:$0xff] %v2011_v12  ;;  %2014 = vst [vmem:[%s10597_s30 + $0xc68] sm:$0xff] %v2013_v13  ;;  %v2017_v15 = vld [vmem:[%s10592_s29 + $0x18f0] sm:$0xff] }
  0xdc   : > { %2016 = vst [vmem:[%s10597_s30 + $0xc70] sm:$0xff] %v2015_v14  ;;  %v2019_v16 = vld [vmem:[%s10592_s29 + $0x1900] sm:$0xff]  ;;  %v2021_v17 = vld [vmem:[%s10592_s29 + $0x1910] sm:$0xff]  ;;  %2018 = vst [vmem:[%s10597_s30 + $0xc78] sm:$0xff] %v2017_v15 }
  0xdd   : > { %2020 = vst [vmem:[%s10597_s30 + $0xc80] sm:$0xff] %v2019_v16  ;;  %2022 = vst [vmem:[%s10597_s30 + $0xc88] sm:$0xff] %v2021_v17  ;;  %v2023_v18 = vld [vmem:[%s10592_s29 + $0x1920] sm:$0xff]  ;;  %v2025_v19 = vld [vmem:[%s10592_s29 + $0x1930] sm:$0xff] }
  0xde   : > { %v2027_v20 = vld [vmem:[%s10592_s29 + $0x1940] sm:$0xff]  ;;  %2024 = vst [vmem:[%s10597_s30 + $0xc90] sm:$0xff] %v2023_v18  ;;  %2026 = vst [vmem:[%s10597_s30 + $0xc98] sm:$0xff] %v2025_v19  ;;  %v2029_v21 = vld [vmem:[%s10592_s29 + $0x1950] sm:$0xff] }
  0xdf   : > { %2028 = vst [vmem:[%s10597_s30 + $0xca0] sm:$0xff] %v2027_v20  ;;  %v2031_v22 = vld [vmem:[%s10592_s29 + $0x1960] sm:$0xff]  ;;  %v2033_v23 = vld [vmem:[%s10592_s29 + $0x1970] sm:$0xff]  ;;  %2030 = vst [vmem:[%s10597_s30 + $0xca8] sm:$0xff] %v2029_v21 }
  0xe0   : > { %2032 = vst [vmem:[%s10597_s30 + $0xcb0] sm:$0xff] %v2031_v22  ;;  %2034 = vst [vmem:[%s10597_s30 + $0xcb8] sm:$0xff] %v2033_v23  ;;  %v2035_v24 = vld [vmem:[%s10592_s29 + $0x1980] sm:$0xff]  ;;  %v2037_v25 = vld [vmem:[%s10592_s29 + $0x1990] sm:$0xff] }
  0xe1   : > { %v2039_v26 = vld [vmem:[%s10592_s29 + $0x19a0] sm:$0xff]  ;;  %2036 = vst [vmem:[%s10597_s30 + $0xcc0] sm:$0xff] %v2035_v24  ;;  %2038 = vst [vmem:[%s10597_s30 + $0xcc8] sm:$0xff] %v2037_v25  ;;  %v2041_v27 = vld [vmem:[%s10592_s29 + $0x19b0] sm:$0xff] }
  0xe2   : > { %2040 = vst [vmem:[%s10597_s30 + $0xcd0] sm:$0xff] %v2039_v26  ;;  %v2043_v28 = vld [vmem:[%s10592_s29 + $0x19c0] sm:$0xff]  ;;  %v2045_v29 = vld [vmem:[%s10592_s29 + $0x19d0] sm:$0xff]  ;;  %2042 = vst [vmem:[%s10597_s30 + $0xcd8] sm:$0xff] %v2041_v27 }
  0xe3   : > { %2044 = vst [vmem:[%s10597_s30 + $0xce0] sm:$0xff] %v2043_v28  ;;  %2046 = vst [vmem:[%s10597_s30 + $0xce8] sm:$0xff] %v2045_v29  ;;  %v2047_v30 = vld [vmem:[%s10592_s29 + $0x19e0] sm:$0xff]  ;;  %v2049_v31 = vld [vmem:[%s10592_s29 + $0x19f0] sm:$0xff] }
  0xe4   : > { %v2051_v32 = vld [vmem:[%s10592_s29 + $0x1a00] sm:$0xff]  ;;  %2048 = vst [vmem:[%s10597_s30 + $0xcf0] sm:$0xff] %v2047_v30  ;;  %2050 = vst [vmem:[%s10597_s30 + $0xcf8] sm:$0xff] %v2049_v31  ;;  %v2053_v33 = vld [vmem:[%s10592_s29 + $0x1a10] sm:$0xff] }
  0xe5   : > { %2052 = vst [vmem:[%s10597_s30 + $0xd00] sm:$0xff] %v2051_v32  ;;  %v2055_v34 = vld [vmem:[%s10592_s29 + $0x1a20] sm:$0xff]  ;;  %v2057_v35 = vld [vmem:[%s10592_s29 + $0x1a30] sm:$0xff]  ;;  %2054 = vst [vmem:[%s10597_s30 + $0xd08] sm:$0xff] %v2053_v33 }
  0xe6   : > { %2056 = vst [vmem:[%s10597_s30 + $0xd10] sm:$0xff] %v2055_v34  ;;  %2058 = vst [vmem:[%s10597_s30 + $0xd18] sm:$0xff] %v2057_v35  ;;  %v2059_v36 = vld [vmem:[%s10592_s29 + $0x1a40] sm:$0xff]  ;;  %v2061_v37 = vld [vmem:[%s10592_s29 + $0x1a50] sm:$0xff] }
  0xe7   : > { %v2063_v38 = vld [vmem:[%s10592_s29 + $0x1a60] sm:$0xff]  ;;  %2060 = vst [vmem:[%s10597_s30 + $0xd20] sm:$0xff] %v2059_v36  ;;  %2062 = vst [vmem:[%s10597_s30 + $0xd28] sm:$0xff] %v2061_v37  ;;  %v2065_v39 = vld [vmem:[%s10592_s29 + $0x1a70] sm:$0xff] }
  0xe8   : > { %2064 = vst [vmem:[%s10597_s30 + $0xd30] sm:$0xff] %v2063_v38  ;;  %v2067_v40 = vld [vmem:[%s10592_s29 + $0x1a80] sm:$0xff]  ;;  %v2069_v41 = vld [vmem:[%s10592_s29 + $0x1a90] sm:$0xff]  ;;  %2066 = vst [vmem:[%s10597_s30 + $0xd38] sm:$0xff] %v2065_v39 }
  0xe9   : > { %2068 = vst [vmem:[%s10597_s30 + $0xd40] sm:$0xff] %v2067_v40  ;;  %2070 = vst [vmem:[%s10597_s30 + $0xd48] sm:$0xff] %v2069_v41  ;;  %v2071_v42 = vld [vmem:[%s10592_s29 + $0x1aa0] sm:$0xff]  ;;  %v2073_v43 = vld [vmem:[%s10592_s29 + $0x1ab0] sm:$0xff] }
  0xea   : > { %v2075_v44 = vld [vmem:[%s10592_s29 + $0x1ac0] sm:$0xff]  ;;  %2072 = vst [vmem:[%s10597_s30 + $0xd50] sm:$0xff] %v2071_v42  ;;  %2074 = vst [vmem:[%s10597_s30 + $0xd58] sm:$0xff] %v2073_v43  ;;  %v2077_v45 = vld [vmem:[%s10592_s29 + $0x1ad0] sm:$0xff] }
  0xeb   : > { %2076 = vst [vmem:[%s10597_s30 + $0xd60] sm:$0xff] %v2075_v44  ;;  %v2079_v46 = vld [vmem:[%s10592_s29 + $0x1ae0] sm:$0xff]  ;;  %v2081_v47 = vld [vmem:[%s10592_s29 + $0x1af0] sm:$0xff]  ;;  %2078 = vst [vmem:[%s10597_s30 + $0xd68] sm:$0xff] %v2077_v45 }
  0xec   : > { %2080 = vst [vmem:[%s10597_s30 + $0xd70] sm:$0xff] %v2079_v46  ;;  %2082 = vst [vmem:[%s10597_s30 + $0xd78] sm:$0xff] %v2081_v47  ;;  %v2083_v48 = vld [vmem:[%s10592_s29 + $0x1b00] sm:$0xff]  ;;  %v2085_v49 = vld [vmem:[%s10592_s29 + $0x1b10] sm:$0xff] }
  0xed   : > { %v2087_v50 = vld [vmem:[%s10592_s29 + $0x1b20] sm:$0xff]  ;;  %2084 = vst [vmem:[%s10597_s30 + $0xd80] sm:$0xff] %v2083_v48  ;;  %2086 = vst [vmem:[%s10597_s30 + $0xd88] sm:$0xff] %v2085_v49  ;;  %v2089_v51 = vld [vmem:[%s10592_s29 + $0x1b30] sm:$0xff] }
  0xee   : > { %2088 = vst [vmem:[%s10597_s30 + $0xd90] sm:$0xff] %v2087_v50  ;;  %v2091_v52 = vld [vmem:[%s10592_s29 + $0x1b40] sm:$0xff]  ;;  %v2093_v53 = vld [vmem:[%s10592_s29 + $0x1b50] sm:$0xff]  ;;  %2090 = vst [vmem:[%s10597_s30 + $0xd98] sm:$0xff] %v2089_v51 }
  0xef   : > { %2092 = vst [vmem:[%s10597_s30 + $0xda0] sm:$0xff] %v2091_v52  ;;  %2094 = vst [vmem:[%s10597_s30 + $0xda8] sm:$0xff] %v2093_v53  ;;  %v2095_v54 = vld [vmem:[%s10592_s29 + $0x1b60] sm:$0xff]  ;;  %v2097_v55 = vld [vmem:[%s10592_s29 + $0x1b70] sm:$0xff] }
  0xf0   : > { %v2099_v56 = vld [vmem:[%s10592_s29 + $0x1b80] sm:$0xff]  ;;  %2096 = vst [vmem:[%s10597_s30 + $0xdb0] sm:$0xff] %v2095_v54  ;;  %2098 = vst [vmem:[%s10597_s30 + $0xdb8] sm:$0xff] %v2097_v55  ;;  %v2101_v57 = vld [vmem:[%s10592_s29 + $0x1b90] sm:$0xff] }
  0xf1   : > { %2100 = vst [vmem:[%s10597_s30 + $0xdc0] sm:$0xff] %v2099_v56  ;;  %v2103_v58 = vld [vmem:[%s10592_s29 + $0x1ba0] sm:$0xff]  ;;  %v2105_v59 = vld [vmem:[%s10592_s29 + $0x1bb0] sm:$0xff]  ;;  %2102 = vst [vmem:[%s10597_s30 + $0xdc8] sm:$0xff] %v2101_v57 }
  0xf2   : > { %2104 = vst [vmem:[%s10597_s30 + $0xdd0] sm:$0xff] %v2103_v58  ;;  %2106 = vst [vmem:[%s10597_s30 + $0xdd8] sm:$0xff] %v2105_v59  ;;  %v2107_v60 = vld [vmem:[%s10592_s29 + $0x1bc0] sm:$0xff]  ;;  %v2109_v61 = vld [vmem:[%s10592_s29 + $0x1bd0] sm:$0xff] }
  0xf3   : > { %v2111_v62 = vld [vmem:[%s10592_s29 + $0x1be0] sm:$0xff]  ;;  %2108 = vst [vmem:[%s10597_s30 + $0xde0] sm:$0xff] %v2107_v60  ;;  %2110 = vst [vmem:[%s10597_s30 + $0xde8] sm:$0xff] %v2109_v61  ;;  %v2113_v63 = vld [vmem:[%s10592_s29 + $0x1bf0] sm:$0xff] }
  0xf4   : > { %2112 = vst [vmem:[%s10597_s30 + $0xdf0] sm:$0xff] %v2111_v62  ;;  %v2115_v0 = vld [vmem:[%s10592_s29 + $0x1c00] sm:$0xff]  ;;  %v2117_v1 = vld [vmem:[%s10592_s29 + $0x1c10] sm:$0xff]  ;;  %2114 = vst [vmem:[%s10597_s30 + $0xdf8] sm:$0xff] %v2113_v63 }
  0xf5   : > { %2116 = vst [vmem:[%s10597_s30 + $0xe00] sm:$0xff] %v2115_v0  ;;  %2118 = vst [vmem:[%s10597_s30 + $0xe08] sm:$0xff] %v2117_v1  ;;  %v2119_v2 = vld [vmem:[%s10592_s29 + $0x1c20] sm:$0xff]  ;;  %v2121_v3 = vld [vmem:[%s10592_s29 + $0x1c30] sm:$0xff] }
  0xf6   : > { %v2123_v4 = vld [vmem:[%s10592_s29 + $0x1c40] sm:$0xff]  ;;  %2120 = vst [vmem:[%s10597_s30 + $0xe10] sm:$0xff] %v2119_v2  ;;  %2122 = vst [vmem:[%s10597_s30 + $0xe18] sm:$0xff] %v2121_v3  ;;  %v2125_v5 = vld [vmem:[%s10592_s29 + $0x1c50] sm:$0xff] }
  0xf7   : > { %2124 = vst [vmem:[%s10597_s30 + $0xe20] sm:$0xff] %v2123_v4  ;;  %v2127_v6 = vld [vmem:[%s10592_s29 + $0x1c60] sm:$0xff]  ;;  %v2129_v7 = vld [vmem:[%s10592_s29 + $0x1c70] sm:$0xff]  ;;  %2126 = vst [vmem:[%s10597_s30 + $0xe28] sm:$0xff] %v2125_v5 }
  0xf8   : > { %2128 = vst [vmem:[%s10597_s30 + $0xe30] sm:$0xff] %v2127_v6  ;;  %2130 = vst [vmem:[%s10597_s30 + $0xe38] sm:$0xff] %v2129_v7  ;;  %v2131_v8 = vld [vmem:[%s10592_s29 + $0x1c80] sm:$0xff]  ;;  %v2133_v9 = vld [vmem:[%s10592_s29 + $0x1c90] sm:$0xff] }
  0xf9   : > { %v2135_v10 = vld [vmem:[%s10592_s29 + $0x1ca0] sm:$0xff]  ;;  %2132 = vst [vmem:[%s10597_s30 + $0xe40] sm:$0xff] %v2131_v8  ;;  %2134 = vst [vmem:[%s10597_s30 + $0xe48] sm:$0xff] %v2133_v9  ;;  %v2137_v11 = vld [vmem:[%s10592_s29 + $0x1cb0] sm:$0xff] }
  0xfa   : > { %2136 = vst [vmem:[%s10597_s30 + $0xe50] sm:$0xff] %v2135_v10  ;;  %v2139_v12 = vld [vmem:[%s10592_s29 + $0x1cc0] sm:$0xff]  ;;  %v2141_v13 = vld [vmem:[%s10592_s29 + $0x1cd0] sm:$0xff]  ;;  %2138 = vst [vmem:[%s10597_s30 + $0xe58] sm:$0xff] %v2137_v11 }
  0xfb   : > { %2140 = vst [vmem:[%s10597_s30 + $0xe60] sm:$0xff] %v2139_v12  ;;  %2142 = vst [vmem:[%s10597_s30 + $0xe68] sm:$0xff] %v2141_v13  ;;  %v2143_v14 = vld [vmem:[%s10592_s29 + $0x1ce0] sm:$0xff]  ;;  %v2145_v15 = vld [vmem:[%s10592_s29 + $0x1cf0] sm:$0xff] }
  0xfc   : > { %v2147_v16 = vld [vmem:[%s10592_s29 + $0x1d00] sm:$0xff]  ;;  %2144 = vst [vmem:[%s10597_s30 + $0xe70] sm:$0xff] %v2143_v14  ;;  %2146 = vst [vmem:[%s10597_s30 + $0xe78] sm:$0xff] %v2145_v15  ;;  %v2149_v17 = vld [vmem:[%s10592_s29 + $0x1d10] sm:$0xff] }
  0xfd   : > { %2148 = vst [vmem:[%s10597_s30 + $0xe80] sm:$0xff] %v2147_v16  ;;  %v2151_v18 = vld [vmem:[%s10592_s29 + $0x1d20] sm:$0xff]  ;;  %v2153_v19 = vld [vmem:[%s10592_s29 + $0x1d30] sm:$0xff]  ;;  %2150 = vst [vmem:[%s10597_s30 + $0xe88] sm:$0xff] %v2149_v17 }
  0xfe   : > { %2152 = vst [vmem:[%s10597_s30 + $0xe90] sm:$0xff] %v2151_v18  ;;  %2154 = vst [vmem:[%s10597_s30 + $0xe98] sm:$0xff] %v2153_v19  ;;  %v2155_v20 = vld [vmem:[%s10592_s29 + $0x1d40] sm:$0xff]  ;;  %v2157_v21 = vld [vmem:[%s10592_s29 + $0x1d50] sm:$0xff] }
  0xff   : > { %v2159_v22 = vld [vmem:[%s10592_s29 + $0x1d60] sm:$0xff]  ;;  %2156 = vst [vmem:[%s10597_s30 + $0xea0] sm:$0xff] %v2155_v20  ;;  %2158 = vst [vmem:[%s10597_s30 + $0xea8] sm:$0xff] %v2157_v21  ;;  %v2161_v23 = vld [vmem:[%s10592_s29 + $0x1d70] sm:$0xff] }
 0x100   : > { %2160 = vst [vmem:[%s10597_s30 + $0xeb0] sm:$0xff] %v2159_v22  ;;  %v2163_v24 = vld [vmem:[%s10592_s29 + $0x1d80] sm:$0xff]  ;;  %v2165_v25 = vld [vmem:[%s10592_s29 + $0x1d90] sm:$0xff]  ;;  %2162 = vst [vmem:[%s10597_s30 + $0xeb8] sm:$0xff] %v2161_v23 }
 0x101   : > { %2164 = vst [vmem:[%s10597_s30 + $0xec0] sm:$0xff] %v2163_v24  ;;  %2166 = vst [vmem:[%s10597_s30 + $0xec8] sm:$0xff] %v2165_v25  ;;  %v2167_v26 = vld [vmem:[%s10592_s29 + $0x1da0] sm:$0xff]  ;;  %v2169_v27 = vld [vmem:[%s10592_s29 + $0x1db0] sm:$0xff] }
 0x102   : > { %v2171_v28 = vld [vmem:[%s10592_s29 + $0x1dc0] sm:$0xff]  ;;  %2168 = vst [vmem:[%s10597_s30 + $0xed0] sm:$0xff] %v2167_v26  ;;  %2170 = vst [vmem:[%s10597_s30 + $0xed8] sm:$0xff] %v2169_v27  ;;  %v2173_v29 = vld [vmem:[%s10592_s29 + $0x1dd0] sm:$0xff] }
 0x103   : > { %2172 = vst [vmem:[%s10597_s30 + $0xee0] sm:$0xff] %v2171_v28  ;;  %v2175_v30 = vld [vmem:[%s10592_s29 + $0x1de0] sm:$0xff]  ;;  %v2177_v31 = vld [vmem:[%s10592_s29 + $0x1df0] sm:$0xff]  ;;  %2174 = vst [vmem:[%s10597_s30 + $0xee8] sm:$0xff] %v2173_v29 }
 0x104   : > { %2176 = vst [vmem:[%s10597_s30 + $0xef0] sm:$0xff] %v2175_v30  ;;  %2178 = vst [vmem:[%s10597_s30 + $0xef8] sm:$0xff] %v2177_v31  ;;  %v2179_v32 = vld [vmem:[%s10592_s29 + $0x1e00] sm:$0xff]  ;;  %v2181_v33 = vld [vmem:[%s10592_s29 + $0x1e10] sm:$0xff] }
 0x105   : > { %v2183_v34 = vld [vmem:[%s10592_s29 + $0x1e20] sm:$0xff]  ;;  %2180 = vst [vmem:[%s10597_s30 + $0xf00] sm:$0xff] %v2179_v32  ;;  %2182 = vst [vmem:[%s10597_s30 + $0xf08] sm:$0xff] %v2181_v33  ;;  %v2185_v35 = vld [vmem:[%s10592_s29 + $0x1e30] sm:$0xff] }
 0x106   : > { %2184 = vst [vmem:[%s10597_s30 + $0xf10] sm:$0xff] %v2183_v34  ;;  %v2187_v36 = vld [vmem:[%s10592_s29 + $0x1e40] sm:$0xff]  ;;  %v2189_v37 = vld [vmem:[%s10592_s29 + $0x1e50] sm:$0xff]  ;;  %2186 = vst [vmem:[%s10597_s30 + $0xf18] sm:$0xff] %v2185_v35 }
 0x107   : > { %2188 = vst [vmem:[%s10597_s30 + $0xf20] sm:$0xff] %v2187_v36  ;;  %2190 = vst [vmem:[%s10597_s30 + $0xf28] sm:$0xff] %v2189_v37  ;;  %v2191_v38 = vld [vmem:[%s10592_s29 + $0x1e60] sm:$0xff]  ;;  %v2193_v39 = vld [vmem:[%s10592_s29 + $0x1e70] sm:$0xff] }
 0x108   : > { %v2195_v40 = vld [vmem:[%s10592_s29 + $0x1e80] sm:$0xff]  ;;  %2192 = vst [vmem:[%s10597_s30 + $0xf30] sm:$0xff] %v2191_v38  ;;  %2194 = vst [vmem:[%s10597_s30 + $0xf38] sm:$0xff] %v2193_v39  ;;  %v2197_v41 = vld [vmem:[%s10592_s29 + $0x1e90] sm:$0xff] }
 0x109   : > { %2196 = vst [vmem:[%s10597_s30 + $0xf40] sm:$0xff] %v2195_v40  ;;  %v2199_v42 = vld [vmem:[%s10592_s29 + $0x1ea0] sm:$0xff]  ;;  %v2201_v43 = vld [vmem:[%s10592_s29 + $0x1eb0] sm:$0xff]  ;;  %2198 = vst [vmem:[%s10597_s30 + $0xf48] sm:$0xff] %v2197_v41 }
 0x10a   : > { %2200 = vst [vmem:[%s10597_s30 + $0xf50] sm:$0xff] %v2199_v42  ;;  %2202 = vst [vmem:[%s10597_s30 + $0xf58] sm:$0xff] %v2201_v43  ;;  %v2203_v44 = vld [vmem:[%s10592_s29 + $0x1ec0] sm:$0xff]  ;;  %v2205_v45 = vld [vmem:[%s10592_s29 + $0x1ed0] sm:$0xff] }
 0x10b   : > { %v2207_v46 = vld [vmem:[%s10592_s29 + $0x1ee0] sm:$0xff]  ;;  %2204 = vst [vmem:[%s10597_s30 + $0xf60] sm:$0xff] %v2203_v44  ;;  %2206 = vst [vmem:[%s10597_s30 + $0xf68] sm:$0xff] %v2205_v45  ;;  %v2209_v47 = vld [vmem:[%s10592_s29 + $0x1ef0] sm:$0xff] }
 0x10c   : > { %2208 = vst [vmem:[%s10597_s30 + $0xf70] sm:$0xff] %v2207_v46  ;;  %v2211_v48 = vld [vmem:[%s10592_s29 + $0x1f00] sm:$0xff]  ;;  %v2213_v49 = vld [vmem:[%s10592_s29 + $0x1f10] sm:$0xff]  ;;  %2210 = vst [vmem:[%s10597_s30 + $0xf78] sm:$0xff] %v2209_v47 }
 0x10d   : > { %2212 = vst [vmem:[%s10597_s30 + $0xf80] sm:$0xff] %v2211_v48  ;;  %2214 = vst [vmem:[%s10597_s30 + $0xf88] sm:$0xff] %v2213_v49  ;;  %v2215_v50 = vld [vmem:[%s10592_s29 + $0x1f20] sm:$0xff]  ;;  %v2217_v51 = vld [vmem:[%s10592_s29 + $0x1f30] sm:$0xff] }
 0x10e   : > { %v2219_v52 = vld [vmem:[%s10592_s29 + $0x1f40] sm:$0xff]  ;;  %2216 = vst [vmem:[%s10597_s30 + $0xf90] sm:$0xff] %v2215_v50  ;;  %2218 = vst [vmem:[%s10597_s30 + $0xf98] sm:$0xff] %v2217_v51  ;;  %v2221_v53 = vld [vmem:[%s10592_s29 + $0x1f50] sm:$0xff] }
 0x10f   : > { %2220 = vst [vmem:[%s10597_s30 + $0xfa0] sm:$0xff] %v2219_v52  ;;  %v2223_v54 = vld [vmem:[%s10592_s29 + $0x1f60] sm:$0xff]  ;;  %v2225_v55 = vld [vmem:[%s10592_s29 + $0x1f70] sm:$0xff]  ;;  %2222 = vst [vmem:[%s10597_s30 + $0xfa8] sm:$0xff] %v2221_v53 }
 0x110   : > { %2224 = vst [vmem:[%s10597_s30 + $0xfb0] sm:$0xff] %v2223_v54  ;;  %2226 = vst [vmem:[%s10597_s30 + $0xfb8] sm:$0xff] %v2225_v55  ;;  %v2227_v56 = vld [vmem:[%s10592_s29 + $0x1f80] sm:$0xff]  ;;  %v2229_v57 = vld [vmem:[%s10592_s29 + $0x1f90] sm:$0xff] }
 0x111   : > { %v2231_v58 = vld [vmem:[%s10592_s29 + $0x1fa0] sm:$0xff]  ;;  %2228 = vst [vmem:[%s10597_s30 + $0xfc0] sm:$0xff] %v2227_v56  ;;  %2230 = vst [vmem:[%s10597_s30 + $0xfc8] sm:$0xff] %v2229_v57  ;;  %v2233_v59 = vld [vmem:[%s10592_s29 + $0x1fb0] sm:$0xff] }
 0x112   : > { %2232 = vst [vmem:[%s10597_s30 + $0xfd0] sm:$0xff] %v2231_v58  ;;  %v2235_v60 = vld [vmem:[%s10592_s29 + $0x1fc0] sm:$0xff]  ;;  %v2237_v61 = vld [vmem:[%s10592_s29 + $0x1fd0] sm:$0xff]  ;;  %2234 = vst [vmem:[%s10597_s30 + $0xfd8] sm:$0xff] %v2233_v59 }
 0x113   : > { %2236 = vst [vmem:[%s10597_s30 + $0xfe0] sm:$0xff] %v2235_v60  ;;  %2238 = vst [vmem:[%s10597_s30 + $0xfe8] sm:$0xff] %v2237_v61  ;;  %v2239_v62 = vld [vmem:[%s10592_s29 + $0x1fe0] sm:$0xff]  ;;  %v2241_v63 = vld [vmem:[%s10592_s29 + $0x1ff0] sm:$0xff] }
 0x114   : > { %2240 = vst [vmem:[%s10597_s30 + $0xff0] sm:$0xff] %v2239_v62  ;;  %2242 = vst [vmem:[%s10597_s30 + $0xff8] sm:$0xff] %v2241_v63 }
 0x115 PF: > { %p8990_p7 = scmp.ge.s32.totalorder %s10524_s17, 1  ;;  %p4347_p8 = scmp.lt.s32.totalorder %s10524_s17, 3 }
 0x117   : > { %p4348_p9 = pnand %p8990_p7, %p4347_p8 }
 0x118   : > { %s4354_s5 = sand.u32 (!%p4348_p9), 1, %s10516_s15   ;;  %v11626_v0 = vld [vmem:[%s12490_s0] sm:$0xff] (!%p4348_p9) }
 0x119   : > { %4351 = sbr.rel (%p4348_p9) target bundleno = 1096 (0x448), region = 84  ;;  %v11631_v1 = vld [vmem:[%s12490_s0 + $0x80] sm:$0xff] (!%p4348_p9)  ;;  %s8991_s12 = sshll.u32 (!%p4348_p9), %s4354_s5, 12 }
 0x11a   : > { %v11636_v2 = vld [vmem:[%s12490_s0 + $0x40] sm:$0xff] (!%p4348_p9)  ;;  %v8995_v3 = vcombine.low (!%p4348_p9), %v11626_v0, %v11631_v1  ;;  %v8996_v4 = vcombine.high (!%p4348_p9), %v11626_v0, %v11631_v1  ;;  %s11653_s17 = scalar_lea.vmem (!%p4348_p9), [#allocation2], %s8991_s12  ;;  %s8992_s20 = sshll.u32 (!%p4348_p9), %s4354_s5, 5 }
 0x11b   : > { %v11647_v5 = vld [vmem:[%s12490_s0 + $0xc0] sm:$0xff] (!%p4348_p9)  ;;  %v9736_v12 = vld [vmem:[%s11653_s17 + $0x14] ss:$8 sps:$4 sm:$0xff] (!%p4348_p9)   ;;  %v9740_v14 = vld [vmem:[%s11653_s17 + $0x10] ss:$8 sps:$4 sm:$0xff] (!%p4348_p9)   ;;  %s4385_s21 = scalar_lea.vmem (!%p4348_p9), [#allocation3], %s8992_s20 }
 0x11c   : > { %v9011_v6 = vcombine.low (!%p4348_p9), %v11636_v2, %v11647_v5  ;;  %v9012_v7 = vcombine.high (!%p4348_p9), %v11636_v2, %v11647_v5  ;;  %v9730_v8 = vld [vmem:[%s11653_s17 + $0x4] ss:$8 sps:$4 sm:$0xff] (!%p4348_p9)   ;;  %7886 = vmatprep.mubr.bf16.mxu1 (!%p4348_p9), %v8996_v4  ;;  %v9734_v10 = vld [vmem:[%s11653_s17] ss:$8 sps:$4 sm:$0xff] (!%p4348_p9)   ;;  %v9738_v13 = vld [vmem:[%s11653_s17 + $0x814] ss:$8 sps:$4 sm:$0xff] (!%p4348_p9)  }
 0x11d   : > { %v9732_v9 = vld [vmem:[%s11653_s17 + $0x804] ss:$8 sps:$4 sm:$0xff] (!%p4348_p9)   ;;  %7854 = vmatprep.subr.bf16.mxu1 (!%p4348_p9), %v9730_v8  ;;  %v9735_v11 = vld [vmem:[%s11653_s17 + $0x800] ss:$8 sps:$4 sm:$0xff] (!%p4348_p9)   ;;  %v9741_v15 = vld [vmem:[%s11653_s17 + $0x810] ss:$8 sps:$4 sm:$0xff] (!%p4348_p9)  }
 0x11e   : > { %8310 = vmatprep.mubr.bf16.mxu0 (!%p4348_p9), %v9012_v7  ;;  %8278 = vmatprep.subr.bf16.mxu0 (!%p4348_p9), %v9732_v9  ;;  %v9742_v16 = vld [vmem:[%s11653_s17 + $0x24] ss:$8 sps:$4 sm:$0xff] (!%p4348_p9)   ;;  %v9746_v18 = vld [vmem:[%s11653_s17 + $0x20] ss:$8 sps:$4 sm:$0xff] (!%p4348_p9)   ;;  %v9748_v20 = vld [vmem:[%s11653_s17 + $0x34] ss:$8 sps:$4 sm:$0xff] (!%p4348_p9)  }
 0x11f   : > { %7855 = vmatpush1.bf16.msra.mxu1 (!%p4348_p9), %v9734_v10  ;;  %8279 = vmatpush1.bf16.msra.mxu0 (!%p4348_p9), %v9735_v11  ;;  %v9744_v17 = vld [vmem:[%s11653_s17 + $0x824] ss:$8 sps:$4 sm:$0xff] (!%p4348_p9)   ;;  %v9747_v19 = vld [vmem:[%s11653_s17 + $0x820] ss:$8 sps:$4 sm:$0xff] (!%p4348_p9)   ;;  %v9750_v21 = vld [vmem:[%s11653_s17 + $0x834] ss:$8 sps:$4 sm:$0xff] (!%p4348_p9)  }
 0x120   : > { %7856 = vmatprep.subr.bf16.mxu1 %v9736_v12  ;;  %8280 = vmatprep.subr.bf16.mxu0 %v9738_v13  ;;  %v9752_v22 = vld [vmem:[%s11653_s17 + $0x30] ss:$8 sps:$4 sm:$0xff]   ;;  %v9754_v24 = vld [vmem:[%s11653_s17 + $0x44] ss:$8 sps:$4 sm:$0xff]   ;;  %v9758_v26 = vld [vmem:[%s11653_s17 + $0x40] ss:$8 sps:$4 sm:$0xff]  }
 0x121   : > { %v9753_v23 = vld [vmem:[%s11653_s17 + $0x830] ss:$8 sps:$4 sm:$0xff]   ;;  %v9756_v25 = vld [vmem:[%s11653_s17 + $0x844] ss:$8 sps:$4 sm:$0xff]   ;;  %v9759_v27 = vld [vmem:[%s11653_s17 + $0x840] ss:$8 sps:$4 sm:$0xff]  }
 0x122   : > { %v9760_v28 = vld [vmem:[%s11653_s17 + $0x54] ss:$8 sps:$4 sm:$0xff]   ;;  %v9764_v30 = vld [vmem:[%s11653_s17 + $0x50] ss:$8 sps:$4 sm:$0xff]   ;;  %v9766_v32 = vld [vmem:[%s11653_s17 + $0x64] ss:$8 sps:$4 sm:$0xff]  }
 0x123   : > { %7857 = vmatpush1.bf16.msra.mxu1 %v9740_v14  ;;  %8281 = vmatpush1.bf16.msra.mxu0 %v9741_v15  ;;  %v9762_v29 = vld [vmem:[%s11653_s17 + $0x854] ss:$8 sps:$4 sm:$0xff]   ;;  %v9765_v31 = vld [vmem:[%s11653_s17 + $0x850] ss:$8 sps:$4 sm:$0xff]   ;;  %v9768_v33 = vld [vmem:[%s11653_s17 + $0x864] ss:$8 sps:$4 sm:$0xff]  }
 0x124   : > { %7858 = vmatprep.subr.bf16.mxu1 %v9742_v16  ;;  %8282 = vmatprep.subr.bf16.mxu0 %v9744_v17  ;;  %v9770_v34 = vld [vmem:[%s11653_s17 + $0x60] ss:$8 sps:$4 sm:$0xff]   ;;  %v9772_v36 = vld [vmem:[%s11653_s17 + $0x74] ss:$8 sps:$4 sm:$0xff]   ;;  %v9776_v38 = vld [vmem:[%s11653_s17 + $0x70] ss:$8 sps:$4 sm:$0xff]  }
 0x125   : > { %v9771_v35 = vld [vmem:[%s11653_s17 + $0x860] ss:$8 sps:$4 sm:$0xff]   ;;  %v9774_v37 = vld [vmem:[%s11653_s17 + $0x874] ss:$8 sps:$4 sm:$0xff]   ;;  %v9777_v39 = vld [vmem:[%s11653_s17 + $0x870] ss:$8 sps:$4 sm:$0xff]  }
 0x126   : > { %v9778_v40 = vld [vmem:[%s11653_s17 + $0x84] ss:$8 sps:$4 sm:$0xff]   ;;  %v9782_v42 = vld [vmem:[%s11653_s17 + $0x80] ss:$8 sps:$4 sm:$0xff]   ;;  %v9784_v44 = vld [vmem:[%s11653_s17 + $0x94] ss:$8 sps:$4 sm:$0xff]  }
 0x127   : > { %7859 = vmatpush1.bf16.msra.mxu1 %v9746_v18  ;;  %8283 = vmatpush1.bf16.msra.mxu0 %v9747_v19  ;;  %v9780_v41 = vld [vmem:[%s11653_s17 + $0x884] ss:$8 sps:$4 sm:$0xff]   ;;  %v9783_v43 = vld [vmem:[%s11653_s17 + $0x880] ss:$8 sps:$4 sm:$0xff]   ;;  %v9786_v45 = vld [vmem:[%s11653_s17 + $0x894] ss:$8 sps:$4 sm:$0xff]  }
 0x128   : > { %7860 = vmatprep.subr.bf16.mxu1 %v9748_v20  ;;  %8284 = vmatprep.subr.bf16.mxu0 %v9750_v21  ;;  %v9788_v46 = vld [vmem:[%s11653_s17 + $0x90] ss:$8 sps:$4 sm:$0xff]   ;;  %v9790_v48 = vld [vmem:[%s11653_s17 + $0xa4] ss:$8 sps:$4 sm:$0xff]   ;;  %v9794_v50 = vld [vmem:[%s11653_s17 + $0xa0] ss:$8 sps:$4 sm:$0xff]  }
 0x129   : > { %v9789_v47 = vld [vmem:[%s11653_s17 + $0x890] ss:$8 sps:$4 sm:$0xff]   ;;  %v9792_v49 = vld [vmem:[%s11653_s17 + $0x8a4] ss:$8 sps:$4 sm:$0xff]   ;;  %v9795_v51 = vld [vmem:[%s11653_s17 + $0x8a0] ss:$8 sps:$4 sm:$0xff]  }
 0x12a   : > { %v9796_v52 = vld [vmem:[%s11653_s17 + $0xb4] ss:$8 sps:$4 sm:$0xff]   ;;  %v9800_v54 = vld [vmem:[%s11653_s17 + $0xb0] ss:$8 sps:$4 sm:$0xff]   ;;  %v9802_v56 = vld [vmem:[%s11653_s17 + $0xc4] ss:$8 sps:$4 sm:$0xff]  }
 0x12b   : > { %7861 = vmatpush1.bf16.msra.mxu1 %v9752_v22  ;;  %8285 = vmatpush1.bf16.msra.mxu0 %v9753_v23  ;;  %v9798_v53 = vld [vmem:[%s11653_s17 + $0x8b4] ss:$8 sps:$4 sm:$0xff]   ;;  %v9801_v55 = vld [vmem:[%s11653_s17 + $0x8b0] ss:$8 sps:$4 sm:$0xff]   ;;  %v9804_v57 = vld [vmem:[%s11653_s17 + $0x8c4] ss:$8 sps:$4 sm:$0xff]  }
 0x12c   : > { %7862 = vmatprep.subr.bf16.mxu1 %v9754_v24  ;;  %8286 = vmatprep.subr.bf16.mxu0 %v9756_v25  ;;  %v9806_v58 = vld [vmem:[%s11653_s17 + $0xc0] ss:$8 sps:$4 sm:$0xff]   ;;  %v9808_v60 = vld [vmem:[%s11653_s17 + $0xd4] ss:$8 sps:$4 sm:$0xff]   ;;  %v9812_v62 = vld [vmem:[%s11653_s17 + $0xd0] ss:$8 sps:$4 sm:$0xff]  }
 0x12d   : > { %v9807_v59 = vld [vmem:[%s11653_s17 + $0x8c0] ss:$8 sps:$4 sm:$0xff]   ;;  %v9810_v61 = vld [vmem:[%s11653_s17 + $0x8d4] ss:$8 sps:$4 sm:$0xff]   ;;  %v9813_v63 = vld [vmem:[%s11653_s17 + $0x8d0] ss:$8 sps:$4 sm:$0xff]  }
 0x12e   : > { %v9814_v4 = vld [vmem:[%s11653_s17 + $0xe4] ss:$8 sps:$4 sm:$0xff]   ;;  %v9818_v8 = vld [vmem:[%s11653_s17 + $0xe0] ss:$8 sps:$4 sm:$0xff]   ;;  %v9820_v10 = vld [vmem:[%s11653_s17 + $0xf4] ss:$8 sps:$4 sm:$0xff]  }
 0x12f   : > { %7863 = vmatpush1.bf16.msra.mxu1 %v9758_v26  ;;  %8287 = vmatpush1.bf16.msra.mxu0 %v9759_v27  ;;  %v9816_v7 = vld [vmem:[%s11653_s17 + $0x8e4] ss:$8 sps:$4 sm:$0xff]   ;;  %v9819_v9 = vld [vmem:[%s11653_s17 + $0x8e0] ss:$8 sps:$4 sm:$0xff]   ;;  %v9822_v11 = vld [vmem:[%s11653_s17 + $0x8f4] ss:$8 sps:$4 sm:$0xff]  }
 0x130   : > { %7864 = vmatprep.subr.bf16.mxu1 %v9760_v28  ;;  %8288 = vmatprep.subr.bf16.mxu0 %v9762_v29  ;;  %v9824_v12 = vld [vmem:[%s11653_s17 + $0xf0] ss:$8 sps:$4 sm:$0xff]   ;;  %v9828_v14 = vld [vmem:[%s11653_s17 + $0x104] ss:$8 sps:$4 sm:$0xff]   ;;  %v9826_v20 = vld [vmem:[%s11653_s17 + $0x100] ss:$8 sps:$4 sm:$0xff]  }
 0x131   : > { %v9825_v13 = vld [vmem:[%s11653_s17 + $0x8f0] ss:$8 sps:$4 sm:$0xff]   ;;  %v9831_v15 = vld [vmem:[%s11653_s17 + $0x904] ss:$8 sps:$4 sm:$0xff]   ;;  %v9829_v21 = vld [vmem:[%s11653_s17 + $0x900] ss:$8 sps:$4 sm:$0xff]  }
 0x132   : > { %v4430_v16 = vld [vmem:[%s12490_s0 + $0x100] sm:$0xff]  ;;  %v9834_v22 = vld [vmem:[%s11653_s17 + $0x114] ss:$8 sps:$4 sm:$0xff]   ;;  %v9832_v26 = vld [vmem:[%s11653_s17 + $0x110] ss:$8 sps:$4 sm:$0xff]   ;;  %s9585_s15 = sshll.u32 (%p10582_p5), %s10567_s18, 3 }
 0x133   : > { %7865 = vmatpush1.bf16.msra.mxu1 %v9764_v30  ;;  %8289 = vmatpush1.bf16.msra.mxu0 %v9765_v31  ;;  %v4446_v17 = vld [vmem:[%s12490_s0 + $0x180] sm:$0xff]  ;;  %v9837_v23 = vld [vmem:[%s11653_s17 + $0x914] ss:$8 sps:$4 sm:$0xff]   ;;  %v9835_v27 = vld [vmem:[%s11653_s17 + $0x910] ss:$8 sps:$4 sm:$0xff]   ;;  %s8855_s25 = scalar_lea.vmem (%p10582_p5), %s12494_s4, %s9585_s15 }
 0x134   : > { %7866 = vmatprep.subr.bf16.mxu1 %v9766_v32  ;;  %8290 = vmatprep.subr.bf16.mxu0 %v9768_v33  ;;  %v4438_v18 = vld [vmem:[%s12490_s0 + $0x140] sm:$0xff]  ;;  %v9028_v24 = vcombine.high %v4430_v16, %v4446_v17  ;;  %v9846_v5 = vld [vmem:[%s11653_s17 + $0x134] ss:$8 sps:$4 sm:$0xff]   ;;  %v9844_v30 = vld [vmem:[%s11653_s17 + $0x130] ss:$8 sps:$4 sm:$0xff]  }
 0x135   : > { %v4454_v19 = vld [vmem:[%s12490_s0 + $0x1c0] sm:$0xff]  ;;  %v9847_v31 = vld [vmem:[%s11653_s17 + $0x930] ss:$8 sps:$4 sm:$0xff]  }
 0x136   : > { %v9044_v25 = vcombine.high %v4438_v18, %v4454_v19  ;;  %v9840_v28 = vld [vmem:[%s11653_s17 + $0x124] ss:$8 sps:$4 sm:$0xff]   ;;  %v9838_v0 = vld [vmem:[%s11653_s17 + $0x120] ss:$8 sps:$4 sm:$0xff]   ;;  %v9043_v2 = vcombine.low %v4438_v18, %v4454_v19  ;;  %v9904_v18 = vld [vmem:[%s11653_s17 + $0x1d0] ss:$8 sps:$4 sm:$0xff]  }
 0x137   : > { %7867 = vmatpush1.bf16.msra.mxu1 %v9770_v34  ;;  %8291 = vmatpush1.bf16.msra.mxu0 %v9771_v35  ;;  %v9843_v29 = vld [vmem:[%s11653_s17 + $0x924] ss:$8 sps:$4 sm:$0xff]   ;;  %v9841_v1 = vld [vmem:[%s11653_s17 + $0x920] ss:$8 sps:$4 sm:$0xff]   ;;  %v9907_v19 = vld [vmem:[%s11653_s17 + $0x9d0] ss:$8 sps:$4 sm:$0xff]  }
 0x138   : > { %7868 = vmatprep.subr.bf16.mxu1 %v9772_v36  ;;  %8292 = vmatprep.subr.bf16.mxu0 %v9774_v37  ;;  %v9852_v32 = vld [vmem:[%s11653_s17 + $0x144] ss:$8 sps:$4 sm:$0xff]   ;;  %v9850_v34 = vld [vmem:[%s11653_s17 + $0x140] ss:$8 sps:$4 sm:$0xff]   ;;  %v9858_v36 = vld [vmem:[%s11653_s17 + $0x154] ss:$8 sps:$4 sm:$0xff]  }
 0x139   : > { %v9855_v33 = vld [vmem:[%s11653_s17 + $0x944] ss:$8 sps:$4 sm:$0xff]   ;;  %v9853_v35 = vld [vmem:[%s11653_s17 + $0x940] ss:$8 sps:$4 sm:$0xff]   ;;  %v9861_v37 = vld [vmem:[%s11653_s17 + $0x954] ss:$8 sps:$4 sm:$0xff]  }
 0x13b   : > { %7869 = vmatpush1.bf16.msra.mxu1 %v9776_v38  ;;  %8293 = vmatpush1.bf16.msra.mxu0 %v9777_v39  ;;  %v9856_v38 = vld [vmem:[%s11653_s17 + $0x150] ss:$8 sps:$4 sm:$0xff]  }
 0x13c   : > { %7870 = vmatprep.subr.bf16.mxu1 %v9778_v40  ;;  %8294 = vmatprep.subr.bf16.mxu0 %v9780_v41  ;;  %v9859_v39 = vld [vmem:[%s11653_s17 + $0x950] ss:$8 sps:$4 sm:$0xff]   ;;  %v9864_v40 = vld [vmem:[%s11653_s17 + $0x164] ss:$8 sps:$4 sm:$0xff]  }
 0x13d   : > { %v9867_v41 = vld [vmem:[%s11653_s17 + $0x964] ss:$8 sps:$4 sm:$0xff]  }
 0x13f   : > { %7871 = vmatpush1.bf16.msra.mxu1 %v9782_v42  ;;  %8295 = vmatpush1.bf16.msra.mxu0 %v9783_v43  ;;  %v11766_v42 = vld [vmem:[%s12490_s0 + $0x8] sm:$0xff] }
 0x140   : > { %7872 = vmatprep.subr.bf16.mxu1 %v9784_v44  ;;  %8296 = vmatprep.subr.bf16.mxu0 %v9786_v45  ;;  %v11771_v43 = vld [vmem:[%s12490_s0 + $0x88] sm:$0xff] }
 0x141   : > { %v9862_v44 = vld [vmem:[%s11653_s17 + $0x160] ss:$8 sps:$4 sm:$0xff]   ;;  %v8998_v45 = vcombine.high %v11766_v42, %v11771_v43 }
 0x143   : > { %7873 = vmatpush1.bf16.msra.mxu1 %v9788_v46  ;;  %8297 = vmatpush1.bf16.msra.mxu0 %v9789_v47  ;;  %v9865_v46 = vld [vmem:[%s11653_s17 + $0x960] ss:$8 sps:$4 sm:$0xff]  }
 0x144   : > { %7874 = vmatprep.subr.bf16.mxu1 %v9790_v48  ;;  %8298 = vmatprep.subr.bf16.mxu0 %v9792_v49  ;;  %v11780_v47 = vld [vmem:[%s12490_s0 + $0x48] sm:$0xff]  ;;  %v9870_v49 = vld [vmem:[%s11653_s17 + $0x174] ss:$8 sps:$4 sm:$0xff]  }
 0x145   : > { %v11785_v48 = vld [vmem:[%s12490_s0 + $0xc8] sm:$0xff] }
 0x147   : > { %7875 = vmatpush1.bf16.msra.mxu1 %v9794_v50  ;;  %8299 = vmatpush1.bf16.msra.mxu0 %v9795_v51  ;;  %v9014_v50 = vcombine.high %v11780_v47, %v11785_v48  ;;  %v9873_v51 = vld [vmem:[%s11653_s17 + $0x974] ss:$8 sps:$4 sm:$0xff]  }
 0x148   : > { %7876 = vmatprep.subr.bf16.mxu1 %v9796_v52  ;;  %8300 = vmatprep.subr.bf16.mxu0 %v9798_v53  ;;  %v9868_v52 = vld [vmem:[%s11653_s17 + $0x170] ss:$8 sps:$4 sm:$0xff]  }
 0x149   : > { %v9871_v53 = vld [vmem:[%s11653_s17 + $0x970] ss:$8 sps:$4 sm:$0xff]  }
 0x14b   : > { %7877 = vmatpush1.bf16.msra.mxu1 %v9800_v54  ;;  %8301 = vmatpush1.bf16.msra.mxu0 %v9801_v55  ;;  %v9876_v54 = vld [vmem:[%s11653_s17 + $0x184] ss:$8 sps:$4 sm:$0xff]  }
 0x14c   : > { %7878 = vmatprep.subr.bf16.mxu1 %v9802_v56  ;;  %8302 = vmatprep.subr.bf16.mxu0 %v9804_v57  ;;  %v9879_v55 = vld [vmem:[%s11653_s17 + $0x984] ss:$8 sps:$4 sm:$0xff]   ;;  %v9874_v56 = vld [vmem:[%s11653_s17 + $0x180] ss:$8 sps:$4 sm:$0xff]  }
 0x14d   : > { %v9877_v57 = vld [vmem:[%s11653_s17 + $0x980] ss:$8 sps:$4 sm:$0xff]  }
 0x14f   : > { %7879 = vmatpush1.bf16.msra.mxu1 %v9806_v58  ;;  %8303 = vmatpush1.bf16.msra.mxu0 %v9807_v59  ;;  %v9882_v58 = vld [vmem:[%s11653_s17 + $0x194] ss:$8 sps:$4 sm:$0xff]  }
 0x150   : > { %7880 = vmatprep.subr.bf16.mxu1 %v9808_v60  ;;  %8304 = vmatprep.subr.bf16.mxu0 %v9810_v61  ;;  %v9885_v59 = vld [vmem:[%s11653_s17 + $0x994] ss:$8 sps:$4 sm:$0xff]   ;;  %v9880_v60 = vld [vmem:[%s11653_s17 + $0x190] ss:$8 sps:$4 sm:$0xff]  }
 0x151   : > { %v9883_v61 = vld [vmem:[%s11653_s17 + $0x990] ss:$8 sps:$4 sm:$0xff]  }
 0x153   : > { %7881 = vmatpush1.bf16.msra.mxu1 %v9812_v62  ;;  %8305 = vmatpush1.bf16.msra.mxu0 %v9813_v63  ;;  %v9888_v62 = vld [vmem:[%s11653_s17 + $0x1a4] ss:$8 sps:$4 sm:$0xff]  }
 0x154   : > { %7882 = vmatprep.subr.bf16.mxu1 %v9814_v4  ;;  %8306 = vmatprep.subr.bf16.mxu0 %v9816_v7  ;;  %v9891_v63 = vld [vmem:[%s11653_s17 + $0x9a4] ss:$8 sps:$4 sm:$0xff]   ;;  %v9886_v4 = vld [vmem:[%s11653_s17 + $0x1a0] ss:$8 sps:$4 sm:$0xff]  }
 0x155   : > { %v9889_v7 = vld [vmem:[%s11653_s17 + $0x9a0] ss:$8 sps:$4 sm:$0xff]  }
 0x157   : > { %7883 = vmatpush1.bf16.msra.mxu1 %v9818_v8  ;;  %8307 = vmatpush1.bf16.msra.mxu0 %v9819_v9  ;;  %v9894_v8 = vld [vmem:[%s11653_s17 + $0x1b4] ss:$8 sps:$4 sm:$0xff]  }
 0x158   : > { %7884 = vmatprep.subr.bf16.mxu1 %v9820_v10  ;;  %8308 = vmatprep.subr.bf16.mxu0 %v9822_v11  ;;  %v9897_v9 = vld [vmem:[%s11653_s17 + $0x9b4] ss:$8 sps:$4 sm:$0xff]   ;;  %v9892_v10 = vld [vmem:[%s11653_s17 + $0x1b0] ss:$8 sps:$4 sm:$0xff]  }
 0x159   : > { %v9895_v11 = vld [vmem:[%s11653_s17 + $0x9b0] ss:$8 sps:$4 sm:$0xff]  }
 0x15b   : > { %7885 = vmatpush1.bf16.msra.mxu1 %v9824_v12  ;;  %8309 = vmatpush1.bf16.msra.mxu0 %v9825_v13  ;;  %v9900_v12 = vld [vmem:[%s11653_s17 + $0x1c4] ss:$8 sps:$4 sm:$0xff]  }
 0x15c   : > { %7907 = vmatprep.subr.bf16.mxu1 %v9828_v14  ;;  %8331 = vmatprep.subr.bf16.mxu0 %v9831_v15  ;;  %v9903_v13 = vld [vmem:[%s11653_s17 + $0x9c4] ss:$8 sps:$4 sm:$0xff]   ;;  %v9898_v14 = vld [vmem:[%s11653_s17 + $0x1c0] ss:$8 sps:$4 sm:$0xff]  }
 0x15d   : > { %v9901_v15 = vld [vmem:[%s11653_s17 + $0x9c0] ss:$8 sps:$4 sm:$0xff]  }
 0x15e   : > { %7887 = vmatmul.mubr.bf16.vlgmr.msra.gmra.mrb[0].mxu1 %v8995_v3  ;;  %8311 = vmatmul.mubr.bf16.vlgmr.msra.gmra.mrb[0].mxu0 %v9011_v6  ;;  %v9027_v3 = vcombine.low %v4430_v16, %v4446_v17  ;;  %v9849_v6 = vld [vmem:[%s11653_s17 + $0x934] ss:$8 sps:$4 sm:$0xff]  }
 0x15f   : > { %7908 = vmatpush1.bf16.msra.mxu1 %v9826_v20  ;;  %8332 = vmatpush1.bf16.msra.mxu0 %v9829_v21  ;;  %v9906_v16 = vld [vmem:[%s11653_s17 + $0x1d4] ss:$8 sps:$4 sm:$0xff]   ;;  %v9912_v20 = vld [vmem:[%s11653_s17 + $0x1e4] ss:$8 sps:$4 sm:$0xff]  }
 0x160   : > { %7909 = vmatprep.subr.bf16.mxu1 %v9834_v22  ;;  %8333 = vmatprep.subr.bf16.mxu0 %v9837_v23  ;;  %v9909_v17 = vld [vmem:[%s11653_s17 + $0x9d4] ss:$8 sps:$4 sm:$0xff]   ;;  %v9915_v21 = vld [vmem:[%s11653_s17 + $0x9e4] ss:$8 sps:$4 sm:$0xff]   ;;  %v9910_v22 = vld [vmem:[%s11653_s17 + $0x1e0] ss:$8 sps:$4 sm:$0xff]  }
 0x161   : > { %7896 = vmatprep.mubr.bf16.mxu1 %v9028_v24  ;;  %8320 = vmatprep.mubr.bf16.mxu0 %v9044_v25  ;;  %v9913_v23 = vld [vmem:[%s11653_s17 + $0x9e0] ss:$8 sps:$4 sm:$0xff]   ;;  %v9918_v24 = vld [vmem:[%s11653_s17 + $0x1f4] ss:$8 sps:$4 sm:$0xff]  }
 0x162   : > { %v9921_v25 = vld [vmem:[%s11653_s17 + $0x9f4] ss:$8 sps:$4 sm:$0xff]  }
 0x163   : > { %7910 = vmatpush1.bf16.msra.mxu1 %v9832_v26  ;;  %8334 = vmatpush1.bf16.msra.mxu0 %v9835_v27  ;;  %v9916_v26 = vld [vmem:[%s11653_s17 + $0x1f0] ss:$8 sps:$4 sm:$0xff]  }
 0x164   : > { %7911 = vmatprep.subr.bf16.mxu1 %v9840_v28  ;;  %8335 = vmatprep.subr.bf16.mxu0 %v9843_v29  ;;  %v9919_v27 = vld [vmem:[%s11653_s17 + $0x9f0] ss:$8 sps:$4 sm:$0xff]   ;;  %v9924_v28 = vld [vmem:[%s11653_s17 + $0x204] ss:$8 sps:$4 sm:$0xff]  }
 0x165   : > { %v9927_v29 = vld [vmem:[%s11653_s17 + $0xa04] ss:$8 sps:$4 sm:$0xff]  }
 0x166   : > { %7897 = vmatmul.mubr.bf16.gmra.mrb[4].mxu1 %v9027_v3  ;;  %8321 = vmatmul.mubr.bf16.gmra.mrb[4].mxu0 %v9043_v2  ;;  %v4431_v3 = vld [vmem:[%s12490_s0 + $0x108] sm:$0xff] }
 0x167   : > { %7912 = vmatpush1.bf16.msra.mxu1 %v9838_v0  ;;  %8336 = vmatpush1.bf16.msra.mxu0 %v9841_v1  ;;  %v9922_v0 = vld [vmem:[%s11653_s17 + $0x200] ss:$8 sps:$4 sm:$0xff]  }
 0x168   : > { %7913 = vmatprep.subr.bf16.mxu1 %v9846_v5  ;;  %8337 = vmatprep.subr.bf16.mxu0 %v9849_v6  ;;  %v9925_v1 = vld [vmem:[%s11653_s17 + $0xa00] ss:$8 sps:$4 sm:$0xff]   ;;  %v8997_v5 = vcombine.low %v11766_v42, %v11771_v43  ;;  %v9013_v6 = vcombine.low %v11780_v47, %v11785_v48  ;;  %v11856_v42 = vld [vmem:[%s12490_s0 + $0x10] sm:$0xff] }
 0x169   : > { %7939 = vmatprep.mubr.bf16.mxu1 %v8998_v45  ;;  %8363 = vmatprep.mubr.bf16.mxu0 %v9014_v50  ;;  %v4447_v2 = vld [vmem:[%s12490_s0 + $0x188] sm:$0xff]  ;;  %v11861_v43 = vld [vmem:[%s12490_s0 + $0x90] sm:$0xff] }
 0x16a   : > { %v11871_v47 = vld [vmem:[%s12490_s0 + $0xd0] sm:$0xff]  ;;  %v9000_v50 = vcombine.high %v11856_v42, %v11861_v43 }
 0x16b   : > { %7914 = vmatpush1.bf16.msra.mxu1 %v9844_v30  ;;  %8338 = vmatpush1.bf16.msra.mxu0 %v9847_v31  ;;  %v4439_v30 = vld [vmem:[%s12490_s0 + $0x148] sm:$0xff]  ;;  %v9942_v48 = vld [vmem:[%s11653_s17 + $0x234] ss:$8 sps:$4 sm:$0xff]  }
 0x16c   : > { %7915 = vmatprep.subr.bf16.mxu1 %v9852_v32  ;;  %8339 = vmatprep.subr.bf16.mxu0 %v9855_v33  ;;  %v4455_v31 = vld [vmem:[%s12490_s0 + $0x1c8] sm:$0xff]  ;;  %v9930_v32 = vld [vmem:[%s11653_s17 + $0x214] ss:$8 sps:$4 sm:$0xff]  }
 0x16d   : > { %v9933_v33 = vld [vmem:[%s11653_s17 + $0xa14] ss:$8 sps:$4 sm:$0xff]   ;;  %v9045_v45 = vcombine.low %v4439_v30, %v4455_v31 }
 0x16f   : > { %7916 = vmatpush1.bf16.msra.mxu1 %v9850_v34  ;;  %8340 = vmatpush1.bf16.msra.mxu0 %v9853_v35  ;;  %v9030_v34 = vcombine.high %v4431_v3, %v4447_v2  ;;  %v9046_v35 = vcombine.high %v4439_v30, %v4455_v31  ;;  %v10008_v30 = vld [vmem:[%s11653_s17 + $0x2e4] ss:$8 sps:$4 sm:$0xff]  }
 0x170   : > { %7917 = vmatprep.subr.bf16.mxu1 %v9858_v36  ;;  %8341 = vmatprep.subr.bf16.mxu0 %v9861_v37  ;;  %v9928_v36 = vld [vmem:[%s11653_s17 + $0x210] ss:$8 sps:$4 sm:$0xff]   ;;  %v10011_v31 = vld [vmem:[%s11653_s17 + $0xae4] ss:$8 sps:$4 sm:$0xff]  }
 0x171   : > { %v9931_v37 = vld [vmem:[%s11653_s17 + $0xa10] ss:$8 sps:$4 sm:$0xff]  }
 0x173   : > { %7918 = vmatpush1.bf16.msra.mxu1 %v9856_v38  ;;  %8342 = vmatpush1.bf16.msra.mxu0 %v9859_v39  ;;  %v9936_v38 = vld [vmem:[%s11653_s17 + $0x224] ss:$8 sps:$4 sm:$0xff]  }
 0x174   : > { %7919 = vmatprep.subr.bf16.mxu1 %v9864_v40  ;;  %8343 = vmatprep.subr.bf16.mxu0 %v9867_v41  ;;  %v9939_v39 = vld [vmem:[%s11653_s17 + $0xa24] ss:$8 sps:$4 sm:$0xff]   ;;  %v9934_v40 = vld [vmem:[%s11653_s17 + $0x220] ss:$8 sps:$4 sm:$0xff]  }
 0x175   : > { %v9937_v41 = vld [vmem:[%s11653_s17 + $0xa20] ss:$8 sps:$4 sm:$0xff]  }
 0x177   : > { %7920 = vmatpush1.bf16.msra.mxu1 %v9862_v44  ;;  %8344 = vmatpush1.bf16.msra.mxu0 %v9865_v46  ;;  %v9029_v44 = vcombine.low %v4431_v3, %v4447_v2  ;;  %v11866_v46 = vld [vmem:[%s12490_s0 + $0x50] sm:$0xff] }
 0x178   : > { %7921 = vmatprep.subr.bf16.mxu1 %v9870_v49  ;;  %8345 = vmatprep.subr.bf16.mxu0 %v9873_v51  ;;  %v9945_v49 = vld [vmem:[%s11653_s17 + $0xa34] ss:$8 sps:$4 sm:$0xff]   ;;  %v9016_v51 = vcombine.high %v11866_v46, %v11871_v47 }
 0x179   : > { %v10002_v3 = vld [vmem:[%s11653_s17 + $0x2d4] ss:$8 sps:$4 sm:$0xff]  }
 0x17a   : > { %v10005_v2 = vld [vmem:[%s11653_s17 + $0xad4] ss:$8 sps:$4 sm:$0xff]  }
 0x17b   : > { %7922 = vmatpush1.bf16.msra.mxu1 %v9868_v52  ;;  %8346 = vmatpush1.bf16.msra.mxu0 %v9871_v53  ;;  %v9940_v52 = vld [vmem:[%s11653_s17 + $0x230] ss:$8 sps:$4 sm:$0xff]  }
 0x17c   : > { %7923 = vmatprep.subr.bf16.mxu1 %v9876_v54  ;;  %8347 = vmatprep.subr.bf16.mxu0 %v9879_v55  ;;  %v9943_v53 = vld [vmem:[%s11653_s17 + $0xa30] ss:$8 sps:$4 sm:$0xff]   ;;  %v9948_v54 = vld [vmem:[%s11653_s17 + $0x244] ss:$8 sps:$4 sm:$0xff]  }
 0x17d   : > { %v9951_v55 = vld [vmem:[%s11653_s17 + $0xa44] ss:$8 sps:$4 sm:$0xff]  }
 0x17f   : > { %7924 = vmatpush1.bf16.msra.mxu1 %v9874_v56  ;;  %8348 = vmatpush1.bf16.msra.mxu0 %v9877_v57  ;;  %v9946_v56 = vld [vmem:[%s11653_s17 + $0x240] ss:$8 sps:$4 sm:$0xff]  }
 0x180   : > { %7925 = vmatprep.subr.bf16.mxu1 %v9882_v58  ;;  %8349 = vmatprep.subr.bf16.mxu0 %v9885_v59  ;;  %v9949_v57 = vld [vmem:[%s11653_s17 + $0xa40] ss:$8 sps:$4 sm:$0xff]   ;;  %v9954_v58 = vld [vmem:[%s11653_s17 + $0x254] ss:$8 sps:$4 sm:$0xff]  }
 0x181   : > { %v9957_v59 = vld [vmem:[%s11653_s17 + $0xa54] ss:$8 sps:$4 sm:$0xff]  }
 0x183   : > { %7926 = vmatpush1.bf16.msra.mxu1 %v9880_v60  ;;  %8350 = vmatpush1.bf16.msra.mxu0 %v9883_v61  ;;  %v9952_v60 = vld [vmem:[%s11653_s17 + $0x250] ss:$8 sps:$4 sm:$0xff]  }
 0x184   : > { %7927 = vmatprep.subr.bf16.mxu1 %v9888_v62  ;;  %8351 = vmatprep.subr.bf16.mxu0 %v9891_v63  ;;  %v9955_v61 = vld [vmem:[%s11653_s17 + $0xa50] ss:$8 sps:$4 sm:$0xff]   ;;  %v9960_v62 = vld [vmem:[%s11653_s17 + $0x264] ss:$8 sps:$4 sm:$0xff]  }
 0x185   : > { %v9963_v63 = vld [vmem:[%s11653_s17 + $0xa64] ss:$8 sps:$4 sm:$0xff]  }
 0x187   : > { %7928 = vmatpush1.bf16.msra.mxu1 %v9886_v4  ;;  %8352 = vmatpush1.bf16.msra.mxu0 %v9889_v7  ;;  %v9958_v4 = vld [vmem:[%s11653_s17 + $0x260] ss:$8 sps:$4 sm:$0xff]  }
 0x188   : > { %7929 = vmatprep.subr.bf16.mxu1 %v9894_v8  ;;  %8353 = vmatprep.subr.bf16.mxu0 %v9897_v9  ;;  %v9961_v7 = vld [vmem:[%s11653_s17 + $0xa60] ss:$8 sps:$4 sm:$0xff]   ;;  %v9966_v8 = vld [vmem:[%s11653_s17 + $0x274] ss:$8 sps:$4 sm:$0xff]  }
 0x189   : > { %v9969_v9 = vld [vmem:[%s11653_s17 + $0xa74] ss:$8 sps:$4 sm:$0xff]  }
 0x18b   : > { %7930 = vmatpush1.bf16.msra.mxu1 %v9892_v10  ;;  %8354 = vmatpush1.bf16.msra.mxu0 %v9895_v11  ;;  %v9964_v10 = vld [vmem:[%s11653_s17 + $0x270] ss:$8 sps:$4 sm:$0xff]  }
 0x18c   : > { %7931 = vmatprep.subr.bf16.mxu1 %v9900_v12  ;;  %8355 = vmatprep.subr.bf16.mxu0 %v9903_v13  ;;  %v9967_v11 = vld [vmem:[%s11653_s17 + $0xa70] ss:$8 sps:$4 sm:$0xff]   ;;  %v9972_v12 = vld [vmem:[%s11653_s17 + $0x284] ss:$8 sps:$4 sm:$0xff]  }
 0x18d   : > { %v9975_v13 = vld [vmem:[%s11653_s17 + $0xa84] ss:$8 sps:$4 sm:$0xff]  }
 0x18f   : > { %7932 = vmatpush1.bf16.msra.mxu1 %v9898_v14  ;;  %8356 = vmatpush1.bf16.msra.mxu0 %v9901_v15  ;;  %v9970_v14 = vld [vmem:[%s11653_s17 + $0x280] ss:$8 sps:$4 sm:$0xff]  }
 0x190   : > { %7933 = vmatprep.subr.bf16.mxu1 %v9906_v16  ;;  %8357 = vmatprep.subr.bf16.mxu0 %v9909_v17  ;;  %v9973_v15 = vld [vmem:[%s11653_s17 + $0xa80] ss:$8 sps:$4 sm:$0xff]   ;;  %v9978_v16 = vld [vmem:[%s11653_s17 + $0x294] ss:$8 sps:$4 sm:$0xff]  }
 0x191   : > { %v9981_v17 = vld [vmem:[%s11653_s17 + $0xa94] ss:$8 sps:$4 sm:$0xff]  }
 0x193   : > { %7934 = vmatpush1.bf16.msra.mxu1 %v9904_v18  ;;  %8358 = vmatpush1.bf16.msra.mxu0 %v9907_v19  ;;  %v9976_v18 = vld [vmem:[%s11653_s17 + $0x290] ss:$8 sps:$4 sm:$0xff]  }
 0x194   : > { %7935 = vmatprep.subr.bf16.mxu1 %v9912_v20  ;;  %8359 = vmatprep.subr.bf16.mxu0 %v9915_v21  ;;  %v9979_v19 = vld [vmem:[%s11653_s17 + $0xa90] ss:$8 sps:$4 sm:$0xff]   ;;  %v9984_v20 = vld [vmem:[%s11653_s17 + $0x2a4] ss:$8 sps:$4 sm:$0xff]  }
 0x195   : > { %v9987_v21 = vld [vmem:[%s11653_s17 + $0xaa4] ss:$8 sps:$4 sm:$0xff]  }
 0x197   : > { %7936 = vmatpush1.bf16.msra.mxu1 %v9910_v22  ;;  %8360 = vmatpush1.bf16.msra.mxu0 %v9913_v23  ;;  %v9982_v22 = vld [vmem:[%s11653_s17 + $0x2a0] ss:$8 sps:$4 sm:$0xff]  }
 0x198   : > { %7937 = vmatprep.subr.bf16.mxu1 %v9918_v24  ;;  %8361 = vmatprep.subr.bf16.mxu0 %v9921_v25  ;;  %v9985_v23 = vld [vmem:[%s11653_s17 + $0xaa0] ss:$8 sps:$4 sm:$0xff]   ;;  %v9990_v24 = vld [vmem:[%s11653_s17 + $0x2b4] ss:$8 sps:$4 sm:$0xff]  }
 0x199   : > { %v9993_v25 = vld [vmem:[%s11653_s17 + $0xab4] ss:$8 sps:$4 sm:$0xff]  }
 0x19b   : > { %7938 = vmatpush1.bf16.msra.mxu1 %v9916_v26  ;;  %8362 = vmatpush1.bf16.msra.mxu0 %v9919_v27  ;;  %v9988_v26 = vld [vmem:[%s11653_s17 + $0x2b0] ss:$8 sps:$4 sm:$0xff]  }
 0x19c   : > { %7960 = vmatprep.subr.bf16.mxu1 %v9924_v28  ;;  %8384 = vmatprep.subr.bf16.mxu0 %v9927_v29  ;;  %v9991_v27 = vld [vmem:[%s11653_s17 + $0xab0] ss:$8 sps:$4 sm:$0xff]   ;;  %v9996_v28 = vld [vmem:[%s11653_s17 + $0x2c4] ss:$8 sps:$4 sm:$0xff]  }
 0x19d   : > { %v9999_v29 = vld [vmem:[%s11653_s17 + $0xac4] ss:$8 sps:$4 sm:$0xff]  }
 0x19e   : > { %7940 = vmatmul.mubr.bf16.vlgmr.msra.gmra.mrb[0].mxu1 %v8997_v5  ;;  %8364 = vmatmul.mubr.bf16.vlgmr.msra.gmra.mrb[0].mxu0 %v9013_v6  ;;  %v10000_v5 = vld [vmem:[%s11653_s17 + $0x2d0] ss:$8 sps:$4 sm:$0xff]  }
 0x19f   : > { %7961 = vmatpush1.bf16.msra.mxu1 %v9922_v0  ;;  %8385 = vmatpush1.bf16.msra.mxu0 %v9925_v1  ;;  %v9994_v0 = vld [vmem:[%s11653_s17 + $0x2c0] ss:$8 sps:$4 sm:$0xff]   ;;  %v10003_v6 = vld [vmem:[%s11653_s17 + $0xad0] ss:$8 sps:$4 sm:$0xff]  }
 0x1a0   : > { %7962 = vmatprep.subr.bf16.mxu1 %v9930_v32  ;;  %8386 = vmatprep.subr.bf16.mxu0 %v9933_v33  ;;  %v9997_v1 = vld [vmem:[%s11653_s17 + $0xac0] ss:$8 sps:$4 sm:$0xff]  }
 0x1a1   : > { %7949 = vmatprep.mubr.bf16.mxu1 %v9030_v34  ;;  %8373 = vmatprep.mubr.bf16.mxu0 %v9046_v35  ;;  %v10006_v32 = vld [vmem:[%s11653_s17 + $0x2e0] ss:$8 sps:$4 sm:$0xff]   ;;  %v10014_v34 = vld [vmem:[%s11653_s17 + $0x2f4] ss:$8 sps:$4 sm:$0xff]  }
 0x1a2   : > { %v10009_v33 = vld [vmem:[%s11653_s17 + $0xae0] ss:$8 sps:$4 sm:$0xff]   ;;  %v10017_v35 = vld [vmem:[%s11653_s17 + $0xaf4] ss:$8 sps:$4 sm:$0xff]  }
 0x1a3   : > { %7963 = vmatpush1.bf16.msra.mxu1 %v9928_v36  ;;  %8387 = vmatpush1.bf16.msra.mxu0 %v9931_v37  ;;  %v10012_v36 = vld [vmem:[%s11653_s17 + $0x2f0] ss:$8 sps:$4 sm:$0xff]  }
 0x1a4   : > { %7964 = vmatprep.subr.bf16.mxu1 %v9936_v38  ;;  %8388 = vmatprep.subr.bf16.mxu0 %v9939_v39  ;;  %v10015_v37 = vld [vmem:[%s11653_s17 + $0xaf0] ss:$8 sps:$4 sm:$0xff]   ;;  %v10020_v38 = vld [vmem:[%s11653_s17 + $0x304] ss:$8 sps:$4 sm:$0xff]  }
 0x1a5   : > { %v10023_v39 = vld [vmem:[%s11653_s17 + $0xb04] ss:$8 sps:$4 sm:$0xff]  }
 0x1a6   : > { %7950 = vmatmul.mubr.bf16.gmra.mrb[4].mxu1 %v9029_v44  ;;  %8374 = vmatmul.mubr.bf16.gmra.mrb[4].mxu0 %v9045_v45  ;;  %v4432_v44 = vld [vmem:[%s12490_s0 + $0x110] sm:$0xff] }
 0x1a7   : > { %7965 = vmatpush1.bf16.msra.mxu1 %v9934_v40  ;;  %8389 = vmatpush1.bf16.msra.mxu0 %v9937_v41  ;;  %v10018_v40 = vld [vmem:[%s11653_s17 + $0x300] ss:$8 sps:$4 sm:$0xff]   ;;  %v4448_v45 = vld [vmem:[%s12490_s0 + $0x190] sm:$0xff] }
 0x1a8   : > { %7966 = vmatprep.subr.bf16.mxu1 %v9942_v48  ;;  %8390 = vmatprep.subr.bf16.mxu0 %v9945_v49  ;;  %v10021_v41 = vld [vmem:[%s11653_s17 + $0xb00] ss:$8 sps:$4 sm:$0xff]   ;;  %v8999_v48 = vcombine.low %v11856_v42, %v11861_v43  ;;  %v9015_v49 = vcombine.low %v11866_v46, %v11871_v47  ;;  %v10029_v42 = vld [vmem:[%s11653_s17 + $0xb14] ss:$8 sps:$4 sm:$0xff]   ;;  %v9032_v43 = vcombine.high %v4432_v44, %v4448_v45  ;;  %v10024_v47 = vld [vmem:[%s11653_s17 + $0x310] ss:$8 sps:$4 sm:$0xff]  }
 0x1a9   : > { %7992 = vmatprep.mubr.bf16.mxu1 %v9000_v50  ;;  %8416 = vmatprep.mubr.bf16.mxu0 %v9016_v51  ;;  %v4440_v50 = vld [vmem:[%s12490_s0 + $0x150] sm:$0xff] }
 0x1aa   : > { %v4456_v51 = vld [vmem:[%s12490_s0 + $0x1d0] sm:$0xff] }
 0x1ab   : > { %7967 = vmatpush1.bf16.msra.mxu1 %v9940_v52  ;;  %8391 = vmatpush1.bf16.msra.mxu0 %v9943_v53  ;;  %v10026_v52 = vld [vmem:[%s11653_s17 + $0x314] ss:$8 sps:$4 sm:$0xff]   ;;  %v9048_v46 = vcombine.high %v4440_v50, %v4456_v51  ;;  %v10027_v53 = vld [vmem:[%s11653_s17 + $0xb10] ss:$8 sps:$4 sm:$0xff]  }
 0x1ac   : > { %7968 = vmatprep.subr.bf16.mxu1 %v9948_v54  ;;  %8392 = vmatprep.subr.bf16.mxu0 %v9951_v55  ;;  %v10032_v54 = vld [vmem:[%s11653_s17 + $0x324] ss:$8 sps:$4 sm:$0xff]  }
 0x1ad   : > { %v10035_v55 = vld [vmem:[%s11653_s17 + $0xb24] ss:$8 sps:$4 sm:$0xff]  }
 0x1af   : > { %7969 = vmatpush1.bf16.msra.mxu1 %v9946_v56  ;;  %8393 = vmatpush1.bf16.msra.mxu0 %v9949_v57  ;;  %v10030_v56 = vld [vmem:[%s11653_s17 + $0x320] ss:$8 sps:$4 sm:$0xff]  }
 0x1b0   : > { %7970 = vmatprep.subr.bf16.mxu1 %v9954_v58  ;;  %8394 = vmatprep.subr.bf16.mxu0 %v9957_v59  ;;  %v10033_v57 = vld [vmem:[%s11653_s17 + $0xb20] ss:$8 sps:$4 sm:$0xff]   ;;  %v11960_v58 = vld [vmem:[%s12490_s0 + $0x18] sm:$0xff] }
 0x1b1   : > { %v11965_v59 = vld [vmem:[%s12490_s0 + $0x98] sm:$0xff] }
 0x1b3   : > { %7971 = vmatpush1.bf16.msra.mxu1 %v9952_v60  ;;  %8395 = vmatpush1.bf16.msra.mxu0 %v9955_v61  ;;  %v9031_v60 = vcombine.low %v4432_v44, %v4448_v45  ;;  %v9047_v61 = vcombine.low %v4440_v50, %v4456_v51  ;;  %v10098_v44 = vld [vmem:[%s11653_s17 + $0x3d4] ss:$8 sps:$4 sm:$0xff]   ;;  %v10104_v50 = vld [vmem:[%s11653_s17 + $0x3e4] ss:$8 sps:$4 sm:$0xff]  }
 0x1b4   : > { %7972 = vmatprep.subr.bf16.mxu1 %v9960_v62  ;;  %8396 = vmatprep.subr.bf16.mxu0 %v9963_v63  ;;  %v11970_v62 = vld [vmem:[%s12490_s0 + $0x58] sm:$0xff]  ;;  %v10107_v51 = vld [vmem:[%s11653_s17 + $0xbe4] ss:$8 sps:$4 sm:$0xff]  }
 0x1b5   : > { %v11975_v63 = vld [vmem:[%s12490_s0 + $0xd8] sm:$0xff] }
 0x1b6   : > { %v10101_v45 = vld [vmem:[%s11653_s17 + $0xbd4] ss:$8 sps:$4 sm:$0xff]  }
 0x1b7   : > { %7973 = vmatpush1.bf16.msra.mxu1 %v9958_v4  ;;  %8397 = vmatpush1.bf16.msra.mxu0 %v9961_v7  ;;  %v10038_v4 = vld [vmem:[%s11653_s17 + $0x334] ss:$8 sps:$4 sm:$0xff]  }
 0x1b8   : > { %7974 = vmatprep.subr.bf16.mxu1 %v9966_v8  ;;  %8398 = vmatprep.subr.bf16.mxu0 %v9969_v9  ;;  %v10041_v7 = vld [vmem:[%s11653_s17 + $0xb34] ss:$8 sps:$4 sm:$0xff]   ;;  %v9002_v8 = vcombine.high %v11960_v58, %v11965_v59  ;;  %v9018_v9 = vcombine.high %v11970_v62, %v11975_v63 }
 0x1bb   : > { %7975 = vmatpush1.bf16.msra.mxu1 %v9964_v10  ;;  %8399 = vmatpush1.bf16.msra.mxu0 %v9967_v11  ;;  %v10036_v10 = vld [vmem:[%s11653_s17 + $0x330] ss:$8 sps:$4 sm:$0xff]  }
 0x1bc   : > { %7976 = vmatprep.subr.bf16.mxu1 %v9972_v12  ;;  %8400 = vmatprep.subr.bf16.mxu0 %v9975_v13  ;;  %v10039_v11 = vld [vmem:[%s11653_s17 + $0xb30] ss:$8 sps:$4 sm:$0xff]   ;;  %v10044_v12 = vld [vmem:[%s11653_s17 + $0x344] ss:$8 sps:$4 sm:$0xff]  }
 0x1bd   : > { %v10047_v13 = vld [vmem:[%s11653_s17 + $0xb44] ss:$8 sps:$4 sm:$0xff]  }
 0x1bf   : > { %7977 = vmatpush1.bf16.msra.mxu1 %v9970_v14  ;;  %8401 = vmatpush1.bf16.msra.mxu0 %v9973_v15  ;;  %v10042_v14 = vld [vmem:[%s11653_s17 + $0x340] ss:$8 sps:$4 sm:$0xff]  }
 0x1c0   : > { %7978 = vmatprep.subr.bf16.mxu1 %v9978_v16  ;;  %8402 = vmatprep.subr.bf16.mxu0 %v9981_v17  ;;  %v10045_v15 = vld [vmem:[%s11653_s17 + $0xb40] ss:$8 sps:$4 sm:$0xff]   ;;  %v10050_v16 = vld [vmem:[%s11653_s17 + $0x354] ss:$8 sps:$4 sm:$0xff]  }
 0x1c1   : > { %v10053_v17 = vld [vmem:[%s11653_s17 + $0xb54] ss:$8 sps:$4 sm:$0xff]  }
 0x1c3   : > { %7979 = vmatpush1.bf16.msra.mxu1 %v9976_v18  ;;  %8403 = vmatpush1.bf16.msra.mxu0 %v9979_v19  ;;  %v10048_v18 = vld [vmem:[%s11653_s17 + $0x350] ss:$8 sps:$4 sm:$0xff]  }
 0x1c4   : > { %7980 = vmatprep.subr.bf16.mxu1 %v9984_v20  ;;  %8404 = vmatprep.subr.bf16.mxu0 %v9987_v21  ;;  %v10051_v19 = vld [vmem:[%s11653_s17 + $0xb50] ss:$8 sps:$4 sm:$0xff]   ;;  %v10056_v20 = vld [vmem:[%s11653_s17 + $0x364] ss:$8 sps:$4 sm:$0xff]  }
 0x1c5   : > { %v10059_v21 = vld [vmem:[%s11653_s17 + $0xb64] ss:$8 sps:$4 sm:$0xff]  }
 0x1c7   : > { %7981 = vmatpush1.bf16.msra.mxu1 %v9982_v22  ;;  %8405 = vmatpush1.bf16.msra.mxu0 %v9985_v23  ;;  %v10054_v22 = vld [vmem:[%s11653_s17 + $0x360] ss:$8 sps:$4 sm:$0xff]  }
 0x1c8   : > { %7982 = vmatprep.subr.bf16.mxu1 %v9990_v24  ;;  %8406 = vmatprep.subr.bf16.mxu0 %v9993_v25  ;;  %v10057_v23 = vld [vmem:[%s11653_s17 + $0xb60] ss:$8 sps:$4 sm:$0xff]   ;;  %v10062_v24 = vld [vmem:[%s11653_s17 + $0x374] ss:$8 sps:$4 sm:$0xff]  }
 0x1c9   : > { %v10065_v25 = vld [vmem:[%s11653_s17 + $0xb74] ss:$8 sps:$4 sm:$0xff]  }
 0x1cb   : > { %7983 = vmatpush1.bf16.msra.mxu1 %v9988_v26  ;;  %8407 = vmatpush1.bf16.msra.mxu0 %v9991_v27  ;;  %v10060_v26 = vld [vmem:[%s11653_s17 + $0x370] ss:$8 sps:$4 sm:$0xff]  }
 0x1cc   : > { %7984 = vmatprep.subr.bf16.mxu1 %v9996_v28  ;;  %8408 = vmatprep.subr.bf16.mxu0 %v9999_v29  ;;  %v10063_v27 = vld [vmem:[%s11653_s17 + $0xb70] ss:$8 sps:$4 sm:$0xff]   ;;  %v10068_v28 = vld [vmem:[%s11653_s17 + $0x384] ss:$8 sps:$4 sm:$0xff]  }
 0x1cd   : > { %v10071_v29 = vld [vmem:[%s11653_s17 + $0xb84] ss:$8 sps:$4 sm:$0xff]  }
 0x1cf   : > { %7985 = vmatpush1.bf16.msra.mxu1 %v9994_v0  ;;  %8409 = vmatpush1.bf16.msra.mxu0 %v9997_v1  ;;  %v10066_v0 = vld [vmem:[%s11653_s17 + $0x380] ss:$8 sps:$4 sm:$0xff]  }
 0x1d0   : > { %7986 = vmatprep.subr.bf16.mxu1 %v10002_v3  ;;  %8410 = vmatprep.subr.bf16.mxu0 %v10005_v2  ;;  %v10069_v1 = vld [vmem:[%s11653_s17 + $0xb80] ss:$8 sps:$4 sm:$0xff]   ;;  %v10074_v3 = vld [vmem:[%s11653_s17 + $0x394] ss:$8 sps:$4 sm:$0xff]  }
 0x1d1   : > { %v10077_v2 = vld [vmem:[%s11653_s17 + $0xb94] ss:$8 sps:$4 sm:$0xff]  }
 0x1d3   : > { %7987 = vmatpush1.bf16.msra.mxu1 %v10000_v5  ;;  %8411 = vmatpush1.bf16.msra.mxu0 %v10003_v6  ;;  %v10072_v5 = vld [vmem:[%s11653_s17 + $0x390] ss:$8 sps:$4 sm:$0xff]  }
 0x1d4   : > { %7988 = vmatprep.subr.bf16.mxu1 %v10008_v30  ;;  %8412 = vmatprep.subr.bf16.mxu0 %v10011_v31  ;;  %v10075_v6 = vld [vmem:[%s11653_s17 + $0xb90] ss:$8 sps:$4 sm:$0xff]   ;;  %v10080_v30 = vld [vmem:[%s11653_s17 + $0x3a4] ss:$8 sps:$4 sm:$0xff]  }
 0x1d5   : > { %v10083_v31 = vld [vmem:[%s11653_s17 + $0xba4] ss:$8 sps:$4 sm:$0xff]  }
 0x1d7   : > { %7989 = vmatpush1.bf16.msra.mxu1 %v10006_v32  ;;  %8413 = vmatpush1.bf16.msra.mxu0 %v10009_v33  ;;  %v10078_v32 = vld [vmem:[%s11653_s17 + $0x3a0] ss:$8 sps:$4 sm:$0xff]  }
 0x1d8   : > { %7990 = vmatprep.subr.bf16.mxu1 %v10014_v34  ;;  %8414 = vmatprep.subr.bf16.mxu0 %v10017_v35  ;;  %v10081_v33 = vld [vmem:[%s11653_s17 + $0xba0] ss:$8 sps:$4 sm:$0xff]   ;;  %v10086_v34 = vld [vmem:[%s11653_s17 + $0x3b4] ss:$8 sps:$4 sm:$0xff]  }
 0x1d9   : > { %v10089_v35 = vld [vmem:[%s11653_s17 + $0xbb4] ss:$8 sps:$4 sm:$0xff]  }
 0x1db   : > { %7991 = vmatpush1.bf16.msra.mxu1 %v10012_v36  ;;  %8415 = vmatpush1.bf16.msra.mxu0 %v10015_v37  ;;  %v10084_v36 = vld [vmem:[%s11653_s17 + $0x3b0] ss:$8 sps:$4 sm:$0xff]  }
 0x1dc   : > { %8013 = vmatprep.subr.bf16.mxu1 %v10020_v38  ;;  %8437 = vmatprep.subr.bf16.mxu0 %v10023_v39  ;;  %v10087_v37 = vld [vmem:[%s11653_s17 + $0xbb0] ss:$8 sps:$4 sm:$0xff]   ;;  %v10092_v38 = vld [vmem:[%s11653_s17 + $0x3c4] ss:$8 sps:$4 sm:$0xff]  }
 0x1dd   : > { %v10095_v39 = vld [vmem:[%s11653_s17 + $0xbc4] ss:$8 sps:$4 sm:$0xff]  }
 0x1de   : > { %7993 = vmatmul.mubr.bf16.vlgmr.msra.gmra.mrb[0].mxu1 %v8999_v48  ;;  %8417 = vmatmul.mubr.bf16.vlgmr.msra.gmra.mrb[0].mxu0 %v9015_v49  ;;  %v10096_v48 = vld [vmem:[%s11653_s17 + $0x3d0] ss:$8 sps:$4 sm:$0xff]  }
 0x1df   : > { %8014 = vmatpush1.bf16.msra.mxu1 %v10018_v40  ;;  %8438 = vmatpush1.bf16.msra.mxu0 %v10021_v41  ;;  %v10090_v40 = vld [vmem:[%s11653_s17 + $0x3c0] ss:$8 sps:$4 sm:$0xff]   ;;  %v10099_v49 = vld [vmem:[%s11653_s17 + $0xbd0] ss:$8 sps:$4 sm:$0xff]  }
 0x1e0   : > { %8015 = vmatprep.subr.bf16.mxu1 %v10026_v52  ;;  %8439 = vmatprep.subr.bf16.mxu0 %v10029_v42  ;;  %v10093_v41 = vld [vmem:[%s11653_s17 + $0xbc0] ss:$8 sps:$4 sm:$0xff]  }
 0x1e1   : > { %8002 = vmatprep.mubr.bf16.mxu1 %v9032_v43  ;;  %8426 = vmatprep.mubr.bf16.mxu0 %v9048_v46  ;;  %v10102_v52 = vld [vmem:[%s11653_s17 + $0x3e0] ss:$8 sps:$4 sm:$0xff]   ;;  %v10110_v43 = vld [vmem:[%s11653_s17 + $0x3f4] ss:$8 sps:$4 sm:$0xff]  }
 0x1e2   : > { %v10105_v42 = vld [vmem:[%s11653_s17 + $0xbe0] ss:$8 sps:$4 sm:$0xff]   ;;  %v10113_v46 = vld [vmem:[%s11653_s17 + $0xbf4] ss:$8 sps:$4 sm:$0xff]  }
 0x1e3   : > { %8016 = vmatpush1.bf16.msra.mxu1 %v10024_v47  ;;  %8440 = vmatpush1.bf16.msra.mxu0 %v10027_v53  ;;  %v10108_v47 = vld [vmem:[%s11653_s17 + $0x3f0] ss:$8 sps:$4 sm:$0xff]  }
 0x1e4   : > { %8017 = vmatprep.subr.bf16.mxu1 %v10032_v54  ;;  %8441 = vmatprep.subr.bf16.mxu0 %v10035_v55  ;;  %v10111_v53 = vld [vmem:[%s11653_s17 + $0xbf0] ss:$8 sps:$4 sm:$0xff]   ;;  %v10116_v54 = vld [vmem:[%s11653_s17 + $0x404] ss:$8 sps:$4 sm:$0xff]  }
 0x1e5   : > { %v10119_v55 = vld [vmem:[%s11653_s17 + $0xc04] ss:$8 sps:$4 sm:$0xff]  }
 0x1e6   : > { %8003 = vmatmul.mubr.bf16.gmra.mrb[4].mxu1 %v9031_v60  ;;  %8427 = vmatmul.mubr.bf16.gmra.mrb[4].mxu0 %v9047_v61  ;;  %v4433_v60 = vld [vmem:[%s12490_s0 + $0x118] sm:$0xff] }
 0x1e7   : > { %8018 = vmatpush1.bf16.msra.mxu1 %v10030_v56  ;;  %8442 = vmatpush1.bf16.msra.mxu0 %v10033_v57  ;;  %v10114_v56 = vld [vmem:[%s11653_s17 + $0x400] ss:$8 sps:$4 sm:$0xff]   ;;  %v4449_v61 = vld [vmem:[%s12490_s0 + $0x198] sm:$0xff] }
 0x1e8   : > { %8019 = vmatprep.subr.bf16.mxu1 %v10038_v4  ;;  %8443 = vmatprep.subr.bf16.mxu0 %v10041_v7  ;;  %v10117_v57 = vld [vmem:[%s11653_s17 + $0xc00] ss:$8 sps:$4 sm:$0xff]   ;;  %v9001_v4 = vcombine.low %v11960_v58, %v11965_v59  ;;  %v9017_v7 = vcombine.low %v11970_v62, %v11975_v63  ;;  %v10125_v58 = vld [vmem:[%s11653_s17 + $0xc14] ss:$8 sps:$4 sm:$0xff]   ;;  %v9034_v59 = vcombine.high %v4433_v60, %v4449_v61  ;;  %v10120_v63 = vld [vmem:[%s11653_s17 + $0x410] ss:$8 sps:$4 sm:$0xff]  }
 0x1e9   : > { %8045 = vmatprep.mubr.bf16.mxu1 %v9002_v8  ;;  %8469 = vmatprep.mubr.bf16.mxu0 %v9018_v9  ;;  %v4441_v8 = vld [vmem:[%s12490_s0 + $0x158] sm:$0xff] }
 0x1ea   : > { %v4457_v9 = vld [vmem:[%s12490_s0 + $0x1d8] sm:$0xff] }
 0x1eb   : > { %8020 = vmatpush1.bf16.msra.mxu1 %v10036_v10  ;;  %8444 = vmatpush1.bf16.msra.mxu0 %v10039_v11  ;;  %v10122_v10 = vld [vmem:[%s11653_s17 + $0x414] ss:$8 sps:$4 sm:$0xff]   ;;  %v9050_v62 = vcombine.high %v4441_v8, %v4457_v9  ;;  %v10123_v11 = vld [vmem:[%s11653_s17 + $0xc10] ss:$8 sps:$4 sm:$0xff]  }
 0x1ec   : > { %8021 = vmatprep.subr.bf16.mxu1 %v10044_v12  ;;  %8445 = vmatprep.subr.bf16.mxu0 %v10047_v13  ;;  %v10128_v12 = vld [vmem:[%s11653_s17 + $0x424] ss:$8 sps:$4 sm:$0xff]  }
 0x1ed   : > { %v10131_v13 = vld [vmem:[%s11653_s17 + $0xc24] ss:$8 sps:$4 sm:$0xff]  }
 0x1ef   : > { %8022 = vmatpush1.bf16.msra.mxu1 %v10042_v14  ;;  %8446 = vmatpush1.bf16.msra.mxu0 %v10045_v15  ;;  %v10126_v14 = vld [vmem:[%s11653_s17 + $0x420] ss:$8 sps:$4 sm:$0xff]  }
 0x1f0   : > { %8023 = vmatprep.subr.bf16.mxu1 %v10050_v16  ;;  %8447 = vmatprep.subr.bf16.mxu0 %v10053_v17  ;;  %v10129_v15 = vld [vmem:[%s11653_s17 + $0xc20] ss:$8 sps:$4 sm:$0xff]  }
 0x1f1   : > { %v12064_v16 = vld [vmem:[%s12490_s0 + $0x20] sm:$0xff] }
 0x1f2   : > { %v12069_v17 = vld [vmem:[%s12490_s0 + $0xa0] sm:$0xff] }
 0x1f3   : > { %8024 = vmatpush1.bf16.msra.mxu1 %v10048_v18  ;;  %8448 = vmatpush1.bf16.msra.mxu0 %v10051_v19  ;;  %v9033_v18 = vcombine.low %v4433_v60, %v4449_v61  ;;  %v9049_v19 = vcombine.low %v4441_v8, %v4457_v9  ;;  %v10194_v60 = vld [vmem:[%s11653_s17 + $0x4d4] ss:$8 sps:$4 sm:$0xff]   ;;  %v10200_v8 = vld [vmem:[%s11653_s17 + $0x4e4] ss:$8 sps:$4 sm:$0xff]  }
 0x1f4   : > { %8025 = vmatprep.subr.bf16.mxu1 %v10056_v20  ;;  %8449 = vmatprep.subr.bf16.mxu0 %v10059_v21  ;;  %v12074_v20 = vld [vmem:[%s12490_s0 + $0x60] sm:$0xff]  ;;  %v10197_v61 = vld [vmem:[%s11653_s17 + $0xcd4] ss:$8 sps:$4 sm:$0xff]  }
 0x1f5   : > { %v12079_v21 = vld [vmem:[%s12490_s0 + $0xe0] sm:$0xff] }
 0x1f6   : > { %v10203_v9 = vld [vmem:[%s11653_s17 + $0xce4] ss:$8 sps:$4 sm:$0xff]  }
 0x1f7   : > { %8026 = vmatpush1.bf16.msra.mxu1 %v10054_v22  ;;  %8450 = vmatpush1.bf16.msra.mxu0 %v10057_v23  ;;  %v10134_v22 = vld [vmem:[%s11653_s17 + $0x434] ss:$8 sps:$4 sm:$0xff]  }
 0x1f8   : > { %8027 = vmatprep.subr.bf16.mxu1 %v10062_v24  ;;  %8451 = vmatprep.subr.bf16.mxu0 %v10065_v25  ;;  %v10137_v23 = vld [vmem:[%s11653_s17 + $0xc34] ss:$8 sps:$4 sm:$0xff]   ;;  %v9004_v24 = vcombine.high %v12064_v16, %v12069_v17  ;;  %v9020_v25 = vcombine.high %v12074_v20, %v12079_v21 }
 0x1fb   : > { %8028 = vmatpush1.bf16.msra.mxu1 %v10060_v26  ;;  %8452 = vmatpush1.bf16.msra.mxu0 %v10063_v27  ;;  %v10132_v26 = vld [vmem:[%s11653_s17 + $0x430] ss:$8 sps:$4 sm:$0xff]  }
 0x1fc   : > { %8029 = vmatprep.subr.bf16.mxu1 %v10068_v28  ;;  %8453 = vmatprep.subr.bf16.mxu0 %v10071_v29  ;;  %v10135_v27 = vld [vmem:[%s11653_s17 + $0xc30] ss:$8 sps:$4 sm:$0xff]   ;;  %v10140_v28 = vld [vmem:[%s11653_s17 + $0x444] ss:$8 sps:$4 sm:$0xff]  }
 0x1fd   : > { %v10143_v29 = vld [vmem:[%s11653_s17 + $0xc44] ss:$8 sps:$4 sm:$0xff]  }
 0x1ff   : > { %8030 = vmatpush1.bf16.msra.mxu1 %v10066_v0  ;;  %8454 = vmatpush1.bf16.msra.mxu0 %v10069_v1  ;;  %v10138_v0 = vld [vmem:[%s11653_s17 + $0x440] ss:$8 sps:$4 sm:$0xff]  }
 0x200   : > { %8031 = vmatprep.subr.bf16.mxu1 %v10074_v3  ;;  %8455 = vmatprep.subr.bf16.mxu0 %v10077_v2  ;;  %v10141_v1 = vld [vmem:[%s11653_s17 + $0xc40] ss:$8 sps:$4 sm:$0xff]   ;;  %v10146_v3 = vld [vmem:[%s11653_s17 + $0x454] ss:$8 sps:$4 sm:$0xff]  }
 0x201   : > { %v10149_v2 = vld [vmem:[%s11653_s17 + $0xc54] ss:$8 sps:$4 sm:$0xff]  }
 0x203   : > { %8032 = vmatpush1.bf16.msra.mxu1 %v10072_v5  ;;  %8456 = vmatpush1.bf16.msra.mxu0 %v10075_v6  ;;  %v10144_v5 = vld [vmem:[%s11653_s17 + $0x450] ss:$8 sps:$4 sm:$0xff]  }
 0x204   : > { %8033 = vmatprep.subr.bf16.mxu1 %v10080_v30  ;;  %8457 = vmatprep.subr.bf16.mxu0 %v10083_v31  ;;  %v10147_v6 = vld [vmem:[%s11653_s17 + $0xc50] ss:$8 sps:$4 sm:$0xff]   ;;  %v10152_v30 = vld [vmem:[%s11653_s17 + $0x464] ss:$8 sps:$4 sm:$0xff]  }
 0x205   : > { %v10155_v31 = vld [vmem:[%s11653_s17 + $0xc64] ss:$8 sps:$4 sm:$0xff]  }
 0x207   : > { %8034 = vmatpush1.bf16.msra.mxu1 %v10078_v32  ;;  %8458 = vmatpush1.bf16.msra.mxu0 %v10081_v33  ;;  %v10150_v32 = vld [vmem:[%s11653_s17 + $0x460] ss:$8 sps:$4 sm:$0xff]  }
 0x208   : > { %8035 = vmatprep.subr.bf16.mxu1 %v10086_v34  ;;  %8459 = vmatprep.subr.bf16.mxu0 %v10089_v35  ;;  %v10153_v33 = vld [vmem:[%s11653_s17 + $0xc60] ss:$8 sps:$4 sm:$0xff]   ;;  %v10158_v34 = vld [vmem:[%s11653_s17 + $0x474] ss:$8 sps:$4 sm:$0xff]  }
 0x209   : > { %v10161_v35 = vld [vmem:[%s11653_s17 + $0xc74] ss:$8 sps:$4 sm:$0xff]  }
 0x20b   : > { %8036 = vmatpush1.bf16.msra.mxu1 %v10084_v36  ;;  %8460 = vmatpush1.bf16.msra.mxu0 %v10087_v37  ;;  %v10156_v36 = vld [vmem:[%s11653_s17 + $0x470] ss:$8 sps:$4 sm:$0xff]  }
 0x20c   : > { %8037 = vmatprep.subr.bf16.mxu1 %v10092_v38  ;;  %8461 = vmatprep.subr.bf16.mxu0 %v10095_v39  ;;  %v10159_v37 = vld [vmem:[%s11653_s17 + $0xc70] ss:$8 sps:$4 sm:$0xff]   ;;  %v10164_v38 = vld [vmem:[%s11653_s17 + $0x484] ss:$8 sps:$4 sm:$0xff]  }
 0x20d   : > { %v10167_v39 = vld [vmem:[%s11653_s17 + $0xc84] ss:$8 sps:$4 sm:$0xff]  }
 0x20f   : > { %8038 = vmatpush1.bf16.msra.mxu1 %v10090_v40  ;;  %8462 = vmatpush1.bf16.msra.mxu0 %v10093_v41  ;;  %v10162_v40 = vld [vmem:[%s11653_s17 + $0x480] ss:$8 sps:$4 sm:$0xff]  }
 0x210   : > { %8039 = vmatprep.subr.bf16.mxu1 %v10098_v44  ;;  %8463 = vmatprep.subr.bf16.mxu0 %v10101_v45  ;;  %v10165_v41 = vld [vmem:[%s11653_s17 + $0xc80] ss:$8 sps:$4 sm:$0xff]   ;;  %v10170_v44 = vld [vmem:[%s11653_s17 + $0x494] ss:$8 sps:$4 sm:$0xff]  }
 0x211   : > { %v10173_v45 = vld [vmem:[%s11653_s17 + $0xc94] ss:$8 sps:$4 sm:$0xff]  }
 0x213   : > { %8040 = vmatpush1.bf16.msra.mxu1 %v10096_v48  ;;  %8464 = vmatpush1.bf16.msra.mxu0 %v10099_v49  ;;  %v10168_v48 = vld [vmem:[%s11653_s17 + $0x490] ss:$8 sps:$4 sm:$0xff]  }
 0x214   : > { %8041 = vmatprep.subr.bf16.mxu1 %v10104_v50  ;;  %8465 = vmatprep.subr.bf16.mxu0 %v10107_v51  ;;  %v10171_v49 = vld [vmem:[%s11653_s17 + $0xc90] ss:$8 sps:$4 sm:$0xff]   ;;  %v10176_v50 = vld [vmem:[%s11653_s17 + $0x4a4] ss:$8 sps:$4 sm:$0xff]  }
 0x215   : > { %v10179_v51 = vld [vmem:[%s11653_s17 + $0xca4] ss:$8 sps:$4 sm:$0xff]  }
 0x217   : > { %8042 = vmatpush1.bf16.msra.mxu1 %v10102_v52  ;;  %8466 = vmatpush1.bf16.msra.mxu0 %v10105_v42  ;;  %v10174_v52 = vld [vmem:[%s11653_s17 + $0x4a0] ss:$8 sps:$4 sm:$0xff]  }
 0x218   : > { %8043 = vmatprep.subr.bf16.mxu1 %v10110_v43  ;;  %8467 = vmatprep.subr.bf16.mxu0 %v10113_v46  ;;  %v10177_v42 = vld [vmem:[%s11653_s17 + $0xca0] ss:$8 sps:$4 sm:$0xff]   ;;  %v10182_v43 = vld [vmem:[%s11653_s17 + $0x4b4] ss:$8 sps:$4 sm:$0xff]  }
 0x219   : > { %v10185_v46 = vld [vmem:[%s11653_s17 + $0xcb4] ss:$8 sps:$4 sm:$0xff]  }
 0x21b   : > { %8044 = vmatpush1.bf16.msra.mxu1 %v10108_v47  ;;  %8468 = vmatpush1.bf16.msra.mxu0 %v10111_v53  ;;  %v10180_v47 = vld [vmem:[%s11653_s17 + $0x4b0] ss:$8 sps:$4 sm:$0xff]  }
 0x21c   : > { %8066 = vmatprep.subr.bf16.mxu1 %v10116_v54  ;;  %8490 = vmatprep.subr.bf16.mxu0 %v10119_v55  ;;  %v10183_v53 = vld [vmem:[%s11653_s17 + $0xcb0] ss:$8 sps:$4 sm:$0xff]   ;;  %v10188_v54 = vld [vmem:[%s11653_s17 + $0x4c4] ss:$8 sps:$4 sm:$0xff]  }
 0x21d   : > { %v10191_v55 = vld [vmem:[%s11653_s17 + $0xcc4] ss:$8 sps:$4 sm:$0xff]  }
 0x21e   : > { %8046 = vmatmul.mubr.bf16.vlgmr.msra.gmra.mrb[0].mxu1 %v9001_v4  ;;  %8470 = vmatmul.mubr.bf16.vlgmr.msra.gmra.mrb[0].mxu0 %v9017_v7  ;;  %v10192_v4 = vld [vmem:[%s11653_s17 + $0x4d0] ss:$8 sps:$4 sm:$0xff]  }
 0x21f   : > { %8067 = vmatpush1.bf16.msra.mxu1 %v10114_v56  ;;  %8491 = vmatpush1.bf16.msra.mxu0 %v10117_v57  ;;  %v10186_v56 = vld [vmem:[%s11653_s17 + $0x4c0] ss:$8 sps:$4 sm:$0xff]   ;;  %v10195_v7 = vld [vmem:[%s11653_s17 + $0xcd0] ss:$8 sps:$4 sm:$0xff]  }
 0x220   : > { %8068 = vmatprep.subr.bf16.mxu1 %v10122_v10  ;;  %8492 = vmatprep.subr.bf16.mxu0 %v10125_v58  ;;  %v10189_v57 = vld [vmem:[%s11653_s17 + $0xcc0] ss:$8 sps:$4 sm:$0xff]  }
 0x221   : > { %8055 = vmatprep.mubr.bf16.mxu1 %v9034_v59  ;;  %8479 = vmatprep.mubr.bf16.mxu0 %v9050_v62  ;;  %v10198_v10 = vld [vmem:[%s11653_s17 + $0x4e0] ss:$8 sps:$4 sm:$0xff]   ;;  %v10206_v59 = vld [vmem:[%s11653_s17 + $0x4f4] ss:$8 sps:$4 sm:$0xff]  }
 0x222   : > { %v10201_v58 = vld [vmem:[%s11653_s17 + $0xce0] ss:$8 sps:$4 sm:$0xff]   ;;  %v10209_v62 = vld [vmem:[%s11653_s17 + $0xcf4] ss:$8 sps:$4 sm:$0xff]  }
 0x223   : > { %8069 = vmatpush1.bf16.msra.mxu1 %v10120_v63  ;;  %8493 = vmatpush1.bf16.msra.mxu0 %v10123_v11  ;;  %v10204_v63 = vld [vmem:[%s11653_s17 + $0x4f0] ss:$8 sps:$4 sm:$0xff]  }
 0x224   : > { %8070 = vmatprep.subr.bf16.mxu1 %v10128_v12  ;;  %8494 = vmatprep.subr.bf16.mxu0 %v10131_v13  ;;  %v10207_v11 = vld [vmem:[%s11653_s17 + $0xcf0] ss:$8 sps:$4 sm:$0xff]   ;;  %v10212_v12 = vld [vmem:[%s11653_s17 + $0x504] ss:$8 sps:$4 sm:$0xff]  }
 0x225   : > { %v10215_v13 = vld [vmem:[%s11653_s17 + $0xd04] ss:$8 sps:$4 sm:$0xff]  }
 0x226   : > { %8056 = vmatmul.mubr.bf16.gmra.mrb[4].mxu1 %v9033_v18  ;;  %8480 = vmatmul.mubr.bf16.gmra.mrb[4].mxu0 %v9049_v19  ;;  %v4442_v18 = vld [vmem:[%s12490_s0 + $0x160] sm:$0xff] }
 0x227   : > { %8071 = vmatpush1.bf16.msra.mxu1 %v10126_v14  ;;  %8495 = vmatpush1.bf16.msra.mxu0 %v10129_v15  ;;  %v4434_v14 = vld [vmem:[%s12490_s0 + $0x120] sm:$0xff] }
 0x228   : > { %8072 = vmatprep.subr.bf16.mxu1 %v10134_v22  ;;  %8496 = vmatprep.subr.bf16.mxu0 %v10137_v23  ;;  %v4450_v15 = vld [vmem:[%s12490_s0 + $0x1a0] sm:$0xff]  ;;  %v9003_v22 = vcombine.low %v12064_v16, %v12069_v17  ;;  %v9019_v23 = vcombine.low %v12074_v20, %v12079_v21  ;;  %v12166_v20 = vld [vmem:[%s12490_s0 + $0x28] sm:$0xff] }
 0x229   : > { %8098 = vmatprep.mubr.bf16.mxu1 %v9004_v24  ;;  %8522 = vmatprep.mubr.bf16.mxu0 %v9020_v25  ;;  %v4458_v19 = vld [vmem:[%s12490_s0 + $0x1e0] sm:$0xff]  ;;  %v12171_v21 = vld [vmem:[%s12490_s0 + $0xa8] sm:$0xff] }
 0x22a   : > { %v10210_v24 = vld [vmem:[%s11653_s17 + $0x500] ss:$8 sps:$4 sm:$0xff]   ;;  %v10224_v16 = vld [vmem:[%s11653_s17 + $0x524] ss:$8 sps:$4 sm:$0xff]  }
 0x22b   : > { %8073 = vmatpush1.bf16.msra.mxu1 %v10132_v26  ;;  %8497 = vmatpush1.bf16.msra.mxu0 %v10135_v27  ;;  %v10213_v25 = vld [vmem:[%s11653_s17 + $0xd00] ss:$8 sps:$4 sm:$0xff]   ;;  %v10218_v26 = vld [vmem:[%s11653_s17 + $0x514] ss:$8 sps:$4 sm:$0xff]   ;;  %v10227_v17 = vld [vmem:[%s11653_s17 + $0xd24] ss:$8 sps:$4 sm:$0xff]  }
 0x22c   : > { %8074 = vmatprep.subr.bf16.mxu1 %v10140_v28  ;;  %8498 = vmatprep.subr.bf16.mxu0 %v10143_v29  ;;  %v10221_v27 = vld [vmem:[%s11653_s17 + $0xd14] ss:$8 sps:$4 sm:$0xff]   ;;  %v10216_v28 = vld [vmem:[%s11653_s17 + $0x510] ss:$8 sps:$4 sm:$0xff]  }
 0x22d   : > { %v10219_v29 = vld [vmem:[%s11653_s17 + $0xd10] ss:$8 sps:$4 sm:$0xff]  }
 0x22f   : > { %8075 = vmatpush1.bf16.msra.mxu1 %v10138_v0  ;;  %8499 = vmatpush1.bf16.msra.mxu0 %v10141_v1  ;;  %v9036_v0 = vcombine.high %v4434_v14, %v4450_v15  ;;  %v9052_v1 = vcombine.high %v4442_v18, %v4458_v19 }
 0x230   : > { %8076 = vmatprep.subr.bf16.mxu1 %v10146_v3  ;;  %8500 = vmatprep.subr.bf16.mxu0 %v10149_v2  ;;  %v12176_v3 = vld [vmem:[%s12490_s0 + $0x68] sm:$0xff] }
 0x231   : > { %v12181_v2 = vld [vmem:[%s12490_s0 + $0xe8] sm:$0xff] }
 0x233   : > { %8077 = vmatpush1.bf16.msra.mxu1 %v10144_v5  ;;  %8501 = vmatpush1.bf16.msra.mxu0 %v10147_v6  ;;  %v9035_v5 = vcombine.low %v4434_v14, %v4450_v15  ;;  %v9051_v6 = vcombine.low %v4442_v18, %v4458_v19  ;;  %v10282_v14 = vld [vmem:[%s11653_s17 + $0x5c0] ss:$8 sps:$4 sm:$0xff]   ;;  %v10290_v18 = vld [vmem:[%s11653_s17 + $0x5d4] ss:$8 sps:$4 sm:$0xff]  }
 0x234   : > { %8078 = vmatprep.subr.bf16.mxu1 %v10152_v30  ;;  %8502 = vmatprep.subr.bf16.mxu0 %v10155_v31  ;;  %v10222_v30 = vld [vmem:[%s11653_s17 + $0x520] ss:$8 sps:$4 sm:$0xff]   ;;  %v10293_v19 = vld [vmem:[%s11653_s17 + $0xdd4] ss:$8 sps:$4 sm:$0xff]  }
 0x235   : > { %v10225_v31 = vld [vmem:[%s11653_s17 + $0xd20] ss:$8 sps:$4 sm:$0xff]  }
 0x236   : > { %v10285_v15 = vld [vmem:[%s11653_s17 + $0xdc0] ss:$8 sps:$4 sm:$0xff]  }
 0x237   : > { %8079 = vmatpush1.bf16.msra.mxu1 %v10150_v32  ;;  %8503 = vmatpush1.bf16.msra.mxu0 %v10153_v33  ;;  %v10230_v32 = vld [vmem:[%s11653_s17 + $0x534] ss:$8 sps:$4 sm:$0xff]  }
 0x238   : > { %8080 = vmatprep.subr.bf16.mxu1 %v10158_v34  ;;  %8504 = vmatprep.subr.bf16.mxu0 %v10161_v35  ;;  %v10233_v33 = vld [vmem:[%s11653_s17 + $0xd34] ss:$8 sps:$4 sm:$0xff]   ;;  %v9006_v34 = vcombine.high %v12166_v20, %v12171_v21  ;;  %v9022_v35 = vcombine.high %v12176_v3, %v12181_v2 }
 0x23b   : > { %8081 = vmatpush1.bf16.msra.mxu1 %v10156_v36  ;;  %8505 = vmatpush1.bf16.msra.mxu0 %v10159_v37  ;;  %v10228_v36 = vld [vmem:[%s11653_s17 + $0x530] ss:$8 sps:$4 sm:$0xff]  }
 0x23c   : > { %8082 = vmatprep.subr.bf16.mxu1 %v10164_v38  ;;  %8506 = vmatprep.subr.bf16.mxu0 %v10167_v39  ;;  %v10231_v37 = vld [vmem:[%s11653_s17 + $0xd30] ss:$8 sps:$4 sm:$0xff]   ;;  %v10236_v38 = vld [vmem:[%s11653_s17 + $0x544] ss:$8 sps:$4 sm:$0xff]  }
 0x23d   : > { %v10239_v39 = vld [vmem:[%s11653_s17 + $0xd44] ss:$8 sps:$4 sm:$0xff]  }
 0x23f   : > { %8083 = vmatpush1.bf16.msra.mxu1 %v10162_v40  ;;  %8507 = vmatpush1.bf16.msra.mxu0 %v10165_v41  ;;  %v10234_v40 = vld [vmem:[%s11653_s17 + $0x540] ss:$8 sps:$4 sm:$0xff]  }
 0x240   : > { %8084 = vmatprep.subr.bf16.mxu1 %v10170_v44  ;;  %8508 = vmatprep.subr.bf16.mxu0 %v10173_v45  ;;  %v10237_v41 = vld [vmem:[%s11653_s17 + $0xd40] ss:$8 sps:$4 sm:$0xff]   ;;  %v10242_v44 = vld [vmem:[%s11653_s17 + $0x554] ss:$8 sps:$4 sm:$0xff]  }
 0x241   : > { %v10245_v45 = vld [vmem:[%s11653_s17 + $0xd54] ss:$8 sps:$4 sm:$0xff]  }
 0x243   : > { %8085 = vmatpush1.bf16.msra.mxu1 %v10168_v48  ;;  %8509 = vmatpush1.bf16.msra.mxu0 %v10171_v49  ;;  %v10240_v48 = vld [vmem:[%s11653_s17 + $0x550] ss:$8 sps:$4 sm:$0xff]  }
 0x244   : > { %8086 = vmatprep.subr.bf16.mxu1 %v10176_v50  ;;  %8510 = vmatprep.subr.bf16.mxu0 %v10179_v51  ;;  %v10243_v49 = vld [vmem:[%s11653_s17 + $0xd50] ss:$8 sps:$4 sm:$0xff]   ;;  %v10248_v50 = vld [vmem:[%s11653_s17 + $0x564] ss:$8 sps:$4 sm:$0xff]  }
 0x245   : > { %v10251_v51 = vld [vmem:[%s11653_s17 + $0xd64] ss:$8 sps:$4 sm:$0xff]  }
 0x247   : > { %8087 = vmatpush1.bf16.msra.mxu1 %v10174_v52  ;;  %8511 = vmatpush1.bf16.msra.mxu0 %v10177_v42  ;;  %v10246_v52 = vld [vmem:[%s11653_s17 + $0x560] ss:$8 sps:$4 sm:$0xff]  }
 0x248   : > { %8088 = vmatprep.subr.bf16.mxu1 %v10182_v43  ;;  %8512 = vmatprep.subr.bf16.mxu0 %v10185_v46  ;;  %v10249_v42 = vld [vmem:[%s11653_s17 + $0xd60] ss:$8 sps:$4 sm:$0xff]   ;;  %v10254_v43 = vld [vmem:[%s11653_s17 + $0x574] ss:$8 sps:$4 sm:$0xff]  }
 0x249   : > { %v10257_v46 = vld [vmem:[%s11653_s17 + $0xd74] ss:$8 sps:$4 sm:$0xff]  }
 0x24b   : > { %8089 = vmatpush1.bf16.msra.mxu1 %v10180_v47  ;;  %8513 = vmatpush1.bf16.msra.mxu0 %v10183_v53  ;;  %v10252_v47 = vld [vmem:[%s11653_s17 + $0x570] ss:$8 sps:$4 sm:$0xff]  }
 0x24c   : > { %8090 = vmatprep.subr.bf16.mxu1 %v10188_v54  ;;  %8514 = vmatprep.subr.bf16.mxu0 %v10191_v55  ;;  %v10255_v53 = vld [vmem:[%s11653_s17 + $0xd70] ss:$8 sps:$4 sm:$0xff]   ;;  %v10260_v54 = vld [vmem:[%s11653_s17 + $0x584] ss:$8 sps:$4 sm:$0xff]  }
 0x24d   : > { %v10263_v55 = vld [vmem:[%s11653_s17 + $0xd84] ss:$8 sps:$4 sm:$0xff]  }
 0x24f   : > { %8091 = vmatpush1.bf16.msra.mxu1 %v10186_v56  ;;  %8515 = vmatpush1.bf16.msra.mxu0 %v10189_v57  ;;  %v10258_v56 = vld [vmem:[%s11653_s17 + $0x580] ss:$8 sps:$4 sm:$0xff]  }
 0x250   : > { %8092 = vmatprep.subr.bf16.mxu1 %v10194_v60  ;;  %8516 = vmatprep.subr.bf16.mxu0 %v10197_v61  ;;  %v10261_v57 = vld [vmem:[%s11653_s17 + $0xd80] ss:$8 sps:$4 sm:$0xff]   ;;  %v10266_v60 = vld [vmem:[%s11653_s17 + $0x594] ss:$8 sps:$4 sm:$0xff]  }
 0x251   : > { %v10269_v61 = vld [vmem:[%s11653_s17 + $0xd94] ss:$8 sps:$4 sm:$0xff]  }
 0x253   : > { %8093 = vmatpush1.bf16.msra.mxu1 %v10192_v4  ;;  %8517 = vmatpush1.bf16.msra.mxu0 %v10195_v7  ;;  %v10264_v4 = vld [vmem:[%s11653_s17 + $0x590] ss:$8 sps:$4 sm:$0xff]  }
 0x254   : > { %8094 = vmatprep.subr.bf16.mxu1 %v10200_v8  ;;  %8518 = vmatprep.subr.bf16.mxu0 %v10203_v9  ;;  %v10267_v7 = vld [vmem:[%s11653_s17 + $0xd90] ss:$8 sps:$4 sm:$0xff]   ;;  %v10272_v8 = vld [vmem:[%s11653_s17 + $0x5a4] ss:$8 sps:$4 sm:$0xff]  }
 0x255   : > { %v10275_v9 = vld [vmem:[%s11653_s17 + $0xda4] ss:$8 sps:$4 sm:$0xff]  }
 0x257   : > { %8095 = vmatpush1.bf16.msra.mxu1 %v10198_v10  ;;  %8519 = vmatpush1.bf16.msra.mxu0 %v10201_v58  ;;  %v10270_v10 = vld [vmem:[%s11653_s17 + $0x5a0] ss:$8 sps:$4 sm:$0xff]  }
 0x258   : > { %8096 = vmatprep.subr.bf16.mxu1 %v10206_v59  ;;  %8520 = vmatprep.subr.bf16.mxu0 %v10209_v62  ;;  %v10273_v58 = vld [vmem:[%s11653_s17 + $0xda0] ss:$8 sps:$4 sm:$0xff]   ;;  %v10278_v59 = vld [vmem:[%s11653_s17 + $0x5b4] ss:$8 sps:$4 sm:$0xff]  }
 0x259   : > { %v10281_v62 = vld [vmem:[%s11653_s17 + $0xdb4] ss:$8 sps:$4 sm:$0xff]  }
 0x25b   : > { %8097 = vmatpush1.bf16.msra.mxu1 %v10204_v63  ;;  %8521 = vmatpush1.bf16.msra.mxu0 %v10207_v11  ;;  %v10276_v63 = vld [vmem:[%s11653_s17 + $0x5b0] ss:$8 sps:$4 sm:$0xff]  }
 0x25c   : > { %8119 = vmatprep.subr.bf16.mxu1 %v10212_v12  ;;  %8543 = vmatprep.subr.bf16.mxu0 %v10215_v13  ;;  %v10279_v11 = vld [vmem:[%s11653_s17 + $0xdb0] ss:$8 sps:$4 sm:$0xff]   ;;  %v10284_v12 = vld [vmem:[%s11653_s17 + $0x5c4] ss:$8 sps:$4 sm:$0xff]  }
 0x25d   : > { %v10287_v13 = vld [vmem:[%s11653_s17 + $0xdc4] ss:$8 sps:$4 sm:$0xff]  }
 0x25e   : > { %8099 = vmatmul.mubr.bf16.vlgmr.msra.gmra.mrb[0].mxu1 %v9003_v22  ;;  %8523 = vmatmul.mubr.bf16.vlgmr.msra.gmra.mrb[0].mxu0 %v9019_v23  ;;  %v10288_v22 = vld [vmem:[%s11653_s17 + $0x5d0] ss:$8 sps:$4 sm:$0xff]  }
 0x25f   : > { %8120 = vmatpush1.bf16.msra.mxu1 %v10210_v24  ;;  %8544 = vmatpush1.bf16.msra.mxu0 %v10213_v25  ;;  %v10291_v23 = vld [vmem:[%s11653_s17 + $0xdd0] ss:$8 sps:$4 sm:$0xff]   ;;  %v10296_v24 = vld [vmem:[%s11653_s17 + $0x5e4] ss:$8 sps:$4 sm:$0xff]  }
 0x260   : > { %8121 = vmatprep.subr.bf16.mxu1 %v10218_v26  ;;  %8545 = vmatprep.subr.bf16.mxu0 %v10221_v27  ;;  %v10299_v25 = vld [vmem:[%s11653_s17 + $0xde4] ss:$8 sps:$4 sm:$0xff]   ;;  %v10294_v26 = vld [vmem:[%s11653_s17 + $0x5e0] ss:$8 sps:$4 sm:$0xff]  }
 0x261   : > { %8108 = vmatprep.mubr.bf16.mxu1 %v9036_v0  ;;  %8532 = vmatprep.mubr.bf16.mxu0 %v9052_v1  ;;  %v10297_v27 = vld [vmem:[%s11653_s17 + $0xde0] ss:$8 sps:$4 sm:$0xff]   ;;  %v10300_v0 = vld [vmem:[%s11653_s17 + $0x5f0] ss:$8 sps:$4 sm:$0xff]  }
 0x262   : > { %v10303_v1 = vld [vmem:[%s11653_s17 + $0xdf0] ss:$8 sps:$4 sm:$0xff]  }
 0x263   : > { %8122 = vmatpush1.bf16.msra.mxu1 %v10216_v28  ;;  %8546 = vmatpush1.bf16.msra.mxu0 %v10219_v29  ;;  %v10302_v28 = vld [vmem:[%s11653_s17 + $0x5f4] ss:$8 sps:$4 sm:$0xff]  }
 0x264   : > { %8123 = vmatprep.subr.bf16.mxu1 %v10224_v16  ;;  %8547 = vmatprep.subr.bf16.mxu0 %v10227_v17  ;;  %v10305_v29 = vld [vmem:[%s11653_s17 + $0xdf4] ss:$8 sps:$4 sm:$0xff]   ;;  %v10308_v16 = vld [vmem:[%s11653_s17 + $0x604] ss:$8 sps:$4 sm:$0xff]  }
 0x265   : > { %v10311_v17 = vld [vmem:[%s11653_s17 + $0xe04] ss:$8 sps:$4 sm:$0xff]  }
 0x266   : > { %8109 = vmatmul.mubr.bf16.gmra.mrb[4].mxu1 %v9035_v5  ;;  %8533 = vmatmul.mubr.bf16.gmra.mrb[4].mxu0 %v9051_v6  ;;  %v4435_v5 = vld [vmem:[%s12490_s0 + $0x128] sm:$0xff]  ;;  %v9005_v6 = vcombine.low %v12166_v20, %v12171_v21 }
 0x267   : > { %8124 = vmatpush1.bf16.msra.mxu1 %v10222_v30  ;;  %8548 = vmatpush1.bf16.msra.mxu0 %v10225_v31  ;;  %v9021_v30 = vcombine.low %v12176_v3, %v12181_v2  ;;  %v4451_v31 = vld [vmem:[%s12490_s0 + $0x1a8] sm:$0xff]  ;;  %v10314_v3 = vld [vmem:[%s11653_s17 + $0x614] ss:$8 sps:$4 sm:$0xff]  }
 0x268   : > { %8125 = vmatprep.subr.bf16.mxu1 %v10230_v32  ;;  %8549 = vmatprep.subr.bf16.mxu0 %v10233_v33  ;;  %v4443_v32 = vld [vmem:[%s12490_s0 + $0x168] sm:$0xff]  ;;  %v10317_v2 = vld [vmem:[%s11653_s17 + $0xe14] ss:$8 sps:$4 sm:$0xff]  }
 0x269   : > { %8151 = vmatprep.mubr.bf16.mxu1 %v9006_v34  ;;  %8575 = vmatprep.mubr.bf16.mxu0 %v9022_v35  ;;  %v4459_v33 = vld [vmem:[%s12490_s0 + $0x1e8] sm:$0xff]  ;;  %v9038_v34 = vcombine.high %v4435_v5, %v4451_v31 }
 0x26a   : > { %v10306_v20 = vld [vmem:[%s11653_s17 + $0x600] ss:$8 sps:$4 sm:$0xff]   ;;  %v9054_v35 = vcombine.high %v4443_v32, %v4459_v33 }
 0x26b   : > { %8126 = vmatpush1.bf16.msra.mxu1 %v10228_v36  ;;  %8550 = vmatpush1.bf16.msra.mxu0 %v10231_v37  ;;  %v10309_v21 = vld [vmem:[%s11653_s17 + $0xe00] ss:$8 sps:$4 sm:$0xff]   ;;  %v10312_v36 = vld [vmem:[%s11653_s17 + $0x610] ss:$8 sps:$4 sm:$0xff]  }
 0x26c   : > { %8127 = vmatprep.subr.bf16.mxu1 %v10236_v38  ;;  %8551 = vmatprep.subr.bf16.mxu0 %v10239_v39  ;;  %v10315_v37 = vld [vmem:[%s11653_s17 + $0xe10] ss:$8 sps:$4 sm:$0xff]   ;;  %v10320_v38 = vld [vmem:[%s11653_s17 + $0x624] ss:$8 sps:$4 sm:$0xff]  }
 0x26d   : > { %v10323_v39 = vld [vmem:[%s11653_s17 + $0xe24] ss:$8 sps:$4 sm:$0xff]  }
 0x26f   : > { %8128 = vmatpush1.bf16.msra.mxu1 %v10234_v40  ;;  %8552 = vmatpush1.bf16.msra.mxu0 %v10237_v41  ;;  %v12270_v40 = vld [vmem:[%s12490_s0 + $0x30] sm:$0xff]  ;;  %v9037_v41 = vcombine.low %v4435_v5, %v4451_v31  ;;  %v10378_v5 = vld [vmem:[%s11653_s17 + $0x6c0] ss:$8 sps:$4 sm:$0xff]  }
 0x270   : > { %8129 = vmatprep.subr.bf16.mxu1 %v10242_v44  ;;  %8553 = vmatprep.subr.bf16.mxu0 %v10245_v45  ;;  %v9053_v44 = vcombine.low %v4443_v32, %v4459_v33  ;;  %v12275_v45 = vld [vmem:[%s12490_s0 + $0xb0] sm:$0xff] }
 0x271   : > { %v10389_v31 = vld [vmem:[%s11653_s17 + $0xed4] ss:$8 sps:$4 sm:$0xff]   ;;  %v10384_v32 = vld [vmem:[%s11653_s17 + $0x6d0] ss:$8 sps:$4 sm:$0xff]  }
 0x272   : > { %v10387_v33 = vld [vmem:[%s11653_s17 + $0xed0] ss:$8 sps:$4 sm:$0xff]  }
 0x273   : > { %8130 = vmatpush1.bf16.msra.mxu1 %v10240_v48  ;;  %8554 = vmatpush1.bf16.msra.mxu0 %v10243_v49  ;;  %v12280_v48 = vld [vmem:[%s12490_s0 + $0x70] sm:$0xff] }
 0x274   : > { %8131 = vmatprep.subr.bf16.mxu1 %v10248_v50  ;;  %8555 = vmatprep.subr.bf16.mxu0 %v10251_v51  ;;  %v12285_v49 = vld [vmem:[%s12490_s0 + $0xf0] sm:$0xff]  ;;  %v10318_v50 = vld [vmem:[%s11653_s17 + $0x620] ss:$8 sps:$4 sm:$0xff]  }
 0x275   : > { %v10321_v51 = vld [vmem:[%s11653_s17 + $0xe20] ss:$8 sps:$4 sm:$0xff]  }
 0x277   : > { %8132 = vmatpush1.bf16.msra.mxu1 %v10246_v52  ;;  %8556 = vmatpush1.bf16.msra.mxu0 %v10249_v42  ;;  %v10326_v52 = vld [vmem:[%s11653_s17 + $0x634] ss:$8 sps:$4 sm:$0xff]  }
 0x278   : > { %8133 = vmatprep.subr.bf16.mxu1 %v10254_v43  ;;  %8557 = vmatprep.subr.bf16.mxu0 %v10257_v46  ;;  %v10329_v42 = vld [vmem:[%s11653_s17 + $0xe34] ss:$8 sps:$4 sm:$0xff]   ;;  %v9008_v43 = vcombine.high %v12270_v40, %v12275_v45  ;;  %v9024_v46 = vcombine.high %v12280_v48, %v12285_v49 }
 0x27b   : > { %8134 = vmatpush1.bf16.msra.mxu1 %v10252_v47  ;;  %8558 = vmatpush1.bf16.msra.mxu0 %v10255_v53  ;;  %v10324_v47 = vld [vmem:[%s11653_s17 + $0x630] ss:$8 sps:$4 sm:$0xff]  }
 0x27c   : > { %8135 = vmatprep.subr.bf16.mxu1 %v10260_v54  ;;  %8559 = vmatprep.subr.bf16.mxu0 %v10263_v55  ;;  %v10327_v53 = vld [vmem:[%s11653_s17 + $0xe30] ss:$8 sps:$4 sm:$0xff]   ;;  %v10332_v54 = vld [vmem:[%s11653_s17 + $0x644] ss:$8 sps:$4 sm:$0xff]  }
 0x27d   : > { %v10335_v55 = vld [vmem:[%s11653_s17 + $0xe44] ss:$8 sps:$4 sm:$0xff]  }
 0x27f   : > { %8136 = vmatpush1.bf16.msra.mxu1 %v10258_v56  ;;  %8560 = vmatpush1.bf16.msra.mxu0 %v10261_v57  ;;  %v10330_v56 = vld [vmem:[%s11653_s17 + $0x640] ss:$8 sps:$4 sm:$0xff]  }
 0x280   : > { %8137 = vmatprep.subr.bf16.mxu1 %v10266_v60  ;;  %8561 = vmatprep.subr.bf16.mxu0 %v10269_v61  ;;  %v10333_v57 = vld [vmem:[%s11653_s17 + $0xe40] ss:$8 sps:$4 sm:$0xff]   ;;  %v10338_v60 = vld [vmem:[%s11653_s17 + $0x654] ss:$8 sps:$4 sm:$0xff]  }
 0x281   : > { %v10341_v61 = vld [vmem:[%s11653_s17 + $0xe54] ss:$8 sps:$4 sm:$0xff]  }
 0x283   : > { %8138 = vmatpush1.bf16.msra.mxu1 %v10264_v4  ;;  %8562 = vmatpush1.bf16.msra.mxu0 %v10267_v7  ;;  %v10336_v4 = vld [vmem:[%s11653_s17 + $0x650] ss:$8 sps:$4 sm:$0xff]  }
 0x284   : > { %8139 = vmatprep.subr.bf16.mxu1 %v10272_v8  ;;  %8563 = vmatprep.subr.bf16.mxu0 %v10275_v9  ;;  %v10339_v7 = vld [vmem:[%s11653_s17 + $0xe50] ss:$8 sps:$4 sm:$0xff]   ;;  %v10344_v8 = vld [vmem:[%s11653_s17 + $0x664] ss:$8 sps:$4 sm:$0xff]  }
 0x285   : > { %v10347_v9 = vld [vmem:[%s11653_s17 + $0xe64] ss:$8 sps:$4 sm:$0xff]  }
 0x287   : > { %8140 = vmatpush1.bf16.msra.mxu1 %v10270_v10  ;;  %8564 = vmatpush1.bf16.msra.mxu0 %v10273_v58  ;;  %v10342_v10 = vld [vmem:[%s11653_s17 + $0x660] ss:$8 sps:$4 sm:$0xff]  }
 0x288   : > { %8141 = vmatprep.subr.bf16.mxu1 %v10278_v59  ;;  %8565 = vmatprep.subr.bf16.mxu0 %v10281_v62  ;;  %v10345_v58 = vld [vmem:[%s11653_s17 + $0xe60] ss:$8 sps:$4 sm:$0xff]   ;;  %v10350_v59 = vld [vmem:[%s11653_s17 + $0x674] ss:$8 sps:$4 sm:$0xff]  }
 0x289   : > { %v10353_v62 = vld [vmem:[%s11653_s17 + $0xe74] ss:$8 sps:$4 sm:$0xff]  }
 0x28b   : > { %8142 = vmatpush1.bf16.msra.mxu1 %v10276_v63  ;;  %8566 = vmatpush1.bf16.msra.mxu0 %v10279_v11  ;;  %v10348_v63 = vld [vmem:[%s11653_s17 + $0x670] ss:$8 sps:$4 sm:$0xff]  }
 0x28c   : > { %8143 = vmatprep.subr.bf16.mxu1 %v10284_v12  ;;  %8567 = vmatprep.subr.bf16.mxu0 %v10287_v13  ;;  %v10351_v11 = vld [vmem:[%s11653_s17 + $0xe70] ss:$8 sps:$4 sm:$0xff]   ;;  %v10356_v12 = vld [vmem:[%s11653_s17 + $0x684] ss:$8 sps:$4 sm:$0xff]  }
 0x28d   : > { %v10359_v13 = vld [vmem:[%s11653_s17 + $0xe84] ss:$8 sps:$4 sm:$0xff]  }
 0x28f   : > { %8144 = vmatpush1.bf16.msra.mxu1 %v10282_v14  ;;  %8568 = vmatpush1.bf16.msra.mxu0 %v10285_v15  ;;  %v10354_v14 = vld [vmem:[%s11653_s17 + $0x680] ss:$8 sps:$4 sm:$0xff]  }
 0x290   : > { %8145 = vmatprep.subr.bf16.mxu1 %v10290_v18  ;;  %8569 = vmatprep.subr.bf16.mxu0 %v10293_v19  ;;  %v10357_v15 = vld [vmem:[%s11653_s17 + $0xe80] ss:$8 sps:$4 sm:$0xff]   ;;  %v10362_v18 = vld [vmem:[%s11653_s17 + $0x694] ss:$8 sps:$4 sm:$0xff]  }
 0x291   : > { %v10365_v19 = vld [vmem:[%s11653_s17 + $0xe94] ss:$8 sps:$4 sm:$0xff]  }
 0x293   : > { %8146 = vmatpush1.bf16.msra.mxu1 %v10288_v22  ;;  %8570 = vmatpush1.bf16.msra.mxu0 %v10291_v23  ;;  %v10360_v22 = vld [vmem:[%s11653_s17 + $0x690] ss:$8 sps:$4 sm:$0xff]  }
 0x294   : > { %8147 = vmatprep.subr.bf16.mxu1 %v10296_v24  ;;  %8571 = vmatprep.subr.bf16.mxu0 %v10299_v25  ;;  %v10363_v23 = vld [vmem:[%s11653_s17 + $0xe90] ss:$8 sps:$4 sm:$0xff]   ;;  %v10368_v24 = vld [vmem:[%s11653_s17 + $0x6a4] ss:$8 sps:$4 sm:$0xff]  }
 0x295   : > { %v10371_v25 = vld [vmem:[%s11653_s17 + $0xea4] ss:$8 sps:$4 sm:$0xff]  }
 0x297   : > { %8148 = vmatpush1.bf16.msra.mxu1 %v10294_v26  ;;  %8572 = vmatpush1.bf16.msra.mxu0 %v10297_v27  ;;  %v10366_v26 = vld [vmem:[%s11653_s17 + $0x6a0] ss:$8 sps:$4 sm:$0xff]  }
 0x298   : > { %8149 = vmatprep.subr.bf16.mxu1 %v10302_v28  ;;  %8573 = vmatprep.subr.bf16.mxu0 %v10305_v29  ;;  %v10369_v27 = vld [vmem:[%s11653_s17 + $0xea0] ss:$8 sps:$4 sm:$0xff]   ;;  %v10374_v28 = vld [vmem:[%s11653_s17 + $0x6b4] ss:$8 sps:$4 sm:$0xff]  }
 0x299   : > { %v10377_v29 = vld [vmem:[%s11653_s17 + $0xeb4] ss:$8 sps:$4 sm:$0xff]  }
 0x29b   : > { %8150 = vmatpush1.bf16.msra.mxu1 %v10300_v0  ;;  %8574 = vmatpush1.bf16.msra.mxu0 %v10303_v1  ;;  %v10372_v0 = vld [vmem:[%s11653_s17 + $0x6b0] ss:$8 sps:$4 sm:$0xff]  }
 0x29c   : > { %8172 = vmatprep.subr.bf16.mxu1 %v10308_v16  ;;  %8596 = vmatprep.subr.bf16.mxu0 %v10311_v17  ;;  %v10375_v1 = vld [vmem:[%s11653_s17 + $0xeb0] ss:$8 sps:$4 sm:$0xff]   ;;  %v10380_v16 = vld [vmem:[%s11653_s17 + $0x6c4] ss:$8 sps:$4 sm:$0xff]  }
 0x29d   : > { %v10383_v17 = vld [vmem:[%s11653_s17 + $0xec4] ss:$8 sps:$4 sm:$0xff]  }
 0x29e   : > { %8152 = vmatmul.mubr.bf16.vlgmr.msra.gmra.mrb[0].mxu1 %v9005_v6  ;;  %8576 = vmatmul.mubr.bf16.vlgmr.msra.gmra.mrb[0].mxu0 %v9021_v30  ;;  %v10381_v6 = vld [vmem:[%s11653_s17 + $0xec0] ss:$8 sps:$4 sm:$0xff]   ;;  %v10386_v30 = vld [vmem:[%s11653_s17 + $0x6d4] ss:$8 sps:$4 sm:$0xff]  }
 0x29f   : > { %8173 = vmatpush1.bf16.msra.mxu1 %v10306_v20  ;;  %8597 = vmatpush1.bf16.msra.mxu0 %v10309_v21  ;;  %v10392_v20 = vld [vmem:[%s11653_s17 + $0x6e4] ss:$8 sps:$4 sm:$0xff]  }
 0x2a0   : > { %8174 = vmatprep.subr.bf16.mxu1 %v10314_v3  ;;  %8598 = vmatprep.subr.bf16.mxu0 %v10317_v2  ;;  %v10395_v21 = vld [vmem:[%s11653_s17 + $0xee4] ss:$8 sps:$4 sm:$0xff]   ;;  %v10390_v3 = vld [vmem:[%s11653_s17 + $0x6e0] ss:$8 sps:$4 sm:$0xff]  }
 0x2a1   : > { %8161 = vmatprep.mubr.bf16.mxu1 %v9038_v34  ;;  %8585 = vmatprep.mubr.bf16.mxu0 %v9054_v35  ;;  %v10393_v2 = vld [vmem:[%s11653_s17 + $0xee0] ss:$8 sps:$4 sm:$0xff]   ;;  %v10398_v34 = vld [vmem:[%s11653_s17 + $0x6f4] ss:$8 sps:$4 sm:$0xff]  }
 0x2a2   : > { %v10401_v35 = vld [vmem:[%s11653_s17 + $0xef4] ss:$8 sps:$4 sm:$0xff]  }
 0x2a3   : > { %8175 = vmatpush1.bf16.msra.mxu1 %v10312_v36  ;;  %8599 = vmatpush1.bf16.msra.mxu0 %v10315_v37  ;;  %v10396_v36 = vld [vmem:[%s11653_s17 + $0x6f0] ss:$8 sps:$4 sm:$0xff]  }
 0x2a4   : > { %8176 = vmatprep.subr.bf16.mxu1 %v10320_v38  ;;  %8600 = vmatprep.subr.bf16.mxu0 %v10323_v39  ;;  %v10399_v37 = vld [vmem:[%s11653_s17 + $0xef0] ss:$8 sps:$4 sm:$0xff]   ;;  %v10404_v38 = vld [vmem:[%s11653_s17 + $0x704] ss:$8 sps:$4 sm:$0xff]  }
 0x2a5   : > { %v10407_v39 = vld [vmem:[%s11653_s17 + $0xf04] ss:$8 sps:$4 sm:$0xff]  }
 0x2a6   : > { %8162 = vmatmul.mubr.bf16.gmra.mrb[4].mxu1 %v9037_v41  ;;  %8586 = vmatmul.mubr.bf16.gmra.mrb[4].mxu0 %v9053_v44  ;;  %v4436_v41 = vld [vmem:[%s12490_s0 + $0x130] sm:$0xff]  ;;  %v9007_v44 = vcombine.low %v12270_v40, %v12275_v45  ;;  %v10402_v40 = vld [vmem:[%s11653_s17 + $0x700] ss:$8 sps:$4 sm:$0xff]  }
 0x2a7   : > { %8177 = vmatpush1.bf16.msra.mxu1 %v10318_v50  ;;  %8601 = vmatpush1.bf16.msra.mxu0 %v10321_v51  ;;  %v9023_v50 = vcombine.low %v12280_v48, %v12285_v49  ;;  %v4452_v51 = vld [vmem:[%s12490_s0 + $0x1b0] sm:$0xff]  ;;  %v10405_v45 = vld [vmem:[%s11653_s17 + $0xf00] ss:$8 sps:$4 sm:$0xff]  }
 0x2a8   : > { %8178 = vmatprep.subr.bf16.mxu1 %v10326_v52  ;;  %8602 = vmatprep.subr.bf16.mxu0 %v10329_v42  ;;  %v4444_v52 = vld [vmem:[%s12490_s0 + $0x170] sm:$0xff] }
 0x2a9   : > { %8204 = vmatprep.mubr.bf16.mxu1 %v9008_v43  ;;  %8628 = vmatprep.mubr.bf16.mxu0 %v9024_v46  ;;  %v4460_v42 = vld [vmem:[%s12490_s0 + $0x1f0] sm:$0xff]  ;;  %v9040_v43 = vcombine.high %v4436_v41, %v4452_v51 }
 0x2aa   : > { %v10410_v48 = vld [vmem:[%s11653_s17 + $0x714] ss:$8 sps:$4 sm:$0xff]   ;;  %v9056_v46 = vcombine.high %v4444_v52, %v4460_v42 }
 0x2ab   : > { %8179 = vmatpush1.bf16.msra.mxu1 %v10324_v47  ;;  %8603 = vmatpush1.bf16.msra.mxu0 %v10327_v53  ;;  %v10413_v49 = vld [vmem:[%s11653_s17 + $0xf14] ss:$8 sps:$4 sm:$0xff]   ;;  %v10408_v47 = vld [vmem:[%s11653_s17 + $0x710] ss:$8 sps:$4 sm:$0xff]  }
 0x2ac   : > { %8180 = vmatprep.subr.bf16.mxu1 %v10332_v54  ;;  %8604 = vmatprep.subr.bf16.mxu0 %v10335_v55  ;;  %v10411_v53 = vld [vmem:[%s11653_s17 + $0xf10] ss:$8 sps:$4 sm:$0xff]   ;;  %v10416_v54 = vld [vmem:[%s11653_s17 + $0x724] ss:$8 sps:$4 sm:$0xff]  }
 0x2ad   : > { %v10419_v55 = vld [vmem:[%s11653_s17 + $0xf24] ss:$8 sps:$4 sm:$0xff]  }
 0x2af   : > { %8181 = vmatpush1.bf16.msra.mxu1 %v10330_v56  ;;  %8605 = vmatpush1.bf16.msra.mxu0 %v10333_v57  ;;  %v12374_v56 = vld [vmem:[%s12490_s0 + $0x38] sm:$0xff]  ;;  %v9039_v57 = vcombine.low %v4436_v41, %v4452_v51  ;;  %v10474_v41 = vld [vmem:[%s11653_s17 + $0x7c0] ss:$8 sps:$4 sm:$0xff]  }
 0x2b0   : > { %8182 = vmatprep.subr.bf16.mxu1 %v10338_v60  ;;  %8606 = vmatprep.subr.bf16.mxu0 %v10341_v61  ;;  %v9055_v60 = vcombine.low %v4444_v52, %v4460_v42  ;;  %v12379_v61 = vld [vmem:[%s12490_s0 + $0xb8] sm:$0xff] }
 0x2b1   : > { %v10485_v51 = vld [vmem:[%s11653_s17 + $0xfd4] ss:$8 sps:$4 sm:$0xff]   ;;  %v10480_v52 = vld [vmem:[%s11653_s17 + $0x7d0] ss:$8 sps:$4 sm:$0xff]  }
 0x2b2   : > { %v10483_v42 = vld [vmem:[%s11653_s17 + $0xfd0] ss:$8 sps:$4 sm:$0xff]  }
 0x2b3   : > { %8183 = vmatpush1.bf16.msra.mxu1 %v10336_v4  ;;  %8607 = vmatpush1.bf16.msra.mxu0 %v10339_v7  ;;  %v12384_v4 = vld [vmem:[%s12490_s0 + $0x78] sm:$0xff] }
 0x2b4   : > { %8184 = vmatprep.subr.bf16.mxu1 %v10344_v8  ;;  %8608 = vmatprep.subr.bf16.mxu0 %v10347_v9  ;;  %v12389_v7 = vld [vmem:[%s12490_s0 + $0xf8] sm:$0xff]  ;;  %v10414_v8 = vld [vmem:[%s11653_s17 + $0x720] ss:$8 sps:$4 sm:$0xff]  }
 0x2b5   : > { %v10417_v9 = vld [vmem:[%s11653_s17 + $0xf20] ss:$8 sps:$4 sm:$0xff]  }
 0x2b7   : > { %8185 = vmatpush1.bf16.msra.mxu1 %v10342_v10  ;;  %8609 = vmatpush1.bf16.msra.mxu0 %v10345_v58  ;;  %v10422_v10 = vld [vmem:[%s11653_s17 + $0x734] ss:$8 sps:$4 sm:$0xff]  }
 0x2b8   : > { %8186 = vmatprep.subr.bf16.mxu1 %v10350_v59  ;;  %8610 = vmatprep.subr.bf16.mxu0 %v10353_v62  ;;  %v10425_v58 = vld [vmem:[%s11653_s17 + $0xf34] ss:$8 sps:$4 sm:$0xff]   ;;  %v9010_v59 = vcombine.high %v12374_v56, %v12379_v61  ;;  %v9026_v62 = vcombine.high %v12384_v4, %v12389_v7 }
 0x2bb   : > { %8187 = vmatpush1.bf16.msra.mxu1 %v10348_v63  ;;  %8611 = vmatpush1.bf16.msra.mxu0 %v10351_v11  ;;  %v10420_v63 = vld [vmem:[%s11653_s17 + $0x730] ss:$8 sps:$4 sm:$0xff]  }
 0x2bc   : > { %8188 = vmatprep.subr.bf16.mxu1 %v10356_v12  ;;  %8612 = vmatprep.subr.bf16.mxu0 %v10359_v13  ;;  %v10423_v11 = vld [vmem:[%s11653_s17 + $0xf30] ss:$8 sps:$4 sm:$0xff]   ;;  %v10428_v12 = vld [vmem:[%s11653_s17 + $0x744] ss:$8 sps:$4 sm:$0xff]  }
 0x2bd   : > { %v10431_v13 = vld [vmem:[%s11653_s17 + $0xf44] ss:$8 sps:$4 sm:$0xff]  }
 0x2bf   : > { %8189 = vmatpush1.bf16.msra.mxu1 %v10354_v14  ;;  %8613 = vmatpush1.bf16.msra.mxu0 %v10357_v15  ;;  %v10426_v14 = vld [vmem:[%s11653_s17 + $0x740] ss:$8 sps:$4 sm:$0xff]  }
 0x2c0   : > { %8190 = vmatprep.subr.bf16.mxu1 %v10362_v18  ;;  %8614 = vmatprep.subr.bf16.mxu0 %v10365_v19  ;;  %v10429_v15 = vld [vmem:[%s11653_s17 + $0xf40] ss:$8 sps:$4 sm:$0xff]   ;;  %v10434_v18 = vld [vmem:[%s11653_s17 + $0x754] ss:$8 sps:$4 sm:$0xff]  }
 0x2c1   : > { %v10437_v19 = vld [vmem:[%s11653_s17 + $0xf54] ss:$8 sps:$4 sm:$0xff]  }
 0x2c3   : > { %8191 = vmatpush1.bf16.msra.mxu1 %v10360_v22  ;;  %8615 = vmatpush1.bf16.msra.mxu0 %v10363_v23  ;;  %v10432_v22 = vld [vmem:[%s11653_s17 + $0x750] ss:$8 sps:$4 sm:$0xff]  }
 0x2c4   : > { %8192 = vmatprep.subr.bf16.mxu1 %v10368_v24  ;;  %8616 = vmatprep.subr.bf16.mxu0 %v10371_v25  ;;  %v10435_v23 = vld [vmem:[%s11653_s17 + $0xf50] ss:$8 sps:$4 sm:$0xff]   ;;  %v10440_v24 = vld [vmem:[%s11653_s17 + $0x764] ss:$8 sps:$4 sm:$0xff]  }
 0x2c5   : > { %v10443_v25 = vld [vmem:[%s11653_s17 + $0xf64] ss:$8 sps:$4 sm:$0xff]  }
 0x2c7   : > { %8193 = vmatpush1.bf16.msra.mxu1 %v10366_v26  ;;  %8617 = vmatpush1.bf16.msra.mxu0 %v10369_v27  ;;  %v10438_v26 = vld [vmem:[%s11653_s17 + $0x760] ss:$8 sps:$4 sm:$0xff]  }
 0x2c8   : > { %8194 = vmatprep.subr.bf16.mxu1 %v10374_v28  ;;  %8618 = vmatprep.subr.bf16.mxu0 %v10377_v29  ;;  %v10441_v27 = vld [vmem:[%s11653_s17 + $0xf60] ss:$8 sps:$4 sm:$0xff]   ;;  %v10446_v28 = vld [vmem:[%s11653_s17 + $0x774] ss:$8 sps:$4 sm:$0xff]  }
 0x2c9   : > { %v10449_v29 = vld [vmem:[%s11653_s17 + $0xf74] ss:$8 sps:$4 sm:$0xff]  }
 0x2cb   : > { %8195 = vmatpush1.bf16.msra.mxu1 %v10372_v0  ;;  %8619 = vmatpush1.bf16.msra.mxu0 %v10375_v1  ;;  %v10444_v0 = vld [vmem:[%s11653_s17 + $0x770] ss:$8 sps:$4 sm:$0xff]  }
 0x2cc   : > { %8196 = vmatprep.subr.bf16.mxu1 %v10380_v16  ;;  %8620 = vmatprep.subr.bf16.mxu0 %v10383_v17  ;;  %v10447_v1 = vld [vmem:[%s11653_s17 + $0xf70] ss:$8 sps:$4 sm:$0xff]   ;;  %v10452_v16 = vld [vmem:[%s11653_s17 + $0x784] ss:$8 sps:$4 sm:$0xff]  }
 0x2cd   : > { %v10455_v17 = vld [vmem:[%s11653_s17 + $0xf84] ss:$8 sps:$4 sm:$0xff]  }
 0x2cf   : > { %8197 = vmatpush1.bf16.msra.mxu1 %v10378_v5  ;;  %8621 = vmatpush1.bf16.msra.mxu0 %v10381_v6  ;;  %v10450_v5 = vld [vmem:[%s11653_s17 + $0x780] ss:$8 sps:$4 sm:$0xff]  }
 0x2d0   : > { %8198 = vmatprep.subr.bf16.mxu1 %v10386_v30  ;;  %8622 = vmatprep.subr.bf16.mxu0 %v10389_v31  ;;  %v10453_v6 = vld [vmem:[%s11653_s17 + $0xf80] ss:$8 sps:$4 sm:$0xff]   ;;  %v10458_v30 = vld [vmem:[%s11653_s17 + $0x794] ss:$8 sps:$4 sm:$0xff]  }
 0x2d1   : > { %v10461_v31 = vld [vmem:[%s11653_s17 + $0xf94] ss:$8 sps:$4 sm:$0xff]  }
 0x2d3   : > { %8199 = vmatpush1.bf16.msra.mxu1 %v10384_v32  ;;  %8623 = vmatpush1.bf16.msra.mxu0 %v10387_v33  ;;  %v10456_v32 = vld [vmem:[%s11653_s17 + $0x790] ss:$8 sps:$4 sm:$0xff]  }
 0x2d4   : > { %8200 = vmatprep.subr.bf16.mxu1 %v10392_v20  ;;  %8624 = vmatprep.subr.bf16.mxu0 %v10395_v21  ;;  %v10459_v33 = vld [vmem:[%s11653_s17 + $0xf90] ss:$8 sps:$4 sm:$0xff]   ;;  %v10464_v20 = vld [vmem:[%s11653_s17 + $0x7a4] ss:$8 sps:$4 sm:$0xff]  }
 0x2d5   : > { %v10467_v21 = vld [vmem:[%s11653_s17 + $0xfa4] ss:$8 sps:$4 sm:$0xff]  }
 0x2d7   : > { %8201 = vmatpush1.bf16.msra.mxu1 %v10390_v3  ;;  %8625 = vmatpush1.bf16.msra.mxu0 %v10393_v2  ;;  %v10462_v3 = vld [vmem:[%s11653_s17 + $0x7a0] ss:$8 sps:$4 sm:$0xff]  }
 0x2d8   : > { %8202 = vmatprep.subr.bf16.mxu1 %v10398_v34  ;;  %8626 = vmatprep.subr.bf16.mxu0 %v10401_v35  ;;  %v10465_v2 = vld [vmem:[%s11653_s17 + $0xfa0] ss:$8 sps:$4 sm:$0xff]   ;;  %v10470_v34 = vld [vmem:[%s11653_s17 + $0x7b4] ss:$8 sps:$4 sm:$0xff]  }
 0x2d9   : > { %v10473_v35 = vld [vmem:[%s11653_s17 + $0xfb4] ss:$8 sps:$4 sm:$0xff]  }
 0x2db   : > { %8203 = vmatpush1.bf16.msra.mxu1 %v10396_v36  ;;  %8627 = vmatpush1.bf16.msra.mxu0 %v10399_v37  ;;  %v10468_v36 = vld [vmem:[%s11653_s17 + $0x7b0] ss:$8 sps:$4 sm:$0xff]  }
 0x2dc   : > { %8225 = vmatprep.subr.bf16.mxu1 %v10404_v38  ;;  %8649 = vmatprep.subr.bf16.mxu0 %v10407_v39  ;;  %v10471_v37 = vld [vmem:[%s11653_s17 + $0xfb0] ss:$8 sps:$4 sm:$0xff]   ;;  %v10476_v38 = vld [vmem:[%s11653_s17 + $0x7c4] ss:$8 sps:$4 sm:$0xff]  }
 0x2dd   : > { %v10479_v39 = vld [vmem:[%s11653_s17 + $0xfc4] ss:$8 sps:$4 sm:$0xff]  }
 0x2de   : > { %8205 = vmatmul.mubr.bf16.vlgmr.msra.gmra.mrb[0].mxu1 %v9007_v44  ;;  %8629 = vmatmul.mubr.bf16.vlgmr.msra.gmra.mrb[0].mxu0 %v9023_v50  ;;  %v10477_v44 = vld [vmem:[%s11653_s17 + $0xfc0] ss:$8 sps:$4 sm:$0xff]   ;;  %v10482_v50 = vld [vmem:[%s11653_s17 + $0x7d4] ss:$8 sps:$4 sm:$0xff]  }
 0x2df   : > { %8226 = vmatpush1.bf16.msra.mxu1 %v10402_v40  ;;  %8650 = vmatpush1.bf16.msra.mxu0 %v10405_v45  ;;  %v10488_v40 = vld [vmem:[%s11653_s17 + $0x7e4] ss:$8 sps:$4 sm:$0xff]  }
 0x2e0   : > { %8227 = vmatprep.subr.bf16.mxu1 %v10410_v48  ;;  %8651 = vmatprep.subr.bf16.mxu0 %v10413_v49  ;;  %v10491_v45 = vld [vmem:[%s11653_s17 + $0xfe4] ss:$8 sps:$4 sm:$0xff]   ;;  %v10486_v48 = vld [vmem:[%s11653_s17 + $0x7e0] ss:$8 sps:$4 sm:$0xff]  }
 0x2e1   : > { %8214 = vmatprep.mubr.bf16.mxu1 %v9040_v43  ;;  %8638 = vmatprep.mubr.bf16.mxu0 %v9056_v46  ;;  %v10489_v49 = vld [vmem:[%s11653_s17 + $0xfe0] ss:$8 sps:$4 sm:$0xff]   ;;  %v10494_v43 = vld [vmem:[%s11653_s17 + $0x7f4] ss:$8 sps:$4 sm:$0xff]  }
 0x2e2   : > { %v10497_v46 = vld [vmem:[%s11653_s17 + $0xff4] ss:$8 sps:$4 sm:$0xff]  }
 0x2e3   : > { %8228 = vmatpush1.bf16.msra.mxu1 %v10408_v47  ;;  %8652 = vmatpush1.bf16.msra.mxu0 %v10411_v53  ;;  %v10492_v47 = vld [vmem:[%s11653_s17 + $0x7f0] ss:$8 sps:$4 sm:$0xff]  }
 0x2e4   : > { %8229 = vmatprep.subr.bf16.mxu1 %v10416_v54  ;;  %8653 = vmatprep.subr.bf16.mxu0 %v10419_v55  ;;  %v10495_v53 = vld [vmem:[%s11653_s17 + $0xff0] ss:$8 sps:$4 sm:$0xff]   ;;  %s8993_s17 = sshll.u32 %s10567_s18, 1 }
 0x2e5   : > { %v4437_v54 = vld [vmem:[%s12490_s0 + $0x138] sm:$0xff]  ;;  %p4388_p10 = scmp.lt.s32.totalorder %s8993_s17, 3 }
 0x2e6   : > { %8215 = vmatmul.mubr.bf16.gmra.mrb[4].mxu1 %v9039_v57  ;;  %8639 = vmatmul.mubr.bf16.gmra.mrb[4].mxu0 %v9055_v60  ;;  %v4453_v55 = vld [vmem:[%s12490_s0 + $0x1b8] sm:$0xff] }
 0x2e7   : > { %8230 = vmatpush1.bf16.msra.mxu1 %v10414_v8  ;;  %8654 = vmatpush1.bf16.msra.mxu0 %v10417_v9  ;;  %v4445_v57 = vld [vmem:[%s12490_s0 + $0x178] sm:$0xff]  ;;  %v9009_v8 = vcombine.low %v12374_v56, %v12379_v61  ;;  %v9025_v9 = vcombine.low %v12384_v4, %v12389_v7  ;;  %s12500_s17 = smov (!%p4388_p10, %s8993_s17), 3 }
 0x2e8   : > { %8231 = vmatprep.subr.bf16.mxu1 %v10422_v10  ;;  %8655 = vmatprep.subr.bf16.mxu0 %v10425_v58  ;;  %v4461_v60 = vld [vmem:[%s12490_s0 + $0x1f8] sm:$0xff]  ;;  %v9042_v10 = vcombine.high %v4437_v54, %v4453_v55  ;;  %s4390_s11 = scalar_lea.vmem %s12492_s2, %s12500_s17  ;;  %s4395_s14 = scalar_lea.vmem %s12493_s3, %s12500_s17 }
 0x2e9   : > { %8257 = vmatprep.mubr.bf16.mxu1 %v9010_v59  ;;  %8681 = vmatprep.mubr.bf16.mxu0 %v9026_v62  ;;  %v9058_v58 = vcombine.high %v4445_v57, %v4461_v60  ;;  %v9041_v59 = vcombine.low %v4437_v54, %v4453_v55  ;;  %v9057_v62 = vcombine.low %v4445_v57, %v4461_v60 }
 0x2eb   : > { %8232 = vmatpush1.bf16.msra.mxu1 %v10420_v63  ;;  %8656 = vmatpush1.bf16.msra.mxu0 %v10423_v11 }
 0x2ec   : > { %8233 = vmatprep.subr.bf16.mxu1 %v10428_v12  ;;  %8657 = vmatprep.subr.bf16.mxu0 %v10431_v13 }
 0x2ef   : > { %8234 = vmatpush1.bf16.msra.mxu1 %v10426_v14  ;;  %8658 = vmatpush1.bf16.msra.mxu0 %v10429_v15 }
 0x2f0   : > { %8235 = vmatprep.subr.bf16.mxu1 %v10434_v18  ;;  %8659 = vmatprep.subr.bf16.mxu0 %v10437_v19 }
 0x2f3   : > { %8236 = vmatpush1.bf16.msra.mxu1 %v10432_v22  ;;  %8660 = vmatpush1.bf16.msra.mxu0 %v10435_v23 }
 0x2f4   : > { %8237 = vmatprep.subr.bf16.mxu1 %v10440_v24  ;;  %8661 = vmatprep.subr.bf16.mxu0 %v10443_v25 }
 0x2f7   : > { %8238 = vmatpush1.bf16.msra.mxu1 %v10438_v26  ;;  %8662 = vmatpush1.bf16.msra.mxu0 %v10441_v27 }
 0x2f8   : > { %8239 = vmatprep.subr.bf16.mxu1 %v10446_v28  ;;  %8663 = vmatprep.subr.bf16.mxu0 %v10449_v29 }
 0x2fb   : > { %8240 = vmatpush1.bf16.msra.mxu1 %v10444_v0  ;;  %8664 = vmatpush1.bf16.msra.mxu0 %v10447_v1 }
 0x2fc   : > { %8241 = vmatprep.subr.bf16.mxu1 %v10452_v16  ;;  %8665 = vmatprep.subr.bf16.mxu0 %v10455_v17 }
 0x2ff   : > { %8242 = vmatpush1.bf16.msra.mxu1 %v10450_v5  ;;  %8666 = vmatpush1.bf16.msra.mxu0 %v10453_v6 }
 0x300   : > { %8243 = vmatprep.subr.bf16.mxu1 %v10458_v30  ;;  %8667 = vmatprep.subr.bf16.mxu0 %v10461_v31 }
 0x303   : > { %8244 = vmatpush1.bf16.msra.mxu1 %v10456_v32  ;;  %8668 = vmatpush1.bf16.msra.mxu0 %v10459_v33 }
 0x304   : > { %8245 = vmatprep.subr.bf16.mxu1 %v10464_v20  ;;  %8669 = vmatprep.subr.bf16.mxu0 %v10467_v21 }
 0x307   : > { %8246 = vmatpush1.bf16.msra.mxu1 %v10462_v3  ;;  %8670 = vmatpush1.bf16.msra.mxu0 %v10465_v2 }
 0x308   : > { %8247 = vmatprep.subr.bf16.mxu1 %v10470_v34  ;;  %8671 = vmatprep.subr.bf16.mxu0 %v10473_v35 }
 0x30b   : > { %8248 = vmatpush1.bf16.msra.mxu1 %v10468_v36  ;;  %8672 = vmatpush1.bf16.msra.mxu0 %v10471_v37 }
 0x30c   : > { %8249 = vmatprep.subr.bf16.mxu1 %v10476_v38  ;;  %8673 = vmatprep.subr.bf16.mxu0 %v10479_v39 }
 0x30f   : > { %8250 = vmatpush1.bf16.msra.mxu1 %v10474_v41  ;;  %8674 = vmatpush1.bf16.msra.mxu0 %v10477_v44 }
 0x310   : > { %8251 = vmatprep.subr.bf16.mxu1 %v10482_v50  ;;  %8675 = vmatprep.subr.bf16.mxu0 %v10485_v51 }
 0x313   : > { %8252 = vmatpush1.bf16.msra.mxu1 %v10480_v52  ;;  %8676 = vmatpush1.bf16.msra.mxu0 %v10483_v42 }
 0x314   : > { %8253 = vmatprep.subr.bf16.mxu1 %v10488_v40  ;;  %8677 = vmatprep.subr.bf16.mxu0 %v10491_v45 }
 0x317   : > { %8254 = vmatpush1.bf16.msra.mxu1 %v10486_v48  ;;  %8678 = vmatpush1.bf16.msra.mxu0 %v10489_v49 }
 0x318   : > { %8255 = vmatprep.subr.bf16.mxu1 %v10494_v43  ;;  %8679 = vmatprep.subr.bf16.mxu0 %v10497_v46 }
 0x31b   : > { %8256 = vmatpush1.bf16.msra.mxu1 %v10492_v47  ;;  %8680 = vmatpush1.bf16.msra.mxu0 %v10495_v53 }
 0x31e   : > { %8258 = vmatmul.mubr.bf16.vlgmr.msra.gmra.mrb[0].mxu1 %v9009_v8  ;;  %8682 = vmatmul.mubr.bf16.vlgmr.msra.gmra.mrb[0].mxu0 %v9025_v9 }
 0x31f   : > { %8267 = vmatprep.mubr.bf16.mxu1 %v9042_v10  ;;  %8691 = vmatprep.mubr.bf16.mxu0 %v9058_v58 }
 0x326   : > { %8268 = vmatmul.mubr.bf16.gmra.mrb[4].mxu1 %v9041_v59  ;;  %8692 = vmatmul.mubr.bf16.gmra.mrb[4].mxu0 %v9057_v62 }
 0x3f1   : > { %v8259_v63 = vpop.f32.mrb[0].mxu1  ;;  %v8683_v11 = vpop.f32.mrb[0].mxu0 }
 0x3f2   : > { %v9586_v12 = vadd.f32 %v8683_v11, %v8259_v63  ;;  %v8261_v13 = vpop.f32.mrb[1].mxu1  ;;  %v8685_v56 = vpop.f32.mrb[1].mxu0 }
 0x3f3   : > { %v9587_v61 = vadd.f32 %v8685_v56, %v8261_v13  ;;  %v8263_v14 = vpop.f32.mrb[2].mxu1  ;;  %v8687_v4 = vpop.f32.mrb[2].mxu0 }
 0x3f4   : > { %v9588_v7 = vadd.f32 %v8687_v4, %v8263_v14  ;;  %v8265_v15 = vpop.f32.mrb[3].mxu1  ;;  %v8689_v18 = vpop.f32.mrb[3].mxu0 }
 0x3f5   : > { %v9589_v19 = vadd.f32 %v8689_v18, %v8265_v15 }
 0x3f6   : > { %v8702_v22 = vadd.f32 %v9588_v7, %v9586_v12 }
 0x3f7   : > { %v8711_v23 = vadd.f32 %v9589_v19, %v9587_v61 }
 0x3f9   : > { %v8269_v24 = vpop.f32.mrb[4].mxu1  ;;  %v8693_v25 = vpop.f32.mrb[4].mxu0 }
 0x3fa   : > { %v9590_v26 = vadd.f32 %v8693_v25, %v8269_v24  ;;  %v8271_v27 = vpop.f32.mrb[5].mxu1  ;;  %v8695_v28 = vpop.f32.mrb[5].mxu0  ;;  %v8772_v25 = vlaneseq }
 0x3fb   : > { %v9591_v29 = vadd.f32 %v8695_v28, %v8271_v27  ;;  %v8273_v0 = vpop.f32.mrb[6].mxu1  ;;  %v8697_v1 = vpop.f32.mrb[6].mxu0 }
 0x3fc   : > { %v8703_v16 = vadd.f32 %v9590_v26, %v8702_v22  ;;  %v9592_v17 = vadd.f32 %v8697_v1, %v8273_v0  ;;  %v8275_v5 = vpop.f32.mrb[7].mxu1  ;;  %v8699_v6 = vpop.f32.mrb[7].mxu0  ;;  %v8770_v1 = vld [vmem:[%s4390_s11] sm:$0x3] }
 0x3fd   : > { %v8712_v30 = vadd.f32 %v9591_v29, %v8711_v23  ;;  %v9593_v31 = vadd.f32 %v8699_v6, %v8275_v5 }
 0x3fe   : > { %v8704_v32 = vadd.f32 %v9592_v17, %v8703_v16 }
 0x3ff   : > { %v8713_v33 = vadd.f32 %v9593_v31, %v8712_v30 }
 0x400   : > { %v8705_v20 = vrot.slane %v8704_v32, 4 }
 0x401   : > { %v8714_v21 = vrot.slane %v8713_v33, 4 }
 0x402   : > { %v8706_v3 = vadd.f32 %v8705_v20, %v8704_v32 }
 0x403   : > { %v8715_v2 = vadd.f32 %v8714_v21, %v8713_v33 }
 0x404   : > { %v8707_v34 = vrot.slane %v8706_v3, 2 }
 0x405   : > { %v8716_v35 = vrot.slane %v8715_v2, 2 }
 0x406   : > { %v8708_v36 = vadd.f32 %v8707_v34, %v8706_v3 }
 0x407   : > { %v8717_v37 = vadd.f32 %v8716_v35, %v8715_v2 }
 0x408   : > { %v8709_v38 = vrot.slane %v8708_v36, 1 }
 0x409   : > { %v8718_v39 = vrot.slane %v8717_v37, 1 }
 0x40a   : > { %v8710_v41 = vadd.f32 %v8709_v38, %v8708_v36 }
 0x40b   : > { %v8719_v44 = vadd.f32 %v8718_v39, %v8717_v37 }
 0x40c   : > { %v8720_v50 = vmul.f32 0.03125, %v8710_v41 }
 0x40d   : > { %v8721_v51 = vmul.f32 0.03125, %v8719_v44 }
 0x40e   : > { %v8722_v52 = vsub.f32 %v9586_v12, %v8720_v50  ;;  %v8724_v42 = vsub.f32 %v9588_v7, %v8720_v50  ;;  %v8726_v40 = vsub.f32 %v9590_v26, %v8720_v50  ;;  %v8728_v45 = vsub.f32 %v9592_v17, %v8720_v50  ;;  %v8790_v17 = vld [vmem:[%s4395_s14] sm:$0x3] }
 0x40f   : > { %v8723_v48 = vsub.f32 %v9587_v61, %v8721_v51  ;;  %v8725_v49 = vsub.f32 %v9589_v19, %v8721_v51  ;;  %v8727_v43 = vsub.f32 %v9591_v29, %v8721_v51  ;;  %v8729_v46 = vsub.f32 %v9593_v31, %v8721_v51 }
 0x410   : > { %v8730_v47 = vmul.f32 %v8722_v52, %v8722_v52  ;;  %v8732_v53 = vmul.f32 %v8724_v42, %v8724_v42  ;;  %v8734_v57 = vmul.f32 %v8726_v40, %v8726_v40  ;;  %v8736_v10 = vmul.f32 %v8728_v45, %v8728_v45 }
 0x411   : > { %v8731_v54 = vmul.f32 %v8723_v48, %v8723_v48  ;;  %v8733_v55 = vmul.f32 %v8725_v49, %v8725_v49  ;;  %v8735_v8 = vmul.f32 %v8727_v43, %v8727_v43  ;;  %v8737_v59 = vmul.f32 %v8729_v46, %v8729_v46 }
 0x412   : > { %v8738_v60 = vadd.f32 %v8732_v53, %v8730_v47  ;;  %v8773_v29 = vshrl.u32 %v8772_v25, 7 }
 0x413   : > { %v8747_v9 = vadd.f32 %v8733_v55, %v8731_v54 }
 0x414   : > { %v8739_v58 = vadd.f32 %v8738_v60, %v8734_v57  ;;  %v8774_v0 = vsub.s32 0, %v8773_v29  ;;  %v8778_v16 = vsub.s32 1, %v8773_v29 }
 0x415   : > { %v8748_v62 = vadd.f32 %v8747_v9, %v8735_v8 }
 0x416   : > { %v8740_v63 = vadd.f32 %v8739_v58, %v8736_v10  ;;  %v8775_v5 = vrot.slane %v8770_v1, %v8774_v0  ;;  %v8795_v30 = vrot.slane %v8790_v17, %v8774_v0  ;;  %v8779_v31 = vrot.slane %v8770_v1, %v8778_v16 }
 0x417   : > { %v8749_v11 = vadd.f32 %v8748_v62, %v8737_v59  ;;  %v8799_v32 = vrot.slane %v8790_v17, %v8778_v16 }
 0x418   : > { %v8741_v12 = vrot.slane %v8740_v63, 4 }
 0x419   : > { %v8750_v13 = vrot.slane %v8749_v11, 4 }
 0x41a   : > { %v8742_v56 = vadd.f32 %v8741_v12, %v8740_v63 }
 0x41b   : > { %v8751_v61 = vadd.f32 %v8750_v13, %v8749_v11 }
 0x41c   : > { %v8743_v14 = vrot.slane %v8742_v56, 2 }
 0x41d   : > { %v8752_v4 = vrot.slane %v8751_v61, 2 }
 0x41e   : > { %v8744_v7 = vadd.f32 %v8743_v14, %v8742_v56 }
 0x41f   : > { %v8753_v15 = vadd.f32 %v8752_v4, %v8751_v61 }
 0x420   : > { %v8745_v18 = vrot.slane %v8744_v7, 1 }
 0x421   : > { %v8754_v19 = vrot.slane %v8753_v15, 1 }
 0x422   : > { %v8746_v22 = vadd.f32 %v8745_v18, %v8744_v7 }
 0x423   : > { %v8755_v23 = vadd.f32 %v8754_v19, %v8753_v15 }
 0x424   : > { %v8756_v24 = vmul.f32 0.03125, %v8746_v22 }
 0x425   : > { %v8757_v26 = vmul.f32 0.03125, %v8755_v23 }
 0x426   : > { %v8758_v27 = vadd.f32 1e-05, %v8756_v24 }
 0x427   : > { %v8759_v28 = vadd.f32 1e-05, %v8757_v26 }
 0x428   : > { %10498 = vrsqrt.f32 %v8758_v27 }
 0x429   : > { %10500 = vrsqrt.f32 %v8759_v28 }
 0x432   : > { %v10499_v6 = vpop.eup %10498 }
 0x433   : > { %v10501_v33 = vpop.eup %10500  ;;  %v8762_v20 = vmul.f32 %v10499_v6, %v8722_v52  ;;  %v8764_v21 = vmul.f32 %v10499_v6, %v8724_v42  ;;  %v8766_v3 = vmul.f32 %v10499_v6, %v8726_v40  ;;  %v8768_v2 = vmul.f32 %v10499_v6, %v8728_v45 }
 0x434   : > { %v8763_v34 = vmul.f32 %v10501_v33, %v8723_v48  ;;  %v8765_v35 = vmul.f32 %v10501_v33, %v8725_v49  ;;  %v8767_v36 = vmul.f32 %v10501_v33, %v8727_v43  ;;  %v8769_v37 = vmul.f32 %v10501_v33, %v8729_v46 }
 0x435   : > { %v8782_v38 = vmul.f32 %v8775_v5, %v8762_v20  ;;  %v8784_v39 = vmul.f32 %v8775_v5, %v8764_v21  ;;  %v8786_v41 = vmul.f32 %v8775_v5, %v8766_v3  ;;  %v8788_v44 = vmul.f32 %v8775_v5, %v8768_v2 }
 0x436   : > { %v8783_v50 = vmul.f32 %v8779_v31, %v8763_v34  ;;  %v8785_v51 = vmul.f32 %v8779_v31, %v8765_v35  ;;  %v8787_v47 = vmul.f32 %v8779_v31, %v8767_v36  ;;  %v8789_v53 = vmul.f32 %v8779_v31, %v8769_v37 }
 0x437   : > { %v8802_v54 = vadd.f32 %v8795_v30, %v8782_v38  ;;  %v8804_v55 = vadd.f32 %v8795_v30, %v8784_v39  ;;  %v8806_v57 = vadd.f32 %v8795_v30, %v8786_v41  ;;  %v8808_v52 = vadd.f32 %v8795_v30, %v8788_v44 }
 0x438   : > { %v8803_v42 = vadd.f32 %v8799_v32, %v8783_v50  ;;  %v8805_v40 = vadd.f32 %v8799_v32, %v8785_v51  ;;  %v8807_v45 = vadd.f32 %v8799_v32, %v8787_v47  ;;  %v8809_v48 = vadd.f32 %v8799_v32, %v8789_v53 }
 0x439   : > { %v8810_v49 = vmax.f32 %v8802_v54, 0.0  ;;  %v8812_v43 = vmax.f32 %v8804_v55, 0.0  ;;  %v8814_v46 = vmax.f32 %v8806_v57, 0.0  ;;  %v8816_v60 = vmax.f32 %v8808_v52, 0.0  ;;  %8852 = sbr.rel (!%p10582_p5) target bundleno = 1096 (0x448), region = 92 }
 0x43a   : > { %v8811_v8 = vmax.f32 %v8803_v42, 0.0  ;;  %v8813_v9 = vmax.f32 %v8805_v40, 0.0  ;;  %v8815_v10 = vmax.f32 %v8807_v45, 0.0  ;;  %v8817_v58 = vmax.f32 %v8809_v48, 0.0 }
 0x43c   : > { %v9581_v59 = vpack.c.bf16 %v8811_v8, %v8810_v49  ;;  %v9582_v62 = vpack.c.bf16 %v8813_v9, %v8812_v43  ;;  %v9583_v63 = vpack.c.bf16 %v8815_v10, %v8814_v46  ;;  %v9584_v11 = vpack.c.bf16 %v8817_v58, %v8816_v60 }
 0x43e   : > { %8842 = vst [vmem:[%s4385_s21] sm:$0xff] %v9581_v59  ;;  %8843 = vst [vmem:[%s4385_s21 + $0x8] sm:$0xff] %v9582_v62 }
 0x43f   : > { %8844 = vst [vmem:[%s4385_s21 + $0x10] sm:$0xff] %v9583_v63  ;;  %8845 = vst [vmem:[%s4385_s21 + $0x18] sm:$0xff] %v9584_v11 }
 0x445   : > { %v8889_v12 = vld [vmem:[%s4385_s21] sm:$0xff]  ;;  %v8891_v13 = vld [vmem:[%s4385_s21 + $0x8] sm:$0xff] }
 0x446   : > { %v8893_v56 = vld [vmem:[%s4385_s21 + $0x10] sm:$0xff]  ;;  %v8895_v61 = vld [vmem:[%s4385_s21 + $0x18] sm:$0xff]  ;;  %8890 = vst [vmem:[%s8855_s25] sm:$0xff] %v8889_v12  ;;  %8892 = vst [vmem:[%s8855_s25 + $0x10] sm:$0xff] %v8891_v13 }
 0x447   : > { %8894 = vst [vmem:[%s8855_s25 + $0x20] sm:$0xff] %v8893_v56  ;;  %8896 = vst [vmem:[%s8855_s25 + $0x30] sm:$0xff] %v8895_v61 }
 0x448 PF: > { %p11_p11 = scmp.ge.s32.totalorder %s10570_s19, 4   ;;  %s12496_s15 = smov %s10520_s16 }
 0x449   : > { %s12497_s16 = smov %s10580_s22  ;;  %s12498_s17 = smov %s10570_s19 }
 0x44a   :  { %13 = sbr.rel (!%p11_p11) target bundleno = 2 (0x2), region = 173 }

// kernel: fwd.7
= control target key start
LH: loop header
LB: loop body
LE: loop exit
PB: predicated region body
PF: predicated region fallthrough
CT: control target
= control target key end

     0   :  { %s5198_s1 = inlined_call_operand.vmem [shape: bf16[4608,128], index: 1, kind: input, shape index: {}]   ;;  %s5199_s2 = inlined_call_operand.vmem [shape: f32[1,128], index: 2, kind: input, shape index: {}]   ;;  %s5200_s0 = inlined_call_operand.vmem [shape: bf16[8,4608], index: 0, kind: input, shape index: {}]   ;;  %s5201_s3 = inlined_call_operand.vmem [shape: f32[1,128], index: 3, kind: input, shape index: {}]   ;;  %s5202_s4 = inlined_call_operand.vmem [shape: f32[8,128], index: 4, kind: output, shape index: {}]  }
   0x1   :  { %v3920_v0 = vld [vmem:[%s5198_s1 + $0x40] sm:$0xff]   ;;  %v3924_v4 = vld [vmem:[%s5198_s1 + $0x48] sm:$0xff]   ;;  %v3928_v8 = vld [vmem:[%s5198_s1 + $0x50] sm:$0xff]  }
   0x2   :  { %v3921_v1 = vld [vmem:[%s5198_s1 + $0xc0] sm:$0xff]   ;;  %3524 = vmatprep.subr.bf16.mxu0 %v3920_v0  ;;  %v3925_v5 = vld [vmem:[%s5198_s1 + $0xc8] sm:$0xff]   ;;  %v3929_v9 = vld [vmem:[%s5198_s1 + $0xd0] sm:$0xff]  }
   0x3   :  { %v3922_v2 = vld [vmem:[%s5198_s1] sm:$0xff]   ;;  %3546 = vmatprep.subr.bf16.mxu1 %v3921_v1  ;;  %v3926_v6 = vld [vmem:[%s5198_s1 + $0x8] sm:$0xff]   ;;  %v3930_v10 = vld [vmem:[%s5198_s1 + $0x10] sm:$0xff]  }
   0x4   :  { %v3923_v3 = vld [vmem:[%s5198_s1 + $0x80] sm:$0xff]   ;;  %3525 = vmatpush3.bf16.msra.mxu0 %v3922_v2  ;;  %v3927_v7 = vld [vmem:[%s5198_s1 + $0x88] sm:$0xff]   ;;  %v3931_v11 = vld [vmem:[%s5198_s1 + $0x90] sm:$0xff]  }
   0x5   :  { %3547 = vmatpush3.bf16.msra.mxu1 %v3923_v3  ;;  %3526 = vmatprep.subr.bf16.mxu0 %v3924_v4  ;;  %v3932_v12 = vld [vmem:[%s5198_s1 + $0x58] sm:$0xff]   ;;  %v3936_v16 = vld [vmem:[%s5198_s1 + $0x60] sm:$0xff]   ;;  %v3940_v20 = vld [vmem:[%s5198_s1 + $0x68] sm:$0xff]  }
   0x6   :  { %3548 = vmatprep.subr.bf16.mxu1 %v3925_v5  ;;  %v3933_v13 = vld [vmem:[%s5198_s1 + $0xd8] sm:$0xff]   ;;  %v3937_v17 = vld [vmem:[%s5198_s1 + $0xe0] sm:$0xff]   ;;  %v3941_v21 = vld [vmem:[%s5198_s1 + $0xe8] sm:$0xff]  }
   0x7   :  { %v3934_v14 = vld [vmem:[%s5198_s1 + $0x18] sm:$0xff]   ;;  %v3938_v18 = vld [vmem:[%s5198_s1 + $0x20] sm:$0xff]   ;;  %v3942_v22 = vld [vmem:[%s5198_s1 + $0x28] sm:$0xff]  }
   0x8   :  { %3527 = vmatpush3.bf16.msra.mxu0 %v3926_v6  ;;  %v3935_v15 = vld [vmem:[%s5198_s1 + $0x98] sm:$0xff]   ;;  %v3939_v19 = vld [vmem:[%s5198_s1 + $0xa0] sm:$0xff]   ;;  %v3943_v23 = vld [vmem:[%s5198_s1 + $0xa8] sm:$0xff]  }
   0x9   :  { %3549 = vmatpush3.bf16.msra.mxu1 %v3927_v7  ;;  %3528 = vmatprep.subr.bf16.mxu0 %v3928_v8  ;;  %v3944_v24 = vld [vmem:[%s5198_s1 + $0x70] sm:$0xff]   ;;  %v3948_v28 = vld [vmem:[%s5198_s1 + $0x78] sm:$0xff]   ;;  %v18_v32 = vld [vmem:[%s5200_s0] sm:$0xff] }
   0xa   :  { %3550 = vmatprep.subr.bf16.mxu1 %v3929_v9  ;;  %v3945_v25 = vld [vmem:[%s5198_s1 + $0xf0] sm:$0xff]   ;;  %v3949_v29 = vld [vmem:[%s5198_s1 + $0xf8] sm:$0xff]   ;;  %v19_v33 = vld [vmem:[%s5200_s0 + $0x8] sm:$0xff]  ;;  %v3200_v34 = vcombine.low %v18_v32, %v18_v32  ;;  %v3201_v35 = vcombine.high %v18_v32, %v18_v32 }
   0xb   :  { %v3946_v26 = vld [vmem:[%s5198_s1 + $0x30] sm:$0xff]   ;;  %v3950_v30 = vld [vmem:[%s5198_s1 + $0x38] sm:$0xff]   ;;  %v3202_v36 = vcombine.low %v19_v33, %v19_v33  ;;  %v3203_v37 = vcombine.high %v19_v33, %v19_v33  ;;  %v3956_v38 = vld [vmem:[%s5198_s1 + $0x140] sm:$0xff]  }
   0xc   :  { %3529 = vmatpush3.bf16.msra.mxu0 %v3930_v10  ;;  %v3947_v27 = vld [vmem:[%s5198_s1 + $0xb0] sm:$0xff]   ;;  %v3951_v31 = vld [vmem:[%s5198_s1 + $0xb8] sm:$0xff]   ;;  %v3957_v39 = vld [vmem:[%s5198_s1 + $0x1c0] sm:$0xff]   ;;  %2505 = vmatprep.mubr.bf16.mxu0 %v3201_v35 }
   0xd   :  { %3551 = vmatpush3.bf16.msra.mxu1 %v3931_v11  ;;  %3530 = vmatprep.subr.bf16.mxu0 %v3932_v12  ;;  %v3958_v40 = vld [vmem:[%s5198_s1 + $0x100] sm:$0xff]   ;;  %v3960_v42 = vld [vmem:[%s5198_s1 + $0x148] sm:$0xff]   ;;  %v3964_v46 = vld [vmem:[%s5198_s1 + $0x150] sm:$0xff]  }
   0xe   :  { %3552 = vmatprep.subr.bf16.mxu1 %v3933_v13  ;;  %2545 = vmatprep.mubr.bf16.mxu1 %v3203_v37  ;;  %v3959_v41 = vld [vmem:[%s5198_s1 + $0x180] sm:$0xff]   ;;  %v3961_v43 = vld [vmem:[%s5198_s1 + $0x1c8] sm:$0xff]   ;;  %v3965_v47 = vld [vmem:[%s5198_s1 + $0x1d0] sm:$0xff]  }
   0xf   :  { %v3962_v44 = vld [vmem:[%s5198_s1 + $0x108] sm:$0xff]   ;;  %v3966_v48 = vld [vmem:[%s5198_s1 + $0x110] sm:$0xff]   ;;  %v3968_v50 = vld [vmem:[%s5198_s1 + $0x158] sm:$0xff]  }
  0x10   :  { %3531 = vmatpush3.bf16.msra.mxu0 %v3934_v14  ;;  %v3963_v45 = vld [vmem:[%s5198_s1 + $0x188] sm:$0xff]   ;;  %v3967_v49 = vld [vmem:[%s5198_s1 + $0x190] sm:$0xff]   ;;  %v3969_v51 = vld [vmem:[%s5198_s1 + $0x1d8] sm:$0xff]  }
  0x11   :  { %3553 = vmatpush3.bf16.msra.mxu1 %v3935_v15  ;;  %3532 = vmatprep.subr.bf16.mxu0 %v3936_v16  ;;  %v3970_v52 = vld [vmem:[%s5198_s1 + $0x118] sm:$0xff]   ;;  %v3972_v54 = vld [vmem:[%s5198_s1 + $0x160] sm:$0xff]   ;;  %v3976_v58 = vld [vmem:[%s5198_s1 + $0x168] sm:$0xff]  }
  0x12   :  { %3554 = vmatprep.subr.bf16.mxu1 %v3937_v17  ;;  %v3971_v53 = vld [vmem:[%s5198_s1 + $0x198] sm:$0xff]   ;;  %v3973_v55 = vld [vmem:[%s5198_s1 + $0x1e0] sm:$0xff]   ;;  %v3977_v59 = vld [vmem:[%s5198_s1 + $0x1e8] sm:$0xff]  }
  0x13   :  { %v3974_v56 = vld [vmem:[%s5198_s1 + $0x120] sm:$0xff]   ;;  %v3978_v60 = vld [vmem:[%s5198_s1 + $0x128] sm:$0xff]   ;;  %v3980_v62 = vld [vmem:[%s5198_s1 + $0x170] sm:$0xff]  }
  0x14   :  { %3533 = vmatpush3.bf16.msra.mxu0 %v3938_v18  ;;  %v3975_v57 = vld [vmem:[%s5198_s1 + $0x1a0] sm:$0xff]   ;;  %v3979_v61 = vld [vmem:[%s5198_s1 + $0x1a8] sm:$0xff]   ;;  %v3981_v63 = vld [vmem:[%s5198_s1 + $0x1f0] sm:$0xff]  }
  0x15   :  { %3555 = vmatpush3.bf16.msra.mxu1 %v3939_v19  ;;  %3534 = vmatprep.subr.bf16.mxu0 %v3940_v20  ;;  %v3982_v0 = vld [vmem:[%s5198_s1 + $0x130] sm:$0xff]   ;;  %v3984_v2 = vld [vmem:[%s5198_s1 + $0x178] sm:$0xff]   ;;  %v3992_v12 = vld [vmem:[%s5198_s1 + $0x240] sm:$0xff]  }
  0x16   :  { %3556 = vmatprep.subr.bf16.mxu1 %v3941_v21  ;;  %v3983_v1 = vld [vmem:[%s5198_s1 + $0x1b0] sm:$0xff]   ;;  %v3985_v3 = vld [vmem:[%s5198_s1 + $0x1f8] sm:$0xff]   ;;  %v3993_v13 = vld [vmem:[%s5198_s1 + $0x2c0] sm:$0xff]  }
  0x17   :  { %v3986_v4 = vld [vmem:[%s5198_s1 + $0x138] sm:$0xff]   ;;  %v20_v6 = vld [vmem:[%s5200_s0 + $0x10] sm:$0xff]  ;;  %v3994_v14 = vld [vmem:[%s5198_s1 + $0x200] sm:$0xff]  }
  0x18   :  { %3535 = vmatpush3.bf16.msra.mxu0 %v3942_v22  ;;  %v3987_v5 = vld [vmem:[%s5198_s1 + $0x1b8] sm:$0xff]   ;;  %v3204_v7 = vcombine.low %v20_v6, %v20_v6  ;;  %v3205_v8 = vcombine.high %v20_v6, %v20_v6  ;;  %v3995_v15 = vld [vmem:[%s5198_s1 + $0x280] sm:$0xff]   ;;  %v3996_v16 = vld [vmem:[%s5198_s1 + $0x248] sm:$0xff]  }
  0x19   :  { %3557 = vmatpush3.bf16.msra.mxu1 %v3943_v23  ;;  %3536 = vmatprep.subr.bf16.mxu0 %v3944_v24  ;;  %v21_v9 = vld [vmem:[%s5200_s0 + $0x18] sm:$0xff]  ;;  %v3997_v17 = vld [vmem:[%s5198_s1 + $0x2c8] sm:$0xff]   ;;  %v4000_v20 = vld [vmem:[%s5198_s1 + $0x250] sm:$0xff]  }
  0x1a   :  { %3558 = vmatprep.subr.bf16.mxu1 %v3945_v25  ;;  %v3206_v10 = vcombine.low %v21_v9, %v21_v9  ;;  %v3207_v11 = vcombine.high %v21_v9, %v21_v9  ;;  %v3998_v18 = vld [vmem:[%s5198_s1 + $0x208] sm:$0xff]   ;;  %v4001_v21 = vld [vmem:[%s5198_s1 + $0x2d0] sm:$0xff]   ;;  %v4004_v24 = vld [vmem:[%s5198_s1 + $0x258] sm:$0xff]  }
  0x1b   :  { %v3999_v19 = vld [vmem:[%s5198_s1 + $0x288] sm:$0xff]   ;;  %v4002_v22 = vld [vmem:[%s5198_s1 + $0x210] sm:$0xff]   ;;  %v4005_v25 = vld [vmem:[%s5198_s1 + $0x2d8] sm:$0xff]  }
  0x1c   :  { %3537 = vmatpush3.bf16.msra.mxu0 %v3946_v26  ;;  %v4003_v23 = vld [vmem:[%s5198_s1 + $0x290] sm:$0xff]   ;;  %v4006_v26 = vld [vmem:[%s5198_s1 + $0x218] sm:$0xff]   ;;  %v4012_v32 = vld [vmem:[%s5198_s1 + $0x268] sm:$0xff]  }
  0x1d   :  { %3559 = vmatpush3.bf16.msra.mxu1 %v3947_v27  ;;  %3538 = vmatprep.subr.bf16.mxu0 %v3948_v28  ;;  %v4007_v27 = vld [vmem:[%s5198_s1 + $0x298] sm:$0xff]   ;;  %v4008_v28 = vld [vmem:[%s5198_s1 + $0x260] sm:$0xff]   ;;  %v4013_v33 = vld [vmem:[%s5198_s1 + $0x2e8] sm:$0xff]  }
  0x1e   :  { %3560 = vmatprep.subr.bf16.mxu1 %v3949_v29  ;;  %v4009_v29 = vld [vmem:[%s5198_s1 + $0x2e0] sm:$0xff]   ;;  %v4015_v35 = vld [vmem:[%s5198_s1 + $0x2a8] sm:$0xff]   ;;  %v4017_v37 = vld [vmem:[%s5198_s1 + $0x2f0] sm:$0xff]  }
  0x1f   :  { %v4048_v6 = vld [vmem:[%s5198_s1 + $0x368] sm:$0xff]  }
  0x20   :  { %3539 = vmatpush3.bf16.msra.mxu0 %v3950_v30  ;;  %v4010_v30 = vld [vmem:[%s5198_s1 + $0x220] sm:$0xff]   ;;  %v4051_v9 = vld [vmem:[%s5198_s1 + $0x3a8] sm:$0xff]  }
  0x21   :  { %3561 = vmatpush3.bf16.msra.mxu1 %v3951_v31  ;;  %3568 = vmatprep.subr.bf16.mxu0 %v3956_v38  ;;  %v4011_v31 = vld [vmem:[%s5198_s1 + $0x2a0] sm:$0xff]   ;;  %v4018_v38 = vld [vmem:[%s5198_s1 + $0x230] sm:$0xff]  }
  0x22   :  { %3590 = vmatprep.subr.bf16.mxu1 %v3957_v39  ;;  %v4019_v39 = vld [vmem:[%s5198_s1 + $0x2b0] sm:$0xff]  }
  0x23   :  { %2506 = vmatmul.mubr.bf16.vlgmr.msra.gmra.mrb[0].mxu0 %v3200_v34  ;;  %v4014_v34 = vld [vmem:[%s5198_s1 + $0x228] sm:$0xff]  }
  0x24   :  { %2546 = vmatmul.mubr.bf16.vlgmr.msra.gmra.mrb[0].mxu1 %v3202_v36  ;;  %3569 = vmatpush3.bf16.msra.mxu0 %v3958_v40  ;;  %v4016_v36 = vld [vmem:[%s5198_s1 + $0x270] sm:$0xff]   ;;  %v4020_v40 = vld [vmem:[%s5198_s1 + $0x278] sm:$0xff]  }
  0x25   :  { %3591 = vmatpush3.bf16.msra.mxu1 %v3959_v41  ;;  %3570 = vmatprep.subr.bf16.mxu0 %v3960_v42  ;;  %v4021_v41 = vld [vmem:[%s5198_s1 + $0x2f8] sm:$0xff]  }
  0x26   :  { %3592 = vmatprep.subr.bf16.mxu1 %v3961_v43  ;;  %2585 = vmatprep.mubr.bf16.mxu0 %v3205_v8  ;;  %v4022_v42 = vld [vmem:[%s5198_s1 + $0x238] sm:$0xff]   ;;  %v4050_v8 = vld [vmem:[%s5198_s1 + $0x328] sm:$0xff]  }
  0x27   :  { %2625 = vmatprep.mubr.bf16.mxu1 %v3207_v11  ;;  %v4023_v43 = vld [vmem:[%s5198_s1 + $0x2b8] sm:$0xff]   ;;  %v4053_v11 = vld [vmem:[%s5198_s1 + $0x3f0] sm:$0xff]  }
  0x28   :  { %3571 = vmatpush3.bf16.msra.mxu0 %v3962_v44  ;;  %v22_v44 = vld [vmem:[%s5200_s0 + $0x20] sm:$0xff] }
  0x29   :  { %3593 = vmatpush3.bf16.msra.mxu1 %v3963_v45  ;;  %3572 = vmatprep.subr.bf16.mxu0 %v3964_v46  ;;  %v23_v45 = vld [vmem:[%s5200_s0 + $0x28] sm:$0xff]  ;;  %v3208_v46 = vcombine.low %v22_v44, %v22_v44 }
  0x2a   :  { %3594 = vmatprep.subr.bf16.mxu1 %v3965_v47  ;;  %v3209_v47 = vcombine.high %v22_v44, %v22_v44  ;;  %v4084_v44 = vld [vmem:[%s5198_s1 + $0x468] sm:$0xff]  }
  0x2c   :  { %3573 = vmatpush3.bf16.msra.mxu0 %v3966_v48  ;;  %v3210_v48 = vcombine.low %v23_v45, %v23_v45 }
  0x2d   :  { %3595 = vmatpush3.bf16.msra.mxu1 %v3967_v49  ;;  %3574 = vmatprep.subr.bf16.mxu0 %v3968_v50  ;;  %v3211_v49 = vcombine.high %v23_v45, %v23_v45  ;;  %v4028_v50 = vld [vmem:[%s5198_s1 + $0x340] sm:$0xff]   ;;  %v4085_v45 = vld [vmem:[%s5198_s1 + $0x4e8] sm:$0xff]  }
  0x2e   :  { %3596 = vmatprep.subr.bf16.mxu1 %v3969_v51  ;;  %v4029_v51 = vld [vmem:[%s5198_s1 + $0x3c0] sm:$0xff]  }
  0x30   :  { %3575 = vmatpush3.bf16.msra.mxu0 %v3970_v52  ;;  %v4030_v52 = vld [vmem:[%s5198_s1 + $0x300] sm:$0xff]  }
  0x31   :  { %3597 = vmatpush3.bf16.msra.mxu1 %v3971_v53  ;;  %3576 = vmatprep.subr.bf16.mxu0 %v3972_v54  ;;  %v4031_v53 = vld [vmem:[%s5198_s1 + $0x380] sm:$0xff]   ;;  %v4032_v54 = vld [vmem:[%s5198_s1 + $0x348] sm:$0xff]  }
  0x32   :  { %3598 = vmatprep.subr.bf16.mxu1 %v3973_v55  ;;  %v4033_v55 = vld [vmem:[%s5198_s1 + $0x3c8] sm:$0xff]  }
  0x34   :  { %3577 = vmatpush3.bf16.msra.mxu0 %v3974_v56  ;;  %v4034_v56 = vld [vmem:[%s5198_s1 + $0x308] sm:$0xff]  }
  0x35   :  { %3599 = vmatpush3.bf16.msra.mxu1 %v3975_v57  ;;  %3578 = vmatprep.subr.bf16.mxu0 %v3976_v58  ;;  %v4035_v57 = vld [vmem:[%s5198_s1 + $0x388] sm:$0xff]   ;;  %v4036_v58 = vld [vmem:[%s5198_s1 + $0x350] sm:$0xff]  }
  0x36   :  { %3600 = vmatprep.subr.bf16.mxu1 %v3977_v59  ;;  %v4037_v59 = vld [vmem:[%s5198_s1 + $0x3d0] sm:$0xff]  }
  0x38   :  { %3579 = vmatpush3.bf16.msra.mxu0 %v3978_v60  ;;  %v4038_v60 = vld [vmem:[%s5198_s1 + $0x310] sm:$0xff]  }
  0x39   :  { %3601 = vmatpush3.bf16.msra.mxu1 %v3979_v61  ;;  %3580 = vmatprep.subr.bf16.mxu0 %v3980_v62  ;;  %v4039_v61 = vld [vmem:[%s5198_s1 + $0x390] sm:$0xff]   ;;  %v4040_v62 = vld [vmem:[%s5198_s1 + $0x358] sm:$0xff]  }
  0x3a   :  { %3602 = vmatprep.subr.bf16.mxu1 %v3981_v63  ;;  %v4041_v63 = vld [vmem:[%s5198_s1 + $0x3d8] sm:$0xff]  }
  0x3c   :  { %3581 = vmatpush3.bf16.msra.mxu0 %v3982_v0  ;;  %v4042_v0 = vld [vmem:[%s5198_s1 + $0x318] sm:$0xff]  }
  0x3d   :  { %3603 = vmatpush3.bf16.msra.mxu1 %v3983_v1  ;;  %3582 = vmatprep.subr.bf16.mxu0 %v3984_v2  ;;  %v4043_v1 = vld [vmem:[%s5198_s1 + $0x398] sm:$0xff]   ;;  %v4044_v2 = vld [vmem:[%s5198_s1 + $0x360] sm:$0xff]  }
  0x3e   :  { %3604 = vmatprep.subr.bf16.mxu1 %v3985_v3  ;;  %v4045_v3 = vld [vmem:[%s5198_s1 + $0x3e0] sm:$0xff]  }
  0x40   :  { %3583 = vmatpush3.bf16.msra.mxu0 %v3986_v4  ;;  %v4046_v4 = vld [vmem:[%s5198_s1 + $0x320] sm:$0xff]  }
  0x41   :  { %3605 = vmatpush3.bf16.msra.mxu1 %v3987_v5  ;;  %3612 = vmatprep.subr.bf16.mxu0 %v3992_v12  ;;  %v4047_v5 = vld [vmem:[%s5198_s1 + $0x3a0] sm:$0xff]   ;;  %v4054_v12 = vld [vmem:[%s5198_s1 + $0x330] sm:$0xff]  }
  0x42   :  { %3634 = vmatprep.subr.bf16.mxu1 %v3993_v13  ;;  %v4055_v13 = vld [vmem:[%s5198_s1 + $0x3b0] sm:$0xff]  }
  0x43   :  { %2586 = vmatmul.mubr.bf16.vlgmr.msra.gmra.mrb[4].mxu0 %v3204_v7  ;;  %v4049_v7 = vld [vmem:[%s5198_s1 + $0x3e8] sm:$0xff]  }
  0x44   :  { %2626 = vmatmul.mubr.bf16.vlgmr.msra.gmra.mrb[4].mxu1 %v3206_v10  ;;  %3613 = vmatpush3.bf16.msra.mxu0 %v3994_v14  ;;  %v4052_v10 = vld [vmem:[%s5198_s1 + $0x370] sm:$0xff]   ;;  %v4056_v14 = vld [vmem:[%s5198_s1 + $0x378] sm:$0xff]  }
  0x45   :  { %3635 = vmatpush3.bf16.msra.mxu1 %v3995_v15  ;;  %3614 = vmatprep.subr.bf16.mxu0 %v3996_v16  ;;  %v4057_v15 = vld [vmem:[%s5198_s1 + $0x3f8] sm:$0xff]  }
  0x46   :  { %3636 = vmatprep.subr.bf16.mxu1 %v3997_v17  ;;  %2665 = vmatprep.mubr.bf16.mxu0 %v3209_v47  ;;  %v4058_v16 = vld [vmem:[%s5198_s1 + $0x338] sm:$0xff]   ;;  %v4087_v47 = vld [vmem:[%s5198_s1 + $0x4a8] sm:$0xff]  }
  0x47   :  { %2705 = vmatprep.mubr.bf16.mxu1 %v3211_v49  ;;  %v4059_v17 = vld [vmem:[%s5198_s1 + $0x3b8] sm:$0xff]   ;;  %v4089_v49 = vld [vmem:[%s5198_s1 + $0x4f0] sm:$0xff]  }
  0x48   :  { %3615 = vmatpush3.bf16.msra.mxu0 %v3998_v18  ;;  %v24_v18 = vld [vmem:[%s5200_s0 + $0x30] sm:$0xff] }
  0x49   :  { %3637 = vmatpush3.bf16.msra.mxu1 %v3999_v19  ;;  %3616 = vmatprep.subr.bf16.mxu0 %v4000_v20  ;;  %v25_v19 = vld [vmem:[%s5200_s0 + $0x38] sm:$0xff]  ;;  %v3212_v20 = vcombine.low %v24_v18, %v24_v18 }
  0x4a   :  { %3638 = vmatprep.subr.bf16.mxu1 %v4001_v21  ;;  %v3213_v21 = vcombine.high %v24_v18, %v24_v18  ;;  %v4120_v18 = vld [vmem:[%s5198_s1 + $0x568] sm:$0xff]  }
  0x4c   :  { %3617 = vmatpush3.bf16.msra.mxu0 %v4002_v22  ;;  %v3214_v22 = vcombine.low %v25_v19, %v25_v19 }
  0x4d   :  { %3639 = vmatpush3.bf16.msra.mxu1 %v4003_v23  ;;  %3618 = vmatprep.subr.bf16.mxu0 %v4004_v24  ;;  %v4064_v23 = vld [vmem:[%s5198_s1 + $0x440] sm:$0xff]   ;;  %v3215_v24 = vcombine.high %v25_v19, %v25_v19  ;;  %v4121_v19 = vld [vmem:[%s5198_s1 + $0x5e8] sm:$0xff]  }
  0x4e   :  { %3640 = vmatprep.subr.bf16.mxu1 %v4005_v25  ;;  %v4065_v25 = vld [vmem:[%s5198_s1 + $0x4c0] sm:$0xff]  }
  0x50   :  { %3619 = vmatpush3.bf16.msra.mxu0 %v4006_v26  ;;  %v4066_v26 = vld [vmem:[%s5198_s1 + $0x400] sm:$0xff]  }
  0x51   :  { %3641 = vmatpush3.bf16.msra.mxu1 %v4007_v27  ;;  %3620 = vmatprep.subr.bf16.mxu0 %v4008_v28  ;;  %v4067_v27 = vld [vmem:[%s5198_s1 + $0x480] sm:$0xff]   ;;  %v4068_v28 = vld [vmem:[%s5198_s1 + $0x448] sm:$0xff]  }
  0x52   :  { %3642 = vmatprep.subr.bf16.mxu1 %v4009_v29  ;;  %v4069_v29 = vld [vmem:[%s5198_s1 + $0x4c8] sm:$0xff]  }
  0x54   :  { %3621 = vmatpush3.bf16.msra.mxu0 %v4010_v30  ;;  %v4070_v30 = vld [vmem:[%s5198_s1 + $0x408] sm:$0xff]  }
  0x55   :  { %3643 = vmatpush3.bf16.msra.mxu1 %v4011_v31  ;;  %3622 = vmatprep.subr.bf16.mxu0 %v4012_v32  ;;  %v4071_v31 = vld [vmem:[%s5198_s1 + $0x488] sm:$0xff]   ;;  %v4072_v32 = vld [vmem:[%s5198_s1 + $0x450] sm:$0xff]  }
  0x56   :  { %3644 = vmatprep.subr.bf16.mxu1 %v4013_v33  ;;  %v4073_v33 = vld [vmem:[%s5198_s1 + $0x4d0] sm:$0xff]  }
  0x58   :  { %3623 = vmatpush3.bf16.msra.mxu0 %v4014_v34  ;;  %v4074_v34 = vld [vmem:[%s5198_s1 + $0x410] sm:$0xff]  }
  0x59   :  { %3645 = vmatpush3.bf16.msra.mxu1 %v4015_v35  ;;  %3624 = vmatprep.subr.bf16.mxu0 %v4016_v36  ;;  %v4075_v35 = vld [vmem:[%s5198_s1 + $0x490] sm:$0xff]   ;;  %v4076_v36 = vld [vmem:[%s5198_s1 + $0x458] sm:$0xff]  }
  0x5a   :  { %3646 = vmatprep.subr.bf16.mxu1 %v4017_v37  ;;  %v4077_v37 = vld [vmem:[%s5198_s1 + $0x4d8] sm:$0xff]  }
  0x5c   :  { %3625 = vmatpush3.bf16.msra.mxu0 %v4018_v38  ;;  %v4078_v38 = vld [vmem:[%s5198_s1 + $0x418] sm:$0xff]  }
  0x5d   :  { %3647 = vmatpush3.bf16.msra.mxu1 %v4019_v39  ;;  %3626 = vmatprep.subr.bf16.mxu0 %v4020_v40  ;;  %v4079_v39 = vld [vmem:[%s5198_s1 + $0x498] sm:$0xff]   ;;  %v4080_v40 = vld [vmem:[%s5198_s1 + $0x460] sm:$0xff]  }
  0x5e   :  { %3648 = vmatprep.subr.bf16.mxu1 %v4021_v41  ;;  %v4081_v41 = vld [vmem:[%s5198_s1 + $0x4e0] sm:$0xff]  }
  0x60   :  { %3627 = vmatpush3.bf16.msra.mxu0 %v4022_v42  ;;  %v4082_v42 = vld [vmem:[%s5198_s1 + $0x420] sm:$0xff]  }
  0x61   :  { %3649 = vmatpush3.bf16.msra.mxu1 %v4023_v43  ;;  %3656 = vmatprep.subr.bf16.mxu0 %v4028_v50  ;;  %v4083_v43 = vld [vmem:[%s5198_s1 + $0x4a0] sm:$0xff]   ;;  %v4090_v50 = vld [vmem:[%s5198_s1 + $0x430] sm:$0xff]  }
  0x62   :  { %3678 = vmatprep.subr.bf16.mxu1 %v4029_v51  ;;  %v4091_v51 = vld [vmem:[%s5198_s1 + $0x4b0] sm:$0xff]  }
  0x63   :  { %2666 = vmatmul.mubr.bf16.vlgmr.msra.gmra.mrb[8].mxu0 %v3208_v46  ;;  %v4086_v46 = vld [vmem:[%s5198_s1 + $0x428] sm:$0xff]  }
  0x64   :  { %2706 = vmatmul.mubr.bf16.vlgmr.msra.gmra.mrb[8].mxu1 %v3210_v48  ;;  %3657 = vmatpush3.bf16.msra.mxu0 %v4030_v52  ;;  %v4088_v48 = vld [vmem:[%s5198_s1 + $0x470] sm:$0xff]   ;;  %v4092_v52 = vld [vmem:[%s5198_s1 + $0x478] sm:$0xff]  }
  0x65   :  { %3679 = vmatpush3.bf16.msra.mxu1 %v4031_v53  ;;  %3658 = vmatprep.subr.bf16.mxu0 %v4032_v54  ;;  %v4093_v53 = vld [vmem:[%s5198_s1 + $0x4f8] sm:$0xff]  }
  0x66   :  { %3680 = vmatprep.subr.bf16.mxu1 %v4033_v55  ;;  %2745 = vmatprep.mubr.bf16.mxu0 %v3213_v21  ;;  %v4094_v54 = vld [vmem:[%s5198_s1 + $0x438] sm:$0xff]   ;;  %v4123_v21 = vld [vmem:[%s5198_s1 + $0x5a8] sm:$0xff]  }
  0x67   :  { %2785 = vmatprep.mubr.bf16.mxu1 %v3215_v24  ;;  %v4095_v55 = vld [vmem:[%s5198_s1 + $0x4b8] sm:$0xff]   ;;  %v4126_v24 = vld [vmem:[%s5198_s1 + $0x530] sm:$0xff]  }
  0x68   :  { %3659 = vmatpush3.bf16.msra.mxu0 %v4034_v56  ;;  %v26_v56 = vld [vmem:[%s5200_s0 + $0x40] sm:$0xff] }
  0x69   :  { %3681 = vmatpush3.bf16.msra.mxu1 %v4035_v57  ;;  %3660 = vmatprep.subr.bf16.mxu0 %v4036_v58  ;;  %v3216_v57 = vcombine.low %v26_v56, %v26_v56  ;;  %v3217_v58 = vcombine.high %v26_v56, %v26_v56  ;;  %v4156_v56 = vld [vmem:[%s5198_s1 + $0x668] sm:$0xff]  }
  0x6a   :  { %3682 = vmatprep.subr.bf16.mxu1 %v4037_v59  ;;  %v27_v59 = vld [vmem:[%s5200_s0 + $0x48] sm:$0xff] }
  0x6c   :  { %3661 = vmatpush3.bf16.msra.mxu0 %v4038_v60  ;;  %v3218_v60 = vcombine.low %v27_v59, %v27_v59 }
  0x6d   :  { %3683 = vmatpush3.bf16.msra.mxu1 %v4039_v61  ;;  %3662 = vmatprep.subr.bf16.mxu0 %v4040_v62  ;;  %v3219_v61 = vcombine.high %v27_v59, %v27_v59  ;;  %v4100_v62 = vld [vmem:[%s5198_s1 + $0x540] sm:$0xff]   ;;  %v4159_v59 = vld [vmem:[%s5198_s1 + $0x6a8] sm:$0xff]  }
  0x6e   :  { %3684 = vmatprep.subr.bf16.mxu1 %v4041_v63  ;;  %v4101_v63 = vld [vmem:[%s5198_s1 + $0x5c0] sm:$0xff]  }
  0x70   :  { %3663 = vmatpush3.bf16.msra.mxu0 %v4042_v0  ;;  %v4102_v0 = vld [vmem:[%s5198_s1 + $0x500] sm:$0xff]  }
  0x71   :  { %3685 = vmatpush3.bf16.msra.mxu1 %v4043_v1  ;;  %3664 = vmatprep.subr.bf16.mxu0 %v4044_v2  ;;  %v4103_v1 = vld [vmem:[%s5198_s1 + $0x580] sm:$0xff]   ;;  %v4104_v2 = vld [vmem:[%s5198_s1 + $0x548] sm:$0xff]  }
  0x72   :  { %3686 = vmatprep.subr.bf16.mxu1 %v4045_v3  ;;  %v4105_v3 = vld [vmem:[%s5198_s1 + $0x5c8] sm:$0xff]  }
  0x74   :  { %3665 = vmatpush3.bf16.msra.mxu0 %v4046_v4  ;;  %v4106_v4 = vld [vmem:[%s5198_s1 + $0x508] sm:$0xff]  }
  0x75   :  { %3687 = vmatpush3.bf16.msra.mxu1 %v4047_v5  ;;  %3666 = vmatprep.subr.bf16.mxu0 %v4048_v6  ;;  %v4107_v5 = vld [vmem:[%s5198_s1 + $0x588] sm:$0xff]   ;;  %v4108_v6 = vld [vmem:[%s5198_s1 + $0x550] sm:$0xff]  }
  0x76   :  { %3688 = vmatprep.subr.bf16.mxu1 %v4049_v7  ;;  %v4109_v7 = vld [vmem:[%s5198_s1 + $0x5d0] sm:$0xff]  }
  0x78   :  { %3667 = vmatpush3.bf16.msra.mxu0 %v4050_v8  ;;  %v4110_v8 = vld [vmem:[%s5198_s1 + $0x510] sm:$0xff]  }
  0x79   :  { %3689 = vmatpush3.bf16.msra.mxu1 %v4051_v9  ;;  %3668 = vmatprep.subr.bf16.mxu0 %v4052_v10  ;;  %v4111_v9 = vld [vmem:[%s5198_s1 + $0x590] sm:$0xff]   ;;  %v4112_v10 = vld [vmem:[%s5198_s1 + $0x558] sm:$0xff]  }
  0x7a   :  { %3690 = vmatprep.subr.bf16.mxu1 %v4053_v11  ;;  %v4113_v11 = vld [vmem:[%s5198_s1 + $0x5d8] sm:$0xff]  }
  0x7c   :  { %3669 = vmatpush3.bf16.msra.mxu0 %v4054_v12  ;;  %v4114_v12 = vld [vmem:[%s5198_s1 + $0x518] sm:$0xff]  }
  0x7d   :  { %3691 = vmatpush3.bf16.msra.mxu1 %v4055_v13  ;;  %3670 = vmatprep.subr.bf16.mxu0 %v4056_v14  ;;  %v4115_v13 = vld [vmem:[%s5198_s1 + $0x598] sm:$0xff]   ;;  %v4116_v14 = vld [vmem:[%s5198_s1 + $0x560] sm:$0xff]  }
  0x7e   :  { %3692 = vmatprep.subr.bf16.mxu1 %v4057_v15  ;;  %v4117_v15 = vld [vmem:[%s5198_s1 + $0x5e0] sm:$0xff]  }
  0x80   :  { %3671 = vmatpush3.bf16.msra.mxu0 %v4058_v16  ;;  %v4118_v16 = vld [vmem:[%s5198_s1 + $0x520] sm:$0xff]  }
  0x81   :  { %3693 = vmatpush3.bf16.msra.mxu1 %v4059_v17  ;;  %3700 = vmatprep.subr.bf16.mxu0 %v4064_v23  ;;  %v4119_v17 = vld [vmem:[%s5198_s1 + $0x5a0] sm:$0xff]   ;;  %v4125_v23 = vld [vmem:[%s5198_s1 + $0x5f0] sm:$0xff]  }
  0x82   :  { %3722 = vmatprep.subr.bf16.mxu1 %v4065_v25  ;;  %v4127_v25 = vld [vmem:[%s5198_s1 + $0x5b0] sm:$0xff]  }
  0x83   :  { %2746 = vmatmul.mubr.bf16.vlgmr.msra.gmra.mrb[12].mxu0 %v3212_v20  ;;  %v4122_v20 = vld [vmem:[%s5198_s1 + $0x528] sm:$0xff]  }
  0x84   :  { %2786 = vmatmul.mubr.bf16.vlgmr.msra.gmra.mrb[12].mxu1 %v3214_v22  ;;  %3701 = vmatpush3.bf16.msra.mxu0 %v4066_v26  ;;  %v4124_v22 = vld [vmem:[%s5198_s1 + $0x570] sm:$0xff]   ;;  %v4128_v26 = vld [vmem:[%s5198_s1 + $0x578] sm:$0xff]  }
  0x85   :  { %3723 = vmatpush3.bf16.msra.mxu1 %v4067_v27  ;;  %3702 = vmatprep.subr.bf16.mxu0 %v4068_v28  ;;  %v4129_v27 = vld [vmem:[%s5198_s1 + $0x5f8] sm:$0xff]  }
  0x86   :  { %3724 = vmatprep.subr.bf16.mxu1 %v4069_v29  ;;  %2825 = vmatprep.mubr.bf16.mxu0 %v3217_v58  ;;  %v4130_v28 = vld [vmem:[%s5198_s1 + $0x538] sm:$0xff]   ;;  %v4158_v58 = vld [vmem:[%s5198_s1 + $0x628] sm:$0xff]  }
  0x87   :  { %2865 = vmatprep.mubr.bf16.mxu1 %v3219_v61  ;;  %v4131_v29 = vld [vmem:[%s5198_s1 + $0x5b8] sm:$0xff]   ;;  %v4161_v61 = vld [vmem:[%s5198_s1 + $0x6f0] sm:$0xff]  }
  0x88   :  { %3703 = vmatpush3.bf16.msra.mxu0 %v4070_v30  ;;  %v28_v30 = vld [vmem:[%s5200_s0 + $0x50] sm:$0xff] }
  0x89   :  { %3725 = vmatpush3.bf16.msra.mxu1 %v4071_v31  ;;  %3704 = vmatprep.subr.bf16.mxu0 %v4072_v32  ;;  %v29_v31 = vld [vmem:[%s5200_s0 + $0x58] sm:$0xff]  ;;  %v3220_v32 = vcombine.low %v28_v30, %v28_v30 }
  0x8a   :  { %3726 = vmatprep.subr.bf16.mxu1 %v4073_v33  ;;  %v3221_v33 = vcombine.high %v28_v30, %v28_v30  ;;  %v4191_v30 = vld [vmem:[%s5198_s1 + $0x7a0] sm:$0xff]  }
  0x8c   :  { %3705 = vmatpush3.bf16.msra.mxu0 %v4074_v34  ;;  %v3222_v34 = vcombine.low %v29_v31, %v29_v31 }
  0x8d   :  { %3727 = vmatpush3.bf16.msra.mxu1 %v4075_v35  ;;  %3706 = vmatprep.subr.bf16.mxu0 %v4076_v36  ;;  %v3223_v35 = vcombine.high %v29_v31, %v29_v31  ;;  %v4136_v36 = vld [vmem:[%s5198_s1 + $0x640] sm:$0xff]  }
  0x8e   :  { %3728 = vmatprep.subr.bf16.mxu1 %v4077_v37  ;;  %v4137_v37 = vld [vmem:[%s5198_s1 + $0x6c0] sm:$0xff]  }
  0x90   :  { %3707 = vmatpush3.bf16.msra.mxu0 %v4078_v38  ;;  %v4138_v38 = vld [vmem:[%s5198_s1 + $0x600] sm:$0xff]  }
  0x91   :  { %3729 = vmatpush3.bf16.msra.mxu1 %v4079_v39  ;;  %3708 = vmatprep.subr.bf16.mxu0 %v4080_v40  ;;  %v4139_v39 = vld [vmem:[%s5198_s1 + $0x680] sm:$0xff]   ;;  %v4140_v40 = vld [vmem:[%s5198_s1 + $0x648] sm:$0xff]  }
  0x92   :  { %3730 = vmatprep.subr.bf16.mxu1 %v4081_v41  ;;  %v4141_v41 = vld [vmem:[%s5198_s1 + $0x6c8] sm:$0xff]  }
  0x94   :  { %3709 = vmatpush3.bf16.msra.mxu0 %v4082_v42  ;;  %v4142_v42 = vld [vmem:[%s5198_s1 + $0x608] sm:$0xff]  }
  0x95   :  { %3731 = vmatpush3.bf16.msra.mxu1 %v4083_v43  ;;  %3710 = vmatprep.subr.bf16.mxu0 %v4084_v44  ;;  %v4143_v43 = vld [vmem:[%s5198_s1 + $0x688] sm:$0xff]   ;;  %v4144_v44 = vld [vmem:[%s5198_s1 + $0x650] sm:$0xff]  }
  0x96   :  { %3732 = vmatprep.subr.bf16.mxu1 %v4085_v45  ;;  %v4145_v45 = vld [vmem:[%s5198_s1 + $0x6d0] sm:$0xff]  }
  0x98   :  { %3711 = vmatpush3.bf16.msra.mxu0 %v4086_v46  ;;  %v4146_v46 = vld [vmem:[%s5198_s1 + $0x610] sm:$0xff]  }
  0x99   :  { %3733 = vmatpush3.bf16.msra.mxu1 %v4087_v47  ;;  %3712 = vmatprep.subr.bf16.mxu0 %v4088_v48  ;;  %v4147_v47 = vld [vmem:[%s5198_s1 + $0x690] sm:$0xff]   ;;  %v4148_v48 = vld [vmem:[%s5198_s1 + $0x658] sm:$0xff]  }
  0x9a   :  { %3734 = vmatprep.subr.bf16.mxu1 %v4089_v49  ;;  %v4149_v49 = vld [vmem:[%s5198_s1 + $0x6d8] sm:$0xff]  }
  0x9c   :  { %3713 = vmatpush3.bf16.msra.mxu0 %v4090_v50  ;;  %v4150_v50 = vld [vmem:[%s5198_s1 + $0x618] sm:$0xff]  }
  0x9d   :  { %3735 = vmatpush3.bf16.msra.mxu1 %v4091_v51  ;;  %3714 = vmatprep.subr.bf16.mxu0 %v4092_v52  ;;  %v4151_v51 = vld [vmem:[%s5198_s1 + $0x698] sm:$0xff]   ;;  %v4152_v52 = vld [vmem:[%s5198_s1 + $0x660] sm:$0xff]  }
  0x9e   :  { %3736 = vmatprep.subr.bf16.mxu1 %v4093_v53  ;;  %v4153_v53 = vld [vmem:[%s5198_s1 + $0x6e0] sm:$0xff]  }
  0xa0   :  { %3715 = vmatpush3.bf16.msra.mxu0 %v4094_v54  ;;  %v4154_v54 = vld [vmem:[%s5198_s1 + $0x620] sm:$0xff]  }
  0xa1   :  { %3737 = vmatpush3.bf16.msra.mxu1 %v4095_v55  ;;  %3744 = vmatprep.subr.bf16.mxu0 %v4100_v62  ;;  %v4155_v55 = vld [vmem:[%s5198_s1 + $0x6a0] sm:$0xff]   ;;  %v4162_v62 = vld [vmem:[%s5198_s1 + $0x630] sm:$0xff]  }
  0xa2   :  { %3766 = vmatprep.subr.bf16.mxu1 %v4101_v63  ;;  %v4163_v63 = vld [vmem:[%s5198_s1 + $0x6b0] sm:$0xff]  }
  0xa3   :  { %2826 = vmatmul.mubr.bf16.vlgmr.msra.gmra.mrb[16].mxu0 %v3216_v57  ;;  %v4157_v57 = vld [vmem:[%s5198_s1 + $0x6e8] sm:$0xff]  }
  0xa4   :  { %2866 = vmatmul.mubr.bf16.vlgmr.msra.gmra.mrb[16].mxu1 %v3218_v60  ;;  %3745 = vmatpush3.bf16.msra.mxu0 %v4102_v0  ;;  %v4160_v60 = vld [vmem:[%s5198_s1 + $0x670] sm:$0xff]   ;;  %v4164_v0 = vld [vmem:[%s5198_s1 + $0x678] sm:$0xff]  }
  0xa5   :  { %3767 = vmatpush3.bf16.msra.mxu1 %v4103_v1  ;;  %3746 = vmatprep.subr.bf16.mxu0 %v4104_v2  ;;  %v4165_v1 = vld [vmem:[%s5198_s1 + $0x6f8] sm:$0xff]  }
  0xa6   :  { %3768 = vmatprep.subr.bf16.mxu1 %v4105_v3  ;;  %2905 = vmatprep.mubr.bf16.mxu0 %v3221_v33  ;;  %v4166_v2 = vld [vmem:[%s5198_s1 + $0x638] sm:$0xff]  }
  0xa7   :  { %2945 = vmatprep.mubr.bf16.mxu1 %v3223_v35  ;;  %v4167_v3 = vld [vmem:[%s5198_s1 + $0x6b8] sm:$0xff]  }
  0xa8   :  { %3747 = vmatpush3.bf16.msra.mxu0 %v4106_v4  ;;  %v30_v4 = vld [vmem:[%s5200_s0 + $0x60] sm:$0xff] }
  0xa9   :  { %3769 = vmatpush3.bf16.msra.mxu1 %v4107_v5  ;;  %3748 = vmatprep.subr.bf16.mxu0 %v4108_v6  ;;  %v31_v5 = vld [vmem:[%s5200_s0 + $0x68] sm:$0xff]  ;;  %v3224_v6 = vcombine.low %v30_v4, %v30_v4 }
  0xaa   :  { %3770 = vmatprep.subr.bf16.mxu1 %v4109_v7  ;;  %v3225_v7 = vcombine.high %v30_v4, %v30_v4  ;;  %v4215_v4 = vld [vmem:[%s5198_s1 + $0x888] sm:$0xff]  }
  0xac   :  { %3749 = vmatpush3.bf16.msra.mxu0 %v4110_v8  ;;  %v3226_v8 = vcombine.low %v31_v5, %v31_v5 }
  0xad   :  { %3771 = vmatpush3.bf16.msra.mxu1 %v4111_v9  ;;  %3750 = vmatprep.subr.bf16.mxu0 %v4112_v10  ;;  %v4172_v9 = vld [vmem:[%s5198_s1 + $0x740] sm:$0xff]   ;;  %v3227_v10 = vcombine.high %v31_v5, %v31_v5  ;;  %v4216_v5 = vld [vmem:[%s5198_s1 + $0x850] sm:$0xff]  }
  0xae   :  { %3772 = vmatprep.subr.bf16.mxu1 %v4113_v11  ;;  %v4173_v11 = vld [vmem:[%s5198_s1 + $0x7c0] sm:$0xff]  }
  0xb0   :  { %3751 = vmatpush3.bf16.msra.mxu0 %v4114_v12  ;;  %v4174_v12 = vld [vmem:[%s5198_s1 + $0x700] sm:$0xff]  }
  0xb1   :  { %3773 = vmatpush3.bf16.msra.mxu1 %v4115_v13  ;;  %3752 = vmatprep.subr.bf16.mxu0 %v4116_v14  ;;  %v4175_v13 = vld [vmem:[%s5198_s1 + $0x780] sm:$0xff]   ;;  %v4176_v14 = vld [vmem:[%s5198_s1 + $0x748] sm:$0xff]  }
  0xb2   :  { %3774 = vmatprep.subr.bf16.mxu1 %v4117_v15  ;;  %v4177_v15 = vld [vmem:[%s5198_s1 + $0x7c8] sm:$0xff]  }
  0xb4   :  { %3753 = vmatpush3.bf16.msra.mxu0 %v4118_v16  ;;  %v4178_v16 = vld [vmem:[%s5198_s1 + $0x708] sm:$0xff]  }
  0xb5   :  { %3775 = vmatpush3.bf16.msra.mxu1 %v4119_v17  ;;  %3754 = vmatprep.subr.bf16.mxu0 %v4120_v18  ;;  %v4179_v17 = vld [vmem:[%s5198_s1 + $0x788] sm:$0xff]   ;;  %v4180_v18 = vld [vmem:[%s5198_s1 + $0x750] sm:$0xff]  }
  0xb6   :  { %3776 = vmatprep.subr.bf16.mxu1 %v4121_v19  ;;  %v4181_v19 = vld [vmem:[%s5198_s1 + $0x7d0] sm:$0xff]  }
  0xb8   :  { %3755 = vmatpush3.bf16.msra.mxu0 %v4122_v20  ;;  %v4182_v20 = vld [vmem:[%s5198_s1 + $0x710] sm:$0xff]  }
  0xb9   :  { %3777 = vmatpush3.bf16.msra.mxu1 %v4123_v21  ;;  %3756 = vmatprep.subr.bf16.mxu0 %v4124_v22  ;;  %v4183_v21 = vld [vmem:[%s5198_s1 + $0x790] sm:$0xff]   ;;  %v4184_v22 = vld [vmem:[%s5198_s1 + $0x758] sm:$0xff]  }
  0xba   :  { %3778 = vmatprep.subr.bf16.mxu1 %v4125_v23  ;;  %v4185_v23 = vld [vmem:[%s5198_s1 + $0x7d8] sm:$0xff]  }
  0xbc   :  { %3757 = vmatpush3.bf16.msra.mxu0 %v4126_v24  ;;  %v4186_v24 = vld [vmem:[%s5198_s1 + $0x718] sm:$0xff]  }
  0xbd   :  { %3779 = vmatpush3.bf16.msra.mxu1 %v4127_v25  ;;  %3758 = vmatprep.subr.bf16.mxu0 %v4128_v26  ;;  %v4187_v25 = vld [vmem:[%s5198_s1 + $0x798] sm:$0xff]   ;;  %v4188_v26 = vld [vmem:[%s5198_s1 + $0x760] sm:$0xff]  }
  0xbe   :  { %3780 = vmatprep.subr.bf16.mxu1 %v4129_v27  ;;  %v4189_v27 = vld [vmem:[%s5198_s1 + $0x7e0] sm:$0xff]  }
  0xc0   :  { %3759 = vmatpush3.bf16.msra.mxu0 %v4130_v28  ;;  %v4190_v28 = vld [vmem:[%s5198_s1 + $0x720] sm:$0xff]  }
  0xc1   :  { %3781 = vmatpush3.bf16.msra.mxu1 %v4131_v29  ;;  %3788 = vmatprep.subr.bf16.mxu0 %v4136_v36 }
  0xc2   :  { %3810 = vmatprep.subr.bf16.mxu1 %v4137_v37  ;;  %v4192_v37 = vld [vmem:[%s5198_s1 + $0x768] sm:$0xff]  }
  0xc3   :  { %2906 = vmatmul.mubr.bf16.vlgmr.msra.gmra.mrb[20].mxu0 %v3220_v32  ;;  %v3199_v32 = vld [vmem:[%s5201_s3] ss:$0 sm:$0xff] }
  0xc4   :  { %2946 = vmatmul.mubr.bf16.vlgmr.msra.gmra.mrb[20].mxu1 %v3222_v34  ;;  %3789 = vmatpush3.bf16.msra.mxu0 %v4138_v38 }
  0xc5   :  { %3811 = vmatpush3.bf16.msra.mxu1 %v4139_v39  ;;  %3790 = vmatprep.subr.bf16.mxu0 %v4140_v40  ;;  %v4193_v39 = vld [vmem:[%s5198_s1 + $0x7e8] sm:$0xff]  }
  0xc6   :  { %3812 = vmatprep.subr.bf16.mxu1 %v4141_v41  ;;  %2985 = vmatprep.mubr.bf16.mxu0 %v3225_v7  ;;  %v4218_v7 = vld [vmem:[%s5198_s1 + $0x810] sm:$0xff]  }
  0xc7   :  { %3025 = vmatprep.mubr.bf16.mxu1 %v3227_v10  ;;  %v4221_v10 = vld [vmem:[%s5198_s1 + $0x8d8] sm:$0xff]  }
  0xc8   :  { %3791 = vmatpush3.bf16.msra.mxu0 %v4142_v42  ;;  %v4194_v42 = vld [vmem:[%s5198_s1 + $0x728] sm:$0xff]  }
  0xc9   :  { %3813 = vmatpush3.bf16.msra.mxu1 %v4143_v43  ;;  %3792 = vmatprep.subr.bf16.mxu0 %v4144_v44  ;;  %v4195_v44 = vld [vmem:[%s5198_s1 + $0x7a8] sm:$0xff]  }
  0xca   :  { %3814 = vmatprep.subr.bf16.mxu1 %v4145_v45 }
  0xcc   :  { %3793 = vmatpush3.bf16.msra.mxu0 %v4146_v46 }
  0xcd   :  { %3815 = vmatpush3.bf16.msra.mxu1 %v4147_v47  ;;  %3794 = vmatprep.subr.bf16.mxu0 %v4148_v48  ;;  %v4196_v47 = vld [vmem:[%s5198_s1 + $0x770] sm:$0xff]  }
  0xce   :  { %3816 = vmatprep.subr.bf16.mxu1 %v4149_v49  ;;  %v4197_v48 = vld [vmem:[%s5198_s1 + $0x7f0] sm:$0xff]  }
  0xcf   :  { %v4198_v49 = vld [vmem:[%s5198_s1 + $0x730] sm:$0xff]  }
  0xd0   :  { %3795 = vmatpush3.bf16.msra.mxu0 %v4150_v50  ;;  %v4199_v50 = vld [vmem:[%s5198_s1 + $0x7b0] sm:$0xff]  }
  0xd1   :  { %3817 = vmatpush3.bf16.msra.mxu1 %v4151_v51  ;;  %3796 = vmatprep.subr.bf16.mxu0 %v4152_v52  ;;  %v4200_v51 = vld [vmem:[%s5198_s1 + $0x778] sm:$0xff]  }
  0xd2   :  { %3818 = vmatprep.subr.bf16.mxu1 %v4153_v53  ;;  %v4201_v52 = vld [vmem:[%s5198_s1 + $0x7f8] sm:$0xff]  }
  0xd3   :  { %v4202_v53 = vld [vmem:[%s5198_s1 + $0x738] sm:$0xff]  }
  0xd4   :  { %3797 = vmatpush3.bf16.msra.mxu0 %v4154_v54  ;;  %v4203_v54 = vld [vmem:[%s5198_s1 + $0x7b8] sm:$0xff]  }
  0xd5   :  { %3819 = vmatpush3.bf16.msra.mxu1 %v4155_v55  ;;  %3798 = vmatprep.subr.bf16.mxu0 %v4156_v56  ;;  %v32_v55 = vld [vmem:[%s5200_s0 + $0x70] sm:$0xff]  ;;  %v33_v56 = vld [vmem:[%s5200_s0 + $0x78] sm:$0xff] }
  0xd6   :  { %3820 = vmatprep.subr.bf16.mxu1 %v4157_v57  ;;  %v3228_v57 = vcombine.low %v32_v55, %v32_v55 }
  0xd8   :  { %3799 = vmatpush3.bf16.msra.mxu0 %v4158_v58  ;;  %v3229_v58 = vcombine.high %v32_v55, %v32_v55 }
  0xd9   :  { %3821 = vmatpush3.bf16.msra.mxu1 %v4159_v59  ;;  %3800 = vmatprep.subr.bf16.mxu0 %v4160_v60  ;;  %v3230_v59 = vcombine.low %v33_v56, %v33_v56  ;;  %v3231_v60 = vcombine.high %v33_v56, %v33_v56 }
  0xda   :  { %3822 = vmatprep.subr.bf16.mxu1 %v4161_v61  ;;  %v4208_v61 = vld [vmem:[%s5198_s1 + $0x840] sm:$0xff]  }
  0xdc   :  { %3801 = vmatpush3.bf16.msra.mxu0 %v4162_v62  ;;  %v4209_v62 = vld [vmem:[%s5198_s1 + $0x8c0] sm:$0xff]  }
  0xdd   :  { %3823 = vmatpush3.bf16.msra.mxu1 %v4163_v63  ;;  %3802 = vmatprep.subr.bf16.mxu0 %v4164_v0  ;;  %v4210_v63 = vld [vmem:[%s5198_s1 + $0x800] sm:$0xff]  }
  0xde   :  { %3824 = vmatprep.subr.bf16.mxu1 %v4165_v1  ;;  %v4211_v0 = vld [vmem:[%s5198_s1 + $0x880] sm:$0xff]   ;;  %v4212_v1 = vld [vmem:[%s5198_s1 + $0x848] sm:$0xff]  }
  0xe0   :  { %3803 = vmatpush3.bf16.msra.mxu0 %v4166_v2  ;;  %v4213_v2 = vld [vmem:[%s5198_s1 + $0x8c8] sm:$0xff]  }
  0xe1   :  { %3825 = vmatpush3.bf16.msra.mxu1 %v4167_v3  ;;  %3832 = vmatprep.subr.bf16.mxu0 %v4172_v9  ;;  %v4214_v3 = vld [vmem:[%s5198_s1 + $0x808] sm:$0xff]   ;;  %v4220_v9 = vld [vmem:[%s5198_s1 + $0x858] sm:$0xff]  }
  0xe2   :  { %3854 = vmatprep.subr.bf16.mxu1 %v4173_v11  ;;  %v4222_v11 = vld [vmem:[%s5198_s1 + $0x818] sm:$0xff]  }
  0xe3   :  { %2986 = vmatmul.mubr.bf16.vlgmr.msra.gmra.mrb[24].mxu0 %v3224_v6  ;;  %v4217_v6 = vld [vmem:[%s5198_s1 + $0x8d0] sm:$0xff]  }
  0xe4   :  { %3026 = vmatmul.mubr.bf16.vlgmr.msra.gmra.mrb[24].mxu1 %v3226_v8  ;;  %3833 = vmatpush3.bf16.msra.mxu0 %v4174_v12  ;;  %v4219_v8 = vld [vmem:[%s5198_s1 + $0x890] sm:$0xff]   ;;  %v4223_v12 = vld [vmem:[%s5198_s1 + $0x898] sm:$0xff]  }
  0xe5   :  { %3855 = vmatpush3.bf16.msra.mxu1 %v4175_v13  ;;  %3834 = vmatprep.subr.bf16.mxu0 %v4176_v14  ;;  %v4224_v13 = vld [vmem:[%s5198_s1 + $0x860] sm:$0xff]  }
  0xe6   :  { %3856 = vmatprep.subr.bf16.mxu1 %v4177_v15  ;;  %3065 = vmatprep.mubr.bf16.mxu0 %v3229_v58  ;;  %v4225_v14 = vld [vmem:[%s5198_s1 + $0x8e0] sm:$0xff]  }
  0xe7   :  { %3105 = vmatprep.mubr.bf16.mxu1 %v3231_v60  ;;  %v4226_v15 = vld [vmem:[%s5198_s1 + $0x820] sm:$0xff]  }
  0xe8   :  { %3835 = vmatpush3.bf16.msra.mxu0 %v4178_v16 }
  0xe9   :  { %3857 = vmatpush3.bf16.msra.mxu1 %v4179_v17  ;;  %3836 = vmatprep.subr.bf16.mxu0 %v4180_v18  ;;  %v4227_v17 = vld [vmem:[%s5198_s1 + $0x8a0] sm:$0xff]  }
  0xea   :  { %3858 = vmatprep.subr.bf16.mxu1 %v4181_v19 }
  0xec   :  { %3837 = vmatpush3.bf16.msra.mxu0 %v4182_v20 }
  0xed   :  { %3859 = vmatpush3.bf16.msra.mxu1 %v4183_v21  ;;  %3838 = vmatprep.subr.bf16.mxu0 %v4184_v22 }
  0xee   :  { %3860 = vmatprep.subr.bf16.mxu1 %v4185_v23  ;;  %v4228_v23 = vld [vmem:[%s5198_s1 + $0x868] sm:$0xff]  }
  0xf0   :  { %3839 = vmatpush3.bf16.msra.mxu0 %v4186_v24 }
  0xf1   :  { %3861 = vmatpush3.bf16.msra.mxu1 %v4187_v25  ;;  %3840 = vmatprep.subr.bf16.mxu0 %v4188_v26  ;;  %v4229_v25 = vld [vmem:[%s5198_s1 + $0x8e8] sm:$0xff]  }
  0xf2   :  { %3862 = vmatprep.subr.bf16.mxu1 %v4189_v27 }
  0xf4   :  { %3841 = vmatpush3.bf16.msra.mxu0 %v4190_v28  ;;  %v4230_v28 = vld [vmem:[%s5198_s1 + $0x828] sm:$0xff]  }
  0xf5   :  { %3863 = vmatpush3.bf16.msra.mxu1 %v4191_v30  ;;  %3842 = vmatprep.subr.bf16.mxu0 %v4192_v37  ;;  %v4231_v30 = vld [vmem:[%s5198_s1 + $0x8a8] sm:$0xff]   ;;  %v4236_v37 = vld [vmem:[%s5198_s1 + $0x878] sm:$0xff]  }
  0xf6   :  { %v3540_v29 = vpop.f32.mrb[0].mxu0  ;;  %3864 = vmatprep.subr.bf16.mxu1 %v4193_v39  ;;  %v4238_v39 = vld [vmem:[%s5198_s1 + $0x838] sm:$0xff]  }
  0xf7   :  { %v3562_v31 = vpop.f32.mrb[0].mxu1  ;;  %v3541_v33 = vpop.f32.mrb[1].mxu0 }
  0xf8   :  { %v3563_v34 = vpop.f32.mrb[1].mxu1  ;;  %v3542_v35 = vadd.f32 %v3541_v33, %v3540_v29  ;;  %v3543_v38 = vpop.f32.mrb[2].mxu0  ;;  %3843 = vmatpush3.bf16.msra.mxu0 %v4194_v42  ;;  %v4232_v33 = vld [vmem:[%s5198_s1 + $0x870] sm:$0xff]   ;;  %v35_v42 = vld [vmem:[%s5200_s0 + $0x88] sm:$0xff] }
  0xf9   :  { %v3564_v36 = vadd.f32 %v3563_v34, %v3562_v31  ;;  %v3565_v40 = vpop.f32.mrb[2].mxu1  ;;  %v3544_v43 = vpop.f32.mrb[3].mxu0  ;;  %3865 = vmatpush3.bf16.msra.mxu1 %v4195_v44  ;;  %3844 = vmatprep.subr.bf16.mxu0 %v4196_v47  ;;  %v4233_v34 = vld [vmem:[%s5198_s1 + $0x8f0] sm:$0xff]   ;;  %v4237_v38 = vld [vmem:[%s5198_s1 + $0x8f8] sm:$0xff]  }
  0xfa   :  { %v2508_v41 = vadd.f32 %v3542_v35, %v3199_v32  ;;  %v3566_v45 = vpop.f32.mrb[3].mxu1  ;;  %3866 = vmatprep.subr.bf16.mxu1 %v4197_v48  ;;  %v4234_v35 = vld [vmem:[%s5198_s1 + $0x830] sm:$0xff]   ;;  %v4239_v40 = vld [vmem:[%s5198_s1 + $0x8b8] sm:$0xff]  }
  0xfb   :  { %v3234_v45 = vcombine.low %v35_v42, %v35_v42 }
  0xfc   :  { %v5060_v46 = vadd.f32 %v3564_v36, %v2508_v41  ;;  %3845 = vmatpush3.bf16.msra.mxu0 %v4198_v49  ;;  %v4235_v36 = vld [vmem:[%s5198_s1 + $0x8b0] sm:$0xff]   ;;  %v34_v41 = vld [vmem:[%s5200_s0 + $0x80] sm:$0xff] }
  0xfd   :  { %3867 = vmatpush3.bf16.msra.mxu1 %v4199_v50  ;;  %3846 = vmatprep.subr.bf16.mxu0 %v4200_v51  ;;  %v3232_v43 = vcombine.low %v34_v41, %v34_v41  ;;  %v3233_v44 = vcombine.high %v34_v41, %v34_v41 }
  0xfe   :  { %3868 = vmatprep.subr.bf16.mxu1 %v4201_v52 }
 0x100   :  { %3847 = vmatpush3.bf16.msra.mxu0 %v4202_v53 }
 0x101   :  { %3869 = vmatpush3.bf16.msra.mxu1 %v4203_v54  ;;  %3876 = vmatprep.subr.bf16.mxu0 %v4208_v61 }
 0x102   :  { %3898 = vmatprep.subr.bf16.mxu1 %v4209_v62 }
 0x103   :  { %3066 = vmatmul.mubr.bf16.vlgmr.msra.gmra.mrb[28].mxu0 %v3228_v57 }
 0x104   :  { %3106 = vmatmul.mubr.bf16.vlgmr.msra.gmra.mrb[28].mxu1 %v3230_v59  ;;  %3877 = vmatpush3.bf16.msra.mxu0 %v4210_v63 }
 0x105   :  { %3899 = vmatpush3.bf16.msra.mxu1 %v4211_v0  ;;  %3878 = vmatprep.subr.bf16.mxu0 %v4212_v1 }
 0x106   :  { %3900 = vmatprep.subr.bf16.mxu1 %v4213_v2  ;;  %3145 = vmatprep.mubr.bf16.mxu0 %v3233_v44 }
 0x108   :  { %3879 = vmatpush3.bf16.msra.mxu0 %v4214_v3 }
 0x109   :  { %3901 = vmatpush3.bf16.msra.mxu1 %v4215_v4  ;;  %3880 = vmatprep.subr.bf16.mxu0 %v4216_v5 }
 0x10a   :  { %3902 = vmatprep.subr.bf16.mxu1 %v4217_v6 }
 0x10c   :  { %3881 = vmatpush3.bf16.msra.mxu0 %v4218_v7 }
 0x10d   :  { %3903 = vmatpush3.bf16.msra.mxu1 %v4219_v8  ;;  %3882 = vmatprep.subr.bf16.mxu0 %v4220_v9 }
 0x10e   :  { %3904 = vmatprep.subr.bf16.mxu1 %v4221_v10 }
 0x110   :  { %3883 = vmatpush3.bf16.msra.mxu0 %v4222_v11 }
 0x111   :  { %3905 = vmatpush3.bf16.msra.mxu1 %v4223_v12  ;;  %3884 = vmatprep.subr.bf16.mxu0 %v4224_v13 }
 0x112   :  { %3906 = vmatprep.subr.bf16.mxu1 %v4225_v14 }
 0x114   :  { %3885 = vmatpush3.bf16.msra.mxu0 %v4226_v15 }
 0x115   :  { %3907 = vmatpush3.bf16.msra.mxu1 %v4227_v17  ;;  %3886 = vmatprep.subr.bf16.mxu0 %v4228_v23 }
 0x116   :  { %v3584_v16 = vpop.f32.mrb[4].mxu0  ;;  %3908 = vmatprep.subr.bf16.mxu1 %v4229_v25 }
 0x117   :  { %v3606_v18 = vpop.f32.mrb[4].mxu1  ;;  %v3585_v19 = vpop.f32.mrb[5].mxu0 }
 0x118   :  { %v3607_v20 = vpop.f32.mrb[5].mxu1  ;;  %v3586_v21 = vadd.f32 %v3585_v19, %v3584_v16  ;;  %v3587_v24 = vpop.f32.mrb[6].mxu0  ;;  %3887 = vmatpush3.bf16.msra.mxu0 %v4230_v28 }
 0x119   :  { %v3608_v22 = vadd.f32 %v3607_v20, %v3606_v18  ;;  %v3609_v26 = vpop.f32.mrb[6].mxu1  ;;  %v3588_v29 = vpop.f32.mrb[7].mxu0  ;;  %3909 = vmatpush3.bf16.msra.mxu1 %v4231_v30  ;;  %3888 = vmatprep.subr.bf16.mxu0 %v4232_v33 }
 0x11a   :  { %v2588_v27 = vadd.f32 %v3586_v21, %v5060_v46  ;;  %v3610_v31 = vpop.f32.mrb[7].mxu1  ;;  %3910 = vmatprep.subr.bf16.mxu1 %v4233_v34  ;;  %v3235_v46 = vcombine.high %v35_v42, %v35_v42 }
 0x11c   :  { %v2628_v32 = vadd.f32 %v3608_v22, %v2588_v27  ;;  %3889 = vmatpush3.bf16.msra.mxu0 %v4234_v35  ;;  %3185 = vmatprep.mubr.bf16.mxu1 %v3235_v46 }
 0x11d   :  { %3911 = vmatpush3.bf16.msra.mxu1 %v4235_v36  ;;  %3890 = vmatprep.subr.bf16.mxu0 %v4236_v37 }
 0x11e   :  { %3912 = vmatprep.subr.bf16.mxu1 %v4237_v38 }
 0x120   :  { %3891 = vmatpush3.bf16.msra.mxu0 %v4238_v39 }
 0x121   :  { %3913 = vmatpush3.bf16.msra.mxu1 %v4239_v40 }
 0x123   :  { %3146 = vmatmul.mubr.bf16.vlgmr.msra.gmra.mrb[32].mxu0 %v3232_v43 }
 0x124   :  { %3186 = vmatmul.mubr.bf16.vlgmr.msra.gmra.mrb[32].mxu1 %v3234_v45 }
 0x136   :  { %v3628_v47 = vpop.f32.mrb[8].mxu0 }
 0x137   :  { %v3650_v48 = vpop.f32.mrb[8].mxu1  ;;  %v3629_v49 = vpop.f32.mrb[9].mxu0 }
 0x138   :  { %v3630_v50 = vadd.f32 %v3629_v49, %v3628_v47  ;;  %v3651_v51 = vpop.f32.mrb[9].mxu1  ;;  %v3631_v52 = vpop.f32.mrb[10].mxu0 }
 0x139   :  { %v3652_v53 = vadd.f32 %v3651_v51, %v3650_v48  ;;  %v3653_v54 = vpop.f32.mrb[10].mxu1  ;;  %v3632_v55 = vpop.f32.mrb[11].mxu0 }
 0x13a   :  { %v2668_v56 = vadd.f32 %v3630_v50, %v2628_v32  ;;  %v3654_v57 = vpop.f32.mrb[11].mxu1 }
 0x13c   :  { %v2708_v58 = vadd.f32 %v3652_v53, %v2668_v56 }
 0x156   :  { %v3672_v59 = vpop.f32.mrb[12].mxu0 }
 0x157   :  { %v3694_v60 = vpop.f32.mrb[12].mxu1  ;;  %v3673_v61 = vpop.f32.mrb[13].mxu0 }
 0x158   :  { %v3674_v62 = vadd.f32 %v3673_v61, %v3672_v59  ;;  %v3695_v63 = vpop.f32.mrb[13].mxu1  ;;  %v3675_v0 = vpop.f32.mrb[14].mxu0 }
 0x159   :  { %v3696_v1 = vadd.f32 %v3695_v63, %v3694_v60  ;;  %v3697_v2 = vpop.f32.mrb[14].mxu1  ;;  %v3676_v3 = vpop.f32.mrb[15].mxu0 }
 0x15a   :  { %v2748_v4 = vadd.f32 %v3674_v62, %v2708_v58  ;;  %v3698_v5 = vpop.f32.mrb[15].mxu1 }
 0x15c   :  { %v2788_v6 = vadd.f32 %v3696_v1, %v2748_v4 }
 0x176   :  { %v3716_v7 = vpop.f32.mrb[16].mxu0 }
 0x177   :  { %v3738_v8 = vpop.f32.mrb[16].mxu1  ;;  %v3717_v9 = vpop.f32.mrb[17].mxu0 }
 0x178   :  { %v3739_v10 = vpop.f32.mrb[17].mxu1  ;;  %v3718_v11 = vadd.f32 %v3717_v9, %v3716_v7  ;;  %v3719_v13 = vpop.f32.mrb[18].mxu0 }
 0x179   :  { %v3740_v12 = vadd.f32 %v3739_v10, %v3738_v8  ;;  %v3741_v14 = vpop.f32.mrb[18].mxu1  ;;  %v3720_v15 = vpop.f32.mrb[19].mxu0 }
 0x17a   :  { %v3742_v16 = vpop.f32.mrb[19].mxu1  ;;  %v2828_v17 = vadd.f32 %v3718_v11, %v2788_v6 }
 0x17c   :  { %v2868_v18 = vadd.f32 %v3740_v12, %v2828_v17 }
 0x196   :  { %v3760_v19 = vpop.f32.mrb[20].mxu0 }
 0x197   :  { %v3782_v20 = vpop.f32.mrb[20].mxu1  ;;  %v3761_v21 = vpop.f32.mrb[21].mxu0 }
 0x198   :  { %v3762_v22 = vadd.f32 %v3761_v21, %v3760_v19  ;;  %v3783_v23 = vpop.f32.mrb[21].mxu1  ;;  %v3763_v24 = vpop.f32.mrb[22].mxu0 }
 0x199   :  { %v3784_v25 = vadd.f32 %v3783_v23, %v3782_v20  ;;  %v3785_v26 = vpop.f32.mrb[22].mxu1  ;;  %v3764_v27 = vpop.f32.mrb[23].mxu0 }
 0x19a   :  { %v2908_v28 = vadd.f32 %v3762_v22, %v2868_v18  ;;  %v3786_v29 = vpop.f32.mrb[23].mxu1 }
 0x19c   :  { %v2948_v30 = vadd.f32 %v3784_v25, %v2908_v28 }
 0x1b6   :  { %v3804_v31 = vpop.f32.mrb[24].mxu0 }
 0x1b7   :  { %v3826_v32 = vpop.f32.mrb[24].mxu1  ;;  %v3805_v33 = vpop.f32.mrb[25].mxu0 }
 0x1b8   :  { %v3806_v34 = vadd.f32 %v3805_v33, %v3804_v31  ;;  %v3827_v35 = vpop.f32.mrb[25].mxu1  ;;  %v3807_v36 = vpop.f32.mrb[26].mxu0 }
 0x1b9   :  { %v3828_v37 = vadd.f32 %v3827_v35, %v3826_v32  ;;  %v3829_v38 = vpop.f32.mrb[26].mxu1  ;;  %v3808_v39 = vpop.f32.mrb[27].mxu0 }
 0x1ba   :  { %v2988_v40 = vadd.f32 %v3806_v34, %v2948_v30  ;;  %v3830_v41 = vpop.f32.mrb[27].mxu1 }
 0x1bc   :  { %v3028_v42 = vadd.f32 %v3828_v37, %v2988_v40 }
 0x1d6   :  { %v3848_v43 = vpop.f32.mrb[28].mxu0 }
 0x1d7   :  { %v3870_v44 = vpop.f32.mrb[28].mxu1  ;;  %v3849_v45 = vpop.f32.mrb[29].mxu0 }
 0x1d8   :  { %v3850_v46 = vadd.f32 %v3849_v45, %v3848_v43  ;;  %v3871_v47 = vpop.f32.mrb[29].mxu1  ;;  %v3851_v48 = vpop.f32.mrb[30].mxu0 }
 0x1d9   :  { %v3872_v49 = vadd.f32 %v3871_v47, %v3870_v44  ;;  %v3873_v50 = vpop.f32.mrb[30].mxu1  ;;  %v3852_v51 = vpop.f32.mrb[31].mxu0 }
 0x1da   :  { %v3068_v52 = vadd.f32 %v3850_v46, %v3028_v42  ;;  %v3874_v53 = vpop.f32.mrb[31].mxu1 }
 0x1dc   :  { %v3108_v54 = vadd.f32 %v3872_v49, %v3068_v52 }
 0x1f6   :  { %v3892_v55 = vpop.f32.mrb[32].mxu0 }
 0x1f7   :  { %v3914_v56 = vpop.f32.mrb[32].mxu1  ;;  %v3893_v57 = vpop.f32.mrb[33].mxu0 }
 0x1f8   :  { %v3894_v58 = vadd.f32 %v3893_v57, %v3892_v55  ;;  %v3915_v59 = vpop.f32.mrb[33].mxu1  ;;  %v3895_v60 = vpop.f32.mrb[34].mxu0 }
 0x1f9   :  { %v3916_v61 = vadd.f32 %v3915_v59, %v3914_v56  ;;  %v3917_v62 = vpop.f32.mrb[34].mxu1  ;;  %v3896_v63 = vpop.f32.mrb[35].mxu0 }
 0x1fa   :  { %v3148_v0 = vadd.f32 %v3894_v58, %v3108_v54  ;;  %v3918_v1 = vpop.f32.mrb[35].mxu1 }
 0x1fc   :  { %v3188_v2 = vadd.f32 %v3916_v61, %v3148_v0 }
 0x1fe   :  { %4244 = vtanh.f32 %v3188_v2 }
 0x208   :  { %v4245_v3 = vpop.eup %4244 }
 0x209   :  { %3194 = vst [vmem:[%s5202_s4] sm:$0xff] %v4245_v3 }

</bundles_post_ra>
